<compile_context>
chip_gen: v7x
topology: tpu7x:2x2x1
jax: 0.10.0
libtpu: 0.0.40
codegen_flags: <defaults>
</compile_context>

<pallas_src>
import functools

import numpy as np
import jax
import jax.numpy as jnp
from jax.experimental import pallas as pl
from jax.experimental.pallas import tpu as pltpu

_BN_EPS = 1e-5
_DIRS = [(di, dj) for di in (-1, 0, 1) for dj in (-1, 0, 1)]   # tap index 4 == centre


# ----------------------------------------------------------------------------
# Host-side constant builders (numpy): validity masks, maxpool stride-2 lane
# selection, shift+mask matrices for the 4x4 stage, bilinear upsample operator.
# ----------------------------------------------------------------------------
def _conv_mask(n, h, w):
    """(9, 1, N*h*w) 0/1 masks: tap (di,dj) of flattened position p stays inside its image."""
    p = np.arange(n * h * w)
    j = p % w
    i = (p // w) % h
    m = np.stack([(((i + di) >= 0) & ((i + di) < h) & ((j + dj) >= 0) & ((j + dj) < w))
                  for (di, dj) in _DIRS]).astype(np.float32)
    return jnp.asarray(m[:, None, :])


def _pool_select(n, h, w):
    """(N*h*w, N*ho*wo) 0/1 matrix selecting the stride-2 window centres of MaxPool2d(3,2,1)."""
    ho, wo = (h - 1) // 2 + 1, (w - 1) // 2 + 1
    s = np.zeros((n * h * w, n * ho * wo), np.float32)
    for b in range(n):
        for io in range(ho):
            for jo in range(wo):
                s[b * h * w + (2 * io) * w + 2 * jo, b * ho * wo + io * wo + jo] = 1.0
    return jnp.asarray(s)


def _shift_mask_mats(n, h, w):
    """(9, M, M) matrices with the mask baked in: tap_t = a2 @ S_t (M = N*h*w, small stage only)."""
    m = n * h * w
    p = np.arange(m)
    j = p % w
    i = (p // w) % h
    mats = np.zeros((9, m, m), np.float32)
    for t, (di, dj) in enumerate(_DIRS):
        valid = ((i + di) >= 0) & ((i + di) < h) & ((j + dj) >= 0) & ((j + dj) < w)
        src = p + di * w + dj
        mats[t, src[valid], p[valid]] = 1.0
    return jnp.asarray(mats)


def _bilinear_matrix(out_size, in_size):
    # UpsamplingBilinear2d == bilinear with align_corners=True.
    if in_size == 1:
        return np.ones((out_size, 1), np.float32)
    if out_size == 1:
        m = np.zeros((1, in_size), np.float32)
        m[0, 0] = 1.0
        return m
    idx = np.arange(out_size, dtype=np.float64)
    src = idx * (in_size - 1) / (out_size - 1)
    lo = np.minimum(np.floor(src).astype(np.int64), in_size - 2)
    fr = src - lo
    m = np.zeros((out_size, in_size), np.float32)
    m[np.arange(out_size), lo] += (1.0 - fr).astype(np.float32)
    m[np.arange(out_size), lo + 1] += fr.astype(np.float32)
    return m


def _upsample_matrix_T(n, in_hw, out_hw):
    # (N*h*w, N*H*W) right-multiply operator: upsample(x) = x_(C, N*h*w) @ M^T.
    # TODO(synk): block-diagonal kron kept (tiny at N=2); switch to a per-image loop if N/H/W scale.
    m = np.kron(np.eye(n, dtype=np.float32),
                np.kron(_bilinear_matrix(out_hw[0], in_hw[0]),
                        _bilinear_matrix(out_hw[1], in_hw[1])))
    return jnp.asarray(m.T)


# ----------------------------------------------------------------------------
# The single fused kernel.
# Block index (leading axis of the stacked weights):
#   0 first, 1-2 trunk, 3 down1, 4 skip1, 5-6 middle, 7 up1, 8 last.
# ----------------------------------------------------------------------------
def _make_kernel(c, c4p, w_full, m_full, w_half, m_half):
    f32 = jnp.float32

    def kernel(x_ref, bn_ref, w1_ref, w2_ref, w3_ref,
               mbn_ref, mw1_ref, mw2_ref,
               cm1_ref, cm2_ref, sel1_ref, sel2_ref, shift3_ref,
               up1_ref, up2_ref, o_ref):

        def bn_affine(t, g, b):
            # one-pass batch stats (biased variance) -> per-channel scale/offset
            inv = 1.0 / t.shape[1]
            mu = jnp.sum(t, axis=1, keepdims=True) * inv
            ex2 = jnp.sum(t * t, axis=1, keepdims=True) * inv
            var = jnp.maximum(ex2 - mu * mu, 0.0)
            sc = jax.lax.rsqrt(var + _BN_EPS) * g
            return sc, b - mu * sc

        def bn_relu(t, g, b):
            sc, of = bn_affine(t, g, b)
            return jnp.maximum(t * sc + of, 0.0)

        def taps_roll(a2, t, width, m, cm_ref):
            # Per-position BN/ReLU/1x1 commute with the spatial shift, so rolling the
            # once-computed a2 and masking the padded positions reproduces the 3x3 conv operand.
            di, dj = _DIRS[t]
            shift = (-(di * width + dj)) % m
            return pltpu.roll(a2, shift=shift, axis=1) * cm_ref[t]

        def rb(x, k, taps):
            # pre-activation bottleneck ResidualBlock on a (C, M) slab, fully in-register/VMEM
            bn = bn_ref[k]                                              # (R, 6)
            sc1, of1 = bn_affine(x, bn[:c, 0:1], bn[:c, 1:2])
            a1 = jnp.maximum(x * sc1 + of1, 0.0)
            h1 = jnp.dot(w1_ref[k], a1, preferred_element_type=f32)     # (C4p, M)
            sc2, of2 = bn_affine(h1, bn[:c4p, 2:3], bn[:c4p, 3:4])
            a2 = jnp.maximum(h1 * sc2 + of2, 0.0)
            h2 = jnp.dot(w2_ref[9 * k + 4], a2, preferred_element_type=f32)
            for t in range(9):                                          # 3x3 conv, taps generated in-kernel
                if t == 4:
                    continue
                h2 = h2 + jnp.dot(w2_ref[9 * k + t], taps(a2, t),
                                  preferred_element_type=f32)
            sc3, of3 = bn_affine(h2, bn[:c4p, 4:5], bn[:c4p, 5:6])
            a3 = jnp.maximum(h2 * sc3 + of3, 0.0)
            return jnp.dot(w3_ref[k], a3, preferred_element_type=f32) + x

        def maxpool(x, width, m, cm_ref, sel_ref):
            # MaxPool2d(3, 2, 1): masked max over 8 rolled copies + stride-2 lane selection matmul.
            y = x
            for t, (di, dj) in enumerate(_DIRS):
                if di == 0 and dj == 0:
                    continue
                shift = (-(di * width + dj)) % m
                rolled = pltpu.roll(x, shift=shift, axis=1)
                mk = cm_ref[t]
                y = jnp.maximum(y, rolled * mk + (mk - 1.0) * 1e30)
            return jnp.dot(y, sel_ref[...], preferred_element_type=f32)

        taps1 = lambda a2, t: taps_roll(a2, t, w_full, m_full, cm1_ref)
        taps2 = lambda a2, t: taps_roll(a2, t, w_half, m_half, cm2_ref)
        taps3 = lambda a2, t: jnp.dot(a2, shift3_ref[t], preferred_element_type=f32)

        x = x_ref[...]                                          # (C, M1)
        x1 = rb(x, 0, taps1)                                    # first_residual_blocks
        trunk = rb(rb(x1, 1, taps1), 2, taps1)                  # trunk_branches
        p1 = maxpool(x1, w_full, m_full, cm1_ref, sel1_ref)     # mpool1 -> (C, M2)
        d1 = rb(p1, 3, taps2)                                   # down_residual_blocks1
        s1 = rb(d1, 4, taps2)                                   # skip1_connection_residual_block
        p2 = maxpool(d1, w_half, m_half, cm2_ref, sel2_ref)     # mpool2 -> (C, M3)
        mid = rb(rb(p2, 5, taps3), 6, taps3)                    # middle_2r_blocks
        u = jnp.dot(mid, up1_ref[...], preferred_element_type=f32) + d1 + s1   # interp1 + skips
        u1 = rb(u, 7, taps2)                                    # up_residual_blocks1
        xi = jnp.dot(u1, up2_ref[...], preferred_element_type=f32) + trunk     # interp2 + trunk
        mbn = mbn_ref[...]                                      # conv1_1_blocks (soft mask)
        hm = jnp.dot(mw1_ref[...], bn_relu(xi, mbn[:, 0:1], mbn[:, 1:2]),
                     preferred_element_type=f32)
        hm = jnp.dot(mw2_ref[...], bn_relu(hm, mbn[:, 2:3], mbn[:, 3:4]),
                     preferred_element_type=f32)
        att = 1.0 + jax.nn.sigmoid(hm)
        o_ref[...] = rb(att * trunk, 8, taps1)                  # last_blocks

    return kernel


# ----------------------------------------------------------------------------
# parameters (deterministic, synthetic) -- bottleneck channels zero-padded to 8 sublanes
# ----------------------------------------------------------------------------
def init_attention_module_stage1(key, channels):
    c = channels
    c4 = max(c // 4, 1)
    c4p = max(8, ((c4 + 7) // 8) * 8)
    r = max(c, c4p)
    keys = jax.random.split(key, 11)
    bn_l, w1_l, w2_l, w3_l = [], [], [], []
    for i in range(9):
        k1, k2, k3 = jax.random.split(keys[i], 3)
        bn_l.append(jnp.tile(jnp.asarray([[1., 0., 1., 0., 1., 0.]], jnp.float32), (r, 1)))
        w1 = jax.random.normal(k1, (c4, c), jnp.float32) / np.sqrt(c)          # 1x1  C -> C/4
        w2 = jax.random.normal(k2, (9, c4, c4), jnp.float32) / np.sqrt(9 * c4)  # 3x3 taps (tap = _DIRS order)
        w3 = jax.random.normal(k3, (c, c4), jnp.float32) / np.sqrt(c4)          # 1x1  C/4 -> C
        w1_l.append(jnp.zeros((c4p, c), jnp.float32).at[:c4].set(w1))
        w2_l.append(jnp.zeros((9, c4p, c4p), jnp.float32).at[:, :c4, :c4].set(w2))
        w3_l.append(jnp.zeros((c, c4p), jnp.float32).at[:, :c4].set(w3))
    return {
        "bn": jnp.stack(bn_l),                              # (9, R, 6)  [g1 b1 g2 b2 g3 b3]
        "w1": jnp.stack(w1_l),                              # (9, C4p, C)
        "w2": jnp.stack(w2_l).reshape(9 * 9, c4p, c4p),     # (81, C4p, C4p), index = 9*block + tap
        "w3": jnp.stack(w3_l),                              # (9, C, C4p)
        "mbn": jnp.tile(jnp.asarray([[1., 0., 1., 0.]], jnp.float32), (c, 1)),
        "mw1": jax.random.normal(keys[9], (c, c), jnp.float32) / np.sqrt(c),
        "mw2": jax.random.normal(keys[10], (c, c), jnp.float32) / np.sqrt(c),
    }


# ----------------------------------------------------------------------------
# AttentionModule_stage1.forward
# ----------------------------------------------------------------------------
def attention_module_stage1(x_nchw, params, size1=(16, 16), size2=(8, 8)):
    n, c, h, w = x_nchw.shape
    assert (h, w) == tuple(size1), "input spatial size must equal size1"
    hp1, wp1 = (h - 1) // 2 + 1, (w - 1) // 2 + 1
    assert (hp1, wp1) == tuple(size2), "size2 must equal the mpool1 output size"
    hp2, wp2 = (hp1 - 1) // 2 + 1, (wp1 - 1) // 2 + 1
    m1, m2 = n * h * w, n * hp1 * wp1
    assert m1 % 128 == 0 and m2 % 128 == 0, "lane-roll stages need N*H*W % 128 == 0"
    c4p = params["w1"].shape[1]

    # channels on sublanes, flattened (N, H, W) on lanes
    # TODO(synk): the NCHW <-> (C, N*H*W) transposes are XLA-side layout glue, not Pallas kernels.
    x_cm = jnp.transpose(x_nchw.astype(jnp.float32), (1, 0, 2, 3)).reshape(c, m1)

    cm1 = _conv_mask(n, h, w)
    cm2 = _conv_mask(n, hp1, wp1)
    sel1 = _pool_select(n, h, w)
    sel2 = _pool_select(n, hp1, wp1)
    shift3 = _shift_mask_mats(n, hp2, wp2)
    up1 = _upsample_matrix_T(n, (hp2, wp2), size2)
    up2 = _upsample_matrix_T(n, size2, size1)

    kernel = _make_kernel(c, c4p, w, m1, wp1, m2)
    out_cm = pl.pallas_call(
        kernel,
        out_shape=jax.ShapeDtypeStruct((c, m1), jnp.float32),
        in_specs=[pl.BlockSpec(memory_space=pltpu.MemorySpace.VMEM)] * 15,
        out_specs=pl.BlockSpec(memory_space=pltpu.MemorySpace.VMEM),
        compiler_params=pltpu.CompilerParams(vmem_limit_bytes=32 * 1024 * 1024),
    )(x_cm, params["bn"], params["w1"], params["w2"], params["w3"],
      params["mbn"], params["mw1"], params["mw2"],
      cm1, cm2, sel1, sel2, shift3, up1, up2)

    return jnp.transpose(out_cm.reshape(c, n, h, w), (1, 0, 2, 3))   # back to NCHW


if __name__ == "__main__":
    key = jax.random.PRNGKey(0)
    kx, kp = jax.random.split(key)
    N, C, H, W = 2, 8, 16, 16
    x = jax.random.normal(kx, (N, C, H, W), jnp.float32)
    params = init_attention_module_stage1(kp, C)

    fwd = jax.jit(functools.partial(attention_module_stage1,
                                    size1=(H, W), size2=(H // 2, W // 2)))
    out = fwd(x, params)
    jax.block_until_ready(out)
    assert out.shape == (N, C, H, W) and out.dtype == jnp.float32
    assert bool(jnp.all(jnp.isfinite(out)))
    print("KERNEL_OK")
</pallas_src>

<mosaic_0001>
module attributes {stable_mosaic.version = 11 : i64} {
  func.func @kernel(%arg0: memref<8x512xf32, #tpu.memory_space<vmem>>, %arg1: memref<9x8x6xf32, #tpu.memory_space<vmem>>, %arg2: memref<9x8x8xf32, #tpu.memory_space<vmem>>, %arg3: memref<81x8x8xf32, #tpu.memory_space<vmem>>, %arg4: memref<9x8x8xf32, #tpu.memory_space<vmem>>, %arg5: memref<8x4xf32, #tpu.memory_space<vmem>>, %arg6: memref<8x8xf32, #tpu.memory_space<vmem>>, %arg7: memref<8x8xf32, #tpu.memory_space<vmem>>, %arg8: memref<9x1x512xf32, #tpu.memory_space<vmem>>, %arg9: memref<9x1x128xf32, #tpu.memory_space<vmem>>, %arg10: memref<512x128xf32, #tpu.memory_space<vmem>>, %arg11: memref<128x32xf32, #tpu.memory_space<vmem>>, %arg12: memref<9x32x32xf32, #tpu.memory_space<vmem>>, %arg13: memref<32x128xf32, #tpu.memory_space<vmem>>, %arg14: memref<128x512xf32, #tpu.memory_space<vmem>>, %arg15: memref<8x512xf32, #tpu.memory_space<vmem>>) attributes {dimension_semantics = [], scalar_prefetch = 0 : i64, scratch_operands = 0 : i64, tpu.core_type = #tpu.core_type<tc>} {
    %c0 = arith.constant 0 : index
    %c0_0 = arith.constant 0 : index
    %0 = vector.load %arg0[%c0, %c0_0] : memref<8x512xf32, #tpu.memory_space<vmem>>, vector<8x512xf32>
    %c0_1 = arith.constant 0 : index
    %c0_2 = arith.constant 0 : index
    %c0_3 = arith.constant 0 : index
    %1 = vector.load %arg1[%c0_1, %c0_2, %c0_3] : memref<9x8x6xf32, #tpu.memory_space<vmem>>, vector<1x8x6xf32>
    %2 = vector.shape_cast %1 : vector<1x8x6xf32> to vector<8x6xf32>
    %3 = vector.extract_strided_slice %2 {offsets = [0, 0], sizes = [8, 1], strides = [1, 1]} : vector<8x6xf32> to vector<8x1xf32>
    %4 = vector.extract_strided_slice %2 {offsets = [0, 1], sizes = [8, 1], strides = [1, 1]} : vector<8x6xf32> to vector<8x1xf32>
    %cst = arith.constant dense<0.000000e+00> : vector<8xf32>
    %5 = vector.multi_reduction <add>, %0, %cst [1] : vector<8x512xf32> to vector<8xf32>
    %6 = vector.shape_cast %5 : vector<8xf32> to vector<8x1xf32>
    %cst_4 = arith.constant 0.001953125 : f32
    %7 = vector.broadcast %cst_4 : f32 to vector<8x1xf32>
    %8 = arith.mulf %6, %7 : vector<8x1xf32>
    %9 = arith.mulf %0, %0 : vector<8x512xf32>
    %cst_5 = arith.constant dense<0.000000e+00> : vector<8xf32>
    %10 = vector.multi_reduction <add>, %9, %cst_5 [1] : vector<8x512xf32> to vector<8xf32>
    %11 = vector.shape_cast %10 : vector<8xf32> to vector<8x1xf32>
    %cst_6 = arith.constant 0.001953125 : f32
    %12 = vector.broadcast %cst_6 : f32 to vector<8x1xf32>
    %13 = arith.mulf %11, %12 : vector<8x1xf32>
    %14 = arith.mulf %8, %8 : vector<8x1xf32>
    %15 = arith.subf %13, %14 : vector<8x1xf32>
    %cst_7 = arith.constant 0.000000e+00 : f32
    %16 = vector.broadcast %cst_7 : f32 to vector<8x1xf32>
    %17 = arith.maximumf %15, %16 : vector<8x1xf32>
    %cst_8 = arith.constant 9.99999974E-6 : f32
    %18 = vector.broadcast %cst_8 : f32 to vector<8x1xf32>
    %19 = arith.addf %17, %18 : vector<8x1xf32>
    %20 = math.rsqrt %19 : vector<8x1xf32>
    %21 = arith.mulf %20, %3 : vector<8x1xf32>
    %22 = arith.mulf %8, %21 : vector<8x1xf32>
    %23 = arith.subf %4, %22 : vector<8x1xf32>
    %24 = vector.broadcast %21 : vector<8x1xf32> to vector<8x512xf32>
    %25 = arith.mulf %0, %24 : vector<8x512xf32>
    %26 = vector.broadcast %23 : vector<8x1xf32> to vector<8x512xf32>
    %27 = arith.addf %25, %26 : vector<8x512xf32>
    %cst_9 = arith.constant 0.000000e+00 : f32
    %28 = vector.broadcast %cst_9 : f32 to vector<8x512xf32>
    %29 = arith.maximumf %27, %28 : vector<8x512xf32>
    %c0_10 = arith.constant 0 : index
    %c0_11 = arith.constant 0 : index
    %c0_12 = arith.constant 0 : index
    %30 = vector.load %arg2[%c0_10, %c0_11, %c0_12] : memref<9x8x8xf32, #tpu.memory_space<vmem>>, vector<1x8x8xf32>
    %31 = vector.shape_cast %30 : vector<1x8x8xf32> to vector<8x8xf32>
    %cst_13 = arith.constant dense<0.000000e+00> : vector<8x512xf32>
    %32 = tpu.matmul %31, %29, %cst_13 {dimension_numbers = #tpu.dot_dimension_numbers<[1], [0], [0], [1], [0, 0, 1, 1], [], []>} : vector<8x8xf32>, vector<8x512xf32>, vector<8x512xf32> -> vector<8x512xf32>
    %33 = vector.extract_strided_slice %2 {offsets = [0, 2], sizes = [8, 1], strides = [1, 1]} : vector<8x6xf32> to vector<8x1xf32>
    %34 = vector.extract_strided_slice %2 {offsets = [0, 3], sizes = [8, 1], strides = [1, 1]} : vector<8x6xf32> to vector<8x1xf32>
    %cst_14 = arith.constant dense<0.000000e+00> : vector<8xf32>
    %35 = vector.multi_reduction <add>, %32, %cst_14 [1] : vector<8x512xf32> to vector<8xf32>
    %36 = vector.shape_cast %35 : vector<8xf32> to vector<8x1xf32>
    %cst_15 = arith.constant 0.001953125 : f32
    %37 = vector.broadcast %cst_15 : f32 to vector<8x1xf32>
    %38 = arith.mulf %36, %37 : vector<8x1xf32>
    %39 = arith.mulf %32, %32 : vector<8x512xf32>
    %cst_16 = arith.constant dense<0.000000e+00> : vector<8xf32>
    %40 = vector.multi_reduction <add>, %39, %cst_16 [1] : vector<8x512xf32> to vector<8xf32>
    %41 = vector.shape_cast %40 : vector<8xf32> to vector<8x1xf32>
    %cst_17 = arith.constant 0.001953125 : f32
    %42 = vector.broadcast %cst_17 : f32 to vector<8x1xf32>
    %43 = arith.mulf %41, %42 : vector<8x1xf32>
    %44 = arith.mulf %38, %38 : vector<8x1xf32>
    %45 = arith.subf %43, %44 : vector<8x1xf32>
    %cst_18 = arith.constant 0.000000e+00 : f32
    %46 = vector.broadcast %cst_18 : f32 to vector<8x1xf32>
    %47 = arith.maximumf %45, %46 : vector<8x1xf32>
    %cst_19 = arith.constant 9.99999974E-6 : f32
    %48 = vector.broadcast %cst_19 : f32 to vector<8x1xf32>
    %49 = arith.addf %47, %48 : vector<8x1xf32>
    %50 = math.rsqrt %49 : vector<8x1xf32>
    %51 = arith.mulf %50, %33 : vector<8x1xf32>
    %52 = arith.mulf %38, %51 : vector<8x1xf32>
    %53 = arith.subf %34, %52 : vector<8x1xf32>
    %54 = vector.broadcast %51 : vector<8x1xf32> to vector<8x512xf32>
    %55 = arith.mulf %32, %54 : vector<8x512xf32>
    %56 = vector.broadcast %53 : vector<8x1xf32> to vector<8x512xf32>
    %57 = arith.addf %55, %56 : vector<8x512xf32>
    %cst_20 = arith.constant 0.000000e+00 : f32
    %58 = vector.broadcast %cst_20 : f32 to vector<8x512xf32>
    %59 = arith.maximumf %57, %58 : vector<8x512xf32>
    %c4 = arith.constant 4 : index
    %c0_21 = arith.constant 0 : index
    %c0_22 = arith.constant 0 : index
    %60 = vector.load %arg3[%c4, %c0_21, %c0_22] : memref<81x8x8xf32, #tpu.memory_space<vmem>>, vector<1x8x8xf32>
    %61 = vector.shape_cast %60 : vector<1x8x8xf32> to vector<8x8xf32>
    %cst_23 = arith.constant dense<0.000000e+00> : vector<8x512xf32>
    %62 = tpu.matmul %61, %59, %cst_23 {dimension_numbers = #tpu.dot_dimension_numbers<[1], [0], [0], [1], [0, 0, 1, 1], [], []>} : vector<8x8xf32>, vector<8x512xf32>, vector<8x512xf32> -> vector<8x512xf32>
    %c0_24 = arith.constant 0 : index
    %c0_25 = arith.constant 0 : index
    %c0_26 = arith.constant 0 : index
    %63 = vector.load %arg3[%c0_24, %c0_25, %c0_26] : memref<81x8x8xf32, #tpu.memory_space<vmem>>, vector<1x8x8xf32>
    %64 = vector.shape_cast %63 : vector<1x8x8xf32> to vector<8x8xf32>
    %c17_i32 = arith.constant 17 : i32
    %65 = tpu.dynamic_rotate %59 by %c17_i32 dim 1 : vector<8x512xf32>, i32 -> vector<8x512xf32>
    %c0_27 = arith.constant 0 : index
    %c0_28 = arith.constant 0 : index
    %c0_29 = arith.constant 0 : index
    %66 = vector.load %arg8[%c0_27, %c0_28, %c0_29] : memref<9x1x512xf32, #tpu.memory_space<vmem>>, vector<1x1x512xf32>
    %67 = vector.shape_cast %66 : vector<1x1x512xf32> to vector<1x512xf32>
    %68 = vector.broadcast %67 : vector<1x512xf32> to vector<8x512xf32>
    %69 = arith.mulf %65, %68 : vector<8x512xf32>
    %cst_30 = arith.constant dense<0.000000e+00> : vector<8x512xf32>
    %70 = tpu.matmul %64, %69, %cst_30 {dimension_numbers = #tpu.dot_dimension_numbers<[1], [0], [0], [1], [0, 0, 1, 1], [], []>} : vector<8x8xf32>, vector<8x512xf32>, vector<8x512xf32> -> vector<8x512xf32>
    %71 = arith.addf %62, %70 : vector<8x512xf32>
    %c1 = arith.constant 1 : index
    %c0_31 = arith.constant 0 : index
    %c0_32 = arith.constant 0 : index
    %72 = vector.load %arg3[%c1, %c0_31, %c0_32] : memref<81x8x8xf32, #tpu.memory_space<vmem>>, vector<1x8x8xf32>
    %73 = vector.shape_cast %72 : vector<1x8x8xf32> to vector<8x8xf32>
    %c16_i32 = arith.constant 16 : i32
    %74 = tpu.dynamic_rotate %59 by %c16_i32 dim 1 : vector<8x512xf32>, i32 -> vector<8x512xf32>
    %c1_33 = arith.constant 1 : index
    %c0_34 = arith.constant 0 : index
    %c0_35 = arith.constant 0 : index
    %75 = vector.load %arg8[%c1_33, %c0_34, %c0_35] : memref<9x1x512xf32, #tpu.memory_space<vmem>>, vector<1x1x512xf32>
    %76 = vector.shape_cast %75 : vector<1x1x512xf32> to vector<1x512xf32>
    %77 = vector.broadcast %76 : vector<1x512xf32> to vector<8x512xf32>
    %78 = arith.mulf %74, %77 : vector<8x512xf32>
    %cst_36 = arith.constant dense<0.000000e+00> : vector<8x512xf32>
    %79 = tpu.matmul %73, %78, %cst_36 {dimension_numbers = #tpu.dot_dimension_numbers<[1], [0], [0], [1], [0, 0, 1, 1], [], []>} : vector<8x8xf32>, vector<8x512xf32>, vector<8x512xf32> -> vector<8x512xf32>
    %80 = arith.addf %71, %79 : vector<8x512xf32>
    %c2 = arith.constant 2 : index
    %c0_37 = arith.constant 0 : index
    %c0_38 = arith.constant 0 : index
    %81 = vector.load %arg3[%c2, %c0_37, %c0_38] : memref<81x8x8xf32, #tpu.memory_space<vmem>>, vector<1x8x8xf32>
    %82 = vector.shape_cast %81 : vector<1x8x8xf32> to vector<8x8xf32>
    %c15_i32 = arith.constant 15 : i32
    %83 = tpu.dynamic_rotate %59 by %c15_i32 dim 1 : vector<8x512xf32>, i32 -> vector<8x512xf32>
    %c2_39 = arith.constant 2 : index
    %c0_40 = arith.constant 0 : index
    %c0_41 = arith.constant 0 : index
    %84 = vector.load %arg8[%c2_39, %c0_40, %c0_41] : memref<9x1x512xf32, #tpu.memory_space<vmem>>, vector<1x1x512xf32>
    %85 = vector.shape_cast %84 : vector<1x1x512xf32> to vector<1x512xf32>
    %86 = vector.broadcast %85 : vector<1x512xf32> to vector<8x512xf32>
    %87 = arith.mulf %83, %86 : vector<8x512xf32>
    %cst_42 = arith.constant dense<0.000000e+00> : vector<8x512xf32>
    %88 = tpu.matmul %82, %87, %cst_42 {dimension_numbers = #tpu.dot_dimension_numbers<[1], [0], [0], [1], [0, 0, 1, 1], [], []>} : vector<8x8xf32>, vector<8x512xf32>, vector<8x512xf32> -> vector<8x512xf32>
    %89 = arith.addf %80, %88 : vector<8x512xf32>
    %c3 = arith.constant 3 : index
    %c0_43 = arith.constant 0 : index
    %c0_44 = arith.constant 0 : index
    %90 = vector.load %arg3[%c3, %c0_43, %c0_44] : memref<81x8x8xf32, #tpu.memory_space<vmem>>, vector<1x8x8xf32>
    %91 = vector.shape_cast %90 : vector<1x8x8xf32> to vector<8x8xf32>
    %c1_i32 = arith.constant 1 : i32
    %92 = tpu.dynamic_rotate %59 by %c1_i32 dim 1 : vector<8x512xf32>, i32 -> vector<8x512xf32>
    %c3_45 = arith.constant 3 : index
    %c0_46 = arith.constant 0 : index
    %c0_47 = arith.constant 0 : index
    %93 = vector.load %arg8[%c3_45, %c0_46, %c0_47] : memref<9x1x512xf32, #tpu.memory_space<vmem>>, vector<1x1x512xf32>
    %94 = vector.shape_cast %93 : vector<1x1x512xf32> to vector<1x512xf32>
    %95 = vector.broadcast %94 : vector<1x512xf32> to vector<8x512xf32>
    %96 = arith.mulf %92, %95 : vector<8x512xf32>
    %cst_48 = arith.constant dense<0.000000e+00> : vector<8x512xf32>
    %97 = tpu.matmul %91, %96, %cst_48 {dimension_numbers = #tpu.dot_dimension_numbers<[1], [0], [0], [1], [0, 0, 1, 1], [], []>} : vector<8x8xf32>, vector<8x512xf32>, vector<8x512xf32> -> vector<8x512xf32>
    %98 = arith.addf %89, %97 : vector<8x512xf32>
    %c5 = arith.constant 5 : index
    %c0_49 = arith.constant 0 : index
    %c0_50 = arith.constant 0 : index
    %99 = vector.load %arg3[%c5, %c0_49, %c0_50] : memref<81x8x8xf32, #tpu.memory_space<vmem>>, vector<1x8x8xf32>
    %100 = vector.shape_cast %99 : vector<1x8x8xf32> to vector<8x8xf32>
    %c511_i32 = arith.constant 511 : i32
    %101 = tpu.dynamic_rotate %59 by %c511_i32 dim 1 : vector<8x512xf32>, i32 -> vector<8x512xf32>
    %c5_51 = arith.constant 5 : index
    %c0_52 = arith.constant 0 : index
    %c0_53 = arith.constant 0 : index
    %102 = vector.load %arg8[%c5_51, %c0_52, %c0_53] : memref<9x1x512xf32, #tpu.memory_space<vmem>>, vector<1x1x512xf32>
    %103 = vector.shape_cast %102 : vector<1x1x512xf32> to vector<1x512xf32>
    %104 = vector.broadcast %103 : vector<1x512xf32> to vector<8x512xf32>
    %105 = arith.mulf %101, %104 : vector<8x512xf32>
    %cst_54 = arith.constant dense<0.000000e+00> : vector<8x512xf32>
    %106 = tpu.matmul %100, %105, %cst_54 {dimension_numbers = #tpu.dot_dimension_numbers<[1], [0], [0], [1], [0, 0, 1, 1], [], []>} : vector<8x8xf32>, vector<8x512xf32>, vector<8x512xf32> -> vector<8x512xf32>
    %107 = arith.addf %98, %106 : vector<8x512xf32>
    %c6 = arith.constant 6 : index
    %c0_55 = arith.constant 0 : index
    %c0_56 = arith.constant 0 : index
    %108 = vector.load %arg3[%c6, %c0_55, %c0_56] : memref<81x8x8xf32, #tpu.memory_space<vmem>>, vector<1x8x8xf32>
    %109 = vector.shape_cast %108 : vector<1x8x8xf32> to vector<8x8xf32>
    %c497_i32 = arith.constant 497 : i32
    %110 = tpu.dynamic_rotate %59 by %c497_i32 dim 1 : vector<8x512xf32>, i32 -> vector<8x512xf32>
    %c6_57 = arith.constant 6 : index
    %c0_58 = arith.constant 0 : index
    %c0_59 = arith.constant 0 : index
    %111 = vector.load %arg8[%c6_57, %c0_58, %c0_59] : memref<9x1x512xf32, #tpu.memory_space<vmem>>, vector<1x1x512xf32>
    %112 = vector.shape_cast %111 : vector<1x1x512xf32> to vector<1x512xf32>
    %113 = vector.broadcast %112 : vector<1x512xf32> to vector<8x512xf32>
    %114 = arith.mulf %110, %113 : vector<8x512xf32>
    %cst_60 = arith.constant dense<0.000000e+00> : vector<8x512xf32>
    %115 = tpu.matmul %109, %114, %cst_60 {dimension_numbers = #tpu.dot_dimension_numbers<[1], [0], [0], [1], [0, 0, 1, 1], [], []>} : vector<8x8xf32>, vector<8x512xf32>, vector<8x512xf32> -> vector<8x512xf32>
    %116 = arith.addf %107, %115 : vector<8x512xf32>
    %c7 = arith.constant 7 : index
    %c0_61 = arith.constant 0 : index
    %c0_62 = arith.constant 0 : index
    %117 = vector.load %arg3[%c7, %c0_61, %c0_62] : memref<81x8x8xf32, #tpu.memory_space<vmem>>, vector<1x8x8xf32>
    %118 = vector.shape_cast %117 : vector<1x8x8xf32> to vector<8x8xf32>
    %c496_i32 = arith.constant 496 : i32
    %119 = tpu.dynamic_rotate %59 by %c496_i32 dim 1 : vector<8x512xf32>, i32 -> vector<8x512xf32>
    %c7_63 = arith.constant 7 : index
    %c0_64 = arith.constant 0 : index
    %c0_65 = arith.constant 0 : index
    %120 = vector.load %arg8[%c7_63, %c0_64, %c0_65] : memref<9x1x512xf32, #tpu.memory_space<vmem>>, vector<1x1x512xf32>
    %121 = vector.shape_cast %120 : vector<1x1x512xf32> to vector<1x512xf32>
    %122 = vector.broadcast %121 : vector<1x512xf32> to vector<8x512xf32>
    %123 = arith.mulf %119, %122 : vector<8x512xf32>
    %cst_66 = arith.constant dense<0.000000e+00> : vector<8x512xf32>
    %124 = tpu.matmul %118, %123, %cst_66 {dimension_numbers = #tpu.dot_dimension_numbers<[1], [0], [0], [1], [0, 0, 1, 1], [], []>} : vector<8x8xf32>, vector<8x512xf32>, vector<8x512xf32> -> vector<8x512xf32>
    %125 = arith.addf %116, %124 : vector<8x512xf32>
    %c8 = arith.constant 8 : index
    %c0_67 = arith.constant 0 : index
    %c0_68 = arith.constant 0 : index
    %126 = vector.load %arg3[%c8, %c0_67, %c0_68] : memref<81x8x8xf32, #tpu.memory_space<vmem>>, vector<1x8x8xf32>
    %127 = vector.shape_cast %126 : vector<1x8x8xf32> to vector<8x8xf32>
    %c495_i32 = arith.constant 495 : i32
    %128 = tpu.dynamic_rotate %59 by %c495_i32 dim 1 : vector<8x512xf32>, i32 -> vector<8x512xf32>
    %c8_69 = arith.constant 8 : index
    %c0_70 = arith.constant 0 : index
    %c0_71 = arith.constant 0 : index
    %129 = vector.load %arg8[%c8_69, %c0_70, %c0_71] : memref<9x1x512xf32, #tpu.memory_space<vmem>>, vector<1x1x512xf32>
    %130 = vector.shape_cast %129 : vector<1x1x512xf32> to vector<1x512xf32>
    %131 = vector.broadcast %130 : vector<1x512xf32> to vector<8x512xf32>
    %132 = arith.mulf %128, %131 : vector<8x512xf32>
    %cst_72 = arith.constant dense<0.000000e+00> : vector<8x512xf32>
    %133 = tpu.matmul %127, %132, %cst_72 {dimension_numbers = #tpu.dot_dimension_numbers<[1], [0], [0], [1], [0, 0, 1, 1], [], []>} : vector<8x8xf32>, vector<8x512xf32>, vector<8x512xf32> -> vector<8x512xf32>
    %134 = arith.addf %125, %133 : vector<8x512xf32>
    %135 = vector.extract_strided_slice %2 {offsets = [0, 4], sizes = [8, 1], strides = [1, 1]} : vector<8x6xf32> to vector<8x1xf32>
    %136 = vector.extract_strided_slice %2 {offsets = [0, 5], sizes = [8, 1], strides = [1, 1]} : vector<8x6xf32> to vector<8x1xf32>
    %cst_73 = arith.constant dense<0.000000e+00> : vector<8xf32>
    %137 = vector.multi_reduction <add>, %134, %cst_73 [1] : vector<8x512xf32> to vector<8xf32>
    %138 = vector.shape_cast %137 : vector<8xf32> to vector<8x1xf32>
    %cst_74 = arith.constant 0.001953125 : f32
    %139 = vector.broadcast %cst_74 : f32 to vector<8x1xf32>
    %140 = arith.mulf %138, %139 : vector<8x1xf32>
    %141 = arith.mulf %134, %134 : vector<8x512xf32>
    %cst_75 = arith.constant dense<0.000000e+00> : vector<8xf32>
    %142 = vector.multi_reduction <add>, %141, %cst_75 [1] : vector<8x512xf32> to vector<8xf32>
    %143 = vector.shape_cast %142 : vector<8xf32> to vector<8x1xf32>
    %cst_76 = arith.constant 0.001953125 : f32
    %144 = vector.broadcast %cst_76 : f32 to vector<8x1xf32>
    %145 = arith.mulf %143, %144 : vector<8x1xf32>
    %146 = arith.mulf %140, %140 : vector<8x1xf32>
    %147 = arith.subf %145, %146 : vector<8x1xf32>
    %cst_77 = arith.constant 0.000000e+00 : f32
    %148 = vector.broadcast %cst_77 : f32 to vector<8x1xf32>
    %149 = arith.maximumf %147, %148 : vector<8x1xf32>
    %cst_78 = arith.constant 9.99999974E-6 : f32
    %150 = vector.broadcast %cst_78 : f32 to vector<8x1xf32>
    %151 = arith.addf %149, %150 : vector<8x1xf32>
    %152 = math.rsqrt %151 : vector<8x1xf32>
    %153 = arith.mulf %152, %135 : vector<8x1xf32>
    %154 = arith.mulf %140, %153 : vector<8x1xf32>
    %155 = arith.subf %136, %154 : vector<8x1xf32>
    %156 = vector.broadcast %153 : vector<8x1xf32> to vector<8x512xf32>
    %157 = arith.mulf %134, %156 : vector<8x512xf32>
    %158 = vector.broadcast %155 : vector<8x1xf32> to vector<8x512xf32>
    %159 = arith.addf %157, %158 : vector<8x512xf32>
    %cst_79 = arith.constant 0.000000e+00 : f32
    %160 = vector.broadcast %cst_79 : f32 to vector<8x512xf32>
    %161 = arith.maximumf %159, %160 : vector<8x512xf32>
    %c0_80 = arith.constant 0 : index
    %c0_81 = arith.constant 0 : index
    %c0_82 = arith.constant 0 : index
    %162 = vector.load %arg4[%c0_80, %c0_81, %c0_82] : memref<9x8x8xf32, #tpu.memory_space<vmem>>, vector<1x8x8xf32>
    %163 = vector.shape_cast %162 : vector<1x8x8xf32> to vector<8x8xf32>
    %cst_83 = arith.constant dense<0.000000e+00> : vector<8x512xf32>
    %164 = tpu.matmul %163, %161, %cst_83 {dimension_numbers = #tpu.dot_dimension_numbers<[1], [0], [0], [1], [0, 0, 1, 1], [], []>} : vector<8x8xf32>, vector<8x512xf32>, vector<8x512xf32> -> vector<8x512xf32>
    %165 = arith.addf %164, %0 : vector<8x512xf32>
    %c1_84 = arith.constant 1 : index
    %c0_85 = arith.constant 0 : index
    %c0_86 = arith.constant 0 : index
    %166 = vector.load %arg1[%c1_84, %c0_85, %c0_86] : memref<9x8x6xf32, #tpu.memory_space<vmem>>, vector<1x8x6xf32>
    %167 = vector.shape_cast %166 : vector<1x8x6xf32> to vector<8x6xf32>
    %168 = vector.extract_strided_slice %167 {offsets = [0, 0], sizes = [8, 1], strides = [1, 1]} : vector<8x6xf32> to vector<8x1xf32>
    %169 = vector.extract_strided_slice %167 {offsets = [0, 1], sizes = [8, 1], strides = [1, 1]} : vector<8x6xf32> to vector<8x1xf32>
    %cst_87 = arith.constant dense<0.000000e+00> : vector<8xf32>
    %170 = vector.multi_reduction <add>, %165, %cst_87 [1] : vector<8x512xf32> to vector<8xf32>
    %171 = vector.shape_cast %170 : vector<8xf32> to vector<8x1xf32>
    %cst_88 = arith.constant 0.001953125 : f32
    %172 = vector.broadcast %cst_88 : f32 to vector<8x1xf32>
    %173 = arith.mulf %171, %172 : vector<8x1xf32>
    %174 = arith.mulf %165, %165 : vector<8x512xf32>
    %cst_89 = arith.constant dense<0.000000e+00> : vector<8xf32>
    %175 = vector.multi_reduction <add>, %174, %cst_89 [1] : vector<8x512xf32> to vector<8xf32>
    %176 = vector.shape_cast %175 : vector<8xf32> to vector<8x1xf32>
    %cst_90 = arith.constant 0.001953125 : f32
    %177 = vector.broadcast %cst_90 : f32 to vector<8x1xf32>
    %178 = arith.mulf %176, %177 : vector<8x1xf32>
    %179 = arith.mulf %173, %173 : vector<8x1xf32>
    %180 = arith.subf %178, %179 : vector<8x1xf32>
    %cst_91 = arith.constant 0.000000e+00 : f32
    %181 = vector.broadcast %cst_91 : f32 to vector<8x1xf32>
    %182 = arith.maximumf %180, %181 : vector<8x1xf32>
    %cst_92 = arith.constant 9.99999974E-6 : f32
    %183 = vector.broadcast %cst_92 : f32 to vector<8x1xf32>
    %184 = arith.addf %182, %183 : vector<8x1xf32>
    %185 = math.rsqrt %184 : vector<8x1xf32>
    %186 = arith.mulf %185, %168 : vector<8x1xf32>
    %187 = arith.mulf %173, %186 : vector<8x1xf32>
    %188 = arith.subf %169, %187 : vector<8x1xf32>
    %189 = vector.broadcast %186 : vector<8x1xf32> to vector<8x512xf32>
    %190 = arith.mulf %165, %189 : vector<8x512xf32>
    %191 = vector.broadcast %188 : vector<8x1xf32> to vector<8x512xf32>
    %192 = arith.addf %190, %191 : vector<8x512xf32>
    %cst_93 = arith.constant 0.000000e+00 : f32
    %193 = vector.broadcast %cst_93 : f32 to vector<8x512xf32>
    %194 = arith.maximumf %192, %193 : vector<8x512xf32>
    %c1_94 = arith.constant 1 : index
    %c0_95 = arith.constant 0 : index
    %c0_96 = arith.constant 0 : index
    %195 = vector.load %arg2[%c1_94, %c0_95, %c0_96] : memref<9x8x8xf32, #tpu.memory_space<vmem>>, vector<1x8x8xf32>
    %196 = vector.shape_cast %195 : vector<1x8x8xf32> to vector<8x8xf32>
    %cst_97 = arith.constant dense<0.000000e+00> : vector<8x512xf32>
    %197 = tpu.matmul %196, %194, %cst_97 {dimension_numbers = #tpu.dot_dimension_numbers<[1], [0], [0], [1], [0, 0, 1, 1], [], []>} : vector<8x8xf32>, vector<8x512xf32>, vector<8x512xf32> -> vector<8x512xf32>
    %198 = vector.extract_strided_slice %167 {offsets = [0, 2], sizes = [8, 1], strides = [1, 1]} : vector<8x6xf32> to vector<8x1xf32>
    %199 = vector.extract_strided_slice %167 {offsets = [0, 3], sizes = [8, 1], strides = [1, 1]} : vector<8x6xf32> to vector<8x1xf32>
    %cst_98 = arith.constant dense<0.000000e+00> : vector<8xf32>
    %200 = vector.multi_reduction <add>, %197, %cst_98 [1] : vector<8x512xf32> to vector<8xf32>
    %201 = vector.shape_cast %200 : vector<8xf32> to vector<8x1xf32>
    %cst_99 = arith.constant 0.001953125 : f32
    %202 = vector.broadcast %cst_99 : f32 to vector<8x1xf32>
    %203 = arith.mulf %201, %202 : vector<8x1xf32>
    %204 = arith.mulf %197, %197 : vector<8x512xf32>
    %cst_100 = arith.constant dense<0.000000e+00> : vector<8xf32>
    %205 = vector.multi_reduction <add>, %204, %cst_100 [1] : vector<8x512xf32> to vector<8xf32>
    %206 = vector.shape_cast %205 : vector<8xf32> to vector<8x1xf32>
    %cst_101 = arith.constant 0.001953125 : f32
    %207 = vector.broadcast %cst_101 : f32 to vector<8x1xf32>
    %208 = arith.mulf %206, %207 : vector<8x1xf32>
    %209 = arith.mulf %203, %203 : vector<8x1xf32>
    %210 = arith.subf %208, %209 : vector<8x1xf32>
    %cst_102 = arith.constant 0.000000e+00 : f32
    %211 = vector.broadcast %cst_102 : f32 to vector<8x1xf32>
    %212 = arith.maximumf %210, %211 : vector<8x1xf32>
    %cst_103 = arith.constant 9.99999974E-6 : f32
    %213 = vector.broadcast %cst_103 : f32 to vector<8x1xf32>
    %214 = arith.addf %212, %213 : vector<8x1xf32>
    %215 = math.rsqrt %214 : vector<8x1xf32>
    %216 = arith.mulf %215, %198 : vector<8x1xf32>
    %217 = arith.mulf %203, %216 : vector<8x1xf32>
    %218 = arith.subf %199, %217 : vector<8x1xf32>
    %219 = vector.broadcast %216 : vector<8x1xf32> to vector<8x512xf32>
    %220 = arith.mulf %197, %219 : vector<8x512xf32>
    %221 = vector.broadcast %218 : vector<8x1xf32> to vector<8x512xf32>
    %222 = arith.addf %220, %221 : vector<8x512xf32>
    %cst_104 = arith.constant 0.000000e+00 : f32
    %223 = vector.broadcast %cst_104 : f32 to vector<8x512xf32>
    %224 = arith.maximumf %222, %223 : vector<8x512xf32>
    %c13 = arith.constant 13 : index
    %c0_105 = arith.constant 0 : index
    %c0_106 = arith.constant 0 : index
    %225 = vector.load %arg3[%c13, %c0_105, %c0_106] : memref<81x8x8xf32, #tpu.memory_space<vmem>>, vector<1x8x8xf32>
    %226 = vector.shape_cast %225 : vector<1x8x8xf32> to vector<8x8xf32>
    %cst_107 = arith.constant dense<0.000000e+00> : vector<8x512xf32>
    %227 = tpu.matmul %226, %224, %cst_107 {dimension_numbers = #tpu.dot_dimension_numbers<[1], [0], [0], [1], [0, 0, 1, 1], [], []>} : vector<8x8xf32>, vector<8x512xf32>, vector<8x512xf32> -> vector<8x512xf32>
    %c9 = arith.constant 9 : index
    %c0_108 = arith.constant 0 : index
    %c0_109 = arith.constant 0 : index
    %228 = vector.load %arg3[%c9, %c0_108, %c0_109] : memref<81x8x8xf32, #tpu.memory_space<vmem>>, vector<1x8x8xf32>
    %229 = vector.shape_cast %228 : vector<1x8x8xf32> to vector<8x8xf32>
    %c17_i32_110 = arith.constant 17 : i32
    %230 = tpu.dynamic_rotate %224 by %c17_i32_110 dim 1 : vector<8x512xf32>, i32 -> vector<8x512xf32>
    %c0_111 = arith.constant 0 : index
    %c0_112 = arith.constant 0 : index
    %c0_113 = arith.constant 0 : index
    %231 = vector.load %arg8[%c0_111, %c0_112, %c0_113] : memref<9x1x512xf32, #tpu.memory_space<vmem>>, vector<1x1x512xf32>
    %232 = vector.shape_cast %231 : vector<1x1x512xf32> to vector<1x512xf32>
    %233 = vector.broadcast %232 : vector<1x512xf32> to vector<8x512xf32>
    %234 = arith.mulf %230, %233 : vector<8x512xf32>
    %cst_114 = arith.constant dense<0.000000e+00> : vector<8x512xf32>
    %235 = tpu.matmul %229, %234, %cst_114 {dimension_numbers = #tpu.dot_dimension_numbers<[1], [0], [0], [1], [0, 0, 1, 1], [], []>} : vector<8x8xf32>, vector<8x512xf32>, vector<8x512xf32> -> vector<8x512xf32>
    %236 = arith.addf %227, %235 : vector<8x512xf32>
    %c10 = arith.constant 10 : index
    %c0_115 = arith.constant 0 : index
    %c0_116 = arith.constant 0 : index
    %237 = vector.load %arg3[%c10, %c0_115, %c0_116] : memref<81x8x8xf32, #tpu.memory_space<vmem>>, vector<1x8x8xf32>
    %238 = vector.shape_cast %237 : vector<1x8x8xf32> to vector<8x8xf32>
    %c16_i32_117 = arith.constant 16 : i32
    %239 = tpu.dynamic_rotate %224 by %c16_i32_117 dim 1 : vector<8x512xf32>, i32 -> vector<8x512xf32>
    %c1_118 = arith.constant 1 : index
    %c0_119 = arith.constant 0 : index
    %c0_120 = arith.constant 0 : index
    %240 = vector.load %arg8[%c1_118, %c0_119, %c0_120] : memref<9x1x512xf32, #tpu.memory_space<vmem>>, vector<1x1x512xf32>
    %241 = vector.shape_cast %240 : vector<1x1x512xf32> to vector<1x512xf32>
    %242 = vector.broadcast %241 : vector<1x512xf32> to vector<8x512xf32>
    %243 = arith.mulf %239, %242 : vector<8x512xf32>
    %cst_121 = arith.constant dense<0.000000e+00> : vector<8x512xf32>
    %244 = tpu.matmul %238, %243, %cst_121 {dimension_numbers = #tpu.dot_dimension_numbers<[1], [0], [0], [1], [0, 0, 1, 1], [], []>} : vector<8x8xf32>, vector<8x512xf32>, vector<8x512xf32> -> vector<8x512xf32>
    %245 = arith.addf %236, %244 : vector<8x512xf32>
    %c11 = arith.constant 11 : index
    %c0_122 = arith.constant 0 : index
    %c0_123 = arith.constant 0 : index
    %246 = vector.load %arg3[%c11, %c0_122, %c0_123] : memref<81x8x8xf32, #tpu.memory_space<vmem>>, vector<1x8x8xf32>
    %247 = vector.shape_cast %246 : vector<1x8x8xf32> to vector<8x8xf32>
    %c15_i32_124 = arith.constant 15 : i32
    %248 = tpu.dynamic_rotate %224 by %c15_i32_124 dim 1 : vector<8x512xf32>, i32 -> vector<8x512xf32>
    %c2_125 = arith.constant 2 : index
    %c0_126 = arith.constant 0 : index
    %c0_127 = arith.constant 0 : index
    %249 = vector.load %arg8[%c2_125, %c0_126, %c0_127] : memref<9x1x512xf32, #tpu.memory_space<vmem>>, vector<1x1x512xf32>
    %250 = vector.shape_cast %249 : vector<1x1x512xf32> to vector<1x512xf32>
    %251 = vector.broadcast %250 : vector<1x512xf32> to vector<8x512xf32>
    %252 = arith.mulf %248, %251 : vector<8x512xf32>
    %cst_128 = arith.constant dense<0.000000e+00> : vector<8x512xf32>
    %253 = tpu.matmul %247, %252, %cst_128 {dimension_numbers = #tpu.dot_dimension_numbers<[1], [0], [0], [1], [0, 0, 1, 1], [], []>} : vector<8x8xf32>, vector<8x512xf32>, vector<8x512xf32> -> vector<8x512xf32>
    %254 = arith.addf %245, %253 : vector<8x512xf32>
    %c12 = arith.constant 12 : index
    %c0_129 = arith.constant 0 : index
    %c0_130 = arith.constant 0 : index
    %255 = vector.load %arg3[%c12, %c0_129, %c0_130] : memref<81x8x8xf32, #tpu.memory_space<vmem>>, vector<1x8x8xf32>
    %256 = vector.shape_cast %255 : vector<1x8x8xf32> to vector<8x8xf32>
    %c1_i32_131 = arith.constant 1 : i32
    %257 = tpu.dynamic_rotate %224 by %c1_i32_131 dim 1 : vector<8x512xf32>, i32 -> vector<8x512xf32>
    %c3_132 = arith.constant 3 : index
    %c0_133 = arith.constant 0 : index
    %c0_134 = arith.constant 0 : index
    %258 = vector.load %arg8[%c3_132, %c0_133, %c0_134] : memref<9x1x512xf32, #tpu.memory_space<vmem>>, vector<1x1x512xf32>
    %259 = vector.shape_cast %258 : vector<1x1x512xf32> to vector<1x512xf32>
    %260 = vector.broadcast %259 : vector<1x512xf32> to vector<8x512xf32>
    %261 = arith.mulf %257, %260 : vector<8x512xf32>
    %cst_135 = arith.constant dense<0.000000e+00> : vector<8x512xf32>
    %262 = tpu.matmul %256, %261, %cst_135 {dimension_numbers = #tpu.dot_dimension_numbers<[1], [0], [0], [1], [0, 0, 1, 1], [], []>} : vector<8x8xf32>, vector<8x512xf32>, vector<8x512xf32> -> vector<8x512xf32>
    %263 = arith.addf %254, %262 : vector<8x512xf32>
    %c14 = arith.constant 14 : index
    %c0_136 = arith.constant 0 : index
    %c0_137 = arith.constant 0 : index
    %264 = vector.load %arg3[%c14, %c0_136, %c0_137] : memref<81x8x8xf32, #tpu.memory_space<vmem>>, vector<1x8x8xf32>
    %265 = vector.shape_cast %264 : vector<1x8x8xf32> to vector<8x8xf32>
    %c511_i32_138 = arith.constant 511 : i32
    %266 = tpu.dynamic_rotate %224 by %c511_i32_138 dim 1 : vector<8x512xf32>, i32 -> vector<8x512xf32>
    %c5_139 = arith.constant 5 : index
    %c0_140 = arith.constant 0 : index
    %c0_141 = arith.constant 0 : index
    %267 = vector.load %arg8[%c5_139, %c0_140, %c0_141] : memref<9x1x512xf32, #tpu.memory_space<vmem>>, vector<1x1x512xf32>
    %268 = vector.shape_cast %267 : vector<1x1x512xf32> to vector<1x512xf32>
    %269 = vector.broadcast %268 : vector<1x512xf32> to vector<8x512xf32>
    %270 = arith.mulf %266, %269 : vector<8x512xf32>
    %cst_142 = arith.constant dense<0.000000e+00> : vector<8x512xf32>
    %271 = tpu.matmul %265, %270, %cst_142 {dimension_numbers = #tpu.dot_dimension_numbers<[1], [0], [0], [1], [0, 0, 1, 1], [], []>} : vector<8x8xf32>, vector<8x512xf32>, vector<8x512xf32> -> vector<8x512xf32>
    %272 = arith.addf %263, %271 : vector<8x512xf32>
    %c15 = arith.constant 15 : index
    %c0_143 = arith.constant 0 : index
    %c0_144 = arith.constant 0 : index
    %273 = vector.load %arg3[%c15, %c0_143, %c0_144] : memref<81x8x8xf32, #tpu.memory_space<vmem>>, vector<1x8x8xf32>
    %274 = vector.shape_cast %273 : vector<1x8x8xf32> to vector<8x8xf32>
    %c497_i32_145 = arith.constant 497 : i32
    %275 = tpu.dynamic_rotate %224 by %c497_i32_145 dim 1 : vector<8x512xf32>, i32 -> vector<8x512xf32>
    %c6_146 = arith.constant 6 : index
    %c0_147 = arith.constant 0 : index
    %c0_148 = arith.constant 0 : index
    %276 = vector.load %arg8[%c6_146, %c0_147, %c0_148] : memref<9x1x512xf32, #tpu.memory_space<vmem>>, vector<1x1x512xf32>
    %277 = vector.shape_cast %276 : vector<1x1x512xf32> to vector<1x512xf32>
    %278 = vector.broadcast %277 : vector<1x512xf32> to vector<8x512xf32>
    %279 = arith.mulf %275, %278 : vector<8x512xf32>
    %cst_149 = arith.constant dense<0.000000e+00> : vector<8x512xf32>
    %280 = tpu.matmul %274, %279, %cst_149 {dimension_numbers = #tpu.dot_dimension_numbers<[1], [0], [0], [1], [0, 0, 1, 1], [], []>} : vector<8x8xf32>, vector<8x512xf32>, vector<8x512xf32> -> vector<8x512xf32>
    %281 = arith.addf %272, %280 : vector<8x512xf32>
    %c16 = arith.constant 16 : index
    %c0_150 = arith.constant 0 : index
    %c0_151 = arith.constant 0 : index
    %282 = vector.load %arg3[%c16, %c0_150, %c0_151] : memref<81x8x8xf32, #tpu.memory_space<vmem>>, vector<1x8x8xf32>
    %283 = vector.shape_cast %282 : vector<1x8x8xf32> to vector<8x8xf32>
    %c496_i32_152 = arith.constant 496 : i32
    %284 = tpu.dynamic_rotate %224 by %c496_i32_152 dim 1 : vector<8x512xf32>, i32 -> vector<8x512xf32>
    %c7_153 = arith.constant 7 : index
    %c0_154 = arith.constant 0 : index
    %c0_155 = arith.constant 0 : index
    %285 = vector.load %arg8[%c7_153, %c0_154, %c0_155] : memref<9x1x512xf32, #tpu.memory_space<vmem>>, vector<1x1x512xf32>
    %286 = vector.shape_cast %285 : vector<1x1x512xf32> to vector<1x512xf32>
    %287 = vector.broadcast %286 : vector<1x512xf32> to vector<8x512xf32>
    %288 = arith.mulf %284, %287 : vector<8x512xf32>
    %cst_156 = arith.constant dense<0.000000e+00> : vector<8x512xf32>
    %289 = tpu.matmul %283, %288, %cst_156 {dimension_numbers = #tpu.dot_dimension_numbers<[1], [0], [0], [1], [0, 0, 1, 1], [], []>} : vector<8x8xf32>, vector<8x512xf32>, vector<8x512xf32> -> vector<8x512xf32>
    %290 = arith.addf %281, %289 : vector<8x512xf32>
    %c17 = arith.constant 17 : index
    %c0_157 = arith.constant 0 : index
    %c0_158 = arith.constant 0 : index
    %291 = vector.load %arg3[%c17, %c0_157, %c0_158] : memref<81x8x8xf32, #tpu.memory_space<vmem>>, vector<1x8x8xf32>
    %292 = vector.shape_cast %291 : vector<1x8x8xf32> to vector<8x8xf32>
    %c495_i32_159 = arith.constant 495 : i32
    %293 = tpu.dynamic_rotate %224 by %c495_i32_159 dim 1 : vector<8x512xf32>, i32 -> vector<8x512xf32>
    %c8_160 = arith.constant 8 : index
    %c0_161 = arith.constant 0 : index
    %c0_162 = arith.constant 0 : index
    %294 = vector.load %arg8[%c8_160, %c0_161, %c0_162] : memref<9x1x512xf32, #tpu.memory_space<vmem>>, vector<1x1x512xf32>
    %295 = vector.shape_cast %294 : vector<1x1x512xf32> to vector<1x512xf32>
    %296 = vector.broadcast %295 : vector<1x512xf32> to vector<8x512xf32>
    %297 = arith.mulf %293, %296 : vector<8x512xf32>
    %cst_163 = arith.constant dense<0.000000e+00> : vector<8x512xf32>
    %298 = tpu.matmul %292, %297, %cst_163 {dimension_numbers = #tpu.dot_dimension_numbers<[1], [0], [0], [1], [0, 0, 1, 1], [], []>} : vector<8x8xf32>, vector<8x512xf32>, vector<8x512xf32> -> vector<8x512xf32>
    %299 = arith.addf %290, %298 : vector<8x512xf32>
    %300 = vector.extract_strided_slice %167 {offsets = [0, 4], sizes = [8, 1], strides = [1, 1]} : vector<8x6xf32> to vector<8x1xf32>
    %301 = vector.extract_strided_slice %167 {offsets = [0, 5], sizes = [8, 1], strides = [1, 1]} : vector<8x6xf32> to vector<8x1xf32>
    %cst_164 = arith.constant dense<0.000000e+00> : vector<8xf32>
    %302 = vector.multi_reduction <add>, %299, %cst_164 [1] : vector<8x512xf32> to vector<8xf32>
    %303 = vector.shape_cast %302 : vector<8xf32> to vector<8x1xf32>
    %cst_165 = arith.constant 0.001953125 : f32
    %304 = vector.broadcast %cst_165 : f32 to vector<8x1xf32>
    %305 = arith.mulf %303, %304 : vector<8x1xf32>
    %306 = arith.mulf %299, %299 : vector<8x512xf32>
    %cst_166 = arith.constant dense<0.000000e+00> : vector<8xf32>
    %307 = vector.multi_reduction <add>, %306, %cst_166 [1] : vector<8x512xf32> to vector<8xf32>
    %308 = vector.shape_cast %307 : vector<8xf32> to vector<8x1xf32>
    %cst_167 = arith.constant 0.001953125 : f32
    %309 = vector.broadcast %cst_167 : f32 to vector<8x1xf32>
    %310 = arith.mulf %308, %309 : vector<8x1xf32>
    %311 = arith.mulf %305, %305 : vector<8x1xf32>
    %312 = arith.subf %310, %311 : vector<8x1xf32>
    %cst_168 = arith.constant 0.000000e+00 : f32
    %313 = vector.broadcast %cst_168 : f32 to vector<8x1xf32>
    %314 = arith.maximumf %312, %313 : vector<8x1xf32>
    %cst_169 = arith.constant 9.99999974E-6 : f32
    %315 = vector.broadcast %cst_169 : f32 to vector<8x1xf32>
    %316 = arith.addf %314, %315 : vector<8x1xf32>
    %317 = math.rsqrt %316 : vector<8x1xf32>
    %318 = arith.mulf %317, %300 : vector<8x1xf32>
    %319 = arith.mulf %305, %318 : vector<8x1xf32>
    %320 = arith.subf %301, %319 : vector<8x1xf32>
    %321 = vector.broadcast %318 : vector<8x1xf32> to vector<8x512xf32>
    %322 = arith.mulf %299, %321 : vector<8x512xf32>
    %323 = vector.broadcast %320 : vector<8x1xf32> to vector<8x512xf32>
    %324 = arith.addf %322, %323 : vector<8x512xf32>
    %cst_170 = arith.constant 0.000000e+00 : f32
    %325 = vector.broadcast %cst_170 : f32 to vector<8x512xf32>
    %326 = arith.maximumf %324, %325 : vector<8x512xf32>
    %c1_171 = arith.constant 1 : index
    %c0_172 = arith.constant 0 : index
    %c0_173 = arith.constant 0 : index
    %327 = vector.load %arg4[%c1_171, %c0_172, %c0_173] : memref<9x8x8xf32, #tpu.memory_space<vmem>>, vector<1x8x8xf32>
    %328 = vector.shape_cast %327 : vector<1x8x8xf32> to vector<8x8xf32>
    %cst_174 = arith.constant dense<0.000000e+00> : vector<8x512xf32>
    %329 = tpu.matmul %328, %326, %cst_174 {dimension_numbers = #tpu.dot_dimension_numbers<[1], [0], [0], [1], [0, 0, 1, 1], [], []>} : vector<8x8xf32>, vector<8x512xf32>, vector<8x512xf32> -> vector<8x512xf32>
    %330 = arith.addf %329, %165 : vector<8x512xf32>
    %c2_175 = arith.constant 2 : index
    %c0_176 = arith.constant 0 : index
    %c0_177 = arith.constant 0 : index
    %331 = vector.load %arg1[%c2_175, %c0_176, %c0_177] : memref<9x8x6xf32, #tpu.memory_space<vmem>>, vector<1x8x6xf32>
    %332 = vector.shape_cast %331 : vector<1x8x6xf32> to vector<8x6xf32>
    %333 = vector.extract_strided_slice %332 {offsets = [0, 0], sizes = [8, 1], strides = [1, 1]} : vector<8x6xf32> to vector<8x1xf32>
    %334 = vector.extract_strided_slice %332 {offsets = [0, 1], sizes = [8, 1], strides = [1, 1]} : vector<8x6xf32> to vector<8x1xf32>
    %cst_178 = arith.constant dense<0.000000e+00> : vector<8xf32>
    %335 = vector.multi_reduction <add>, %330, %cst_178 [1] : vector<8x512xf32> to vector<8xf32>
    %336 = vector.shape_cast %335 : vector<8xf32> to vector<8x1xf32>
    %cst_179 = arith.constant 0.001953125 : f32
    %337 = vector.broadcast %cst_179 : f32 to vector<8x1xf32>
    %338 = arith.mulf %336, %337 : vector<8x1xf32>
    %339 = arith.mulf %330, %330 : vector<8x512xf32>
    %cst_180 = arith.constant dense<0.000000e+00> : vector<8xf32>
    %340 = vector.multi_reduction <add>, %339, %cst_180 [1] : vector<8x512xf32> to vector<8xf32>
    %341 = vector.shape_cast %340 : vector<8xf32> to vector<8x1xf32>
    %cst_181 = arith.constant 0.001953125 : f32
    %342 = vector.broadcast %cst_181 : f32 to vector<8x1xf32>
    %343 = arith.mulf %341, %342 : vector<8x1xf32>
    %344 = arith.mulf %338, %338 : vector<8x1xf32>
    %345 = arith.subf %343, %344 : vector<8x1xf32>
    %cst_182 = arith.constant 0.000000e+00 : f32
    %346 = vector.broadcast %cst_182 : f32 to vector<8x1xf32>
    %347 = arith.maximumf %345, %346 : vector<8x1xf32>
    %cst_183 = arith.constant 9.99999974E-6 : f32
    %348 = vector.broadcast %cst_183 : f32 to vector<8x1xf32>
    %349 = arith.addf %347, %348 : vector<8x1xf32>
    %350 = math.rsqrt %349 : vector<8x1xf32>
    %351 = arith.mulf %350, %333 : vector<8x1xf32>
    %352 = arith.mulf %338, %351 : vector<8x1xf32>
    %353 = arith.subf %334, %352 : vector<8x1xf32>
    %354 = vector.broadcast %351 : vector<8x1xf32> to vector<8x512xf32>
    %355 = arith.mulf %330, %354 : vector<8x512xf32>
    %356 = vector.broadcast %353 : vector<8x1xf32> to vector<8x512xf32>
    %357 = arith.addf %355, %356 : vector<8x512xf32>
    %cst_184 = arith.constant 0.000000e+00 : f32
    %358 = vector.broadcast %cst_184 : f32 to vector<8x512xf32>
    %359 = arith.maximumf %357, %358 : vector<8x512xf32>
    %c2_185 = arith.constant 2 : index
    %c0_186 = arith.constant 0 : index
    %c0_187 = arith.constant 0 : index
    %360 = vector.load %arg2[%c2_185, %c0_186, %c0_187] : memref<9x8x8xf32, #tpu.memory_space<vmem>>, vector<1x8x8xf32>
    %361 = vector.shape_cast %360 : vector<1x8x8xf32> to vector<8x8xf32>
    %cst_188 = arith.constant dense<0.000000e+00> : vector<8x512xf32>
    %362 = tpu.matmul %361, %359, %cst_188 {dimension_numbers = #tpu.dot_dimension_numbers<[1], [0], [0], [1], [0, 0, 1, 1], [], []>} : vector<8x8xf32>, vector<8x512xf32>, vector<8x512xf32> -> vector<8x512xf32>
    %363 = vector.extract_strided_slice %332 {offsets = [0, 2], sizes = [8, 1], strides = [1, 1]} : vector<8x6xf32> to vector<8x1xf32>
    %364 = vector.extract_strided_slice %332 {offsets = [0, 3], sizes = [8, 1], strides = [1, 1]} : vector<8x6xf32> to vector<8x1xf32>
    %cst_189 = arith.constant dense<0.000000e+00> : vector<8xf32>
    %365 = vector.multi_reduction <add>, %362, %cst_189 [1] : vector<8x512xf32> to vector<8xf32>
    %366 = vector.shape_cast %365 : vector<8xf32> to vector<8x1xf32>
    %cst_190 = arith.constant 0.001953125 : f32
    %367 = vector.broadcast %cst_190 : f32 to vector<8x1xf32>
    %368 = arith.mulf %366, %367 : vector<8x1xf32>
    %369 = arith.mulf %362, %362 : vector<8x512xf32>
    %cst_191 = arith.constant dense<0.000000e+00> : vector<8xf32>
    %370 = vector.multi_reduction <add>, %369, %cst_191 [1] : vector<8x512xf32> to vector<8xf32>
    %371 = vector.shape_cast %370 : vector<8xf32> to vector<8x1xf32>
    %cst_192 = arith.constant 0.001953125 : f32
    %372 = vector.broadcast %cst_192 : f32 to vector<8x1xf32>
    %373 = arith.mulf %371, %372 : vector<8x1xf32>
    %374 = arith.mulf %368, %368 : vector<8x1xf32>
    %375 = arith.subf %373, %374 : vector<8x1xf32>
    %cst_193 = arith.constant 0.000000e+00 : f32
    %376 = vector.broadcast %cst_193 : f32 to vector<8x1xf32>
    %377 = arith.maximumf %375, %376 : vector<8x1xf32>
    %cst_194 = arith.constant 9.99999974E-6 : f32
    %378 = vector.broadcast %cst_194 : f32 to vector<8x1xf32>
    %379 = arith.addf %377, %378 : vector<8x1xf32>
    %380 = math.rsqrt %379 : vector<8x1xf32>
    %381 = arith.mulf %380, %363 : vector<8x1xf32>
    %382 = arith.mulf %368, %381 : vector<8x1xf32>
    %383 = arith.subf %364, %382 : vector<8x1xf32>
    %384 = vector.broadcast %381 : vector<8x1xf32> to vector<8x512xf32>
    %385 = arith.mulf %362, %384 : vector<8x512xf32>
    %386 = vector.broadcast %383 : vector<8x1xf32> to vector<8x512xf32>
    %387 = arith.addf %385, %386 : vector<8x512xf32>
    %cst_195 = arith.constant 0.000000e+00 : f32
    %388 = vector.broadcast %cst_195 : f32 to vector<8x512xf32>
    %389 = arith.maximumf %387, %388 : vector<8x512xf32>
    %c22 = arith.constant 22 : index
    %c0_196 = arith.constant 0 : index
    %c0_197 = arith.constant 0 : index
    %390 = vector.load %arg3[%c22, %c0_196, %c0_197] : memref<81x8x8xf32, #tpu.memory_space<vmem>>, vector<1x8x8xf32>
    %391 = vector.shape_cast %390 : vector<1x8x8xf32> to vector<8x8xf32>
    %cst_198 = arith.constant dense<0.000000e+00> : vector<8x512xf32>
    %392 = tpu.matmul %391, %389, %cst_198 {dimension_numbers = #tpu.dot_dimension_numbers<[1], [0], [0], [1], [0, 0, 1, 1], [], []>} : vector<8x8xf32>, vector<8x512xf32>, vector<8x512xf32> -> vector<8x512xf32>
    %c18 = arith.constant 18 : index
    %c0_199 = arith.constant 0 : index
    %c0_200 = arith.constant 0 : index
    %393 = vector.load %arg3[%c18, %c0_199, %c0_200] : memref<81x8x8xf32, #tpu.memory_space<vmem>>, vector<1x8x8xf32>
    %394 = vector.shape_cast %393 : vector<1x8x8xf32> to vector<8x8xf32>
    %c17_i32_201 = arith.constant 17 : i32
    %395 = tpu.dynamic_rotate %389 by %c17_i32_201 dim 1 : vector<8x512xf32>, i32 -> vector<8x512xf32>
    %c0_202 = arith.constant 0 : index
    %c0_203 = arith.constant 0 : index
    %c0_204 = arith.constant 0 : index
    %396 = vector.load %arg8[%c0_202, %c0_203, %c0_204] : memref<9x1x512xf32, #tpu.memory_space<vmem>>, vector<1x1x512xf32>
    %397 = vector.shape_cast %396 : vector<1x1x512xf32> to vector<1x512xf32>
    %398 = vector.broadcast %397 : vector<1x512xf32> to vector<8x512xf32>
    %399 = arith.mulf %395, %398 : vector<8x512xf32>
    %cst_205 = arith.constant dense<0.000000e+00> : vector<8x512xf32>
    %400 = tpu.matmul %394, %399, %cst_205 {dimension_numbers = #tpu.dot_dimension_numbers<[1], [0], [0], [1], [0, 0, 1, 1], [], []>} : vector<8x8xf32>, vector<8x512xf32>, vector<8x512xf32> -> vector<8x512xf32>
    %401 = arith.addf %392, %400 : vector<8x512xf32>
    %c19 = arith.constant 19 : index
    %c0_206 = arith.constant 0 : index
    %c0_207 = arith.constant 0 : index
    %402 = vector.load %arg3[%c19, %c0_206, %c0_207] : memref<81x8x8xf32, #tpu.memory_space<vmem>>, vector<1x8x8xf32>
    %403 = vector.shape_cast %402 : vector<1x8x8xf32> to vector<8x8xf32>
    %c16_i32_208 = arith.constant 16 : i32
    %404 = tpu.dynamic_rotate %389 by %c16_i32_208 dim 1 : vector<8x512xf32>, i32 -> vector<8x512xf32>
    %c1_209 = arith.constant 1 : index
    %c0_210 = arith.constant 0 : index
    %c0_211 = arith.constant 0 : index
    %405 = vector.load %arg8[%c1_209, %c0_210, %c0_211] : memref<9x1x512xf32, #tpu.memory_space<vmem>>, vector<1x1x512xf32>
    %406 = vector.shape_cast %405 : vector<1x1x512xf32> to vector<1x512xf32>
    %407 = vector.broadcast %406 : vector<1x512xf32> to vector<8x512xf32>
    %408 = arith.mulf %404, %407 : vector<8x512xf32>
    %cst_212 = arith.constant dense<0.000000e+00> : vector<8x512xf32>
    %409 = tpu.matmul %403, %408, %cst_212 {dimension_numbers = #tpu.dot_dimension_numbers<[1], [0], [0], [1], [0, 0, 1, 1], [], []>} : vector<8x8xf32>, vector<8x512xf32>, vector<8x512xf32> -> vector<8x512xf32>
    %410 = arith.addf %401, %409 : vector<8x512xf32>
    %c20 = arith.constant 20 : index
    %c0_213 = arith.constant 0 : index
    %c0_214 = arith.constant 0 : index
    %411 = vector.load %arg3[%c20, %c0_213, %c0_214] : memref<81x8x8xf32, #tpu.memory_space<vmem>>, vector<1x8x8xf32>
    %412 = vector.shape_cast %411 : vector<1x8x8xf32> to vector<8x8xf32>
    %c15_i32_215 = arith.constant 15 : i32
    %413 = tpu.dynamic_rotate %389 by %c15_i32_215 dim 1 : vector<8x512xf32>, i32 -> vector<8x512xf32>
    %c2_216 = arith.constant 2 : index
    %c0_217 = arith.constant 0 : index
    %c0_218 = arith.constant 0 : index
    %414 = vector.load %arg8[%c2_216, %c0_217, %c0_218] : memref<9x1x512xf32, #tpu.memory_space<vmem>>, vector<1x1x512xf32>
    %415 = vector.shape_cast %414 : vector<1x1x512xf32> to vector<1x512xf32>
    %416 = vector.broadcast %415 : vector<1x512xf32> to vector<8x512xf32>
    %417 = arith.mulf %413, %416 : vector<8x512xf32>
    %cst_219 = arith.constant dense<0.000000e+00> : vector<8x512xf32>
    %418 = tpu.matmul %412, %417, %cst_219 {dimension_numbers = #tpu.dot_dimension_numbers<[1], [0], [0], [1], [0, 0, 1, 1], [], []>} : vector<8x8xf32>, vector<8x512xf32>, vector<8x512xf32> -> vector<8x512xf32>
    %419 = arith.addf %410, %418 : vector<8x512xf32>
    %c21 = arith.constant 21 : index
    %c0_220 = arith.constant 0 : index
    %c0_221 = arith.constant 0 : index
    %420 = vector.load %arg3[%c21, %c0_220, %c0_221] : memref<81x8x8xf32, #tpu.memory_space<vmem>>, vector<1x8x8xf32>
    %421 = vector.shape_cast %420 : vector<1x8x8xf32> to vector<8x8xf32>
    %c1_i32_222 = arith.constant 1 : i32
    %422 = tpu.dynamic_rotate %389 by %c1_i32_222 dim 1 : vector<8x512xf32>, i32 -> vector<8x512xf32>
    %c3_223 = arith.constant 3 : index
    %c0_224 = arith.constant 0 : index
    %c0_225 = arith.constant 0 : index
    %423 = vector.load %arg8[%c3_223, %c0_224, %c0_225] : memref<9x1x512xf32, #tpu.memory_space<vmem>>, vector<1x1x512xf32>
    %424 = vector.shape_cast %423 : vector<1x1x512xf32> to vector<1x512xf32>
    %425 = vector.broadcast %424 : vector<1x512xf32> to vector<8x512xf32>
    %426 = arith.mulf %422, %425 : vector<8x512xf32>
    %cst_226 = arith.constant dense<0.000000e+00> : vector<8x512xf32>
    %427 = tpu.matmul %421, %426, %cst_226 {dimension_numbers = #tpu.dot_dimension_numbers<[1], [0], [0], [1], [0, 0, 1, 1], [], []>} : vector<8x8xf32>, vector<8x512xf32>, vector<8x512xf32> -> vector<8x512xf32>
    %428 = arith.addf %419, %427 : vector<8x512xf32>
    %c23 = arith.constant 23 : index
    %c0_227 = arith.constant 0 : index
    %c0_228 = arith.constant 0 : index
    %429 = vector.load %arg3[%c23, %c0_227, %c0_228] : memref<81x8x8xf32, #tpu.memory_space<vmem>>, vector<1x8x8xf32>
    %430 = vector.shape_cast %429 : vector<1x8x8xf32> to vector<8x8xf32>
    %c511_i32_229 = arith.constant 511 : i32
    %431 = tpu.dynamic_rotate %389 by %c511_i32_229 dim 1 : vector<8x512xf32>, i32 -> vector<8x512xf32>
    %c5_230 = arith.constant 5 : index
    %c0_231 = arith.constant 0 : index
    %c0_232 = arith.constant 0 : index
    %432 = vector.load %arg8[%c5_230, %c0_231, %c0_232] : memref<9x1x512xf32, #tpu.memory_space<vmem>>, vector<1x1x512xf32>
    %433 = vector.shape_cast %432 : vector<1x1x512xf32> to vector<1x512xf32>
    %434 = vector.broadcast %433 : vector<1x512xf32> to vector<8x512xf32>
    %435 = arith.mulf %431, %434 : vector<8x512xf32>
    %cst_233 = arith.constant dense<0.000000e+00> : vector<8x512xf32>
    %436 = tpu.matmul %430, %435, %cst_233 {dimension_numbers = #tpu.dot_dimension_numbers<[1], [0], [0], [1], [0, 0, 1, 1], [], []>} : vector<8x8xf32>, vector<8x512xf32>, vector<8x512xf32> -> vector<8x512xf32>
    %437 = arith.addf %428, %436 : vector<8x512xf32>
    %c24 = arith.constant 24 : index
    %c0_234 = arith.constant 0 : index
    %c0_235 = arith.constant 0 : index
    %438 = vector.load %arg3[%c24, %c0_234, %c0_235] : memref<81x8x8xf32, #tpu.memory_space<vmem>>, vector<1x8x8xf32>
    %439 = vector.shape_cast %438 : vector<1x8x8xf32> to vector<8x8xf32>
    %c497_i32_236 = arith.constant 497 : i32
    %440 = tpu.dynamic_rotate %389 by %c497_i32_236 dim 1 : vector<8x512xf32>, i32 -> vector<8x512xf32>
    %c6_237 = arith.constant 6 : index
    %c0_238 = arith.constant 0 : index
    %c0_239 = arith.constant 0 : index
    %441 = vector.load %arg8[%c6_237, %c0_238, %c0_239] : memref<9x1x512xf32, #tpu.memory_space<vmem>>, vector<1x1x512xf32>
    %442 = vector.shape_cast %441 : vector<1x1x512xf32> to vector<1x512xf32>
    %443 = vector.broadcast %442 : vector<1x512xf32> to vector<8x512xf32>
    %444 = arith.mulf %440, %443 : vector<8x512xf32>
    %cst_240 = arith.constant dense<0.000000e+00> : vector<8x512xf32>
    %445 = tpu.matmul %439, %444, %cst_240 {dimension_numbers = #tpu.dot_dimension_numbers<[1], [0], [0], [1], [0, 0, 1, 1], [], []>} : vector<8x8xf32>, vector<8x512xf32>, vector<8x512xf32> -> vector<8x512xf32>
    %446 = arith.addf %437, %445 : vector<8x512xf32>
    %c25 = arith.constant 25 : index
    %c0_241 = arith.constant 0 : index
    %c0_242 = arith.constant 0 : index
    %447 = vector.load %arg3[%c25, %c0_241, %c0_242] : memref<81x8x8xf32, #tpu.memory_space<vmem>>, vector<1x8x8xf32>
    %448 = vector.shape_cast %447 : vector<1x8x8xf32> to vector<8x8xf32>
    %c496_i32_243 = arith.constant 496 : i32
    %449 = tpu.dynamic_rotate %389 by %c496_i32_243 dim 1 : vector<8x512xf32>, i32 -> vector<8x512xf32>
    %c7_244 = arith.constant 7 : index
    %c0_245 = arith.constant 0 : index
    %c0_246 = arith.constant 0 : index
    %450 = vector.load %arg8[%c7_244, %c0_245, %c0_246] : memref<9x1x512xf32, #tpu.memory_space<vmem>>, vector<1x1x512xf32>
    %451 = vector.shape_cast %450 : vector<1x1x512xf32> to vector<1x512xf32>
    %452 = vector.broadcast %451 : vector<1x512xf32> to vector<8x512xf32>
    %453 = arith.mulf %449, %452 : vector<8x512xf32>
    %cst_247 = arith.constant dense<0.000000e+00> : vector<8x512xf32>
    %454 = tpu.matmul %448, %453, %cst_247 {dimension_numbers = #tpu.dot_dimension_numbers<[1], [0], [0], [1], [0, 0, 1, 1], [], []>} : vector<8x8xf32>, vector<8x512xf32>, vector<8x512xf32> -> vector<8x512xf32>
    %455 = arith.addf %446, %454 : vector<8x512xf32>
    %c26 = arith.constant 26 : index
    %c0_248 = arith.constant 0 : index
    %c0_249 = arith.constant 0 : index
    %456 = vector.load %arg3[%c26, %c0_248, %c0_249] : memref<81x8x8xf32, #tpu.memory_space<vmem>>, vector<1x8x8xf32>
    %457 = vector.shape_cast %456 : vector<1x8x8xf32> to vector<8x8xf32>
    %c495_i32_250 = arith.constant 495 : i32
    %458 = tpu.dynamic_rotate %389 by %c495_i32_250 dim 1 : vector<8x512xf32>, i32 -> vector<8x512xf32>
    %c8_251 = arith.constant 8 : index
    %c0_252 = arith.constant 0 : index
    %c0_253 = arith.constant 0 : index
    %459 = vector.load %arg8[%c8_251, %c0_252, %c0_253] : memref<9x1x512xf32, #tpu.memory_space<vmem>>, vector<1x1x512xf32>
    %460 = vector.shape_cast %459 : vector<1x1x512xf32> to vector<1x512xf32>
    %461 = vector.broadcast %460 : vector<1x512xf32> to vector<8x512xf32>
    %462 = arith.mulf %458, %461 : vector<8x512xf32>
    %cst_254 = arith.constant dense<0.000000e+00> : vector<8x512xf32>
    %463 = tpu.matmul %457, %462, %cst_254 {dimension_numbers = #tpu.dot_dimension_numbers<[1], [0], [0], [1], [0, 0, 1, 1], [], []>} : vector<8x8xf32>, vector<8x512xf32>, vector<8x512xf32> -> vector<8x512xf32>
    %464 = arith.addf %455, %463 : vector<8x512xf32>
    %465 = vector.extract_strided_slice %332 {offsets = [0, 4], sizes = [8, 1], strides = [1, 1]} : vector<8x6xf32> to vector<8x1xf32>
    %466 = vector.extract_strided_slice %332 {offsets = [0, 5], sizes = [8, 1], strides = [1, 1]} : vector<8x6xf32> to vector<8x1xf32>
    %cst_255 = arith.constant dense<0.000000e+00> : vector<8xf32>
    %467 = vector.multi_reduction <add>, %464, %cst_255 [1] : vector<8x512xf32> to vector<8xf32>
    %468 = vector.shape_cast %467 : vector<8xf32> to vector<8x1xf32>
    %cst_256 = arith.constant 0.001953125 : f32
    %469 = vector.broadcast %cst_256 : f32 to vector<8x1xf32>
    %470 = arith.mulf %468, %469 : vector<8x1xf32>
    %471 = arith.mulf %464, %464 : vector<8x512xf32>
    %cst_257 = arith.constant dense<0.000000e+00> : vector<8xf32>
    %472 = vector.multi_reduction <add>, %471, %cst_257 [1] : vector<8x512xf32> to vector<8xf32>
    %473 = vector.shape_cast %472 : vector<8xf32> to vector<8x1xf32>
    %cst_258 = arith.constant 0.001953125 : f32
    %474 = vector.broadcast %cst_258 : f32 to vector<8x1xf32>
    %475 = arith.mulf %473, %474 : vector<8x1xf32>
    %476 = arith.mulf %470, %470 : vector<8x1xf32>
    %477 = arith.subf %475, %476 : vector<8x1xf32>
    %cst_259 = arith.constant 0.000000e+00 : f32
    %478 = vector.broadcast %cst_259 : f32 to vector<8x1xf32>
    %479 = arith.maximumf %477, %478 : vector<8x1xf32>
    %cst_260 = arith.constant 9.99999974E-6 : f32
    %480 = vector.broadcast %cst_260 : f32 to vector<8x1xf32>
    %481 = arith.addf %479, %480 : vector<8x1xf32>
    %482 = math.rsqrt %481 : vector<8x1xf32>
    %483 = arith.mulf %482, %465 : vector<8x1xf32>
    %484 = arith.mulf %470, %483 : vector<8x1xf32>
    %485 = arith.subf %466, %484 : vector<8x1xf32>
    %486 = vector.broadcast %483 : vector<8x1xf32> to vector<8x512xf32>
    %487 = arith.mulf %464, %486 : vector<8x512xf32>
    %488 = vector.broadcast %485 : vector<8x1xf32> to vector<8x512xf32>
    %489 = arith.addf %487, %488 : vector<8x512xf32>
    %cst_261 = arith.constant 0.000000e+00 : f32
    %490 = vector.broadcast %cst_261 : f32 to vector<8x512xf32>
    %491 = arith.maximumf %489, %490 : vector<8x512xf32>
    %c2_262 = arith.constant 2 : index
    %c0_263 = arith.constant 0 : index
    %c0_264 = arith.constant 0 : index
    %492 = vector.load %arg4[%c2_262, %c0_263, %c0_264] : memref<9x8x8xf32, #tpu.memory_space<vmem>>, vector<1x8x8xf32>
    %493 = vector.shape_cast %492 : vector<1x8x8xf32> to vector<8x8xf32>
    %cst_265 = arith.constant dense<0.000000e+00> : vector<8x512xf32>
    %494 = tpu.matmul %493, %491, %cst_265 {dimension_numbers = #tpu.dot_dimension_numbers<[1], [0], [0], [1], [0, 0, 1, 1], [], []>} : vector<8x8xf32>, vector<8x512xf32>, vector<8x512xf32> -> vector<8x512xf32>
    %495 = arith.addf %494, %330 : vector<8x512xf32>
    %c17_i32_266 = arith.constant 17 : i32
    %496 = tpu.dynamic_rotate %165 by %c17_i32_266 dim 1 : vector<8x512xf32>, i32 -> vector<8x512xf32>
    %c0_267 = arith.constant 0 : index
    %c0_268 = arith.constant 0 : index
    %c0_269 = arith.constant 0 : index
    %497 = vector.load %arg8[%c0_267, %c0_268, %c0_269] : memref<9x1x512xf32, #tpu.memory_space<vmem>>, vector<1x1x512xf32>
    %498 = vector.shape_cast %497 : vector<1x1x512xf32> to vector<1x512xf32>
    %499 = vector.broadcast %498 : vector<1x512xf32> to vector<8x512xf32>
    %500 = arith.mulf %496, %499 : vector<8x512xf32>
    %cst_270 = arith.constant 1.000000e+00 : f32
    %501 = vector.broadcast %cst_270 : f32 to vector<1x512xf32>
    %502 = arith.subf %498, %501 : vector<1x512xf32>
    %cst_271 = arith.constant 1.000000e+30 : f32
    %503 = vector.broadcast %cst_271 : f32 to vector<1x512xf32>
    %504 = arith.mulf %502, %503 : vector<1x512xf32>
    %505 = vector.broadcast %504 : vector<1x512xf32> to vector<8x512xf32>
    %506 = arith.addf %500, %505 : vector<8x512xf32>
    %507 = arith.maximumf %165, %506 : vector<8x512xf32>
    %c16_i32_272 = arith.constant 16 : i32
    %508 = tpu.dynamic_rotate %165 by %c16_i32_272 dim 1 : vector<8x512xf32>, i32 -> vector<8x512xf32>
    %c1_273 = arith.constant 1 : index
    %c0_274 = arith.constant 0 : index
    %c0_275 = arith.constant 0 : index
    %509 = vector.load %arg8[%c1_273, %c0_274, %c0_275] : memref<9x1x512xf32, #tpu.memory_space<vmem>>, vector<1x1x512xf32>
    %510 = vector.shape_cast %509 : vector<1x1x512xf32> to vector<1x512xf32>
    %511 = vector.broadcast %510 : vector<1x512xf32> to vector<8x512xf32>
    %512 = arith.mulf %508, %511 : vector<8x512xf32>
    %cst_276 = arith.constant 1.000000e+00 : f32
    %513 = vector.broadcast %cst_276 : f32 to vector<1x512xf32>
    %514 = arith.subf %510, %513 : vector<1x512xf32>
    %cst_277 = arith.constant 1.000000e+30 : f32
    %515 = vector.broadcast %cst_277 : f32 to vector<1x512xf32>
    %516 = arith.mulf %514, %515 : vector<1x512xf32>
    %517 = vector.broadcast %516 : vector<1x512xf32> to vector<8x512xf32>
    %518 = arith.addf %512, %517 : vector<8x512xf32>
    %519 = arith.maximumf %507, %518 : vector<8x512xf32>
    %c15_i32_278 = arith.constant 15 : i32
    %520 = tpu.dynamic_rotate %165 by %c15_i32_278 dim 1 : vector<8x512xf32>, i32 -> vector<8x512xf32>
    %c2_279 = arith.constant 2 : index
    %c0_280 = arith.constant 0 : index
    %c0_281 = arith.constant 0 : index
    %521 = vector.load %arg8[%c2_279, %c0_280, %c0_281] : memref<9x1x512xf32, #tpu.memory_space<vmem>>, vector<1x1x512xf32>
    %522 = vector.shape_cast %521 : vector<1x1x512xf32> to vector<1x512xf32>
    %523 = vector.broadcast %522 : vector<1x512xf32> to vector<8x512xf32>
    %524 = arith.mulf %520, %523 : vector<8x512xf32>
    %cst_282 = arith.constant 1.000000e+00 : f32
    %525 = vector.broadcast %cst_282 : f32 to vector<1x512xf32>
    %526 = arith.subf %522, %525 : vector<1x512xf32>
    %cst_283 = arith.constant 1.000000e+30 : f32
    %527 = vector.broadcast %cst_283 : f32 to vector<1x512xf32>
    %528 = arith.mulf %526, %527 : vector<1x512xf32>
    %529 = vector.broadcast %528 : vector<1x512xf32> to vector<8x512xf32>
    %530 = arith.addf %524, %529 : vector<8x512xf32>
    %531 = arith.maximumf %519, %530 : vector<8x512xf32>
    %c1_i32_284 = arith.constant 1 : i32
    %532 = tpu.dynamic_rotate %165 by %c1_i32_284 dim 1 : vector<8x512xf32>, i32 -> vector<8x512xf32>
    %c3_285 = arith.constant 3 : index
    %c0_286 = arith.constant 0 : index
    %c0_287 = arith.constant 0 : index
    %533 = vector.load %arg8[%c3_285, %c0_286, %c0_287] : memref<9x1x512xf32, #tpu.memory_space<vmem>>, vector<1x1x512xf32>
    %534 = vector.shape_cast %533 : vector<1x1x512xf32> to vector<1x512xf32>
    %535 = vector.broadcast %534 : vector<1x512xf32> to vector<8x512xf32>
    %536 = arith.mulf %532, %535 : vector<8x512xf32>
    %cst_288 = arith.constant 1.000000e+00 : f32
    %537 = vector.broadcast %cst_288 : f32 to vector<1x512xf32>
    %538 = arith.subf %534, %537 : vector<1x512xf32>
    %cst_289 = arith.constant 1.000000e+30 : f32
    %539 = vector.broadcast %cst_289 : f32 to vector<1x512xf32>
    %540 = arith.mulf %538, %539 : vector<1x512xf32>
    %541 = vector.broadcast %540 : vector<1x512xf32> to vector<8x512xf32>
    %542 = arith.addf %536, %541 : vector<8x512xf32>
    %543 = arith.maximumf %531, %542 : vector<8x512xf32>
    %c511_i32_290 = arith.constant 511 : i32
    %544 = tpu.dynamic_rotate %165 by %c511_i32_290 dim 1 : vector<8x512xf32>, i32 -> vector<8x512xf32>
    %c5_291 = arith.constant 5 : index
    %c0_292 = arith.constant 0 : index
    %c0_293 = arith.constant 0 : index
    %545 = vector.load %arg8[%c5_291, %c0_292, %c0_293] : memref<9x1x512xf32, #tpu.memory_space<vmem>>, vector<1x1x512xf32>
    %546 = vector.shape_cast %545 : vector<1x1x512xf32> to vector<1x512xf32>
    %547 = vector.broadcast %546 : vector<1x512xf32> to vector<8x512xf32>
    %548 = arith.mulf %544, %547 : vector<8x512xf32>
    %cst_294 = arith.constant 1.000000e+00 : f32
    %549 = vector.broadcast %cst_294 : f32 to vector<1x512xf32>
    %550 = arith.subf %546, %549 : vector<1x512xf32>
    %cst_295 = arith.constant 1.000000e+30 : f32
    %551 = vector.broadcast %cst_295 : f32 to vector<1x512xf32>
    %552 = arith.mulf %550, %551 : vector<1x512xf32>
    %553 = vector.broadcast %552 : vector<1x512xf32> to vector<8x512xf32>
    %554 = arith.addf %548, %553 : vector<8x512xf32>
    %555 = arith.maximumf %543, %554 : vector<8x512xf32>
    %c497_i32_296 = arith.constant 497 : i32
    %556 = tpu.dynamic_rotate %165 by %c497_i32_296 dim 1 : vector<8x512xf32>, i32 -> vector<8x512xf32>
    %c6_297 = arith.constant 6 : index
    %c0_298 = arith.constant 0 : index
    %c0_299 = arith.constant 0 : index
    %557 = vector.load %arg8[%c6_297, %c0_298, %c0_299] : memref<9x1x512xf32, #tpu.memory_space<vmem>>, vector<1x1x512xf32>
    %558 = vector.shape_cast %557 : vector<1x1x512xf32> to vector<1x512xf32>
    %559 = vector.broadcast %558 : vector<1x512xf32> to vector<8x512xf32>
    %560 = arith.mulf %556, %559 : vector<8x512xf32>
    %cst_300 = arith.constant 1.000000e+00 : f32
    %561 = vector.broadcast %cst_300 : f32 to vector<1x512xf32>
    %562 = arith.subf %558, %561 : vector<1x512xf32>
    %cst_301 = arith.constant 1.000000e+30 : f32
    %563 = vector.broadcast %cst_301 : f32 to vector<1x512xf32>
    %564 = arith.mulf %562, %563 : vector<1x512xf32>
    %565 = vector.broadcast %564 : vector<1x512xf32> to vector<8x512xf32>
    %566 = arith.addf %560, %565 : vector<8x512xf32>
    %567 = arith.maximumf %555, %566 : vector<8x512xf32>
    %c496_i32_302 = arith.constant 496 : i32
    %568 = tpu.dynamic_rotate %165 by %c496_i32_302 dim 1 : vector<8x512xf32>, i32 -> vector<8x512xf32>
    %c7_303 = arith.constant 7 : index
    %c0_304 = arith.constant 0 : index
    %c0_305 = arith.constant 0 : index
    %569 = vector.load %arg8[%c7_303, %c0_304, %c0_305] : memref<9x1x512xf32, #tpu.memory_space<vmem>>, vector<1x1x512xf32>
    %570 = vector.shape_cast %569 : vector<1x1x512xf32> to vector<1x512xf32>
    %571 = vector.broadcast %570 : vector<1x512xf32> to vector<8x512xf32>
    %572 = arith.mulf %568, %571 : vector<8x512xf32>
    %cst_306 = arith.constant 1.000000e+00 : f32
    %573 = vector.broadcast %cst_306 : f32 to vector<1x512xf32>
    %574 = arith.subf %570, %573 : vector<1x512xf32>
    %cst_307 = arith.constant 1.000000e+30 : f32
    %575 = vector.broadcast %cst_307 : f32 to vector<1x512xf32>
    %576 = arith.mulf %574, %575 : vector<1x512xf32>
    %577 = vector.broadcast %576 : vector<1x512xf32> to vector<8x512xf32>
    %578 = arith.addf %572, %577 : vector<8x512xf32>
    %579 = arith.maximumf %567, %578 : vector<8x512xf32>
    %c495_i32_308 = arith.constant 495 : i32
    %580 = tpu.dynamic_rotate %165 by %c495_i32_308 dim 1 : vector<8x512xf32>, i32 -> vector<8x512xf32>
    %c8_309 = arith.constant 8 : index
    %c0_310 = arith.constant 0 : index
    %c0_311 = arith.constant 0 : index
    %581 = vector.load %arg8[%c8_309, %c0_310, %c0_311] : memref<9x1x512xf32, #tpu.memory_space<vmem>>, vector<1x1x512xf32>
    %582 = vector.shape_cast %581 : vector<1x1x512xf32> to vector<1x512xf32>
    %583 = vector.broadcast %582 : vector<1x512xf32> to vector<8x512xf32>
    %584 = arith.mulf %580, %583 : vector<8x512xf32>
    %cst_312 = arith.constant 1.000000e+00 : f32
    %585 = vector.broadcast %cst_312 : f32 to vector<1x512xf32>
    %586 = arith.subf %582, %585 : vector<1x512xf32>
    %cst_313 = arith.constant 1.000000e+30 : f32
    %587 = vector.broadcast %cst_313 : f32 to vector<1x512xf32>
    %588 = arith.mulf %586, %587 : vector<1x512xf32>
    %589 = vector.broadcast %588 : vector<1x512xf32> to vector<8x512xf32>
    %590 = arith.addf %584, %589 : vector<8x512xf32>
    %591 = arith.maximumf %579, %590 : vector<8x512xf32>
    %c0_314 = arith.constant 0 : index
    %c0_315 = arith.constant 0 : index
    %592 = vector.load %arg10[%c0_314, %c0_315] : memref<512x128xf32, #tpu.memory_space<vmem>>, vector<512x128xf32>
    %cst_316 = arith.constant dense<0.000000e+00> : vector<8x128xf32>
    %593 = tpu.matmul %591, %592, %cst_316 {dimension_numbers = #tpu.dot_dimension_numbers<[1], [0], [0], [1], [0, 0, 1, 1], [], []>} : vector<8x512xf32>, vector<512x128xf32>, vector<8x128xf32> -> vector<8x128xf32>
    %c3_317 = arith.constant 3 : index
    %c0_318 = arith.constant 0 : index
    %c0_319 = arith.constant 0 : index
    %594 = vector.load %arg1[%c3_317, %c0_318, %c0_319] : memref<9x8x6xf32, #tpu.memory_space<vmem>>, vector<1x8x6xf32>
    %595 = vector.shape_cast %594 : vector<1x8x6xf32> to vector<8x6xf32>
    %596 = vector.extract_strided_slice %595 {offsets = [0, 0], sizes = [8, 1], strides = [1, 1]} : vector<8x6xf32> to vector<8x1xf32>
    %597 = vector.extract_strided_slice %595 {offsets = [0, 1], sizes = [8, 1], strides = [1, 1]} : vector<8x6xf32> to vector<8x1xf32>
    %cst_320 = arith.constant dense<0.000000e+00> : vector<8xf32>
    %598 = vector.multi_reduction <add>, %593, %cst_320 [1] : vector<8x128xf32> to vector<8xf32>
    %599 = vector.shape_cast %598 : vector<8xf32> to vector<8x1xf32>
    %cst_321 = arith.constant 7.812500e-03 : f32
    %600 = vector.broadcast %cst_321 : f32 to vector<8x1xf32>
    %601 = arith.mulf %599, %600 : vector<8x1xf32>
    %602 = arith.mulf %593, %593 : vector<8x128xf32>
    %cst_322 = arith.constant dense<0.000000e+00> : vector<8xf32>
    %603 = vector.multi_reduction <add>, %602, %cst_322 [1] : vector<8x128xf32> to vector<8xf32>
    %604 = vector.shape_cast %603 : vector<8xf32> to vector<8x1xf32>
    %cst_323 = arith.constant 7.812500e-03 : f32
    %605 = vector.broadcast %cst_323 : f32 to vector<8x1xf32>
    %606 = arith.mulf %604, %605 : vector<8x1xf32>
    %607 = arith.mulf %601, %601 : vector<8x1xf32>
    %608 = arith.subf %606, %607 : vector<8x1xf32>
    %cst_324 = arith.constant 0.000000e+00 : f32
    %609 = vector.broadcast %cst_324 : f32 to vector<8x1xf32>
    %610 = arith.maximumf %608, %609 : vector<8x1xf32>
    %cst_325 = arith.constant 9.99999974E-6 : f32
    %611 = vector.broadcast %cst_325 : f32 to vector<8x1xf32>
    %612 = arith.addf %610, %611 : vector<8x1xf32>
    %613 = math.rsqrt %612 : vector<8x1xf32>
    %614 = arith.mulf %613, %596 : vector<8x1xf32>
    %615 = arith.mulf %601, %614 : vector<8x1xf32>
    %616 = arith.subf %597, %615 : vector<8x1xf32>
    %617 = vector.broadcast %614 : vector<8x1xf32> to vector<8x128xf32>
    %618 = arith.mulf %593, %617 : vector<8x128xf32>
    %619 = vector.broadcast %616 : vector<8x1xf32> to vector<8x128xf32>
    %620 = arith.addf %618, %619 : vector<8x128xf32>
    %cst_326 = arith.constant 0.000000e+00 : f32
    %621 = vector.broadcast %cst_326 : f32 to vector<8x128xf32>
    %622 = arith.maximumf %620, %621 : vector<8x128xf32>
    %c3_327 = arith.constant 3 : index
    %c0_328 = arith.constant 0 : index
    %c0_329 = arith.constant 0 : index
    %623 = vector.load %arg2[%c3_327, %c0_328, %c0_329] : memref<9x8x8xf32, #tpu.memory_space<vmem>>, vector<1x8x8xf32>
    %624 = vector.shape_cast %623 : vector<1x8x8xf32> to vector<8x8xf32>
    %cst_330 = arith.constant dense<0.000000e+00> : vector<8x128xf32>
    %625 = tpu.matmul %624, %622, %cst_330 {dimension_numbers = #tpu.dot_dimension_numbers<[1], [0], [0], [1], [0, 0, 1, 1], [], []>} : vector<8x8xf32>, vector<8x128xf32>, vector<8x128xf32> -> vector<8x128xf32>
    %626 = vector.extract_strided_slice %595 {offsets = [0, 2], sizes = [8, 1], strides = [1, 1]} : vector<8x6xf32> to vector<8x1xf32>
    %627 = vector.extract_strided_slice %595 {offsets = [0, 3], sizes = [8, 1], strides = [1, 1]} : vector<8x6xf32> to vector<8x1xf32>
    %cst_331 = arith.constant dense<0.000000e+00> : vector<8xf32>
    %628 = vector.multi_reduction <add>, %625, %cst_331 [1] : vector<8x128xf32> to vector<8xf32>
    %629 = vector.shape_cast %628 : vector<8xf32> to vector<8x1xf32>
    %cst_332 = arith.constant 7.812500e-03 : f32
    %630 = vector.broadcast %cst_332 : f32 to vector<8x1xf32>
    %631 = arith.mulf %629, %630 : vector<8x1xf32>
    %632 = arith.mulf %625, %625 : vector<8x128xf32>
    %cst_333 = arith.constant dense<0.000000e+00> : vector<8xf32>
    %633 = vector.multi_reduction <add>, %632, %cst_333 [1] : vector<8x128xf32> to vector<8xf32>
    %634 = vector.shape_cast %633 : vector<8xf32> to vector<8x1xf32>
    %cst_334 = arith.constant 7.812500e-03 : f32
    %635 = vector.broadcast %cst_334 : f32 to vector<8x1xf32>
    %636 = arith.mulf %634, %635 : vector<8x1xf32>
    %637 = arith.mulf %631, %631 : vector<8x1xf32>
    %638 = arith.subf %636, %637 : vector<8x1xf32>
    %cst_335 = arith.constant 0.000000e+00 : f32
    %639 = vector.broadcast %cst_335 : f32 to vector<8x1xf32>
    %640 = arith.maximumf %638, %639 : vector<8x1xf32>
    %cst_336 = arith.constant 9.99999974E-6 : f32
    %641 = vector.broadcast %cst_336 : f32 to vector<8x1xf32>
    %642 = arith.addf %640, %641 : vector<8x1xf32>
    %643 = math.rsqrt %642 : vector<8x1xf32>
    %644 = arith.mulf %643, %626 : vector<8x1xf32>
    %645 = arith.mulf %631, %644 : vector<8x1xf32>
    %646 = arith.subf %627, %645 : vector<8x1xf32>
    %647 = vector.broadcast %644 : vector<8x1xf32> to vector<8x128xf32>
    %648 = arith.mulf %625, %647 : vector<8x128xf32>
    %649 = vector.broadcast %646 : vector<8x1xf32> to vector<8x128xf32>
    %650 = arith.addf %648, %649 : vector<8x128xf32>
    %cst_337 = arith.constant 0.000000e+00 : f32
    %651 = vector.broadcast %cst_337 : f32 to vector<8x128xf32>
    %652 = arith.maximumf %650, %651 : vector<8x128xf32>
    %c31 = arith.constant 31 : index
    %c0_338 = arith.constant 0 : index
    %c0_339 = arith.constant 0 : index
    %653 = vector.load %arg3[%c31, %c0_338, %c0_339] : memref<81x8x8xf32, #tpu.memory_space<vmem>>, vector<1x8x8xf32>
    %654 = vector.shape_cast %653 : vector<1x8x8xf32> to vector<8x8xf32>
    %cst_340 = arith.constant dense<0.000000e+00> : vector<8x128xf32>
    %655 = tpu.matmul %654, %652, %cst_340 {dimension_numbers = #tpu.dot_dimension_numbers<[1], [0], [0], [1], [0, 0, 1, 1], [], []>} : vector<8x8xf32>, vector<8x128xf32>, vector<8x128xf32> -> vector<8x128xf32>
    %c27 = arith.constant 27 : index
    %c0_341 = arith.constant 0 : index
    %c0_342 = arith.constant 0 : index
    %656 = vector.load %arg3[%c27, %c0_341, %c0_342] : memref<81x8x8xf32, #tpu.memory_space<vmem>>, vector<1x8x8xf32>
    %657 = vector.shape_cast %656 : vector<1x8x8xf32> to vector<8x8xf32>
    %c9_i32 = arith.constant 9 : i32
    %658 = tpu.dynamic_rotate %652 by %c9_i32 dim 1 : vector<8x128xf32>, i32 -> vector<8x128xf32>
    %c0_343 = arith.constant 0 : index
    %c0_344 = arith.constant 0 : index
    %c0_345 = arith.constant 0 : index
    %659 = vector.load %arg9[%c0_343, %c0_344, %c0_345] : memref<9x1x128xf32, #tpu.memory_space<vmem>>, vector<1x1x128xf32>
    %660 = vector.shape_cast %659 : vector<1x1x128xf32> to vector<1x128xf32>
    %661 = vector.broadcast %660 : vector<1x128xf32> to vector<8x128xf32>
    %662 = arith.mulf %658, %661 : vector<8x128xf32>
    %cst_346 = arith.constant dense<0.000000e+00> : vector<8x128xf32>
    %663 = tpu.matmul %657, %662, %cst_346 {dimension_numbers = #tpu.dot_dimension_numbers<[1], [0], [0], [1], [0, 0, 1, 1], [], []>} : vector<8x8xf32>, vector<8x128xf32>, vector<8x128xf32> -> vector<8x128xf32>
    %664 = arith.addf %655, %663 : vector<8x128xf32>
    %c28 = arith.constant 28 : index
    %c0_347 = arith.constant 0 : index
    %c0_348 = arith.constant 0 : index
    %665 = vector.load %arg3[%c28, %c0_347, %c0_348] : memref<81x8x8xf32, #tpu.memory_space<vmem>>, vector<1x8x8xf32>
    %666 = vector.shape_cast %665 : vector<1x8x8xf32> to vector<8x8xf32>
    %c8_i32 = arith.constant 8 : i32
    %667 = tpu.dynamic_rotate %652 by %c8_i32 dim 1 : vector<8x128xf32>, i32 -> vector<8x128xf32>
    %c1_349 = arith.constant 1 : index
    %c0_350 = arith.constant 0 : index
    %c0_351 = arith.constant 0 : index
    %668 = vector.load %arg9[%c1_349, %c0_350, %c0_351] : memref<9x1x128xf32, #tpu.memory_space<vmem>>, vector<1x1x128xf32>
    %669 = vector.shape_cast %668 : vector<1x1x128xf32> to vector<1x128xf32>
    %670 = vector.broadcast %669 : vector<1x128xf32> to vector<8x128xf32>
    %671 = arith.mulf %667, %670 : vector<8x128xf32>
    %cst_352 = arith.constant dense<0.000000e+00> : vector<8x128xf32>
    %672 = tpu.matmul %666, %671, %cst_352 {dimension_numbers = #tpu.dot_dimension_numbers<[1], [0], [0], [1], [0, 0, 1, 1], [], []>} : vector<8x8xf32>, vector<8x128xf32>, vector<8x128xf32> -> vector<8x128xf32>
    %673 = arith.addf %664, %672 : vector<8x128xf32>
    %c29 = arith.constant 29 : index
    %c0_353 = arith.constant 0 : index
    %c0_354 = arith.constant 0 : index
    %674 = vector.load %arg3[%c29, %c0_353, %c0_354] : memref<81x8x8xf32, #tpu.memory_space<vmem>>, vector<1x8x8xf32>
    %675 = vector.shape_cast %674 : vector<1x8x8xf32> to vector<8x8xf32>
    %c7_i32 = arith.constant 7 : i32
    %676 = tpu.dynamic_rotate %652 by %c7_i32 dim 1 : vector<8x128xf32>, i32 -> vector<8x128xf32>
    %c2_355 = arith.constant 2 : index
    %c0_356 = arith.constant 0 : index
    %c0_357 = arith.constant 0 : index
    %677 = vector.load %arg9[%c2_355, %c0_356, %c0_357] : memref<9x1x128xf32, #tpu.memory_space<vmem>>, vector<1x1x128xf32>
    %678 = vector.shape_cast %677 : vector<1x1x128xf32> to vector<1x128xf32>
    %679 = vector.broadcast %678 : vector<1x128xf32> to vector<8x128xf32>
    %680 = arith.mulf %676, %679 : vector<8x128xf32>
    %cst_358 = arith.constant dense<0.000000e+00> : vector<8x128xf32>
    %681 = tpu.matmul %675, %680, %cst_358 {dimension_numbers = #tpu.dot_dimension_numbers<[1], [0], [0], [1], [0, 0, 1, 1], [], []>} : vector<8x8xf32>, vector<8x128xf32>, vector<8x128xf32> -> vector<8x128xf32>
    %682 = arith.addf %673, %681 : vector<8x128xf32>
    %c30 = arith.constant 30 : index
    %c0_359 = arith.constant 0 : index
    %c0_360 = arith.constant 0 : index
    %683 = vector.load %arg3[%c30, %c0_359, %c0_360] : memref<81x8x8xf32, #tpu.memory_space<vmem>>, vector<1x8x8xf32>
    %684 = vector.shape_cast %683 : vector<1x8x8xf32> to vector<8x8xf32>
    %c1_i32_361 = arith.constant 1 : i32
    %685 = tpu.dynamic_rotate %652 by %c1_i32_361 dim 1 : vector<8x128xf32>, i32 -> vector<8x128xf32>
    %c3_362 = arith.constant 3 : index
    %c0_363 = arith.constant 0 : index
    %c0_364 = arith.constant 0 : index
    %686 = vector.load %arg9[%c3_362, %c0_363, %c0_364] : memref<9x1x128xf32, #tpu.memory_space<vmem>>, vector<1x1x128xf32>
    %687 = vector.shape_cast %686 : vector<1x1x128xf32> to vector<1x128xf32>
    %688 = vector.broadcast %687 : vector<1x128xf32> to vector<8x128xf32>
    %689 = arith.mulf %685, %688 : vector<8x128xf32>
    %cst_365 = arith.constant dense<0.000000e+00> : vector<8x128xf32>
    %690 = tpu.matmul %684, %689, %cst_365 {dimension_numbers = #tpu.dot_dimension_numbers<[1], [0], [0], [1], [0, 0, 1, 1], [], []>} : vector<8x8xf32>, vector<8x128xf32>, vector<8x128xf32> -> vector<8x128xf32>
    %691 = arith.addf %682, %690 : vector<8x128xf32>
    %c32 = arith.constant 32 : index
    %c0_366 = arith.constant 0 : index
    %c0_367 = arith.constant 0 : index
    %692 = vector.load %arg3[%c32, %c0_366, %c0_367] : memref<81x8x8xf32, #tpu.memory_space<vmem>>, vector<1x8x8xf32>
    %693 = vector.shape_cast %692 : vector<1x8x8xf32> to vector<8x8xf32>
    %c127_i32 = arith.constant 127 : i32
    %694 = tpu.dynamic_rotate %652 by %c127_i32 dim 1 : vector<8x128xf32>, i32 -> vector<8x128xf32>
    %c5_368 = arith.constant 5 : index
    %c0_369 = arith.constant 0 : index
    %c0_370 = arith.constant 0 : index
    %695 = vector.load %arg9[%c5_368, %c0_369, %c0_370] : memref<9x1x128xf32, #tpu.memory_space<vmem>>, vector<1x1x128xf32>
    %696 = vector.shape_cast %695 : vector<1x1x128xf32> to vector<1x128xf32>
    %697 = vector.broadcast %696 : vector<1x128xf32> to vector<8x128xf32>
    %698 = arith.mulf %694, %697 : vector<8x128xf32>
    %cst_371 = arith.constant dense<0.000000e+00> : vector<8x128xf32>
    %699 = tpu.matmul %693, %698, %cst_371 {dimension_numbers = #tpu.dot_dimension_numbers<[1], [0], [0], [1], [0, 0, 1, 1], [], []>} : vector<8x8xf32>, vector<8x128xf32>, vector<8x128xf32> -> vector<8x128xf32>
    %700 = arith.addf %691, %699 : vector<8x128xf32>
    %c33 = arith.constant 33 : index
    %c0_372 = arith.constant 0 : index
    %c0_373 = arith.constant 0 : index
    %701 = vector.load %arg3[%c33, %c0_372, %c0_373] : memref<81x8x8xf32, #tpu.memory_space<vmem>>, vector<1x8x8xf32>
    %702 = vector.shape_cast %701 : vector<1x8x8xf32> to vector<8x8xf32>
    %c121_i32 = arith.constant 121 : i32
    %703 = tpu.dynamic_rotate %652 by %c121_i32 dim 1 : vector<8x128xf32>, i32 -> vector<8x128xf32>
    %c6_374 = arith.constant 6 : index
    %c0_375 = arith.constant 0 : index
    %c0_376 = arith.constant 0 : index
    %704 = vector.load %arg9[%c6_374, %c0_375, %c0_376] : memref<9x1x128xf32, #tpu.memory_space<vmem>>, vector<1x1x128xf32>
    %705 = vector.shape_cast %704 : vector<1x1x128xf32> to vector<1x128xf32>
    %706 = vector.broadcast %705 : vector<1x128xf32> to vector<8x128xf32>
    %707 = arith.mulf %703, %706 : vector<8x128xf32>
    %cst_377 = arith.constant dense<0.000000e+00> : vector<8x128xf32>
    %708 = tpu.matmul %702, %707, %cst_377 {dimension_numbers = #tpu.dot_dimension_numbers<[1], [0], [0], [1], [0, 0, 1, 1], [], []>} : vector<8x8xf32>, vector<8x128xf32>, vector<8x128xf32> -> vector<8x128xf32>
    %709 = arith.addf %700, %708 : vector<8x128xf32>
    %c34 = arith.constant 34 : index
    %c0_378 = arith.constant 0 : index
    %c0_379 = arith.constant 0 : index
    %710 = vector.load %arg3[%c34, %c0_378, %c0_379] : memref<81x8x8xf32, #tpu.memory_space<vmem>>, vector<1x8x8xf32>
    %711 = vector.shape_cast %710 : vector<1x8x8xf32> to vector<8x8xf32>
    %c120_i32 = arith.constant 120 : i32
    %712 = tpu.dynamic_rotate %652 by %c120_i32 dim 1 : vector<8x128xf32>, i32 -> vector<8x128xf32>
    %c7_380 = arith.constant 7 : index
    %c0_381 = arith.constant 0 : index
    %c0_382 = arith.constant 0 : index
    %713 = vector.load %arg9[%c7_380, %c0_381, %c0_382] : memref<9x1x128xf32, #tpu.memory_space<vmem>>, vector<1x1x128xf32>
    %714 = vector.shape_cast %713 : vector<1x1x128xf32> to vector<1x128xf32>
    %715 = vector.broadcast %714 : vector<1x128xf32> to vector<8x128xf32>
    %716 = arith.mulf %712, %715 : vector<8x128xf32>
    %cst_383 = arith.constant dense<0.000000e+00> : vector<8x128xf32>
    %717 = tpu.matmul %711, %716, %cst_383 {dimension_numbers = #tpu.dot_dimension_numbers<[1], [0], [0], [1], [0, 0, 1, 1], [], []>} : vector<8x8xf32>, vector<8x128xf32>, vector<8x128xf32> -> vector<8x128xf32>
    %718 = arith.addf %709, %717 : vector<8x128xf32>
    %c35 = arith.constant 35 : index
    %c0_384 = arith.constant 0 : index
    %c0_385 = arith.constant 0 : index
    %719 = vector.load %arg3[%c35, %c0_384, %c0_385] : memref<81x8x8xf32, #tpu.memory_space<vmem>>, vector<1x8x8xf32>
    %720 = vector.shape_cast %719 : vector<1x8x8xf32> to vector<8x8xf32>
    %c119_i32 = arith.constant 119 : i32
    %721 = tpu.dynamic_rotate %652 by %c119_i32 dim 1 : vector<8x128xf32>, i32 -> vector<8x128xf32>
    %c8_386 = arith.constant 8 : index
    %c0_387 = arith.constant 0 : index
    %c0_388 = arith.constant 0 : index
    %722 = vector.load %arg9[%c8_386, %c0_387, %c0_388] : memref<9x1x128xf32, #tpu.memory_space<vmem>>, vector<1x1x128xf32>
    %723 = vector.shape_cast %722 : vector<1x1x128xf32> to vector<1x128xf32>
    %724 = vector.broadcast %723 : vector<1x128xf32> to vector<8x128xf32>
    %725 = arith.mulf %721, %724 : vector<8x128xf32>
    %cst_389 = arith.constant dense<0.000000e+00> : vector<8x128xf32>
    %726 = tpu.matmul %720, %725, %cst_389 {dimension_numbers = #tpu.dot_dimension_numbers<[1], [0], [0], [1], [0, 0, 1, 1], [], []>} : vector<8x8xf32>, vector<8x128xf32>, vector<8x128xf32> -> vector<8x128xf32>
    %727 = arith.addf %718, %726 : vector<8x128xf32>
    %728 = vector.extract_strided_slice %595 {offsets = [0, 4], sizes = [8, 1], strides = [1, 1]} : vector<8x6xf32> to vector<8x1xf32>
    %729 = vector.extract_strided_slice %595 {offsets = [0, 5], sizes = [8, 1], strides = [1, 1]} : vector<8x6xf32> to vector<8x1xf32>
    %cst_390 = arith.constant dense<0.000000e+00> : vector<8xf32>
    %730 = vector.multi_reduction <add>, %727, %cst_390 [1] : vector<8x128xf32> to vector<8xf32>
    %731 = vector.shape_cast %730 : vector<8xf32> to vector<8x1xf32>
    %cst_391 = arith.constant 7.812500e-03 : f32
    %732 = vector.broadcast %cst_391 : f32 to vector<8x1xf32>
    %733 = arith.mulf %731, %732 : vector<8x1xf32>
    %734 = arith.mulf %727, %727 : vector<8x128xf32>
    %cst_392 = arith.constant dense<0.000000e+00> : vector<8xf32>
    %735 = vector.multi_reduction <add>, %734, %cst_392 [1] : vector<8x128xf32> to vector<8xf32>
    %736 = vector.shape_cast %735 : vector<8xf32> to vector<8x1xf32>
    %cst_393 = arith.constant 7.812500e-03 : f32
    %737 = vector.broadcast %cst_393 : f32 to vector<8x1xf32>
    %738 = arith.mulf %736, %737 : vector<8x1xf32>
    %739 = arith.mulf %733, %733 : vector<8x1xf32>
    %740 = arith.subf %738, %739 : vector<8x1xf32>
    %cst_394 = arith.constant 0.000000e+00 : f32
    %741 = vector.broadcast %cst_394 : f32 to vector<8x1xf32>
    %742 = arith.maximumf %740, %741 : vector<8x1xf32>
    %cst_395 = arith.constant 9.99999974E-6 : f32
    %743 = vector.broadcast %cst_395 : f32 to vector<8x1xf32>
    %744 = arith.addf %742, %743 : vector<8x1xf32>
    %745 = math.rsqrt %744 : vector<8x1xf32>
    %746 = arith.mulf %745, %728 : vector<8x1xf32>
    %747 = arith.mulf %733, %746 : vector<8x1xf32>
    %748 = arith.subf %729, %747 : vector<8x1xf32>
    %749 = vector.broadcast %746 : vector<8x1xf32> to vector<8x128xf32>
    %750 = arith.mulf %727, %749 : vector<8x128xf32>
    %751 = vector.broadcast %748 : vector<8x1xf32> to vector<8x128xf32>
    %752 = arith.addf %750, %751 : vector<8x128xf32>
    %cst_396 = arith.constant 0.000000e+00 : f32
    %753 = vector.broadcast %cst_396 : f32 to vector<8x128xf32>
    %754 = arith.maximumf %752, %753 : vector<8x128xf32>
    %c3_397 = arith.constant 3 : index
    %c0_398 = arith.constant 0 : index
    %c0_399 = arith.constant 0 : index
    %755 = vector.load %arg4[%c3_397, %c0_398, %c0_399] : memref<9x8x8xf32, #tpu.memory_space<vmem>>, vector<1x8x8xf32>
    %756 = vector.shape_cast %755 : vector<1x8x8xf32> to vector<8x8xf32>
    %cst_400 = arith.constant dense<0.000000e+00> : vector<8x128xf32>
    %757 = tpu.matmul %756, %754, %cst_400 {dimension_numbers = #tpu.dot_dimension_numbers<[1], [0], [0], [1], [0, 0, 1, 1], [], []>} : vector<8x8xf32>, vector<8x128xf32>, vector<8x128xf32> -> vector<8x128xf32>
    %758 = arith.addf %757, %593 : vector<8x128xf32>
    %c4_401 = arith.constant 4 : index
    %c0_402 = arith.constant 0 : index
    %c0_403 = arith.constant 0 : index
    %759 = vector.load %arg1[%c4_401, %c0_402, %c0_403] : memref<9x8x6xf32, #tpu.memory_space<vmem>>, vector<1x8x6xf32>
    %760 = vector.shape_cast %759 : vector<1x8x6xf32> to vector<8x6xf32>
    %761 = vector.extract_strided_slice %760 {offsets = [0, 0], sizes = [8, 1], strides = [1, 1]} : vector<8x6xf32> to vector<8x1xf32>
    %762 = vector.extract_strided_slice %760 {offsets = [0, 1], sizes = [8, 1], strides = [1, 1]} : vector<8x6xf32> to vector<8x1xf32>
    %cst_404 = arith.constant dense<0.000000e+00> : vector<8xf32>
    %763 = vector.multi_reduction <add>, %758, %cst_404 [1] : vector<8x128xf32> to vector<8xf32>
    %764 = vector.shape_cast %763 : vector<8xf32> to vector<8x1xf32>
    %cst_405 = arith.constant 7.812500e-03 : f32
    %765 = vector.broadcast %cst_405 : f32 to vector<8x1xf32>
    %766 = arith.mulf %764, %765 : vector<8x1xf32>
    %767 = arith.mulf %758, %758 : vector<8x128xf32>
    %cst_406 = arith.constant dense<0.000000e+00> : vector<8xf32>
    %768 = vector.multi_reduction <add>, %767, %cst_406 [1] : vector<8x128xf32> to vector<8xf32>
    %769 = vector.shape_cast %768 : vector<8xf32> to vector<8x1xf32>
    %cst_407 = arith.constant 7.812500e-03 : f32
    %770 = vector.broadcast %cst_407 : f32 to vector<8x1xf32>
    %771 = arith.mulf %769, %770 : vector<8x1xf32>
    %772 = arith.mulf %766, %766 : vector<8x1xf32>
    %773 = arith.subf %771, %772 : vector<8x1xf32>
    %cst_408 = arith.constant 0.000000e+00 : f32
    %774 = vector.broadcast %cst_408 : f32 to vector<8x1xf32>
    %775 = arith.maximumf %773, %774 : vector<8x1xf32>
    %cst_409 = arith.constant 9.99999974E-6 : f32
    %776 = vector.broadcast %cst_409 : f32 to vector<8x1xf32>
    %777 = arith.addf %775, %776 : vector<8x1xf32>
    %778 = math.rsqrt %777 : vector<8x1xf32>
    %779 = arith.mulf %778, %761 : vector<8x1xf32>
    %780 = arith.mulf %766, %779 : vector<8x1xf32>
    %781 = arith.subf %762, %780 : vector<8x1xf32>
    %782 = vector.broadcast %779 : vector<8x1xf32> to vector<8x128xf32>
    %783 = arith.mulf %758, %782 : vector<8x128xf32>
    %784 = vector.broadcast %781 : vector<8x1xf32> to vector<8x128xf32>
    %785 = arith.addf %783, %784 : vector<8x128xf32>
    %cst_410 = arith.constant 0.000000e+00 : f32
    %786 = vector.broadcast %cst_410 : f32 to vector<8x128xf32>
    %787 = arith.maximumf %785, %786 : vector<8x128xf32>
    %c4_411 = arith.constant 4 : index
    %c0_412 = arith.constant 0 : index
    %c0_413 = arith.constant 0 : index
    %788 = vector.load %arg2[%c4_411, %c0_412, %c0_413] : memref<9x8x8xf32, #tpu.memory_space<vmem>>, vector<1x8x8xf32>
    %789 = vector.shape_cast %788 : vector<1x8x8xf32> to vector<8x8xf32>
    %cst_414 = arith.constant dense<0.000000e+00> : vector<8x128xf32>
    %790 = tpu.matmul %789, %787, %cst_414 {dimension_numbers = #tpu.dot_dimension_numbers<[1], [0], [0], [1], [0, 0, 1, 1], [], []>} : vector<8x8xf32>, vector<8x128xf32>, vector<8x128xf32> -> vector<8x128xf32>
    %791 = vector.extract_strided_slice %760 {offsets = [0, 2], sizes = [8, 1], strides = [1, 1]} : vector<8x6xf32> to vector<8x1xf32>
    %792 = vector.extract_strided_slice %760 {offsets = [0, 3], sizes = [8, 1], strides = [1, 1]} : vector<8x6xf32> to vector<8x1xf32>
    %cst_415 = arith.constant dense<0.000000e+00> : vector<8xf32>
    %793 = vector.multi_reduction <add>, %790, %cst_415 [1] : vector<8x128xf32> to vector<8xf32>
    %794 = vector.shape_cast %793 : vector<8xf32> to vector<8x1xf32>
    %cst_416 = arith.constant 7.812500e-03 : f32
    %795 = vector.broadcast %cst_416 : f32 to vector<8x1xf32>
    %796 = arith.mulf %794, %795 : vector<8x1xf32>
    %797 = arith.mulf %790, %790 : vector<8x128xf32>
    %cst_417 = arith.constant dense<0.000000e+00> : vector<8xf32>
    %798 = vector.multi_reduction <add>, %797, %cst_417 [1] : vector<8x128xf32> to vector<8xf32>
    %799 = vector.shape_cast %798 : vector<8xf32> to vector<8x1xf32>
    %cst_418 = arith.constant 7.812500e-03 : f32
    %800 = vector.broadcast %cst_418 : f32 to vector<8x1xf32>
    %801 = arith.mulf %799, %800 : vector<8x1xf32>
    %802 = arith.mulf %796, %796 : vector<8x1xf32>
    %803 = arith.subf %801, %802 : vector<8x1xf32>
    %cst_419 = arith.constant 0.000000e+00 : f32
    %804 = vector.broadcast %cst_419 : f32 to vector<8x1xf32>
    %805 = arith.maximumf %803, %804 : vector<8x1xf32>
    %cst_420 = arith.constant 9.99999974E-6 : f32
    %806 = vector.broadcast %cst_420 : f32 to vector<8x1xf32>
    %807 = arith.addf %805, %806 : vector<8x1xf32>
    %808 = math.rsqrt %807 : vector<8x1xf32>
    %809 = arith.mulf %808, %791 : vector<8x1xf32>
    %810 = arith.mulf %796, %809 : vector<8x1xf32>
    %811 = arith.subf %792, %810 : vector<8x1xf32>
    %812 = vector.broadcast %809 : vector<8x1xf32> to vector<8x128xf32>
    %813 = arith.mulf %790, %812 : vector<8x128xf32>
    %814 = vector.broadcast %811 : vector<8x1xf32> to vector<8x128xf32>
    %815 = arith.addf %813, %814 : vector<8x128xf32>
    %cst_421 = arith.constant 0.000000e+00 : f32
    %816 = vector.broadcast %cst_421 : f32 to vector<8x128xf32>
    %817 = arith.maximumf %815, %816 : vector<8x128xf32>
    %c40 = arith.constant 40 : index
    %c0_422 = arith.constant 0 : index
    %c0_423 = arith.constant 0 : index
    %818 = vector.load %arg3[%c40, %c0_422, %c0_423] : memref<81x8x8xf32, #tpu.memory_space<vmem>>, vector<1x8x8xf32>
    %819 = vector.shape_cast %818 : vector<1x8x8xf32> to vector<8x8xf32>
    %cst_424 = arith.constant dense<0.000000e+00> : vector<8x128xf32>
    %820 = tpu.matmul %819, %817, %cst_424 {dimension_numbers = #tpu.dot_dimension_numbers<[1], [0], [0], [1], [0, 0, 1, 1], [], []>} : vector<8x8xf32>, vector<8x128xf32>, vector<8x128xf32> -> vector<8x128xf32>
    %c36 = arith.constant 36 : index
    %c0_425 = arith.constant 0 : index
    %c0_426 = arith.constant 0 : index
    %821 = vector.load %arg3[%c36, %c0_425, %c0_426] : memref<81x8x8xf32, #tpu.memory_space<vmem>>, vector<1x8x8xf32>
    %822 = vector.shape_cast %821 : vector<1x8x8xf32> to vector<8x8xf32>
    %c9_i32_427 = arith.constant 9 : i32
    %823 = tpu.dynamic_rotate %817 by %c9_i32_427 dim 1 : vector<8x128xf32>, i32 -> vector<8x128xf32>
    %c0_428 = arith.constant 0 : index
    %c0_429 = arith.constant 0 : index
    %c0_430 = arith.constant 0 : index
    %824 = vector.load %arg9[%c0_428, %c0_429, %c0_430] : memref<9x1x128xf32, #tpu.memory_space<vmem>>, vector<1x1x128xf32>
    %825 = vector.shape_cast %824 : vector<1x1x128xf32> to vector<1x128xf32>
    %826 = vector.broadcast %825 : vector<1x128xf32> to vector<8x128xf32>
    %827 = arith.mulf %823, %826 : vector<8x128xf32>
    %cst_431 = arith.constant dense<0.000000e+00> : vector<8x128xf32>
    %828 = tpu.matmul %822, %827, %cst_431 {dimension_numbers = #tpu.dot_dimension_numbers<[1], [0], [0], [1], [0, 0, 1, 1], [], []>} : vector<8x8xf32>, vector<8x128xf32>, vector<8x128xf32> -> vector<8x128xf32>
    %829 = arith.addf %820, %828 : vector<8x128xf32>
    %c37 = arith.constant 37 : index
    %c0_432 = arith.constant 0 : index
    %c0_433 = arith.constant 0 : index
    %830 = vector.load %arg3[%c37, %c0_432, %c0_433] : memref<81x8x8xf32, #tpu.memory_space<vmem>>, vector<1x8x8xf32>
    %831 = vector.shape_cast %830 : vector<1x8x8xf32> to vector<8x8xf32>
    %c8_i32_434 = arith.constant 8 : i32
    %832 = tpu.dynamic_rotate %817 by %c8_i32_434 dim 1 : vector<8x128xf32>, i32 -> vector<8x128xf32>
    %c1_435 = arith.constant 1 : index
    %c0_436 = arith.constant 0 : index
    %c0_437 = arith.constant 0 : index
    %833 = vector.load %arg9[%c1_435, %c0_436, %c0_437] : memref<9x1x128xf32, #tpu.memory_space<vmem>>, vector<1x1x128xf32>
    %834 = vector.shape_cast %833 : vector<1x1x128xf32> to vector<1x128xf32>
    %835 = vector.broadcast %834 : vector<1x128xf32> to vector<8x128xf32>
    %836 = arith.mulf %832, %835 : vector<8x128xf32>
    %cst_438 = arith.constant dense<0.000000e+00> : vector<8x128xf32>
    %837 = tpu.matmul %831, %836, %cst_438 {dimension_numbers = #tpu.dot_dimension_numbers<[1], [0], [0], [1], [0, 0, 1, 1], [], []>} : vector<8x8xf32>, vector<8x128xf32>, vector<8x128xf32> -> vector<8x128xf32>
    %838 = arith.addf %829, %837 : vector<8x128xf32>
    %c38 = arith.constant 38 : index
    %c0_439 = arith.constant 0 : index
    %c0_440 = arith.constant 0 : index
    %839 = vector.load %arg3[%c38, %c0_439, %c0_440] : memref<81x8x8xf32, #tpu.memory_space<vmem>>, vector<1x8x8xf32>
    %840 = vector.shape_cast %839 : vector<1x8x8xf32> to vector<8x8xf32>
    %c7_i32_441 = arith.constant 7 : i32
    %841 = tpu.dynamic_rotate %817 by %c7_i32_441 dim 1 : vector<8x128xf32>, i32 -> vector<8x128xf32>
    %c2_442 = arith.constant 2 : index
    %c0_443 = arith.constant 0 : index
    %c0_444 = arith.constant 0 : index
    %842 = vector.load %arg9[%c2_442, %c0_443, %c0_444] : memref<9x1x128xf32, #tpu.memory_space<vmem>>, vector<1x1x128xf32>
    %843 = vector.shape_cast %842 : vector<1x1x128xf32> to vector<1x128xf32>
    %844 = vector.broadcast %843 : vector<1x128xf32> to vector<8x128xf32>
    %845 = arith.mulf %841, %844 : vector<8x128xf32>
    %cst_445 = arith.constant dense<0.000000e+00> : vector<8x128xf32>
    %846 = tpu.matmul %840, %845, %cst_445 {dimension_numbers = #tpu.dot_dimension_numbers<[1], [0], [0], [1], [0, 0, 1, 1], [], []>} : vector<8x8xf32>, vector<8x128xf32>, vector<8x128xf32> -> vector<8x128xf32>
    %847 = arith.addf %838, %846 : vector<8x128xf32>
    %c39 = arith.constant 39 : index
    %c0_446 = arith.constant 0 : index
    %c0_447 = arith.constant 0 : index
    %848 = vector.load %arg3[%c39, %c0_446, %c0_447] : memref<81x8x8xf32, #tpu.memory_space<vmem>>, vector<1x8x8xf32>
    %849 = vector.shape_cast %848 : vector<1x8x8xf32> to vector<8x8xf32>
    %c1_i32_448 = arith.constant 1 : i32
    %850 = tpu.dynamic_rotate %817 by %c1_i32_448 dim 1 : vector<8x128xf32>, i32 -> vector<8x128xf32>
    %c3_449 = arith.constant 3 : index
    %c0_450 = arith.constant 0 : index
    %c0_451 = arith.constant 0 : index
    %851 = vector.load %arg9[%c3_449, %c0_450, %c0_451] : memref<9x1x128xf32, #tpu.memory_space<vmem>>, vector<1x1x128xf32>
    %852 = vector.shape_cast %851 : vector<1x1x128xf32> to vector<1x128xf32>
    %853 = vector.broadcast %852 : vector<1x128xf32> to vector<8x128xf32>
    %854 = arith.mulf %850, %853 : vector<8x128xf32>
    %cst_452 = arith.constant dense<0.000000e+00> : vector<8x128xf32>
    %855 = tpu.matmul %849, %854, %cst_452 {dimension_numbers = #tpu.dot_dimension_numbers<[1], [0], [0], [1], [0, 0, 1, 1], [], []>} : vector<8x8xf32>, vector<8x128xf32>, vector<8x128xf32> -> vector<8x128xf32>
    %856 = arith.addf %847, %855 : vector<8x128xf32>
    %c41 = arith.constant 41 : index
    %c0_453 = arith.constant 0 : index
    %c0_454 = arith.constant 0 : index
    %857 = vector.load %arg3[%c41, %c0_453, %c0_454] : memref<81x8x8xf32, #tpu.memory_space<vmem>>, vector<1x8x8xf32>
    %858 = vector.shape_cast %857 : vector<1x8x8xf32> to vector<8x8xf32>
    %c127_i32_455 = arith.constant 127 : i32
    %859 = tpu.dynamic_rotate %817 by %c127_i32_455 dim 1 : vector<8x128xf32>, i32 -> vector<8x128xf32>
    %c5_456 = arith.constant 5 : index
    %c0_457 = arith.constant 0 : index
    %c0_458 = arith.constant 0 : index
    %860 = vector.load %arg9[%c5_456, %c0_457, %c0_458] : memref<9x1x128xf32, #tpu.memory_space<vmem>>, vector<1x1x128xf32>
    %861 = vector.shape_cast %860 : vector<1x1x128xf32> to vector<1x128xf32>
    %862 = vector.broadcast %861 : vector<1x128xf32> to vector<8x128xf32>
    %863 = arith.mulf %859, %862 : vector<8x128xf32>
    %cst_459 = arith.constant dense<0.000000e+00> : vector<8x128xf32>
    %864 = tpu.matmul %858, %863, %cst_459 {dimension_numbers = #tpu.dot_dimension_numbers<[1], [0], [0], [1], [0, 0, 1, 1], [], []>} : vector<8x8xf32>, vector<8x128xf32>, vector<8x128xf32> -> vector<8x128xf32>
    %865 = arith.addf %856, %864 : vector<8x128xf32>
    %c42 = arith.constant 42 : index
    %c0_460 = arith.constant 0 : index
    %c0_461 = arith.constant 0 : index
    %866 = vector.load %arg3[%c42, %c0_460, %c0_461] : memref<81x8x8xf32, #tpu.memory_space<vmem>>, vector<1x8x8xf32>
    %867 = vector.shape_cast %866 : vector<1x8x8xf32> to vector<8x8xf32>
    %c121_i32_462 = arith.constant 121 : i32
    %868 = tpu.dynamic_rotate %817 by %c121_i32_462 dim 1 : vector<8x128xf32>, i32 -> vector<8x128xf32>
    %c6_463 = arith.constant 6 : index
    %c0_464 = arith.constant 0 : index
    %c0_465 = arith.constant 0 : index
    %869 = vector.load %arg9[%c6_463, %c0_464, %c0_465] : memref<9x1x128xf32, #tpu.memory_space<vmem>>, vector<1x1x128xf32>
    %870 = vector.shape_cast %869 : vector<1x1x128xf32> to vector<1x128xf32>
    %871 = vector.broadcast %870 : vector<1x128xf32> to vector<8x128xf32>
    %872 = arith.mulf %868, %871 : vector<8x128xf32>
    %cst_466 = arith.constant dense<0.000000e+00> : vector<8x128xf32>
    %873 = tpu.matmul %867, %872, %cst_466 {dimension_numbers = #tpu.dot_dimension_numbers<[1], [0], [0], [1], [0, 0, 1, 1], [], []>} : vector<8x8xf32>, vector<8x128xf32>, vector<8x128xf32> -> vector<8x128xf32>
    %874 = arith.addf %865, %873 : vector<8x128xf32>
    %c43 = arith.constant 43 : index
    %c0_467 = arith.constant 0 : index
    %c0_468 = arith.constant 0 : index
    %875 = vector.load %arg3[%c43, %c0_467, %c0_468] : memref<81x8x8xf32, #tpu.memory_space<vmem>>, vector<1x8x8xf32>
    %876 = vector.shape_cast %875 : vector<1x8x8xf32> to vector<8x8xf32>
    %c120_i32_469 = arith.constant 120 : i32
    %877 = tpu.dynamic_rotate %817 by %c120_i32_469 dim 1 : vector<8x128xf32>, i32 -> vector<8x128xf32>
    %c7_470 = arith.constant 7 : index
    %c0_471 = arith.constant 0 : index
    %c0_472 = arith.constant 0 : index
    %878 = vector.load %arg9[%c7_470, %c0_471, %c0_472] : memref<9x1x128xf32, #tpu.memory_space<vmem>>, vector<1x1x128xf32>
    %879 = vector.shape_cast %878 : vector<1x1x128xf32> to vector<1x128xf32>
    %880 = vector.broadcast %879 : vector<1x128xf32> to vector<8x128xf32>
    %881 = arith.mulf %877, %880 : vector<8x128xf32>
    %cst_473 = arith.constant dense<0.000000e+00> : vector<8x128xf32>
    %882 = tpu.matmul %876, %881, %cst_473 {dimension_numbers = #tpu.dot_dimension_numbers<[1], [0], [0], [1], [0, 0, 1, 1], [], []>} : vector<8x8xf32>, vector<8x128xf32>, vector<8x128xf32> -> vector<8x128xf32>
    %883 = arith.addf %874, %882 : vector<8x128xf32>
    %c44 = arith.constant 44 : index
    %c0_474 = arith.constant 0 : index
    %c0_475 = arith.constant 0 : index
    %884 = vector.load %arg3[%c44, %c0_474, %c0_475] : memref<81x8x8xf32, #tpu.memory_space<vmem>>, vector<1x8x8xf32>
    %885 = vector.shape_cast %884 : vector<1x8x8xf32> to vector<8x8xf32>
    %c119_i32_476 = arith.constant 119 : i32
    %886 = tpu.dynamic_rotate %817 by %c119_i32_476 dim 1 : vector<8x128xf32>, i32 -> vector<8x128xf32>
    %c8_477 = arith.constant 8 : index
    %c0_478 = arith.constant 0 : index
    %c0_479 = arith.constant 0 : index
    %887 = vector.load %arg9[%c8_477, %c0_478, %c0_479] : memref<9x1x128xf32, #tpu.memory_space<vmem>>, vector<1x1x128xf32>
    %888 = vector.shape_cast %887 : vector<1x1x128xf32> to vector<1x128xf32>
    %889 = vector.broadcast %888 : vector<1x128xf32> to vector<8x128xf32>
    %890 = arith.mulf %886, %889 : vector<8x128xf32>
    %cst_480 = arith.constant dense<0.000000e+00> : vector<8x128xf32>
    %891 = tpu.matmul %885, %890, %cst_480 {dimension_numbers = #tpu.dot_dimension_numbers<[1], [0], [0], [1], [0, 0, 1, 1], [], []>} : vector<8x8xf32>, vector<8x128xf32>, vector<8x128xf32> -> vector<8x128xf32>
    %892 = arith.addf %883, %891 : vector<8x128xf32>
    %893 = vector.extract_strided_slice %760 {offsets = [0, 4], sizes = [8, 1], strides = [1, 1]} : vector<8x6xf32> to vector<8x1xf32>
    %894 = vector.extract_strided_slice %760 {offsets = [0, 5], sizes = [8, 1], strides = [1, 1]} : vector<8x6xf32> to vector<8x1xf32>
    %cst_481 = arith.constant dense<0.000000e+00> : vector<8xf32>
    %895 = vector.multi_reduction <add>, %892, %cst_481 [1] : vector<8x128xf32> to vector<8xf32>
    %896 = vector.shape_cast %895 : vector<8xf32> to vector<8x1xf32>
    %cst_482 = arith.constant 7.812500e-03 : f32
    %897 = vector.broadcast %cst_482 : f32 to vector<8x1xf32>
    %898 = arith.mulf %896, %897 : vector<8x1xf32>
    %899 = arith.mulf %892, %892 : vector<8x128xf32>
    %cst_483 = arith.constant dense<0.000000e+00> : vector<8xf32>
    %900 = vector.multi_reduction <add>, %899, %cst_483 [1] : vector<8x128xf32> to vector<8xf32>
    %901 = vector.shape_cast %900 : vector<8xf32> to vector<8x1xf32>
    %cst_484 = arith.constant 7.812500e-03 : f32
    %902 = vector.broadcast %cst_484 : f32 to vector<8x1xf32>
    %903 = arith.mulf %901, %902 : vector<8x1xf32>
    %904 = arith.mulf %898, %898 : vector<8x1xf32>
    %905 = arith.subf %903, %904 : vector<8x1xf32>
    %cst_485 = arith.constant 0.000000e+00 : f32
    %906 = vector.broadcast %cst_485 : f32 to vector<8x1xf32>
    %907 = arith.maximumf %905, %906 : vector<8x1xf32>
    %cst_486 = arith.constant 9.99999974E-6 : f32
    %908 = vector.broadcast %cst_486 : f32 to vector<8x1xf32>
    %909 = arith.addf %907, %908 : vector<8x1xf32>
    %910 = math.rsqrt %909 : vector<8x1xf32>
    %911 = arith.mulf %910, %893 : vector<8x1xf32>
    %912 = arith.mulf %898, %911 : vector<8x1xf32>
    %913 = arith.subf %894, %912 : vector<8x1xf32>
    %914 = vector.broadcast %911 : vector<8x1xf32> to vector<8x128xf32>
    %915 = arith.mulf %892, %914 : vector<8x128xf32>
    %916 = vector.broadcast %913 : vector<8x1xf32> to vector<8x128xf32>
    %917 = arith.addf %915, %916 : vector<8x128xf32>
    %cst_487 = arith.constant 0.000000e+00 : f32
    %918 = vector.broadcast %cst_487 : f32 to vector<8x128xf32>
    %919 = arith.maximumf %917, %918 : vector<8x128xf32>
    %c4_488 = arith.constant 4 : index
    %c0_489 = arith.constant 0 : index
    %c0_490 = arith.constant 0 : index
    %920 = vector.load %arg4[%c4_488, %c0_489, %c0_490] : memref<9x8x8xf32, #tpu.memory_space<vmem>>, vector<1x8x8xf32>
    %921 = vector.shape_cast %920 : vector<1x8x8xf32> to vector<8x8xf32>
    %cst_491 = arith.constant dense<0.000000e+00> : vector<8x128xf32>
    %922 = tpu.matmul %921, %919, %cst_491 {dimension_numbers = #tpu.dot_dimension_numbers<[1], [0], [0], [1], [0, 0, 1, 1], [], []>} : vector<8x8xf32>, vector<8x128xf32>, vector<8x128xf32> -> vector<8x128xf32>
    %923 = arith.addf %922, %758 : vector<8x128xf32>
    %c9_i32_492 = arith.constant 9 : i32
    %924 = tpu.dynamic_rotate %758 by %c9_i32_492 dim 1 : vector<8x128xf32>, i32 -> vector<8x128xf32>
    %c0_493 = arith.constant 0 : index
    %c0_494 = arith.constant 0 : index
    %c0_495 = arith.constant 0 : index
    %925 = vector.load %arg9[%c0_493, %c0_494, %c0_495] : memref<9x1x128xf32, #tpu.memory_space<vmem>>, vector<1x1x128xf32>
    %926 = vector.shape_cast %925 : vector<1x1x128xf32> to vector<1x128xf32>
    %927 = vector.broadcast %926 : vector<1x128xf32> to vector<8x128xf32>
    %928 = arith.mulf %924, %927 : vector<8x128xf32>
    %cst_496 = arith.constant 1.000000e+00 : f32
    %929 = vector.broadcast %cst_496 : f32 to vector<1x128xf32>
    %930 = arith.subf %926, %929 : vector<1x128xf32>
    %cst_497 = arith.constant 1.000000e+30 : f32
    %931 = vector.broadcast %cst_497 : f32 to vector<1x128xf32>
    %932 = arith.mulf %930, %931 : vector<1x128xf32>
    %933 = vector.broadcast %932 : vector<1x128xf32> to vector<8x128xf32>
    %934 = arith.addf %928, %933 : vector<8x128xf32>
    %935 = arith.maximumf %758, %934 : vector<8x128xf32>
    %c8_i32_498 = arith.constant 8 : i32
    %936 = tpu.dynamic_rotate %758 by %c8_i32_498 dim 1 : vector<8x128xf32>, i32 -> vector<8x128xf32>
    %c1_499 = arith.constant 1 : index
    %c0_500 = arith.constant 0 : index
    %c0_501 = arith.constant 0 : index
    %937 = vector.load %arg9[%c1_499, %c0_500, %c0_501] : memref<9x1x128xf32, #tpu.memory_space<vmem>>, vector<1x1x128xf32>
    %938 = vector.shape_cast %937 : vector<1x1x128xf32> to vector<1x128xf32>
    %939 = vector.broadcast %938 : vector<1x128xf32> to vector<8x128xf32>
    %940 = arith.mulf %936, %939 : vector<8x128xf32>
    %cst_502 = arith.constant 1.000000e+00 : f32
    %941 = vector.broadcast %cst_502 : f32 to vector<1x128xf32>
    %942 = arith.subf %938, %941 : vector<1x128xf32>
    %cst_503 = arith.constant 1.000000e+30 : f32
    %943 = vector.broadcast %cst_503 : f32 to vector<1x128xf32>
    %944 = arith.mulf %942, %943 : vector<1x128xf32>
    %945 = vector.broadcast %944 : vector<1x128xf32> to vector<8x128xf32>
    %946 = arith.addf %940, %945 : vector<8x128xf32>
    %947 = arith.maximumf %935, %946 : vector<8x128xf32>
    %c7_i32_504 = arith.constant 7 : i32
    %948 = tpu.dynamic_rotate %758 by %c7_i32_504 dim 1 : vector<8x128xf32>, i32 -> vector<8x128xf32>
    %c2_505 = arith.constant 2 : index
    %c0_506 = arith.constant 0 : index
    %c0_507 = arith.constant 0 : index
    %949 = vector.load %arg9[%c2_505, %c0_506, %c0_507] : memref<9x1x128xf32, #tpu.memory_space<vmem>>, vector<1x1x128xf32>
    %950 = vector.shape_cast %949 : vector<1x1x128xf32> to vector<1x128xf32>
    %951 = vector.broadcast %950 : vector<1x128xf32> to vector<8x128xf32>
    %952 = arith.mulf %948, %951 : vector<8x128xf32>
    %cst_508 = arith.constant 1.000000e+00 : f32
    %953 = vector.broadcast %cst_508 : f32 to vector<1x128xf32>
    %954 = arith.subf %950, %953 : vector<1x128xf32>
    %cst_509 = arith.constant 1.000000e+30 : f32
    %955 = vector.broadcast %cst_509 : f32 to vector<1x128xf32>
    %956 = arith.mulf %954, %955 : vector<1x128xf32>
    %957 = vector.broadcast %956 : vector<1x128xf32> to vector<8x128xf32>
    %958 = arith.addf %952, %957 : vector<8x128xf32>
    %959 = arith.maximumf %947, %958 : vector<8x128xf32>
    %c1_i32_510 = arith.constant 1 : i32
    %960 = tpu.dynamic_rotate %758 by %c1_i32_510 dim 1 : vector<8x128xf32>, i32 -> vector<8x128xf32>
    %c3_511 = arith.constant 3 : index
    %c0_512 = arith.constant 0 : index
    %c0_513 = arith.constant 0 : index
    %961 = vector.load %arg9[%c3_511, %c0_512, %c0_513] : memref<9x1x128xf32, #tpu.memory_space<vmem>>, vector<1x1x128xf32>
    %962 = vector.shape_cast %961 : vector<1x1x128xf32> to vector<1x128xf32>
    %963 = vector.broadcast %962 : vector<1x128xf32> to vector<8x128xf32>
    %964 = arith.mulf %960, %963 : vector<8x128xf32>
    %cst_514 = arith.constant 1.000000e+00 : f32
    %965 = vector.broadcast %cst_514 : f32 to vector<1x128xf32>
    %966 = arith.subf %962, %965 : vector<1x128xf32>
    %cst_515 = arith.constant 1.000000e+30 : f32
    %967 = vector.broadcast %cst_515 : f32 to vector<1x128xf32>
    %968 = arith.mulf %966, %967 : vector<1x128xf32>
    %969 = vector.broadcast %968 : vector<1x128xf32> to vector<8x128xf32>
    %970 = arith.addf %964, %969 : vector<8x128xf32>
    %971 = arith.maximumf %959, %970 : vector<8x128xf32>
    %c127_i32_516 = arith.constant 127 : i32
    %972 = tpu.dynamic_rotate %758 by %c127_i32_516 dim 1 : vector<8x128xf32>, i32 -> vector<8x128xf32>
    %c5_517 = arith.constant 5 : index
    %c0_518 = arith.constant 0 : index
    %c0_519 = arith.constant 0 : index
    %973 = vector.load %arg9[%c5_517, %c0_518, %c0_519] : memref<9x1x128xf32, #tpu.memory_space<vmem>>, vector<1x1x128xf32>
    %974 = vector.shape_cast %973 : vector<1x1x128xf32> to vector<1x128xf32>
    %975 = vector.broadcast %974 : vector<1x128xf32> to vector<8x128xf32>
    %976 = arith.mulf %972, %975 : vector<8x128xf32>
    %cst_520 = arith.constant 1.000000e+00 : f32
    %977 = vector.broadcast %cst_520 : f32 to vector<1x128xf32>
    %978 = arith.subf %974, %977 : vector<1x128xf32>
    %cst_521 = arith.constant 1.000000e+30 : f32
    %979 = vector.broadcast %cst_521 : f32 to vector<1x128xf32>
    %980 = arith.mulf %978, %979 : vector<1x128xf32>
    %981 = vector.broadcast %980 : vector<1x128xf32> to vector<8x128xf32>
    %982 = arith.addf %976, %981 : vector<8x128xf32>
    %983 = arith.maximumf %971, %982 : vector<8x128xf32>
    %c121_i32_522 = arith.constant 121 : i32
    %984 = tpu.dynamic_rotate %758 by %c121_i32_522 dim 1 : vector<8x128xf32>, i32 -> vector<8x128xf32>
    %c6_523 = arith.constant 6 : index
    %c0_524 = arith.constant 0 : index
    %c0_525 = arith.constant 0 : index
    %985 = vector.load %arg9[%c6_523, %c0_524, %c0_525] : memref<9x1x128xf32, #tpu.memory_space<vmem>>, vector<1x1x128xf32>
    %986 = vector.shape_cast %985 : vector<1x1x128xf32> to vector<1x128xf32>
    %987 = vector.broadcast %986 : vector<1x128xf32> to vector<8x128xf32>
    %988 = arith.mulf %984, %987 : vector<8x128xf32>
    %cst_526 = arith.constant 1.000000e+00 : f32
    %989 = vector.broadcast %cst_526 : f32 to vector<1x128xf32>
    %990 = arith.subf %986, %989 : vector<1x128xf32>
    %cst_527 = arith.constant 1.000000e+30 : f32
    %991 = vector.broadcast %cst_527 : f32 to vector<1x128xf32>
    %992 = arith.mulf %990, %991 : vector<1x128xf32>
    %993 = vector.broadcast %992 : vector<1x128xf32> to vector<8x128xf32>
    %994 = arith.addf %988, %993 : vector<8x128xf32>
    %995 = arith.maximumf %983, %994 : vector<8x128xf32>
    %c120_i32_528 = arith.constant 120 : i32
    %996 = tpu.dynamic_rotate %758 by %c120_i32_528 dim 1 : vector<8x128xf32>, i32 -> vector<8x128xf32>
    %c7_529 = arith.constant 7 : index
    %c0_530 = arith.constant 0 : index
    %c0_531 = arith.constant 0 : index
    %997 = vector.load %arg9[%c7_529, %c0_530, %c0_531] : memref<9x1x128xf32, #tpu.memory_space<vmem>>, vector<1x1x128xf32>
    %998 = vector.shape_cast %997 : vector<1x1x128xf32> to vector<1x128xf32>
    %999 = vector.broadcast %998 : vector<1x128xf32> to vector<8x128xf32>
    %1000 = arith.mulf %996, %999 : vector<8x128xf32>
    %cst_532 = arith.constant 1.000000e+00 : f32
    %1001 = vector.broadcast %cst_532 : f32 to vector<1x128xf32>
    %1002 = arith.subf %998, %1001 : vector<1x128xf32>
    %cst_533 = arith.constant 1.000000e+30 : f32
    %1003 = vector.broadcast %cst_533 : f32 to vector<1x128xf32>
    %1004 = arith.mulf %1002, %1003 : vector<1x128xf32>
    %1005 = vector.broadcast %1004 : vector<1x128xf32> to vector<8x128xf32>
    %1006 = arith.addf %1000, %1005 : vector<8x128xf32>
    %1007 = arith.maximumf %995, %1006 : vector<8x128xf32>
    %c119_i32_534 = arith.constant 119 : i32
    %1008 = tpu.dynamic_rotate %758 by %c119_i32_534 dim 1 : vector<8x128xf32>, i32 -> vector<8x128xf32>
    %c8_535 = arith.constant 8 : index
    %c0_536 = arith.constant 0 : index
    %c0_537 = arith.constant 0 : index
    %1009 = vector.load %arg9[%c8_535, %c0_536, %c0_537] : memref<9x1x128xf32, #tpu.memory_space<vmem>>, vector<1x1x128xf32>
    %1010 = vector.shape_cast %1009 : vector<1x1x128xf32> to vector<1x128xf32>
    %1011 = vector.broadcast %1010 : vector<1x128xf32> to vector<8x128xf32>
    %1012 = arith.mulf %1008, %1011 : vector<8x128xf32>
    %cst_538 = arith.constant 1.000000e+00 : f32
    %1013 = vector.broadcast %cst_538 : f32 to vector<1x128xf32>
    %1014 = arith.subf %1010, %1013 : vector<1x128xf32>
    %cst_539 = arith.constant 1.000000e+30 : f32
    %1015 = vector.broadcast %cst_539 : f32 to vector<1x128xf32>
    %1016 = arith.mulf %1014, %1015 : vector<1x128xf32>
    %1017 = vector.broadcast %1016 : vector<1x128xf32> to vector<8x128xf32>
    %1018 = arith.addf %1012, %1017 : vector<8x128xf32>
    %1019 = arith.maximumf %1007, %1018 : vector<8x128xf32>
    %c0_540 = arith.constant 0 : index
    %c0_541 = arith.constant 0 : index
    %1020 = vector.load %arg11[%c0_540, %c0_541] : memref<128x32xf32, #tpu.memory_space<vmem>>, vector<128x32xf32>
    %cst_542 = arith.constant dense<0.000000e+00> : vector<8x32xf32>
    %1021 = tpu.matmul %1019, %1020, %cst_542 {dimension_numbers = #tpu.dot_dimension_numbers<[1], [0], [0], [1], [0, 0, 1, 1], [], []>} : vector<8x128xf32>, vector<128x32xf32>, vector<8x32xf32> -> vector<8x32xf32>
    %c5_543 = arith.constant 5 : index
    %c0_544 = arith.constant 0 : index
    %c0_545 = arith.constant 0 : index
    %1022 = vector.load %arg1[%c5_543, %c0_544, %c0_545] : memref<9x8x6xf32, #tpu.memory_space<vmem>>, vector<1x8x6xf32>
    %1023 = vector.shape_cast %1022 : vector<1x8x6xf32> to vector<8x6xf32>
    %1024 = vector.extract_strided_slice %1023 {offsets = [0, 0], sizes = [8, 1], strides = [1, 1]} : vector<8x6xf32> to vector<8x1xf32>
    %1025 = vector.extract_strided_slice %1023 {offsets = [0, 1], sizes = [8, 1], strides = [1, 1]} : vector<8x6xf32> to vector<8x1xf32>
    %cst_546 = arith.constant dense<0.000000e+00> : vector<8xf32>
    %1026 = vector.multi_reduction <add>, %1021, %cst_546 [1] : vector<8x32xf32> to vector<8xf32>
    %1027 = vector.shape_cast %1026 : vector<8xf32> to vector<8x1xf32>
    %cst_547 = arith.constant 3.125000e-02 : f32
    %1028 = vector.broadcast %cst_547 : f32 to vector<8x1xf32>
    %1029 = arith.mulf %1027, %1028 : vector<8x1xf32>
    %1030 = arith.mulf %1021, %1021 : vector<8x32xf32>
    %cst_548 = arith.constant dense<0.000000e+00> : vector<8xf32>
    %1031 = vector.multi_reduction <add>, %1030, %cst_548 [1] : vector<8x32xf32> to vector<8xf32>
    %1032 = vector.shape_cast %1031 : vector<8xf32> to vector<8x1xf32>
    %cst_549 = arith.constant 3.125000e-02 : f32
    %1033 = vector.broadcast %cst_549 : f32 to vector<8x1xf32>
    %1034 = arith.mulf %1032, %1033 : vector<8x1xf32>
    %1035 = arith.mulf %1029, %1029 : vector<8x1xf32>
    %1036 = arith.subf %1034, %1035 : vector<8x1xf32>
    %cst_550 = arith.constant 0.000000e+00 : f32
    %1037 = vector.broadcast %cst_550 : f32 to vector<8x1xf32>
    %1038 = arith.maximumf %1036, %1037 : vector<8x1xf32>
    %cst_551 = arith.constant 9.99999974E-6 : f32
    %1039 = vector.broadcast %cst_551 : f32 to vector<8x1xf32>
    %1040 = arith.addf %1038, %1039 : vector<8x1xf32>
    %1041 = math.rsqrt %1040 : vector<8x1xf32>
    %1042 = arith.mulf %1041, %1024 : vector<8x1xf32>
    %1043 = arith.mulf %1029, %1042 : vector<8x1xf32>
    %1044 = arith.subf %1025, %1043 : vector<8x1xf32>
    %1045 = vector.broadcast %1042 : vector<8x1xf32> to vector<8x32xf32>
    %1046 = arith.mulf %1021, %1045 : vector<8x32xf32>
    %1047 = vector.broadcast %1044 : vector<8x1xf32> to vector<8x32xf32>
    %1048 = arith.addf %1046, %1047 : vector<8x32xf32>
    %cst_552 = arith.constant 0.000000e+00 : f32
    %1049 = vector.broadcast %cst_552 : f32 to vector<8x32xf32>
    %1050 = arith.maximumf %1048, %1049 : vector<8x32xf32>
    %c5_553 = arith.constant 5 : index
    %c0_554 = arith.constant 0 : index
    %c0_555 = arith.constant 0 : index
    %1051 = vector.load %arg2[%c5_553, %c0_554, %c0_555] : memref<9x8x8xf32, #tpu.memory_space<vmem>>, vector<1x8x8xf32>
    %1052 = vector.shape_cast %1051 : vector<1x8x8xf32> to vector<8x8xf32>
    %cst_556 = arith.constant dense<0.000000e+00> : vector<8x32xf32>
    %1053 = tpu.matmul %1052, %1050, %cst_556 {dimension_numbers = #tpu.dot_dimension_numbers<[1], [0], [0], [1], [0, 0, 1, 1], [], []>} : vector<8x8xf32>, vector<8x32xf32>, vector<8x32xf32> -> vector<8x32xf32>
    %1054 = vector.extract_strided_slice %1023 {offsets = [0, 2], sizes = [8, 1], strides = [1, 1]} : vector<8x6xf32> to vector<8x1xf32>
    %1055 = vector.extract_strided_slice %1023 {offsets = [0, 3], sizes = [8, 1], strides = [1, 1]} : vector<8x6xf32> to vector<8x1xf32>
    %cst_557 = arith.constant dense<0.000000e+00> : vector<8xf32>
    %1056 = vector.multi_reduction <add>, %1053, %cst_557 [1] : vector<8x32xf32> to vector<8xf32>
    %1057 = vector.shape_cast %1056 : vector<8xf32> to vector<8x1xf32>
    %cst_558 = arith.constant 3.125000e-02 : f32
    %1058 = vector.broadcast %cst_558 : f32 to vector<8x1xf32>
    %1059 = arith.mulf %1057, %1058 : vector<8x1xf32>
    %1060 = arith.mulf %1053, %1053 : vector<8x32xf32>
    %cst_559 = arith.constant dense<0.000000e+00> : vector<8xf32>
    %1061 = vector.multi_reduction <add>, %1060, %cst_559 [1] : vector<8x32xf32> to vector<8xf32>
    %1062 = vector.shape_cast %1061 : vector<8xf32> to vector<8x1xf32>
    %cst_560 = arith.constant 3.125000e-02 : f32
    %1063 = vector.broadcast %cst_560 : f32 to vector<8x1xf32>
    %1064 = arith.mulf %1062, %1063 : vector<8x1xf32>
    %1065 = arith.mulf %1059, %1059 : vector<8x1xf32>
    %1066 = arith.subf %1064, %1065 : vector<8x1xf32>
    %cst_561 = arith.constant 0.000000e+00 : f32
    %1067 = vector.broadcast %cst_561 : f32 to vector<8x1xf32>
    %1068 = arith.maximumf %1066, %1067 : vector<8x1xf32>
    %cst_562 = arith.constant 9.99999974E-6 : f32
    %1069 = vector.broadcast %cst_562 : f32 to vector<8x1xf32>
    %1070 = arith.addf %1068, %1069 : vector<8x1xf32>
    %1071 = math.rsqrt %1070 : vector<8x1xf32>
    %1072 = arith.mulf %1071, %1054 : vector<8x1xf32>
    %1073 = arith.mulf %1059, %1072 : vector<8x1xf32>
    %1074 = arith.subf %1055, %1073 : vector<8x1xf32>
    %1075 = vector.broadcast %1072 : vector<8x1xf32> to vector<8x32xf32>
    %1076 = arith.mulf %1053, %1075 : vector<8x32xf32>
    %1077 = vector.broadcast %1074 : vector<8x1xf32> to vector<8x32xf32>
    %1078 = arith.addf %1076, %1077 : vector<8x32xf32>
    %cst_563 = arith.constant 0.000000e+00 : f32
    %1079 = vector.broadcast %cst_563 : f32 to vector<8x32xf32>
    %1080 = arith.maximumf %1078, %1079 : vector<8x32xf32>
    %c49 = arith.constant 49 : index
    %c0_564 = arith.constant 0 : index
    %c0_565 = arith.constant 0 : index
    %1081 = vector.load %arg3[%c49, %c0_564, %c0_565] : memref<81x8x8xf32, #tpu.memory_space<vmem>>, vector<1x8x8xf32>
    %1082 = vector.shape_cast %1081 : vector<1x8x8xf32> to vector<8x8xf32>
    %cst_566 = arith.constant dense<0.000000e+00> : vector<8x32xf32>
    %1083 = tpu.matmul %1082, %1080, %cst_566 {dimension_numbers = #tpu.dot_dimension_numbers<[1], [0], [0], [1], [0, 0, 1, 1], [], []>} : vector<8x8xf32>, vector<8x32xf32>, vector<8x32xf32> -> vector<8x32xf32>
    %c45 = arith.constant 45 : index
    %c0_567 = arith.constant 0 : index
    %c0_568 = arith.constant 0 : index
    %1084 = vector.load %arg3[%c45, %c0_567, %c0_568] : memref<81x8x8xf32, #tpu.memory_space<vmem>>, vector<1x8x8xf32>
    %1085 = vector.shape_cast %1084 : vector<1x8x8xf32> to vector<8x8xf32>
    %c0_569 = arith.constant 0 : index
    %c0_570 = arith.constant 0 : index
    %c0_571 = arith.constant 0 : index
    %1086 = vector.load %arg12[%c0_569, %c0_570, %c0_571] : memref<9x32x32xf32, #tpu.memory_space<vmem>>, vector<1x32x32xf32>
    %1087 = vector.shape_cast %1086 : vector<1x32x32xf32> to vector<32x32xf32>
    %cst_572 = arith.constant dense<0.000000e+00> : vector<8x32xf32>
    %1088 = tpu.matmul %1080, %1087, %cst_572 {dimension_numbers = #tpu.dot_dimension_numbers<[1], [0], [0], [1], [0, 0, 1, 1], [], []>} : vector<8x32xf32>, vector<32x32xf32>, vector<8x32xf32> -> vector<8x32xf32>
    %cst_573 = arith.constant dense<0.000000e+00> : vector<8x32xf32>
    %1089 = tpu.matmul %1085, %1088, %cst_573 {dimension_numbers = #tpu.dot_dimension_numbers<[1], [0], [0], [1], [0, 0, 1, 1], [], []>} : vector<8x8xf32>, vector<8x32xf32>, vector<8x32xf32> -> vector<8x32xf32>
    %1090 = arith.addf %1083, %1089 : vector<8x32xf32>
    %c46 = arith.constant 46 : index
    %c0_574 = arith.constant 0 : index
    %c0_575 = arith.constant 0 : index
    %1091 = vector.load %arg3[%c46, %c0_574, %c0_575] : memref<81x8x8xf32, #tpu.memory_space<vmem>>, vector<1x8x8xf32>
    %1092 = vector.shape_cast %1091 : vector<1x8x8xf32> to vector<8x8xf32>
    %c1_576 = arith.constant 1 : index
    %c0_577 = arith.constant 0 : index
    %c0_578 = arith.constant 0 : index
    %1093 = vector.load %arg12[%c1_576, %c0_577, %c0_578] : memref<9x32x32xf32, #tpu.memory_space<vmem>>, vector<1x32x32xf32>
    %1094 = vector.shape_cast %1093 : vector<1x32x32xf32> to vector<32x32xf32>
    %cst_579 = arith.constant dense<0.000000e+00> : vector<8x32xf32>
    %1095 = tpu.matmul %1080, %1094, %cst_579 {dimension_numbers = #tpu.dot_dimension_numbers<[1], [0], [0], [1], [0, 0, 1, 1], [], []>} : vector<8x32xf32>, vector<32x32xf32>, vector<8x32xf32> -> vector<8x32xf32>
    %cst_580 = arith.constant dense<0.000000e+00> : vector<8x32xf32>
    %1096 = tpu.matmul %1092, %1095, %cst_580 {dimension_numbers = #tpu.dot_dimension_numbers<[1], [0], [0], [1], [0, 0, 1, 1], [], []>} : vector<8x8xf32>, vector<8x32xf32>, vector<8x32xf32> -> vector<8x32xf32>
    %1097 = arith.addf %1090, %1096 : vector<8x32xf32>
    %c47 = arith.constant 47 : index
    %c0_581 = arith.constant 0 : index
    %c0_582 = arith.constant 0 : index
    %1098 = vector.load %arg3[%c47, %c0_581, %c0_582] : memref<81x8x8xf32, #tpu.memory_space<vmem>>, vector<1x8x8xf32>
    %1099 = vector.shape_cast %1098 : vector<1x8x8xf32> to vector<8x8xf32>
    %c2_583 = arith.constant 2 : index
    %c0_584 = arith.constant 0 : index
    %c0_585 = arith.constant 0 : index
    %1100 = vector.load %arg12[%c2_583, %c0_584, %c0_585] : memref<9x32x32xf32, #tpu.memory_space<vmem>>, vector<1x32x32xf32>
    %1101 = vector.shape_cast %1100 : vector<1x32x32xf32> to vector<32x32xf32>
    %cst_586 = arith.constant dense<0.000000e+00> : vector<8x32xf32>
    %1102 = tpu.matmul %1080, %1101, %cst_586 {dimension_numbers = #tpu.dot_dimension_numbers<[1], [0], [0], [1], [0, 0, 1, 1], [], []>} : vector<8x32xf32>, vector<32x32xf32>, vector<8x32xf32> -> vector<8x32xf32>
    %cst_587 = arith.constant dense<0.000000e+00> : vector<8x32xf32>
    %1103 = tpu.matmul %1099, %1102, %cst_587 {dimension_numbers = #tpu.dot_dimension_numbers<[1], [0], [0], [1], [0, 0, 1, 1], [], []>} : vector<8x8xf32>, vector<8x32xf32>, vector<8x32xf32> -> vector<8x32xf32>
    %1104 = arith.addf %1097, %1103 : vector<8x32xf32>
    %c48 = arith.constant 48 : index
    %c0_588 = arith.constant 0 : index
    %c0_589 = arith.constant 0 : index
    %1105 = vector.load %arg3[%c48, %c0_588, %c0_589] : memref<81x8x8xf32, #tpu.memory_space<vmem>>, vector<1x8x8xf32>
    %1106 = vector.shape_cast %1105 : vector<1x8x8xf32> to vector<8x8xf32>
    %c3_590 = arith.constant 3 : index
    %c0_591 = arith.constant 0 : index
    %c0_592 = arith.constant 0 : index
    %1107 = vector.load %arg12[%c3_590, %c0_591, %c0_592] : memref<9x32x32xf32, #tpu.memory_space<vmem>>, vector<1x32x32xf32>
    %1108 = vector.shape_cast %1107 : vector<1x32x32xf32> to vector<32x32xf32>
    %cst_593 = arith.constant dense<0.000000e+00> : vector<8x32xf32>
    %1109 = tpu.matmul %1080, %1108, %cst_593 {dimension_numbers = #tpu.dot_dimension_numbers<[1], [0], [0], [1], [0, 0, 1, 1], [], []>} : vector<8x32xf32>, vector<32x32xf32>, vector<8x32xf32> -> vector<8x32xf32>
    %cst_594 = arith.constant dense<0.000000e+00> : vector<8x32xf32>
    %1110 = tpu.matmul %1106, %1109, %cst_594 {dimension_numbers = #tpu.dot_dimension_numbers<[1], [0], [0], [1], [0, 0, 1, 1], [], []>} : vector<8x8xf32>, vector<8x32xf32>, vector<8x32xf32> -> vector<8x32xf32>
    %1111 = arith.addf %1104, %1110 : vector<8x32xf32>
    %c50 = arith.constant 50 : index
    %c0_595 = arith.constant 0 : index
    %c0_596 = arith.constant 0 : index
    %1112 = vector.load %arg3[%c50, %c0_595, %c0_596] : memref<81x8x8xf32, #tpu.memory_space<vmem>>, vector<1x8x8xf32>
    %1113 = vector.shape_cast %1112 : vector<1x8x8xf32> to vector<8x8xf32>
    %c5_597 = arith.constant 5 : index
    %c0_598 = arith.constant 0 : index
    %c0_599 = arith.constant 0 : index
    %1114 = vector.load %arg12[%c5_597, %c0_598, %c0_599] : memref<9x32x32xf32, #tpu.memory_space<vmem>>, vector<1x32x32xf32>
    %1115 = vector.shape_cast %1114 : vector<1x32x32xf32> to vector<32x32xf32>
    %cst_600 = arith.constant dense<0.000000e+00> : vector<8x32xf32>
    %1116 = tpu.matmul %1080, %1115, %cst_600 {dimension_numbers = #tpu.dot_dimension_numbers<[1], [0], [0], [1], [0, 0, 1, 1], [], []>} : vector<8x32xf32>, vector<32x32xf32>, vector<8x32xf32> -> vector<8x32xf32>
    %cst_601 = arith.constant dense<0.000000e+00> : vector<8x32xf32>
    %1117 = tpu.matmul %1113, %1116, %cst_601 {dimension_numbers = #tpu.dot_dimension_numbers<[1], [0], [0], [1], [0, 0, 1, 1], [], []>} : vector<8x8xf32>, vector<8x32xf32>, vector<8x32xf32> -> vector<8x32xf32>
    %1118 = arith.addf %1111, %1117 : vector<8x32xf32>
    %c51 = arith.constant 51 : index
    %c0_602 = arith.constant 0 : index
    %c0_603 = arith.constant 0 : index
    %1119 = vector.load %arg3[%c51, %c0_602, %c0_603] : memref<81x8x8xf32, #tpu.memory_space<vmem>>, vector<1x8x8xf32>
    %1120 = vector.shape_cast %1119 : vector<1x8x8xf32> to vector<8x8xf32>
    %c6_604 = arith.constant 6 : index
    %c0_605 = arith.constant 0 : index
    %c0_606 = arith.constant 0 : index
    %1121 = vector.load %arg12[%c6_604, %c0_605, %c0_606] : memref<9x32x32xf32, #tpu.memory_space<vmem>>, vector<1x32x32xf32>
    %1122 = vector.shape_cast %1121 : vector<1x32x32xf32> to vector<32x32xf32>
    %cst_607 = arith.constant dense<0.000000e+00> : vector<8x32xf32>
    %1123 = tpu.matmul %1080, %1122, %cst_607 {dimension_numbers = #tpu.dot_dimension_numbers<[1], [0], [0], [1], [0, 0, 1, 1], [], []>} : vector<8x32xf32>, vector<32x32xf32>, vector<8x32xf32> -> vector<8x32xf32>
    %cst_608 = arith.constant dense<0.000000e+00> : vector<8x32xf32>
    %1124 = tpu.matmul %1120, %1123, %cst_608 {dimension_numbers = #tpu.dot_dimension_numbers<[1], [0], [0], [1], [0, 0, 1, 1], [], []>} : vector<8x8xf32>, vector<8x32xf32>, vector<8x32xf32> -> vector<8x32xf32>
    %1125 = arith.addf %1118, %1124 : vector<8x32xf32>
    %c52 = arith.constant 52 : index
    %c0_609 = arith.constant 0 : index
    %c0_610 = arith.constant 0 : index
    %1126 = vector.load %arg3[%c52, %c0_609, %c0_610] : memref<81x8x8xf32, #tpu.memory_space<vmem>>, vector<1x8x8xf32>
    %1127 = vector.shape_cast %1126 : vector<1x8x8xf32> to vector<8x8xf32>
    %c7_611 = arith.constant 7 : index
    %c0_612 = arith.constant 0 : index
    %c0_613 = arith.constant 0 : index
    %1128 = vector.load %arg12[%c7_611, %c0_612, %c0_613] : memref<9x32x32xf32, #tpu.memory_space<vmem>>, vector<1x32x32xf32>
    %1129 = vector.shape_cast %1128 : vector<1x32x32xf32> to vector<32x32xf32>
    %cst_614 = arith.constant dense<0.000000e+00> : vector<8x32xf32>
    %1130 = tpu.matmul %1080, %1129, %cst_614 {dimension_numbers = #tpu.dot_dimension_numbers<[1], [0], [0], [1], [0, 0, 1, 1], [], []>} : vector<8x32xf32>, vector<32x32xf32>, vector<8x32xf32> -> vector<8x32xf32>
    %cst_615 = arith.constant dense<0.000000e+00> : vector<8x32xf32>
    %1131 = tpu.matmul %1127, %1130, %cst_615 {dimension_numbers = #tpu.dot_dimension_numbers<[1], [0], [0], [1], [0, 0, 1, 1], [], []>} : vector<8x8xf32>, vector<8x32xf32>, vector<8x32xf32> -> vector<8x32xf32>
    %1132 = arith.addf %1125, %1131 : vector<8x32xf32>
    %c53 = arith.constant 53 : index
    %c0_616 = arith.constant 0 : index
    %c0_617 = arith.constant 0 : index
    %1133 = vector.load %arg3[%c53, %c0_616, %c0_617] : memref<81x8x8xf32, #tpu.memory_space<vmem>>, vector<1x8x8xf32>
    %1134 = vector.shape_cast %1133 : vector<1x8x8xf32> to vector<8x8xf32>
    %c8_618 = arith.constant 8 : index
    %c0_619 = arith.constant 0 : index
    %c0_620 = arith.constant 0 : index
    %1135 = vector.load %arg12[%c8_618, %c0_619, %c0_620] : memref<9x32x32xf32, #tpu.memory_space<vmem>>, vector<1x32x32xf32>
    %1136 = vector.shape_cast %1135 : vector<1x32x32xf32> to vector<32x32xf32>
    %cst_621 = arith.constant dense<0.000000e+00> : vector<8x32xf32>
    %1137 = tpu.matmul %1080, %1136, %cst_621 {dimension_numbers = #tpu.dot_dimension_numbers<[1], [0], [0], [1], [0, 0, 1, 1], [], []>} : vector<8x32xf32>, vector<32x32xf32>, vector<8x32xf32> -> vector<8x32xf32>
    %cst_622 = arith.constant dense<0.000000e+00> : vector<8x32xf32>
    %1138 = tpu.matmul %1134, %1137, %cst_622 {dimension_numbers = #tpu.dot_dimension_numbers<[1], [0], [0], [1], [0, 0, 1, 1], [], []>} : vector<8x8xf32>, vector<8x32xf32>, vector<8x32xf32> -> vector<8x32xf32>
    %1139 = arith.addf %1132, %1138 : vector<8x32xf32>
    %1140 = vector.extract_strided_slice %1023 {offsets = [0, 4], sizes = [8, 1], strides = [1, 1]} : vector<8x6xf32> to vector<8x1xf32>
    %1141 = vector.extract_strided_slice %1023 {offsets = [0, 5], sizes = [8, 1], strides = [1, 1]} : vector<8x6xf32> to vector<8x1xf32>
    %cst_623 = arith.constant dense<0.000000e+00> : vector<8xf32>
    %1142 = vector.multi_reduction <add>, %1139, %cst_623 [1] : vector<8x32xf32> to vector<8xf32>
    %1143 = vector.shape_cast %1142 : vector<8xf32> to vector<8x1xf32>
    %cst_624 = arith.constant 3.125000e-02 : f32
    %1144 = vector.broadcast %cst_624 : f32 to vector<8x1xf32>
    %1145 = arith.mulf %1143, %1144 : vector<8x1xf32>
    %1146 = arith.mulf %1139, %1139 : vector<8x32xf32>
    %cst_625 = arith.constant dense<0.000000e+00> : vector<8xf32>
    %1147 = vector.multi_reduction <add>, %1146, %cst_625 [1] : vector<8x32xf32> to vector<8xf32>
    %1148 = vector.shape_cast %1147 : vector<8xf32> to vector<8x1xf32>
    %cst_626 = arith.constant 3.125000e-02 : f32
    %1149 = vector.broadcast %cst_626 : f32 to vector<8x1xf32>
    %1150 = arith.mulf %1148, %1149 : vector<8x1xf32>
    %1151 = arith.mulf %1145, %1145 : vector<8x1xf32>
    %1152 = arith.subf %1150, %1151 : vector<8x1xf32>
    %cst_627 = arith.constant 0.000000e+00 : f32
    %1153 = vector.broadcast %cst_627 : f32 to vector<8x1xf32>
    %1154 = arith.maximumf %1152, %1153 : vector<8x1xf32>
    %cst_628 = arith.constant 9.99999974E-6 : f32
    %1155 = vector.broadcast %cst_628 : f32 to vector<8x1xf32>
    %1156 = arith.addf %1154, %1155 : vector<8x1xf32>
    %1157 = math.rsqrt %1156 : vector<8x1xf32>
    %1158 = arith.mulf %1157, %1140 : vector<8x1xf32>
    %1159 = arith.mulf %1145, %1158 : vector<8x1xf32>
    %1160 = arith.subf %1141, %1159 : vector<8x1xf32>
    %1161 = vector.broadcast %1158 : vector<8x1xf32> to vector<8x32xf32>
    %1162 = arith.mulf %1139, %1161 : vector<8x32xf32>
    %1163 = vector.broadcast %1160 : vector<8x1xf32> to vector<8x32xf32>
    %1164 = arith.addf %1162, %1163 : vector<8x32xf32>
    %cst_629 = arith.constant 0.000000e+00 : f32
    %1165 = vector.broadcast %cst_629 : f32 to vector<8x32xf32>
    %1166 = arith.maximumf %1164, %1165 : vector<8x32xf32>
    %c5_630 = arith.constant 5 : index
    %c0_631 = arith.constant 0 : index
    %c0_632 = arith.constant 0 : index
    %1167 = vector.load %arg4[%c5_630, %c0_631, %c0_632] : memref<9x8x8xf32, #tpu.memory_space<vmem>>, vector<1x8x8xf32>
    %1168 = vector.shape_cast %1167 : vector<1x8x8xf32> to vector<8x8xf32>
    %cst_633 = arith.constant dense<0.000000e+00> : vector<8x32xf32>
    %1169 = tpu.matmul %1168, %1166, %cst_633 {dimension_numbers = #tpu.dot_dimension_numbers<[1], [0], [0], [1], [0, 0, 1, 1], [], []>} : vector<8x8xf32>, vector<8x32xf32>, vector<8x32xf32> -> vector<8x32xf32>
    %1170 = arith.addf %1169, %1021 : vector<8x32xf32>
    %c6_634 = arith.constant 6 : index
    %c0_635 = arith.constant 0 : index
    %c0_636 = arith.constant 0 : index
    %1171 = vector.load %arg1[%c6_634, %c0_635, %c0_636] : memref<9x8x6xf32, #tpu.memory_space<vmem>>, vector<1x8x6xf32>
    %1172 = vector.shape_cast %1171 : vector<1x8x6xf32> to vector<8x6xf32>
    %1173 = vector.extract_strided_slice %1172 {offsets = [0, 0], sizes = [8, 1], strides = [1, 1]} : vector<8x6xf32> to vector<8x1xf32>
    %1174 = vector.extract_strided_slice %1172 {offsets = [0, 1], sizes = [8, 1], strides = [1, 1]} : vector<8x6xf32> to vector<8x1xf32>
    %cst_637 = arith.constant dense<0.000000e+00> : vector<8xf32>
    %1175 = vector.multi_reduction <add>, %1170, %cst_637 [1] : vector<8x32xf32> to vector<8xf32>
    %1176 = vector.shape_cast %1175 : vector<8xf32> to vector<8x1xf32>
    %cst_638 = arith.constant 3.125000e-02 : f32
    %1177 = vector.broadcast %cst_638 : f32 to vector<8x1xf32>
    %1178 = arith.mulf %1176, %1177 : vector<8x1xf32>
    %1179 = arith.mulf %1170, %1170 : vector<8x32xf32>
    %cst_639 = arith.constant dense<0.000000e+00> : vector<8xf32>
    %1180 = vector.multi_reduction <add>, %1179, %cst_639 [1] : vector<8x32xf32> to vector<8xf32>
    %1181 = vector.shape_cast %1180 : vector<8xf32> to vector<8x1xf32>
    %cst_640 = arith.constant 3.125000e-02 : f32
    %1182 = vector.broadcast %cst_640 : f32 to vector<8x1xf32>
    %1183 = arith.mulf %1181, %1182 : vector<8x1xf32>
    %1184 = arith.mulf %1178, %1178 : vector<8x1xf32>
    %1185 = arith.subf %1183, %1184 : vector<8x1xf32>
    %cst_641 = arith.constant 0.000000e+00 : f32
    %1186 = vector.broadcast %cst_641 : f32 to vector<8x1xf32>
    %1187 = arith.maximumf %1185, %1186 : vector<8x1xf32>
    %cst_642 = arith.constant 9.99999974E-6 : f32
    %1188 = vector.broadcast %cst_642 : f32 to vector<8x1xf32>
    %1189 = arith.addf %1187, %1188 : vector<8x1xf32>
    %1190 = math.rsqrt %1189 : vector<8x1xf32>
    %1191 = arith.mulf %1190, %1173 : vector<8x1xf32>
    %1192 = arith.mulf %1178, %1191 : vector<8x1xf32>
    %1193 = arith.subf %1174, %1192 : vector<8x1xf32>
    %1194 = vector.broadcast %1191 : vector<8x1xf32> to vector<8x32xf32>
    %1195 = arith.mulf %1170, %1194 : vector<8x32xf32>
    %1196 = vector.broadcast %1193 : vector<8x1xf32> to vector<8x32xf32>
    %1197 = arith.addf %1195, %1196 : vector<8x32xf32>
    %cst_643 = arith.constant 0.000000e+00 : f32
    %1198 = vector.broadcast %cst_643 : f32 to vector<8x32xf32>
    %1199 = arith.maximumf %1197, %1198 : vector<8x32xf32>
    %c6_644 = arith.constant 6 : index
    %c0_645 = arith.constant 0 : index
    %c0_646 = arith.constant 0 : index
    %1200 = vector.load %arg2[%c6_644, %c0_645, %c0_646] : memref<9x8x8xf32, #tpu.memory_space<vmem>>, vector<1x8x8xf32>
    %1201 = vector.shape_cast %1200 : vector<1x8x8xf32> to vector<8x8xf32>
    %cst_647 = arith.constant dense<0.000000e+00> : vector<8x32xf32>
    %1202 = tpu.matmul %1201, %1199, %cst_647 {dimension_numbers = #tpu.dot_dimension_numbers<[1], [0], [0], [1], [0, 0, 1, 1], [], []>} : vector<8x8xf32>, vector<8x32xf32>, vector<8x32xf32> -> vector<8x32xf32>
    %1203 = vector.extract_strided_slice %1172 {offsets = [0, 2], sizes = [8, 1], strides = [1, 1]} : vector<8x6xf32> to vector<8x1xf32>
    %1204 = vector.extract_strided_slice %1172 {offsets = [0, 3], sizes = [8, 1], strides = [1, 1]} : vector<8x6xf32> to vector<8x1xf32>
    %cst_648 = arith.constant dense<0.000000e+00> : vector<8xf32>
    %1205 = vector.multi_reduction <add>, %1202, %cst_648 [1] : vector<8x32xf32> to vector<8xf32>
    %1206 = vector.shape_cast %1205 : vector<8xf32> to vector<8x1xf32>
    %cst_649 = arith.constant 3.125000e-02 : f32
    %1207 = vector.broadcast %cst_649 : f32 to vector<8x1xf32>
    %1208 = arith.mulf %1206, %1207 : vector<8x1xf32>
    %1209 = arith.mulf %1202, %1202 : vector<8x32xf32>
    %cst_650 = arith.constant dense<0.000000e+00> : vector<8xf32>
    %1210 = vector.multi_reduction <add>, %1209, %cst_650 [1] : vector<8x32xf32> to vector<8xf32>
    %1211 = vector.shape_cast %1210 : vector<8xf32> to vector<8x1xf32>
    %cst_651 = arith.constant 3.125000e-02 : f32
    %1212 = vector.broadcast %cst_651 : f32 to vector<8x1xf32>
    %1213 = arith.mulf %1211, %1212 : vector<8x1xf32>
    %1214 = arith.mulf %1208, %1208 : vector<8x1xf32>
    %1215 = arith.subf %1213, %1214 : vector<8x1xf32>
    %cst_652 = arith.constant 0.000000e+00 : f32
    %1216 = vector.broadcast %cst_652 : f32 to vector<8x1xf32>
    %1217 = arith.maximumf %1215, %1216 : vector<8x1xf32>
    %cst_653 = arith.constant 9.99999974E-6 : f32
    %1218 = vector.broadcast %cst_653 : f32 to vector<8x1xf32>
    %1219 = arith.addf %1217, %1218 : vector<8x1xf32>
    %1220 = math.rsqrt %1219 : vector<8x1xf32>
    %1221 = arith.mulf %1220, %1203 : vector<8x1xf32>
    %1222 = arith.mulf %1208, %1221 : vector<8x1xf32>
    %1223 = arith.subf %1204, %1222 : vector<8x1xf32>
    %1224 = vector.broadcast %1221 : vector<8x1xf32> to vector<8x32xf32>
    %1225 = arith.mulf %1202, %1224 : vector<8x32xf32>
    %1226 = vector.broadcast %1223 : vector<8x1xf32> to vector<8x32xf32>
    %1227 = arith.addf %1225, %1226 : vector<8x32xf32>
    %cst_654 = arith.constant 0.000000e+00 : f32
    %1228 = vector.broadcast %cst_654 : f32 to vector<8x32xf32>
    %1229 = arith.maximumf %1227, %1228 : vector<8x32xf32>
    %c58 = arith.constant 58 : index
    %c0_655 = arith.constant 0 : index
    %c0_656 = arith.constant 0 : index
    %1230 = vector.load %arg3[%c58, %c0_655, %c0_656] : memref<81x8x8xf32, #tpu.memory_space<vmem>>, vector<1x8x8xf32>
    %1231 = vector.shape_cast %1230 : vector<1x8x8xf32> to vector<8x8xf32>
    %cst_657 = arith.constant dense<0.000000e+00> : vector<8x32xf32>
    %1232 = tpu.matmul %1231, %1229, %cst_657 {dimension_numbers = #tpu.dot_dimension_numbers<[1], [0], [0], [1], [0, 0, 1, 1], [], []>} : vector<8x8xf32>, vector<8x32xf32>, vector<8x32xf32> -> vector<8x32xf32>
    %c54 = arith.constant 54 : index
    %c0_658 = arith.constant 0 : index
    %c0_659 = arith.constant 0 : index
    %1233 = vector.load %arg3[%c54, %c0_658, %c0_659] : memref<81x8x8xf32, #tpu.memory_space<vmem>>, vector<1x8x8xf32>
    %1234 = vector.shape_cast %1233 : vector<1x8x8xf32> to vector<8x8xf32>
    %c0_660 = arith.constant 0 : index
    %c0_661 = arith.constant 0 : index
    %c0_662 = arith.constant 0 : index
    %1235 = vector.load %arg12[%c0_660, %c0_661, %c0_662] : memref<9x32x32xf32, #tpu.memory_space<vmem>>, vector<1x32x32xf32>
    %1236 = vector.shape_cast %1235 : vector<1x32x32xf32> to vector<32x32xf32>
    %cst_663 = arith.constant dense<0.000000e+00> : vector<8x32xf32>
    %1237 = tpu.matmul %1229, %1236, %cst_663 {dimension_numbers = #tpu.dot_dimension_numbers<[1], [0], [0], [1], [0, 0, 1, 1], [], []>} : vector<8x32xf32>, vector<32x32xf32>, vector<8x32xf32> -> vector<8x32xf32>
    %cst_664 = arith.constant dense<0.000000e+00> : vector<8x32xf32>
    %1238 = tpu.matmul %1234, %1237, %cst_664 {dimension_numbers = #tpu.dot_dimension_numbers<[1], [0], [0], [1], [0, 0, 1, 1], [], []>} : vector<8x8xf32>, vector<8x32xf32>, vector<8x32xf32> -> vector<8x32xf32>
    %1239 = arith.addf %1232, %1238 : vector<8x32xf32>
    %c55 = arith.constant 55 : index
    %c0_665 = arith.constant 0 : index
    %c0_666 = arith.constant 0 : index
    %1240 = vector.load %arg3[%c55, %c0_665, %c0_666] : memref<81x8x8xf32, #tpu.memory_space<vmem>>, vector<1x8x8xf32>
    %1241 = vector.shape_cast %1240 : vector<1x8x8xf32> to vector<8x8xf32>
    %c1_667 = arith.constant 1 : index
    %c0_668 = arith.constant 0 : index
    %c0_669 = arith.constant 0 : index
    %1242 = vector.load %arg12[%c1_667, %c0_668, %c0_669] : memref<9x32x32xf32, #tpu.memory_space<vmem>>, vector<1x32x32xf32>
    %1243 = vector.shape_cast %1242 : vector<1x32x32xf32> to vector<32x32xf32>
    %cst_670 = arith.constant dense<0.000000e+00> : vector<8x32xf32>
    %1244 = tpu.matmul %1229, %1243, %cst_670 {dimension_numbers = #tpu.dot_dimension_numbers<[1], [0], [0], [1], [0, 0, 1, 1], [], []>} : vector<8x32xf32>, vector<32x32xf32>, vector<8x32xf32> -> vector<8x32xf32>
    %cst_671 = arith.constant dense<0.000000e+00> : vector<8x32xf32>
    %1245 = tpu.matmul %1241, %1244, %cst_671 {dimension_numbers = #tpu.dot_dimension_numbers<[1], [0], [0], [1], [0, 0, 1, 1], [], []>} : vector<8x8xf32>, vector<8x32xf32>, vector<8x32xf32> -> vector<8x32xf32>
    %1246 = arith.addf %1239, %1245 : vector<8x32xf32>
    %c56 = arith.constant 56 : index
    %c0_672 = arith.constant 0 : index
    %c0_673 = arith.constant 0 : index
    %1247 = vector.load %arg3[%c56, %c0_672, %c0_673] : memref<81x8x8xf32, #tpu.memory_space<vmem>>, vector<1x8x8xf32>
    %1248 = vector.shape_cast %1247 : vector<1x8x8xf32> to vector<8x8xf32>
    %c2_674 = arith.constant 2 : index
    %c0_675 = arith.constant 0 : index
    %c0_676 = arith.constant 0 : index
    %1249 = vector.load %arg12[%c2_674, %c0_675, %c0_676] : memref<9x32x32xf32, #tpu.memory_space<vmem>>, vector<1x32x32xf32>
    %1250 = vector.shape_cast %1249 : vector<1x32x32xf32> to vector<32x32xf32>
    %cst_677 = arith.constant dense<0.000000e+00> : vector<8x32xf32>
    %1251 = tpu.matmul %1229, %1250, %cst_677 {dimension_numbers = #tpu.dot_dimension_numbers<[1], [0], [0], [1], [0, 0, 1, 1], [], []>} : vector<8x32xf32>, vector<32x32xf32>, vector<8x32xf32> -> vector<8x32xf32>
    %cst_678 = arith.constant dense<0.000000e+00> : vector<8x32xf32>
    %1252 = tpu.matmul %1248, %1251, %cst_678 {dimension_numbers = #tpu.dot_dimension_numbers<[1], [0], [0], [1], [0, 0, 1, 1], [], []>} : vector<8x8xf32>, vector<8x32xf32>, vector<8x32xf32> -> vector<8x32xf32>
    %1253 = arith.addf %1246, %1252 : vector<8x32xf32>
    %c57 = arith.constant 57 : index
    %c0_679 = arith.constant 0 : index
    %c0_680 = arith.constant 0 : index
    %1254 = vector.load %arg3[%c57, %c0_679, %c0_680] : memref<81x8x8xf32, #tpu.memory_space<vmem>>, vector<1x8x8xf32>
    %1255 = vector.shape_cast %1254 : vector<1x8x8xf32> to vector<8x8xf32>
    %c3_681 = arith.constant 3 : index
    %c0_682 = arith.constant 0 : index
    %c0_683 = arith.constant 0 : index
    %1256 = vector.load %arg12[%c3_681, %c0_682, %c0_683] : memref<9x32x32xf32, #tpu.memory_space<vmem>>, vector<1x32x32xf32>
    %1257 = vector.shape_cast %1256 : vector<1x32x32xf32> to vector<32x32xf32>
    %cst_684 = arith.constant dense<0.000000e+00> : vector<8x32xf32>
    %1258 = tpu.matmul %1229, %1257, %cst_684 {dimension_numbers = #tpu.dot_dimension_numbers<[1], [0], [0], [1], [0, 0, 1, 1], [], []>} : vector<8x32xf32>, vector<32x32xf32>, vector<8x32xf32> -> vector<8x32xf32>
    %cst_685 = arith.constant dense<0.000000e+00> : vector<8x32xf32>
    %1259 = tpu.matmul %1255, %1258, %cst_685 {dimension_numbers = #tpu.dot_dimension_numbers<[1], [0], [0], [1], [0, 0, 1, 1], [], []>} : vector<8x8xf32>, vector<8x32xf32>, vector<8x32xf32> -> vector<8x32xf32>
    %1260 = arith.addf %1253, %1259 : vector<8x32xf32>
    %c59 = arith.constant 59 : index
    %c0_686 = arith.constant 0 : index
    %c0_687 = arith.constant 0 : index
    %1261 = vector.load %arg3[%c59, %c0_686, %c0_687] : memref<81x8x8xf32, #tpu.memory_space<vmem>>, vector<1x8x8xf32>
    %1262 = vector.shape_cast %1261 : vector<1x8x8xf32> to vector<8x8xf32>
    %c5_688 = arith.constant 5 : index
    %c0_689 = arith.constant 0 : index
    %c0_690 = arith.constant 0 : index
    %1263 = vector.load %arg12[%c5_688, %c0_689, %c0_690] : memref<9x32x32xf32, #tpu.memory_space<vmem>>, vector<1x32x32xf32>
    %1264 = vector.shape_cast %1263 : vector<1x32x32xf32> to vector<32x32xf32>
    %cst_691 = arith.constant dense<0.000000e+00> : vector<8x32xf32>
    %1265 = tpu.matmul %1229, %1264, %cst_691 {dimension_numbers = #tpu.dot_dimension_numbers<[1], [0], [0], [1], [0, 0, 1, 1], [], []>} : vector<8x32xf32>, vector<32x32xf32>, vector<8x32xf32> -> vector<8x32xf32>
    %cst_692 = arith.constant dense<0.000000e+00> : vector<8x32xf32>
    %1266 = tpu.matmul %1262, %1265, %cst_692 {dimension_numbers = #tpu.dot_dimension_numbers<[1], [0], [0], [1], [0, 0, 1, 1], [], []>} : vector<8x8xf32>, vector<8x32xf32>, vector<8x32xf32> -> vector<8x32xf32>
    %1267 = arith.addf %1260, %1266 : vector<8x32xf32>
    %c60 = arith.constant 60 : index
    %c0_693 = arith.constant 0 : index
    %c0_694 = arith.constant 0 : index
    %1268 = vector.load %arg3[%c60, %c0_693, %c0_694] : memref<81x8x8xf32, #tpu.memory_space<vmem>>, vector<1x8x8xf32>
    %1269 = vector.shape_cast %1268 : vector<1x8x8xf32> to vector<8x8xf32>
    %c6_695 = arith.constant 6 : index
    %c0_696 = arith.constant 0 : index
    %c0_697 = arith.constant 0 : index
    %1270 = vector.load %arg12[%c6_695, %c0_696, %c0_697] : memref<9x32x32xf32, #tpu.memory_space<vmem>>, vector<1x32x32xf32>
    %1271 = vector.shape_cast %1270 : vector<1x32x32xf32> to vector<32x32xf32>
    %cst_698 = arith.constant dense<0.000000e+00> : vector<8x32xf32>
    %1272 = tpu.matmul %1229, %1271, %cst_698 {dimension_numbers = #tpu.dot_dimension_numbers<[1], [0], [0], [1], [0, 0, 1, 1], [], []>} : vector<8x32xf32>, vector<32x32xf32>, vector<8x32xf32> -> vector<8x32xf32>
    %cst_699 = arith.constant dense<0.000000e+00> : vector<8x32xf32>
    %1273 = tpu.matmul %1269, %1272, %cst_699 {dimension_numbers = #tpu.dot_dimension_numbers<[1], [0], [0], [1], [0, 0, 1, 1], [], []>} : vector<8x8xf32>, vector<8x32xf32>, vector<8x32xf32> -> vector<8x32xf32>
    %1274 = arith.addf %1267, %1273 : vector<8x32xf32>
    %c61 = arith.constant 61 : index
    %c0_700 = arith.constant 0 : index
    %c0_701 = arith.constant 0 : index
    %1275 = vector.load %arg3[%c61, %c0_700, %c0_701] : memref<81x8x8xf32, #tpu.memory_space<vmem>>, vector<1x8x8xf32>
    %1276 = vector.shape_cast %1275 : vector<1x8x8xf32> to vector<8x8xf32>
    %c7_702 = arith.constant 7 : index
    %c0_703 = arith.constant 0 : index
    %c0_704 = arith.constant 0 : index
    %1277 = vector.load %arg12[%c7_702, %c0_703, %c0_704] : memref<9x32x32xf32, #tpu.memory_space<vmem>>, vector<1x32x32xf32>
    %1278 = vector.shape_cast %1277 : vector<1x32x32xf32> to vector<32x32xf32>
    %cst_705 = arith.constant dense<0.000000e+00> : vector<8x32xf32>
    %1279 = tpu.matmul %1229, %1278, %cst_705 {dimension_numbers = #tpu.dot_dimension_numbers<[1], [0], [0], [1], [0, 0, 1, 1], [], []>} : vector<8x32xf32>, vector<32x32xf32>, vector<8x32xf32> -> vector<8x32xf32>
    %cst_706 = arith.constant dense<0.000000e+00> : vector<8x32xf32>
    %1280 = tpu.matmul %1276, %1279, %cst_706 {dimension_numbers = #tpu.dot_dimension_numbers<[1], [0], [0], [1], [0, 0, 1, 1], [], []>} : vector<8x8xf32>, vector<8x32xf32>, vector<8x32xf32> -> vector<8x32xf32>
    %1281 = arith.addf %1274, %1280 : vector<8x32xf32>
    %c62 = arith.constant 62 : index
    %c0_707 = arith.constant 0 : index
    %c0_708 = arith.constant 0 : index
    %1282 = vector.load %arg3[%c62, %c0_707, %c0_708] : memref<81x8x8xf32, #tpu.memory_space<vmem>>, vector<1x8x8xf32>
    %1283 = vector.shape_cast %1282 : vector<1x8x8xf32> to vector<8x8xf32>
    %c8_709 = arith.constant 8 : index
    %c0_710 = arith.constant 0 : index
    %c0_711 = arith.constant 0 : index
    %1284 = vector.load %arg12[%c8_709, %c0_710, %c0_711] : memref<9x32x32xf32, #tpu.memory_space<vmem>>, vector<1x32x32xf32>
    %1285 = vector.shape_cast %1284 : vector<1x32x32xf32> to vector<32x32xf32>
    %cst_712 = arith.constant dense<0.000000e+00> : vector<8x32xf32>
    %1286 = tpu.matmul %1229, %1285, %cst_712 {dimension_numbers = #tpu.dot_dimension_numbers<[1], [0], [0], [1], [0, 0, 1, 1], [], []>} : vector<8x32xf32>, vector<32x32xf32>, vector<8x32xf32> -> vector<8x32xf32>
    %cst_713 = arith.constant dense<0.000000e+00> : vector<8x32xf32>
    %1287 = tpu.matmul %1283, %1286, %cst_713 {dimension_numbers = #tpu.dot_dimension_numbers<[1], [0], [0], [1], [0, 0, 1, 1], [], []>} : vector<8x8xf32>, vector<8x32xf32>, vector<8x32xf32> -> vector<8x32xf32>
    %1288 = arith.addf %1281, %1287 : vector<8x32xf32>
    %1289 = vector.extract_strided_slice %1172 {offsets = [0, 4], sizes = [8, 1], strides = [1, 1]} : vector<8x6xf32> to vector<8x1xf32>
    %1290 = vector.extract_strided_slice %1172 {offsets = [0, 5], sizes = [8, 1], strides = [1, 1]} : vector<8x6xf32> to vector<8x1xf32>
    %cst_714 = arith.constant dense<0.000000e+00> : vector<8xf32>
    %1291 = vector.multi_reduction <add>, %1288, %cst_714 [1] : vector<8x32xf32> to vector<8xf32>
    %1292 = vector.shape_cast %1291 : vector<8xf32> to vector<8x1xf32>
    %cst_715 = arith.constant 3.125000e-02 : f32
    %1293 = vector.broadcast %cst_715 : f32 to vector<8x1xf32>
    %1294 = arith.mulf %1292, %1293 : vector<8x1xf32>
    %1295 = arith.mulf %1288, %1288 : vector<8x32xf32>
    %cst_716 = arith.constant dense<0.000000e+00> : vector<8xf32>
    %1296 = vector.multi_reduction <add>, %1295, %cst_716 [1] : vector<8x32xf32> to vector<8xf32>
    %1297 = vector.shape_cast %1296 : vector<8xf32> to vector<8x1xf32>
    %cst_717 = arith.constant 3.125000e-02 : f32
    %1298 = vector.broadcast %cst_717 : f32 to vector<8x1xf32>
    %1299 = arith.mulf %1297, %1298 : vector<8x1xf32>
    %1300 = arith.mulf %1294, %1294 : vector<8x1xf32>
    %1301 = arith.subf %1299, %1300 : vector<8x1xf32>
    %cst_718 = arith.constant 0.000000e+00 : f32
    %1302 = vector.broadcast %cst_718 : f32 to vector<8x1xf32>
    %1303 = arith.maximumf %1301, %1302 : vector<8x1xf32>
    %cst_719 = arith.constant 9.99999974E-6 : f32
    %1304 = vector.broadcast %cst_719 : f32 to vector<8x1xf32>
    %1305 = arith.addf %1303, %1304 : vector<8x1xf32>
    %1306 = math.rsqrt %1305 : vector<8x1xf32>
    %1307 = arith.mulf %1306, %1289 : vector<8x1xf32>
    %1308 = arith.mulf %1294, %1307 : vector<8x1xf32>
    %1309 = arith.subf %1290, %1308 : vector<8x1xf32>
    %1310 = vector.broadcast %1307 : vector<8x1xf32> to vector<8x32xf32>
    %1311 = arith.mulf %1288, %1310 : vector<8x32xf32>
    %1312 = vector.broadcast %1309 : vector<8x1xf32> to vector<8x32xf32>
    %1313 = arith.addf %1311, %1312 : vector<8x32xf32>
    %cst_720 = arith.constant 0.000000e+00 : f32
    %1314 = vector.broadcast %cst_720 : f32 to vector<8x32xf32>
    %1315 = arith.maximumf %1313, %1314 : vector<8x32xf32>
    %c6_721 = arith.constant 6 : index
    %c0_722 = arith.constant 0 : index
    %c0_723 = arith.constant 0 : index
    %1316 = vector.load %arg4[%c6_721, %c0_722, %c0_723] : memref<9x8x8xf32, #tpu.memory_space<vmem>>, vector<1x8x8xf32>
    %1317 = vector.shape_cast %1316 : vector<1x8x8xf32> to vector<8x8xf32>
    %cst_724 = arith.constant dense<0.000000e+00> : vector<8x32xf32>
    %1318 = tpu.matmul %1317, %1315, %cst_724 {dimension_numbers = #tpu.dot_dimension_numbers<[1], [0], [0], [1], [0, 0, 1, 1], [], []>} : vector<8x8xf32>, vector<8x32xf32>, vector<8x32xf32> -> vector<8x32xf32>
    %1319 = arith.addf %1318, %1170 : vector<8x32xf32>
    %c0_725 = arith.constant 0 : index
    %c0_726 = arith.constant 0 : index
    %1320 = vector.load %arg13[%c0_725, %c0_726] : memref<32x128xf32, #tpu.memory_space<vmem>>, vector<32x128xf32>
    %cst_727 = arith.constant dense<0.000000e+00> : vector<8x128xf32>
    %1321 = tpu.matmul %1319, %1320, %cst_727 {dimension_numbers = #tpu.dot_dimension_numbers<[1], [0], [0], [1], [0, 0, 1, 1], [], []>} : vector<8x32xf32>, vector<32x128xf32>, vector<8x128xf32> -> vector<8x128xf32>
    %1322 = arith.addf %1321, %758 : vector<8x128xf32>
    %1323 = arith.addf %1322, %923 : vector<8x128xf32>
    %c7_728 = arith.constant 7 : index
    %c0_729 = arith.constant 0 : index
    %c0_730 = arith.constant 0 : index
    %1324 = vector.load %arg1[%c7_728, %c0_729, %c0_730] : memref<9x8x6xf32, #tpu.memory_space<vmem>>, vector<1x8x6xf32>
    %1325 = vector.shape_cast %1324 : vector<1x8x6xf32> to vector<8x6xf32>
    %1326 = vector.extract_strided_slice %1325 {offsets = [0, 0], sizes = [8, 1], strides = [1, 1]} : vector<8x6xf32> to vector<8x1xf32>
    %1327 = vector.extract_strided_slice %1325 {offsets = [0, 1], sizes = [8, 1], strides = [1, 1]} : vector<8x6xf32> to vector<8x1xf32>
    %cst_731 = arith.constant dense<0.000000e+00> : vector<8xf32>
    %1328 = vector.multi_reduction <add>, %1323, %cst_731 [1] : vector<8x128xf32> to vector<8xf32>
    %1329 = vector.shape_cast %1328 : vector<8xf32> to vector<8x1xf32>
    %cst_732 = arith.constant 7.812500e-03 : f32
    %1330 = vector.broadcast %cst_732 : f32 to vector<8x1xf32>
    %1331 = arith.mulf %1329, %1330 : vector<8x1xf32>
    %1332 = arith.mulf %1323, %1323 : vector<8x128xf32>
    %cst_733 = arith.constant dense<0.000000e+00> : vector<8xf32>
    %1333 = vector.multi_reduction <add>, %1332, %cst_733 [1] : vector<8x128xf32> to vector<8xf32>
    %1334 = vector.shape_cast %1333 : vector<8xf32> to vector<8x1xf32>
    %cst_734 = arith.constant 7.812500e-03 : f32
    %1335 = vector.broadcast %cst_734 : f32 to vector<8x1xf32>
    %1336 = arith.mulf %1334, %1335 : vector<8x1xf32>
    %1337 = arith.mulf %1331, %1331 : vector<8x1xf32>
    %1338 = arith.subf %1336, %1337 : vector<8x1xf32>
    %cst_735 = arith.constant 0.000000e+00 : f32
    %1339 = vector.broadcast %cst_735 : f32 to vector<8x1xf32>
    %1340 = arith.maximumf %1338, %1339 : vector<8x1xf32>
    %cst_736 = arith.constant 9.99999974E-6 : f32
    %1341 = vector.broadcast %cst_736 : f32 to vector<8x1xf32>
    %1342 = arith.addf %1340, %1341 : vector<8x1xf32>
    %1343 = math.rsqrt %1342 : vector<8x1xf32>
    %1344 = arith.mulf %1343, %1326 : vector<8x1xf32>
    %1345 = arith.mulf %1331, %1344 : vector<8x1xf32>
    %1346 = arith.subf %1327, %1345 : vector<8x1xf32>
    %1347 = vector.broadcast %1344 : vector<8x1xf32> to vector<8x128xf32>
    %1348 = arith.mulf %1323, %1347 : vector<8x128xf32>
    %1349 = vector.broadcast %1346 : vector<8x1xf32> to vector<8x128xf32>
    %1350 = arith.addf %1348, %1349 : vector<8x128xf32>
    %cst_737 = arith.constant 0.000000e+00 : f32
    %1351 = vector.broadcast %cst_737 : f32 to vector<8x128xf32>
    %1352 = arith.maximumf %1350, %1351 : vector<8x128xf32>
    %c7_738 = arith.constant 7 : index
    %c0_739 = arith.constant 0 : index
    %c0_740 = arith.constant 0 : index
    %1353 = vector.load %arg2[%c7_738, %c0_739, %c0_740] : memref<9x8x8xf32, #tpu.memory_space<vmem>>, vector<1x8x8xf32>
    %1354 = vector.shape_cast %1353 : vector<1x8x8xf32> to vector<8x8xf32>
    %cst_741 = arith.constant dense<0.000000e+00> : vector<8x128xf32>
    %1355 = tpu.matmul %1354, %1352, %cst_741 {dimension_numbers = #tpu.dot_dimension_numbers<[1], [0], [0], [1], [0, 0, 1, 1], [], []>} : vector<8x8xf32>, vector<8x128xf32>, vector<8x128xf32> -> vector<8x128xf32>
    %1356 = vector.extract_strided_slice %1325 {offsets = [0, 2], sizes = [8, 1], strides = [1, 1]} : vector<8x6xf32> to vector<8x1xf32>
    %1357 = vector.extract_strided_slice %1325 {offsets = [0, 3], sizes = [8, 1], strides = [1, 1]} : vector<8x6xf32> to vector<8x1xf32>
    %cst_742 = arith.constant dense<0.000000e+00> : vector<8xf32>
    %1358 = vector.multi_reduction <add>, %1355, %cst_742 [1] : vector<8x128xf32> to vector<8xf32>
    %1359 = vector.shape_cast %1358 : vector<8xf32> to vector<8x1xf32>
    %cst_743 = arith.constant 7.812500e-03 : f32
    %1360 = vector.broadcast %cst_743 : f32 to vector<8x1xf32>
    %1361 = arith.mulf %1359, %1360 : vector<8x1xf32>
    %1362 = arith.mulf %1355, %1355 : vector<8x128xf32>
    %cst_744 = arith.constant dense<0.000000e+00> : vector<8xf32>
    %1363 = vector.multi_reduction <add>, %1362, %cst_744 [1] : vector<8x128xf32> to vector<8xf32>
    %1364 = vector.shape_cast %1363 : vector<8xf32> to vector<8x1xf32>
    %cst_745 = arith.constant 7.812500e-03 : f32
    %1365 = vector.broadcast %cst_745 : f32 to vector<8x1xf32>
    %1366 = arith.mulf %1364, %1365 : vector<8x1xf32>
    %1367 = arith.mulf %1361, %1361 : vector<8x1xf32>
    %1368 = arith.subf %1366, %1367 : vector<8x1xf32>
    %cst_746 = arith.constant 0.000000e+00 : f32
    %1369 = vector.broadcast %cst_746 : f32 to vector<8x1xf32>
    %1370 = arith.maximumf %1368, %1369 : vector<8x1xf32>
    %cst_747 = arith.constant 9.99999974E-6 : f32
    %1371 = vector.broadcast %cst_747 : f32 to vector<8x1xf32>
    %1372 = arith.addf %1370, %1371 : vector<8x1xf32>
    %1373 = math.rsqrt %1372 : vector<8x1xf32>
    %1374 = arith.mulf %1373, %1356 : vector<8x1xf32>
    %1375 = arith.mulf %1361, %1374 : vector<8x1xf32>
    %1376 = arith.subf %1357, %1375 : vector<8x1xf32>
    %1377 = vector.broadcast %1374 : vector<8x1xf32> to vector<8x128xf32>
    %1378 = arith.mulf %1355, %1377 : vector<8x128xf32>
    %1379 = vector.broadcast %1376 : vector<8x1xf32> to vector<8x128xf32>
    %1380 = arith.addf %1378, %1379 : vector<8x128xf32>
    %cst_748 = arith.constant 0.000000e+00 : f32
    %1381 = vector.broadcast %cst_748 : f32 to vector<8x128xf32>
    %1382 = arith.maximumf %1380, %1381 : vector<8x128xf32>
    %c67 = arith.constant 67 : index
    %c0_749 = arith.constant 0 : index
    %c0_750 = arith.constant 0 : index
    %1383 = vector.load %arg3[%c67, %c0_749, %c0_750] : memref<81x8x8xf32, #tpu.memory_space<vmem>>, vector<1x8x8xf32>
    %1384 = vector.shape_cast %1383 : vector<1x8x8xf32> to vector<8x8xf32>
    %cst_751 = arith.constant dense<0.000000e+00> : vector<8x128xf32>
    %1385 = tpu.matmul %1384, %1382, %cst_751 {dimension_numbers = #tpu.dot_dimension_numbers<[1], [0], [0], [1], [0, 0, 1, 1], [], []>} : vector<8x8xf32>, vector<8x128xf32>, vector<8x128xf32> -> vector<8x128xf32>
    %c63 = arith.constant 63 : index
    %c0_752 = arith.constant 0 : index
    %c0_753 = arith.constant 0 : index
    %1386 = vector.load %arg3[%c63, %c0_752, %c0_753] : memref<81x8x8xf32, #tpu.memory_space<vmem>>, vector<1x8x8xf32>
    %1387 = vector.shape_cast %1386 : vector<1x8x8xf32> to vector<8x8xf32>
    %c9_i32_754 = arith.constant 9 : i32
    %1388 = tpu.dynamic_rotate %1382 by %c9_i32_754 dim 1 : vector<8x128xf32>, i32 -> vector<8x128xf32>
    %c0_755 = arith.constant 0 : index
    %c0_756 = arith.constant 0 : index
    %c0_757 = arith.constant 0 : index
    %1389 = vector.load %arg9[%c0_755, %c0_756, %c0_757] : memref<9x1x128xf32, #tpu.memory_space<vmem>>, vector<1x1x128xf32>
    %1390 = vector.shape_cast %1389 : vector<1x1x128xf32> to vector<1x128xf32>
    %1391 = vector.broadcast %1390 : vector<1x128xf32> to vector<8x128xf32>
    %1392 = arith.mulf %1388, %1391 : vector<8x128xf32>
    %cst_758 = arith.constant dense<0.000000e+00> : vector<8x128xf32>
    %1393 = tpu.matmul %1387, %1392, %cst_758 {dimension_numbers = #tpu.dot_dimension_numbers<[1], [0], [0], [1], [0, 0, 1, 1], [], []>} : vector<8x8xf32>, vector<8x128xf32>, vector<8x128xf32> -> vector<8x128xf32>
    %1394 = arith.addf %1385, %1393 : vector<8x128xf32>
    %c64 = arith.constant 64 : index
    %c0_759 = arith.constant 0 : index
    %c0_760 = arith.constant 0 : index
    %1395 = vector.load %arg3[%c64, %c0_759, %c0_760] : memref<81x8x8xf32, #tpu.memory_space<vmem>>, vector<1x8x8xf32>
    %1396 = vector.shape_cast %1395 : vector<1x8x8xf32> to vector<8x8xf32>
    %c8_i32_761 = arith.constant 8 : i32
    %1397 = tpu.dynamic_rotate %1382 by %c8_i32_761 dim 1 : vector<8x128xf32>, i32 -> vector<8x128xf32>
    %c1_762 = arith.constant 1 : index
    %c0_763 = arith.constant 0 : index
    %c0_764 = arith.constant 0 : index
    %1398 = vector.load %arg9[%c1_762, %c0_763, %c0_764] : memref<9x1x128xf32, #tpu.memory_space<vmem>>, vector<1x1x128xf32>
    %1399 = vector.shape_cast %1398 : vector<1x1x128xf32> to vector<1x128xf32>
    %1400 = vector.broadcast %1399 : vector<1x128xf32> to vector<8x128xf32>
    %1401 = arith.mulf %1397, %1400 : vector<8x128xf32>
    %cst_765 = arith.constant dense<0.000000e+00> : vector<8x128xf32>
    %1402 = tpu.matmul %1396, %1401, %cst_765 {dimension_numbers = #tpu.dot_dimension_numbers<[1], [0], [0], [1], [0, 0, 1, 1], [], []>} : vector<8x8xf32>, vector<8x128xf32>, vector<8x128xf32> -> vector<8x128xf32>
    %1403 = arith.addf %1394, %1402 : vector<8x128xf32>
    %c65 = arith.constant 65 : index
    %c0_766 = arith.constant 0 : index
    %c0_767 = arith.constant 0 : index
    %1404 = vector.load %arg3[%c65, %c0_766, %c0_767] : memref<81x8x8xf32, #tpu.memory_space<vmem>>, vector<1x8x8xf32>
    %1405 = vector.shape_cast %1404 : vector<1x8x8xf32> to vector<8x8xf32>
    %c7_i32_768 = arith.constant 7 : i32
    %1406 = tpu.dynamic_rotate %1382 by %c7_i32_768 dim 1 : vector<8x128xf32>, i32 -> vector<8x128xf32>
    %c2_769 = arith.constant 2 : index
    %c0_770 = arith.constant 0 : index
    %c0_771 = arith.constant 0 : index
    %1407 = vector.load %arg9[%c2_769, %c0_770, %c0_771] : memref<9x1x128xf32, #tpu.memory_space<vmem>>, vector<1x1x128xf32>
    %1408 = vector.shape_cast %1407 : vector<1x1x128xf32> to vector<1x128xf32>
    %1409 = vector.broadcast %1408 : vector<1x128xf32> to vector<8x128xf32>
    %1410 = arith.mulf %1406, %1409 : vector<8x128xf32>
    %cst_772 = arith.constant dense<0.000000e+00> : vector<8x128xf32>
    %1411 = tpu.matmul %1405, %1410, %cst_772 {dimension_numbers = #tpu.dot_dimension_numbers<[1], [0], [0], [1], [0, 0, 1, 1], [], []>} : vector<8x8xf32>, vector<8x128xf32>, vector<8x128xf32> -> vector<8x128xf32>
    %1412 = arith.addf %1403, %1411 : vector<8x128xf32>
    %c66 = arith.constant 66 : index
    %c0_773 = arith.constant 0 : index
    %c0_774 = arith.constant 0 : index
    %1413 = vector.load %arg3[%c66, %c0_773, %c0_774] : memref<81x8x8xf32, #tpu.memory_space<vmem>>, vector<1x8x8xf32>
    %1414 = vector.shape_cast %1413 : vector<1x8x8xf32> to vector<8x8xf32>
    %c1_i32_775 = arith.constant 1 : i32
    %1415 = tpu.dynamic_rotate %1382 by %c1_i32_775 dim 1 : vector<8x128xf32>, i32 -> vector<8x128xf32>
    %c3_776 = arith.constant 3 : index
    %c0_777 = arith.constant 0 : index
    %c0_778 = arith.constant 0 : index
    %1416 = vector.load %arg9[%c3_776, %c0_777, %c0_778] : memref<9x1x128xf32, #tpu.memory_space<vmem>>, vector<1x1x128xf32>
    %1417 = vector.shape_cast %1416 : vector<1x1x128xf32> to vector<1x128xf32>
    %1418 = vector.broadcast %1417 : vector<1x128xf32> to vector<8x128xf32>
    %1419 = arith.mulf %1415, %1418 : vector<8x128xf32>
    %cst_779 = arith.constant dense<0.000000e+00> : vector<8x128xf32>
    %1420 = tpu.matmul %1414, %1419, %cst_779 {dimension_numbers = #tpu.dot_dimension_numbers<[1], [0], [0], [1], [0, 0, 1, 1], [], []>} : vector<8x8xf32>, vector<8x128xf32>, vector<8x128xf32> -> vector<8x128xf32>
    %1421 = arith.addf %1412, %1420 : vector<8x128xf32>
    %c68 = arith.constant 68 : index
    %c0_780 = arith.constant 0 : index
    %c0_781 = arith.constant 0 : index
    %1422 = vector.load %arg3[%c68, %c0_780, %c0_781] : memref<81x8x8xf32, #tpu.memory_space<vmem>>, vector<1x8x8xf32>
    %1423 = vector.shape_cast %1422 : vector<1x8x8xf32> to vector<8x8xf32>
    %c127_i32_782 = arith.constant 127 : i32
    %1424 = tpu.dynamic_rotate %1382 by %c127_i32_782 dim 1 : vector<8x128xf32>, i32 -> vector<8x128xf32>
    %c5_783 = arith.constant 5 : index
    %c0_784 = arith.constant 0 : index
    %c0_785 = arith.constant 0 : index
    %1425 = vector.load %arg9[%c5_783, %c0_784, %c0_785] : memref<9x1x128xf32, #tpu.memory_space<vmem>>, vector<1x1x128xf32>
    %1426 = vector.shape_cast %1425 : vector<1x1x128xf32> to vector<1x128xf32>
    %1427 = vector.broadcast %1426 : vector<1x128xf32> to vector<8x128xf32>
    %1428 = arith.mulf %1424, %1427 : vector<8x128xf32>
    %cst_786 = arith.constant dense<0.000000e+00> : vector<8x128xf32>
    %1429 = tpu.matmul %1423, %1428, %cst_786 {dimension_numbers = #tpu.dot_dimension_numbers<[1], [0], [0], [1], [0, 0, 1, 1], [], []>} : vector<8x8xf32>, vector<8x128xf32>, vector<8x128xf32> -> vector<8x128xf32>
    %1430 = arith.addf %1421, %1429 : vector<8x128xf32>
    %c69 = arith.constant 69 : index
    %c0_787 = arith.constant 0 : index
    %c0_788 = arith.constant 0 : index
    %1431 = vector.load %arg3[%c69, %c0_787, %c0_788] : memref<81x8x8xf32, #tpu.memory_space<vmem>>, vector<1x8x8xf32>
    %1432 = vector.shape_cast %1431 : vector<1x8x8xf32> to vector<8x8xf32>
    %c121_i32_789 = arith.constant 121 : i32
    %1433 = tpu.dynamic_rotate %1382 by %c121_i32_789 dim 1 : vector<8x128xf32>, i32 -> vector<8x128xf32>
    %c6_790 = arith.constant 6 : index
    %c0_791 = arith.constant 0 : index
    %c0_792 = arith.constant 0 : index
    %1434 = vector.load %arg9[%c6_790, %c0_791, %c0_792] : memref<9x1x128xf32, #tpu.memory_space<vmem>>, vector<1x1x128xf32>
    %1435 = vector.shape_cast %1434 : vector<1x1x128xf32> to vector<1x128xf32>
    %1436 = vector.broadcast %1435 : vector<1x128xf32> to vector<8x128xf32>
    %1437 = arith.mulf %1433, %1436 : vector<8x128xf32>
    %cst_793 = arith.constant dense<0.000000e+00> : vector<8x128xf32>
    %1438 = tpu.matmul %1432, %1437, %cst_793 {dimension_numbers = #tpu.dot_dimension_numbers<[1], [0], [0], [1], [0, 0, 1, 1], [], []>} : vector<8x8xf32>, vector<8x128xf32>, vector<8x128xf32> -> vector<8x128xf32>
    %1439 = arith.addf %1430, %1438 : vector<8x128xf32>
    %c70 = arith.constant 70 : index
    %c0_794 = arith.constant 0 : index
    %c0_795 = arith.constant 0 : index
    %1440 = vector.load %arg3[%c70, %c0_794, %c0_795] : memref<81x8x8xf32, #tpu.memory_space<vmem>>, vector<1x8x8xf32>
    %1441 = vector.shape_cast %1440 : vector<1x8x8xf32> to vector<8x8xf32>
    %c120_i32_796 = arith.constant 120 : i32
    %1442 = tpu.dynamic_rotate %1382 by %c120_i32_796 dim 1 : vector<8x128xf32>, i32 -> vector<8x128xf32>
    %c7_797 = arith.constant 7 : index
    %c0_798 = arith.constant 0 : index
    %c0_799 = arith.constant 0 : index
    %1443 = vector.load %arg9[%c7_797, %c0_798, %c0_799] : memref<9x1x128xf32, #tpu.memory_space<vmem>>, vector<1x1x128xf32>
    %1444 = vector.shape_cast %1443 : vector<1x1x128xf32> to vector<1x128xf32>
    %1445 = vector.broadcast %1444 : vector<1x128xf32> to vector<8x128xf32>
    %1446 = arith.mulf %1442, %1445 : vector<8x128xf32>
    %cst_800 = arith.constant dense<0.000000e+00> : vector<8x128xf32>
    %1447 = tpu.matmul %1441, %1446, %cst_800 {dimension_numbers = #tpu.dot_dimension_numbers<[1], [0], [0], [1], [0, 0, 1, 1], [], []>} : vector<8x8xf32>, vector<8x128xf32>, vector<8x128xf32> -> vector<8x128xf32>
    %1448 = arith.addf %1439, %1447 : vector<8x128xf32>
    %c71 = arith.constant 71 : index
    %c0_801 = arith.constant 0 : index
    %c0_802 = arith.constant 0 : index
    %1449 = vector.load %arg3[%c71, %c0_801, %c0_802] : memref<81x8x8xf32, #tpu.memory_space<vmem>>, vector<1x8x8xf32>
    %1450 = vector.shape_cast %1449 : vector<1x8x8xf32> to vector<8x8xf32>
    %c119_i32_803 = arith.constant 119 : i32
    %1451 = tpu.dynamic_rotate %1382 by %c119_i32_803 dim 1 : vector<8x128xf32>, i32 -> vector<8x128xf32>
    %c8_804 = arith.constant 8 : index
    %c0_805 = arith.constant 0 : index
    %c0_806 = arith.constant 0 : index
    %1452 = vector.load %arg9[%c8_804, %c0_805, %c0_806] : memref<9x1x128xf32, #tpu.memory_space<vmem>>, vector<1x1x128xf32>
    %1453 = vector.shape_cast %1452 : vector<1x1x128xf32> to vector<1x128xf32>
    %1454 = vector.broadcast %1453 : vector<1x128xf32> to vector<8x128xf32>
    %1455 = arith.mulf %1451, %1454 : vector<8x128xf32>
    %cst_807 = arith.constant dense<0.000000e+00> : vector<8x128xf32>
    %1456 = tpu.matmul %1450, %1455, %cst_807 {dimension_numbers = #tpu.dot_dimension_numbers<[1], [0], [0], [1], [0, 0, 1, 1], [], []>} : vector<8x8xf32>, vector<8x128xf32>, vector<8x128xf32> -> vector<8x128xf32>
    %1457 = arith.addf %1448, %1456 : vector<8x128xf32>
    %1458 = vector.extract_strided_slice %1325 {offsets = [0, 4], sizes = [8, 1], strides = [1, 1]} : vector<8x6xf32> to vector<8x1xf32>
    %1459 = vector.extract_strided_slice %1325 {offsets = [0, 5], sizes = [8, 1], strides = [1, 1]} : vector<8x6xf32> to vector<8x1xf32>
    %cst_808 = arith.constant dense<0.000000e+00> : vector<8xf32>
    %1460 = vector.multi_reduction <add>, %1457, %cst_808 [1] : vector<8x128xf32> to vector<8xf32>
    %1461 = vector.shape_cast %1460 : vector<8xf32> to vector<8x1xf32>
    %cst_809 = arith.constant 7.812500e-03 : f32
    %1462 = vector.broadcast %cst_809 : f32 to vector<8x1xf32>
    %1463 = arith.mulf %1461, %1462 : vector<8x1xf32>
    %1464 = arith.mulf %1457, %1457 : vector<8x128xf32>
    %cst_810 = arith.constant dense<0.000000e+00> : vector<8xf32>
    %1465 = vector.multi_reduction <add>, %1464, %cst_810 [1] : vector<8x128xf32> to vector<8xf32>
    %1466 = vector.shape_cast %1465 : vector<8xf32> to vector<8x1xf32>
    %cst_811 = arith.constant 7.812500e-03 : f32
    %1467 = vector.broadcast %cst_811 : f32 to vector<8x1xf32>
    %1468 = arith.mulf %1466, %1467 : vector<8x1xf32>
    %1469 = arith.mulf %1463, %1463 : vector<8x1xf32>
    %1470 = arith.subf %1468, %1469 : vector<8x1xf32>
    %cst_812 = arith.constant 0.000000e+00 : f32
    %1471 = vector.broadcast %cst_812 : f32 to vector<8x1xf32>
    %1472 = arith.maximumf %1470, %1471 : vector<8x1xf32>
    %cst_813 = arith.constant 9.99999974E-6 : f32
    %1473 = vector.broadcast %cst_813 : f32 to vector<8x1xf32>
    %1474 = arith.addf %1472, %1473 : vector<8x1xf32>
    %1475 = math.rsqrt %1474 : vector<8x1xf32>
    %1476 = arith.mulf %1475, %1458 : vector<8x1xf32>
    %1477 = arith.mulf %1463, %1476 : vector<8x1xf32>
    %1478 = arith.subf %1459, %1477 : vector<8x1xf32>
    %1479 = vector.broadcast %1476 : vector<8x1xf32> to vector<8x128xf32>
    %1480 = arith.mulf %1457, %1479 : vector<8x128xf32>
    %1481 = vector.broadcast %1478 : vector<8x1xf32> to vector<8x128xf32>
    %1482 = arith.addf %1480, %1481 : vector<8x128xf32>
    %cst_814 = arith.constant 0.000000e+00 : f32
    %1483 = vector.broadcast %cst_814 : f32 to vector<8x128xf32>
    %1484 = arith.maximumf %1482, %1483 : vector<8x128xf32>
    %c7_815 = arith.constant 7 : index
    %c0_816 = arith.constant 0 : index
    %c0_817 = arith.constant 0 : index
    %1485 = vector.load %arg4[%c7_815, %c0_816, %c0_817] : memref<9x8x8xf32, #tpu.memory_space<vmem>>, vector<1x8x8xf32>
    %1486 = vector.shape_cast %1485 : vector<1x8x8xf32> to vector<8x8xf32>
    %cst_818 = arith.constant dense<0.000000e+00> : vector<8x128xf32>
    %1487 = tpu.matmul %1486, %1484, %cst_818 {dimension_numbers = #tpu.dot_dimension_numbers<[1], [0], [0], [1], [0, 0, 1, 1], [], []>} : vector<8x8xf32>, vector<8x128xf32>, vector<8x128xf32> -> vector<8x128xf32>
    %1488 = arith.addf %1487, %1323 : vector<8x128xf32>
    %c0_819 = arith.constant 0 : index
    %c0_820 = arith.constant 0 : index
    %1489 = vector.load %arg14[%c0_819, %c0_820] : memref<128x512xf32, #tpu.memory_space<vmem>>, vector<128x512xf32>
    %cst_821 = arith.constant dense<0.000000e+00> : vector<8x512xf32>
    %1490 = tpu.matmul %1488, %1489, %cst_821 {dimension_numbers = #tpu.dot_dimension_numbers<[1], [0], [0], [1], [0, 0, 1, 1], [], []>} : vector<8x128xf32>, vector<128x512xf32>, vector<8x512xf32> -> vector<8x512xf32>
    %1491 = arith.addf %1490, %495 : vector<8x512xf32>
    %c0_822 = arith.constant 0 : index
    %c0_823 = arith.constant 0 : index
    %1492 = vector.load %arg5[%c0_822, %c0_823] : memref<8x4xf32, #tpu.memory_space<vmem>>, vector<8x4xf32>
    %c0_824 = arith.constant 0 : index
    %c0_825 = arith.constant 0 : index
    %1493 = vector.load %arg6[%c0_824, %c0_825] : memref<8x8xf32, #tpu.memory_space<vmem>>, vector<8x8xf32>
    %1494 = vector.extract_strided_slice %1492 {offsets = [0, 0], sizes = [8, 1], strides = [1, 1]} : vector<8x4xf32> to vector<8x1xf32>
    %1495 = vector.extract_strided_slice %1492 {offsets = [0, 1], sizes = [8, 1], strides = [1, 1]} : vector<8x4xf32> to vector<8x1xf32>
    %cst_826 = arith.constant dense<0.000000e+00> : vector<8xf32>
    %1496 = vector.multi_reduction <add>, %1491, %cst_826 [1] : vector<8x512xf32> to vector<8xf32>
    %1497 = vector.shape_cast %1496 : vector<8xf32> to vector<8x1xf32>
    %cst_827 = arith.constant 0.001953125 : f32
    %1498 = vector.broadcast %cst_827 : f32 to vector<8x1xf32>
    %1499 = arith.mulf %1497, %1498 : vector<8x1xf32>
    %1500 = arith.mulf %1491, %1491 : vector<8x512xf32>
    %cst_828 = arith.constant dense<0.000000e+00> : vector<8xf32>
    %1501 = vector.multi_reduction <add>, %1500, %cst_828 [1] : vector<8x512xf32> to vector<8xf32>
    %1502 = vector.shape_cast %1501 : vector<8xf32> to vector<8x1xf32>
    %cst_829 = arith.constant 0.001953125 : f32
    %1503 = vector.broadcast %cst_829 : f32 to vector<8x1xf32>
    %1504 = arith.mulf %1502, %1503 : vector<8x1xf32>
    %1505 = arith.mulf %1499, %1499 : vector<8x1xf32>
    %1506 = arith.subf %1504, %1505 : vector<8x1xf32>
    %cst_830 = arith.constant 0.000000e+00 : f32
    %1507 = vector.broadcast %cst_830 : f32 to vector<8x1xf32>
    %1508 = arith.maximumf %1506, %1507 : vector<8x1xf32>
    %cst_831 = arith.constant 9.99999974E-6 : f32
    %1509 = vector.broadcast %cst_831 : f32 to vector<8x1xf32>
    %1510 = arith.addf %1508, %1509 : vector<8x1xf32>
    %1511 = math.rsqrt %1510 : vector<8x1xf32>
    %1512 = arith.mulf %1511, %1494 : vector<8x1xf32>
    %1513 = arith.mulf %1499, %1512 : vector<8x1xf32>
    %1514 = arith.subf %1495, %1513 : vector<8x1xf32>
    %1515 = vector.broadcast %1512 : vector<8x1xf32> to vector<8x512xf32>
    %1516 = arith.mulf %1491, %1515 : vector<8x512xf32>
    %1517 = vector.broadcast %1514 : vector<8x1xf32> to vector<8x512xf32>
    %1518 = arith.addf %1516, %1517 : vector<8x512xf32>
    %cst_832 = arith.constant 0.000000e+00 : f32
    %1519 = vector.broadcast %cst_832 : f32 to vector<8x512xf32>
    %1520 = arith.maximumf %1518, %1519 : vector<8x512xf32>
    %cst_833 = arith.constant dense<0.000000e+00> : vector<8x512xf32>
    %1521 = tpu.matmul %1493, %1520, %cst_833 {dimension_numbers = #tpu.dot_dimension_numbers<[1], [0], [0], [1], [0, 0, 1, 1], [], []>} : vector<8x8xf32>, vector<8x512xf32>, vector<8x512xf32> -> vector<8x512xf32>
    %c0_834 = arith.constant 0 : index
    %c0_835 = arith.constant 0 : index
    %1522 = vector.load %arg7[%c0_834, %c0_835] : memref<8x8xf32, #tpu.memory_space<vmem>>, vector<8x8xf32>
    %1523 = vector.extract_strided_slice %1492 {offsets = [0, 2], sizes = [8, 1], strides = [1, 1]} : vector<8x4xf32> to vector<8x1xf32>
    %1524 = vector.extract_strided_slice %1492 {offsets = [0, 3], sizes = [8, 1], strides = [1, 1]} : vector<8x4xf32> to vector<8x1xf32>
    %cst_836 = arith.constant dense<0.000000e+00> : vector<8xf32>
    %1525 = vector.multi_reduction <add>, %1521, %cst_836 [1] : vector<8x512xf32> to vector<8xf32>
    %1526 = vector.shape_cast %1525 : vector<8xf32> to vector<8x1xf32>
    %cst_837 = arith.constant 0.001953125 : f32
    %1527 = vector.broadcast %cst_837 : f32 to vector<8x1xf32>
    %1528 = arith.mulf %1526, %1527 : vector<8x1xf32>
    %1529 = arith.mulf %1521, %1521 : vector<8x512xf32>
    %cst_838 = arith.constant dense<0.000000e+00> : vector<8xf32>
    %1530 = vector.multi_reduction <add>, %1529, %cst_838 [1] : vector<8x512xf32> to vector<8xf32>
    %1531 = vector.shape_cast %1530 : vector<8xf32> to vector<8x1xf32>
    %cst_839 = arith.constant 0.001953125 : f32
    %1532 = vector.broadcast %cst_839 : f32 to vector<8x1xf32>
    %1533 = arith.mulf %1531, %1532 : vector<8x1xf32>
    %1534 = arith.mulf %1528, %1528 : vector<8x1xf32>
    %1535 = arith.subf %1533, %1534 : vector<8x1xf32>
    %cst_840 = arith.constant 0.000000e+00 : f32
    %1536 = vector.broadcast %cst_840 : f32 to vector<8x1xf32>
    %1537 = arith.maximumf %1535, %1536 : vector<8x1xf32>
    %cst_841 = arith.constant 9.99999974E-6 : f32
    %1538 = vector.broadcast %cst_841 : f32 to vector<8x1xf32>
    %1539 = arith.addf %1537, %1538 : vector<8x1xf32>
    %1540 = math.rsqrt %1539 : vector<8x1xf32>
    %1541 = arith.mulf %1540, %1523 : vector<8x1xf32>
    %1542 = arith.mulf %1528, %1541 : vector<8x1xf32>
    %1543 = arith.subf %1524, %1542 : vector<8x1xf32>
    %1544 = vector.broadcast %1541 : vector<8x1xf32> to vector<8x512xf32>
    %1545 = arith.mulf %1521, %1544 : vector<8x512xf32>
    %1546 = vector.broadcast %1543 : vector<8x1xf32> to vector<8x512xf32>
    %1547 = arith.addf %1545, %1546 : vector<8x512xf32>
    %cst_842 = arith.constant 0.000000e+00 : f32
    %1548 = vector.broadcast %cst_842 : f32 to vector<8x512xf32>
    %1549 = arith.maximumf %1547, %1548 : vector<8x512xf32>
    %cst_843 = arith.constant dense<0.000000e+00> : vector<8x512xf32>
    %1550 = tpu.matmul %1522, %1549, %cst_843 {dimension_numbers = #tpu.dot_dimension_numbers<[1], [0], [0], [1], [0, 0, 1, 1], [], []>} : vector<8x8xf32>, vector<8x512xf32>, vector<8x512xf32> -> vector<8x512xf32>
    %1551 = arith.negf %1550 : vector<8x512xf32>
    %1552 = math.exp %1551 : vector<8x512xf32>
    %cst_844 = arith.constant 1.000000e+00 : f32
    %1553 = vector.broadcast %cst_844 : f32 to vector<8x512xf32>
    %1554 = arith.addf %1553, %1552 : vector<8x512xf32>
    %1555 = arith.divf %1553, %1554 : vector<8x512xf32>
    %cst_845 = arith.constant 1.000000e+00 : f32
    %1556 = vector.broadcast %cst_845 : f32 to vector<8x512xf32>
    %1557 = arith.addf %1556, %1555 : vector<8x512xf32>
    %1558 = arith.mulf %1557, %495 : vector<8x512xf32>
    %c8_846 = arith.constant 8 : index
    %c0_847 = arith.constant 0 : index
    %c0_848 = arith.constant 0 : index
    %1559 = vector.load %arg1[%c8_846, %c0_847, %c0_848] : memref<9x8x6xf32, #tpu.memory_space<vmem>>, vector<1x8x6xf32>
    %1560 = vector.shape_cast %1559 : vector<1x8x6xf32> to vector<8x6xf32>
    %1561 = vector.extract_strided_slice %1560 {offsets = [0, 0], sizes = [8, 1], strides = [1, 1]} : vector<8x6xf32> to vector<8x1xf32>
    %1562 = vector.extract_strided_slice %1560 {offsets = [0, 1], sizes = [8, 1], strides = [1, 1]} : vector<8x6xf32> to vector<8x1xf32>
    %cst_849 = arith.constant dense<0.000000e+00> : vector<8xf32>
    %1563 = vector.multi_reduction <add>, %1558, %cst_849 [1] : vector<8x512xf32> to vector<8xf32>
    %1564 = vector.shape_cast %1563 : vector<8xf32> to vector<8x1xf32>
    %cst_850 = arith.constant 0.001953125 : f32
    %1565 = vector.broadcast %cst_850 : f32 to vector<8x1xf32>
    %1566 = arith.mulf %1564, %1565 : vector<8x1xf32>
    %1567 = arith.mulf %1558, %1558 : vector<8x512xf32>
    %cst_851 = arith.constant dense<0.000000e+00> : vector<8xf32>
    %1568 = vector.multi_reduction <add>, %1567, %cst_851 [1] : vector<8x512xf32> to vector<8xf32>
    %1569 = vector.shape_cast %1568 : vector<8xf32> to vector<8x1xf32>
    %cst_852 = arith.constant 0.001953125 : f32
    %1570 = vector.broadcast %cst_852 : f32 to vector<8x1xf32>
    %1571 = arith.mulf %1569, %1570 : vector<8x1xf32>
    %1572 = arith.mulf %1566, %1566 : vector<8x1xf32>
    %1573 = arith.subf %1571, %1572 : vector<8x1xf32>
    %cst_853 = arith.constant 0.000000e+00 : f32
    %1574 = vector.broadcast %cst_853 : f32 to vector<8x1xf32>
    %1575 = arith.maximumf %1573, %1574 : vector<8x1xf32>
    %cst_854 = arith.constant 9.99999974E-6 : f32
    %1576 = vector.broadcast %cst_854 : f32 to vector<8x1xf32>
    %1577 = arith.addf %1575, %1576 : vector<8x1xf32>
    %1578 = math.rsqrt %1577 : vector<8x1xf32>
    %1579 = arith.mulf %1578, %1561 : vector<8x1xf32>
    %1580 = arith.mulf %1566, %1579 : vector<8x1xf32>
    %1581 = arith.subf %1562, %1580 : vector<8x1xf32>
    %1582 = vector.broadcast %1579 : vector<8x1xf32> to vector<8x512xf32>
    %1583 = arith.mulf %1558, %1582 : vector<8x512xf32>
    %1584 = vector.broadcast %1581 : vector<8x1xf32> to vector<8x512xf32>
    %1585 = arith.addf %1583, %1584 : vector<8x512xf32>
    %cst_855 = arith.constant 0.000000e+00 : f32
    %1586 = vector.broadcast %cst_855 : f32 to vector<8x512xf32>
    %1587 = arith.maximumf %1585, %1586 : vector<8x512xf32>
    %c8_856 = arith.constant 8 : index
    %c0_857 = arith.constant 0 : index
    %c0_858 = arith.constant 0 : index
    %1588 = vector.load %arg2[%c8_856, %c0_857, %c0_858] : memref<9x8x8xf32, #tpu.memory_space<vmem>>, vector<1x8x8xf32>
    %1589 = vector.shape_cast %1588 : vector<1x8x8xf32> to vector<8x8xf32>
    %cst_859 = arith.constant dense<0.000000e+00> : vector<8x512xf32>
    %1590 = tpu.matmul %1589, %1587, %cst_859 {dimension_numbers = #tpu.dot_dimension_numbers<[1], [0], [0], [1], [0, 0, 1, 1], [], []>} : vector<8x8xf32>, vector<8x512xf32>, vector<8x512xf32> -> vector<8x512xf32>
    %1591 = vector.extract_strided_slice %1560 {offsets = [0, 2], sizes = [8, 1], strides = [1, 1]} : vector<8x6xf32> to vector<8x1xf32>
    %1592 = vector.extract_strided_slice %1560 {offsets = [0, 3], sizes = [8, 1], strides = [1, 1]} : vector<8x6xf32> to vector<8x1xf32>
    %cst_860 = arith.constant dense<0.000000e+00> : vector<8xf32>
    %1593 = vector.multi_reduction <add>, %1590, %cst_860 [1] : vector<8x512xf32> to vector<8xf32>
    %1594 = vector.shape_cast %1593 : vector<8xf32> to vector<8x1xf32>
    %cst_861 = arith.constant 0.001953125 : f32
    %1595 = vector.broadcast %cst_861 : f32 to vector<8x1xf32>
    %1596 = arith.mulf %1594, %1595 : vector<8x1xf32>
    %1597 = arith.mulf %1590, %1590 : vector<8x512xf32>
    %cst_862 = arith.constant dense<0.000000e+00> : vector<8xf32>
    %1598 = vector.multi_reduction <add>, %1597, %cst_862 [1] : vector<8x512xf32> to vector<8xf32>
    %1599 = vector.shape_cast %1598 : vector<8xf32> to vector<8x1xf32>
    %cst_863 = arith.constant 0.001953125 : f32
    %1600 = vector.broadcast %cst_863 : f32 to vector<8x1xf32>
    %1601 = arith.mulf %1599, %1600 : vector<8x1xf32>
    %1602 = arith.mulf %1596, %1596 : vector<8x1xf32>
    %1603 = arith.subf %1601, %1602 : vector<8x1xf32>
    %cst_864 = arith.constant 0.000000e+00 : f32
    %1604 = vector.broadcast %cst_864 : f32 to vector<8x1xf32>
    %1605 = arith.maximumf %1603, %1604 : vector<8x1xf32>
    %cst_865 = arith.constant 9.99999974E-6 : f32
    %1606 = vector.broadcast %cst_865 : f32 to vector<8x1xf32>
    %1607 = arith.addf %1605, %1606 : vector<8x1xf32>
    %1608 = math.rsqrt %1607 : vector<8x1xf32>
    %1609 = arith.mulf %1608, %1591 : vector<8x1xf32>
    %1610 = arith.mulf %1596, %1609 : vector<8x1xf32>
    %1611 = arith.subf %1592, %1610 : vector<8x1xf32>
    %1612 = vector.broadcast %1609 : vector<8x1xf32> to vector<8x512xf32>
    %1613 = arith.mulf %1590, %1612 : vector<8x512xf32>
    %1614 = vector.broadcast %1611 : vector<8x1xf32> to vector<8x512xf32>
    %1615 = arith.addf %1613, %1614 : vector<8x512xf32>
    %cst_866 = arith.constant 0.000000e+00 : f32
    %1616 = vector.broadcast %cst_866 : f32 to vector<8x512xf32>
    %1617 = arith.maximumf %1615, %1616 : vector<8x512xf32>
    %c76 = arith.constant 76 : index
    %c0_867 = arith.constant 0 : index
    %c0_868 = arith.constant 0 : index
    %1618 = vector.load %arg3[%c76, %c0_867, %c0_868] : memref<81x8x8xf32, #tpu.memory_space<vmem>>, vector<1x8x8xf32>
    %1619 = vector.shape_cast %1618 : vector<1x8x8xf32> to vector<8x8xf32>
    %cst_869 = arith.constant dense<0.000000e+00> : vector<8x512xf32>
    %1620 = tpu.matmul %1619, %1617, %cst_869 {dimension_numbers = #tpu.dot_dimension_numbers<[1], [0], [0], [1], [0, 0, 1, 1], [], []>} : vector<8x8xf32>, vector<8x512xf32>, vector<8x512xf32> -> vector<8x512xf32>
    %c72 = arith.constant 72 : index
    %c0_870 = arith.constant 0 : index
    %c0_871 = arith.constant 0 : index
    %1621 = vector.load %arg3[%c72, %c0_870, %c0_871] : memref<81x8x8xf32, #tpu.memory_space<vmem>>, vector<1x8x8xf32>
    %1622 = vector.shape_cast %1621 : vector<1x8x8xf32> to vector<8x8xf32>
    %c17_i32_872 = arith.constant 17 : i32
    %1623 = tpu.dynamic_rotate %1617 by %c17_i32_872 dim 1 : vector<8x512xf32>, i32 -> vector<8x512xf32>
    %c0_873 = arith.constant 0 : index
    %c0_874 = arith.constant 0 : index
    %c0_875 = arith.constant 0 : index
    %1624 = vector.load %arg8[%c0_873, %c0_874, %c0_875] : memref<9x1x512xf32, #tpu.memory_space<vmem>>, vector<1x1x512xf32>
    %1625 = vector.shape_cast %1624 : vector<1x1x512xf32> to vector<1x512xf32>
    %1626 = vector.broadcast %1625 : vector<1x512xf32> to vector<8x512xf32>
    %1627 = arith.mulf %1623, %1626 : vector<8x512xf32>
    %cst_876 = arith.constant dense<0.000000e+00> : vector<8x512xf32>
    %1628 = tpu.matmul %1622, %1627, %cst_876 {dimension_numbers = #tpu.dot_dimension_numbers<[1], [0], [0], [1], [0, 0, 1, 1], [], []>} : vector<8x8xf32>, vector<8x512xf32>, vector<8x512xf32> -> vector<8x512xf32>
    %1629 = arith.addf %1620, %1628 : vector<8x512xf32>
    %c73 = arith.constant 73 : index
    %c0_877 = arith.constant 0 : index
    %c0_878 = arith.constant 0 : index
    %1630 = vector.load %arg3[%c73, %c0_877, %c0_878] : memref<81x8x8xf32, #tpu.memory_space<vmem>>, vector<1x8x8xf32>
    %1631 = vector.shape_cast %1630 : vector<1x8x8xf32> to vector<8x8xf32>
    %c16_i32_879 = arith.constant 16 : i32
    %1632 = tpu.dynamic_rotate %1617 by %c16_i32_879 dim 1 : vector<8x512xf32>, i32 -> vector<8x512xf32>
    %c1_880 = arith.constant 1 : index
    %c0_881 = arith.constant 0 : index
    %c0_882 = arith.constant 0 : index
    %1633 = vector.load %arg8[%c1_880, %c0_881, %c0_882] : memref<9x1x512xf32, #tpu.memory_space<vmem>>, vector<1x1x512xf32>
    %1634 = vector.shape_cast %1633 : vector<1x1x512xf32> to vector<1x512xf32>
    %1635 = vector.broadcast %1634 : vector<1x512xf32> to vector<8x512xf32>
    %1636 = arith.mulf %1632, %1635 : vector<8x512xf32>
    %cst_883 = arith.constant dense<0.000000e+00> : vector<8x512xf32>
    %1637 = tpu.matmul %1631, %1636, %cst_883 {dimension_numbers = #tpu.dot_dimension_numbers<[1], [0], [0], [1], [0, 0, 1, 1], [], []>} : vector<8x8xf32>, vector<8x512xf32>, vector<8x512xf32> -> vector<8x512xf32>
    %1638 = arith.addf %1629, %1637 : vector<8x512xf32>
    %c74 = arith.constant 74 : index
    %c0_884 = arith.constant 0 : index
    %c0_885 = arith.constant 0 : index
    %1639 = vector.load %arg3[%c74, %c0_884, %c0_885] : memref<81x8x8xf32, #tpu.memory_space<vmem>>, vector<1x8x8xf32>
    %1640 = vector.shape_cast %1639 : vector<1x8x8xf32> to vector<8x8xf32>
    %c15_i32_886 = arith.constant 15 : i32
    %1641 = tpu.dynamic_rotate %1617 by %c15_i32_886 dim 1 : vector<8x512xf32>, i32 -> vector<8x512xf32>
    %c2_887 = arith.constant 2 : index
    %c0_888 = arith.constant 0 : index
    %c0_889 = arith.constant 0 : index
    %1642 = vector.load %arg8[%c2_887, %c0_888, %c0_889] : memref<9x1x512xf32, #tpu.memory_space<vmem>>, vector<1x1x512xf32>
    %1643 = vector.shape_cast %1642 : vector<1x1x512xf32> to vector<1x512xf32>
    %1644 = vector.broadcast %1643 : vector<1x512xf32> to vector<8x512xf32>
    %1645 = arith.mulf %1641, %1644 : vector<8x512xf32>
    %cst_890 = arith.constant dense<0.000000e+00> : vector<8x512xf32>
    %1646 = tpu.matmul %1640, %1645, %cst_890 {dimension_numbers = #tpu.dot_dimension_numbers<[1], [0], [0], [1], [0, 0, 1, 1], [], []>} : vector<8x8xf32>, vector<8x512xf32>, vector<8x512xf32> -> vector<8x512xf32>
    %1647 = arith.addf %1638, %1646 : vector<8x512xf32>
    %c75 = arith.constant 75 : index
    %c0_891 = arith.constant 0 : index
    %c0_892 = arith.constant 0 : index
    %1648 = vector.load %arg3[%c75, %c0_891, %c0_892] : memref<81x8x8xf32, #tpu.memory_space<vmem>>, vector<1x8x8xf32>
    %1649 = vector.shape_cast %1648 : vector<1x8x8xf32> to vector<8x8xf32>
    %c1_i32_893 = arith.constant 1 : i32
    %1650 = tpu.dynamic_rotate %1617 by %c1_i32_893 dim 1 : vector<8x512xf32>, i32 -> vector<8x512xf32>
    %c3_894 = arith.constant 3 : index
    %c0_895 = arith.constant 0 : index
    %c0_896 = arith.constant 0 : index
    %1651 = vector.load %arg8[%c3_894, %c0_895, %c0_896] : memref<9x1x512xf32, #tpu.memory_space<vmem>>, vector<1x1x512xf32>
    %1652 = vector.shape_cast %1651 : vector<1x1x512xf32> to vector<1x512xf32>
    %1653 = vector.broadcast %1652 : vector<1x512xf32> to vector<8x512xf32>
    %1654 = arith.mulf %1650, %1653 : vector<8x512xf32>
    %cst_897 = arith.constant dense<0.000000e+00> : vector<8x512xf32>
    %1655 = tpu.matmul %1649, %1654, %cst_897 {dimension_numbers = #tpu.dot_dimension_numbers<[1], [0], [0], [1], [0, 0, 1, 1], [], []>} : vector<8x8xf32>, vector<8x512xf32>, vector<8x512xf32> -> vector<8x512xf32>
    %1656 = arith.addf %1647, %1655 : vector<8x512xf32>
    %c77 = arith.constant 77 : index
    %c0_898 = arith.constant 0 : index
    %c0_899 = arith.constant 0 : index
    %1657 = vector.load %arg3[%c77, %c0_898, %c0_899] : memref<81x8x8xf32, #tpu.memory_space<vmem>>, vector<1x8x8xf32>
    %1658 = vector.shape_cast %1657 : vector<1x8x8xf32> to vector<8x8xf32>
    %c511_i32_900 = arith.constant 511 : i32
    %1659 = tpu.dynamic_rotate %1617 by %c511_i32_900 dim 1 : vector<8x512xf32>, i32 -> vector<8x512xf32>
    %c5_901 = arith.constant 5 : index
    %c0_902 = arith.constant 0 : index
    %c0_903 = arith.constant 0 : index
    %1660 = vector.load %arg8[%c5_901, %c0_902, %c0_903] : memref<9x1x512xf32, #tpu.memory_space<vmem>>, vector<1x1x512xf32>
    %1661 = vector.shape_cast %1660 : vector<1x1x512xf32> to vector<1x512xf32>
    %1662 = vector.broadcast %1661 : vector<1x512xf32> to vector<8x512xf32>
    %1663 = arith.mulf %1659, %1662 : vector<8x512xf32>
    %cst_904 = arith.constant dense<0.000000e+00> : vector<8x512xf32>
    %1664 = tpu.matmul %1658, %1663, %cst_904 {dimension_numbers = #tpu.dot_dimension_numbers<[1], [0], [0], [1], [0, 0, 1, 1], [], []>} : vector<8x8xf32>, vector<8x512xf32>, vector<8x512xf32> -> vector<8x512xf32>
    %1665 = arith.addf %1656, %1664 : vector<8x512xf32>
    %c78 = arith.constant 78 : index
    %c0_905 = arith.constant 0 : index
    %c0_906 = arith.constant 0 : index
    %1666 = vector.load %arg3[%c78, %c0_905, %c0_906] : memref<81x8x8xf32, #tpu.memory_space<vmem>>, vector<1x8x8xf32>
    %1667 = vector.shape_cast %1666 : vector<1x8x8xf32> to vector<8x8xf32>
    %c497_i32_907 = arith.constant 497 : i32
    %1668 = tpu.dynamic_rotate %1617 by %c497_i32_907 dim 1 : vector<8x512xf32>, i32 -> vector<8x512xf32>
    %c6_908 = arith.constant 6 : index
    %c0_909 = arith.constant 0 : index
    %c0_910 = arith.constant 0 : index
    %1669 = vector.load %arg8[%c6_908, %c0_909, %c0_910] : memref<9x1x512xf32, #tpu.memory_space<vmem>>, vector<1x1x512xf32>
    %1670 = vector.shape_cast %1669 : vector<1x1x512xf32> to vector<1x512xf32>
    %1671 = vector.broadcast %1670 : vector<1x512xf32> to vector<8x512xf32>
    %1672 = arith.mulf %1668, %1671 : vector<8x512xf32>
    %cst_911 = arith.constant dense<0.000000e+00> : vector<8x512xf32>
    %1673 = tpu.matmul %1667, %1672, %cst_911 {dimension_numbers = #tpu.dot_dimension_numbers<[1], [0], [0], [1], [0, 0, 1, 1], [], []>} : vector<8x8xf32>, vector<8x512xf32>, vector<8x512xf32> -> vector<8x512xf32>
    %1674 = arith.addf %1665, %1673 : vector<8x512xf32>
    %c79 = arith.constant 79 : index
    %c0_912 = arith.constant 0 : index
    %c0_913 = arith.constant 0 : index
    %1675 = vector.load %arg3[%c79, %c0_912, %c0_913] : memref<81x8x8xf32, #tpu.memory_space<vmem>>, vector<1x8x8xf32>
    %1676 = vector.shape_cast %1675 : vector<1x8x8xf32> to vector<8x8xf32>
    %c496_i32_914 = arith.constant 496 : i32
    %1677 = tpu.dynamic_rotate %1617 by %c496_i32_914 dim 1 : vector<8x512xf32>, i32 -> vector<8x512xf32>
    %c7_915 = arith.constant 7 : index
    %c0_916 = arith.constant 0 : index
    %c0_917 = arith.constant 0 : index
    %1678 = vector.load %arg8[%c7_915, %c0_916, %c0_917] : memref<9x1x512xf32, #tpu.memory_space<vmem>>, vector<1x1x512xf32>
    %1679 = vector.shape_cast %1678 : vector<1x1x512xf32> to vector<1x512xf32>
    %1680 = vector.broadcast %1679 : vector<1x512xf32> to vector<8x512xf32>
    %1681 = arith.mulf %1677, %1680 : vector<8x512xf32>
    %cst_918 = arith.constant dense<0.000000e+00> : vector<8x512xf32>
    %1682 = tpu.matmul %1676, %1681, %cst_918 {dimension_numbers = #tpu.dot_dimension_numbers<[1], [0], [0], [1], [0, 0, 1, 1], [], []>} : vector<8x8xf32>, vector<8x512xf32>, vector<8x512xf32> -> vector<8x512xf32>
    %1683 = arith.addf %1674, %1682 : vector<8x512xf32>
    %c80 = arith.constant 80 : index
    %c0_919 = arith.constant 0 : index
    %c0_920 = arith.constant 0 : index
    %1684 = vector.load %arg3[%c80, %c0_919, %c0_920] : memref<81x8x8xf32, #tpu.memory_space<vmem>>, vector<1x8x8xf32>
    %1685 = vector.shape_cast %1684 : vector<1x8x8xf32> to vector<8x8xf32>
    %c495_i32_921 = arith.constant 495 : i32
    %1686 = tpu.dynamic_rotate %1617 by %c495_i32_921 dim 1 : vector<8x512xf32>, i32 -> vector<8x512xf32>
    %c8_922 = arith.constant 8 : index
    %c0_923 = arith.constant 0 : index
    %c0_924 = arith.constant 0 : index
    %1687 = vector.load %arg8[%c8_922, %c0_923, %c0_924] : memref<9x1x512xf32, #tpu.memory_space<vmem>>, vector<1x1x512xf32>
    %1688 = vector.shape_cast %1687 : vector<1x1x512xf32> to vector<1x512xf32>
    %1689 = vector.broadcast %1688 : vector<1x512xf32> to vector<8x512xf32>
    %1690 = arith.mulf %1686, %1689 : vector<8x512xf32>
    %cst_925 = arith.constant dense<0.000000e+00> : vector<8x512xf32>
    %1691 = tpu.matmul %1685, %1690, %cst_925 {dimension_numbers = #tpu.dot_dimension_numbers<[1], [0], [0], [1], [0, 0, 1, 1], [], []>} : vector<8x8xf32>, vector<8x512xf32>, vector<8x512xf32> -> vector<8x512xf32>
    %1692 = arith.addf %1683, %1691 : vector<8x512xf32>
    %1693 = vector.extract_strided_slice %1560 {offsets = [0, 4], sizes = [8, 1], strides = [1, 1]} : vector<8x6xf32> to vector<8x1xf32>
    %1694 = vector.extract_strided_slice %1560 {offsets = [0, 5], sizes = [8, 1], strides = [1, 1]} : vector<8x6xf32> to vector<8x1xf32>
    %cst_926 = arith.constant dense<0.000000e+00> : vector<8xf32>
    %1695 = vector.multi_reduction <add>, %1692, %cst_926 [1] : vector<8x512xf32> to vector<8xf32>
    %1696 = vector.shape_cast %1695 : vector<8xf32> to vector<8x1xf32>
    %cst_927 = arith.constant 0.001953125 : f32
    %1697 = vector.broadcast %cst_927 : f32 to vector<8x1xf32>
    %1698 = arith.mulf %1696, %1697 : vector<8x1xf32>
    %1699 = arith.mulf %1692, %1692 : vector<8x512xf32>
    %cst_928 = arith.constant dense<0.000000e+00> : vector<8xf32>
    %1700 = vector.multi_reduction <add>, %1699, %cst_928 [1] : vector<8x512xf32> to vector<8xf32>
    %1701 = vector.shape_cast %1700 : vector<8xf32> to vector<8x1xf32>
    %cst_929 = arith.constant 0.001953125 : f32
    %1702 = vector.broadcast %cst_929 : f32 to vector<8x1xf32>
    %1703 = arith.mulf %1701, %1702 : vector<8x1xf32>
    %1704 = arith.mulf %1698, %1698 : vector<8x1xf32>
    %1705 = arith.subf %1703, %1704 : vector<8x1xf32>
    %cst_930 = arith.constant 0.000000e+00 : f32
    %1706 = vector.broadcast %cst_930 : f32 to vector<8x1xf32>
    %1707 = arith.maximumf %1705, %1706 : vector<8x1xf32>
    %cst_931 = arith.constant 9.99999974E-6 : f32
    %1708 = vector.broadcast %cst_931 : f32 to vector<8x1xf32>
    %1709 = arith.addf %1707, %1708 : vector<8x1xf32>
    %1710 = math.rsqrt %1709 : vector<8x1xf32>
    %1711 = arith.mulf %1710, %1693 : vector<8x1xf32>
    %1712 = arith.mulf %1698, %1711 : vector<8x1xf32>
    %1713 = arith.subf %1694, %1712 : vector<8x1xf32>
    %1714 = vector.broadcast %1711 : vector<8x1xf32> to vector<8x512xf32>
    %1715 = arith.mulf %1692, %1714 : vector<8x512xf32>
    %1716 = vector.broadcast %1713 : vector<8x1xf32> to vector<8x512xf32>
    %1717 = arith.addf %1715, %1716 : vector<8x512xf32>
    %cst_932 = arith.constant 0.000000e+00 : f32
    %1718 = vector.broadcast %cst_932 : f32 to vector<8x512xf32>
    %1719 = arith.maximumf %1717, %1718 : vector<8x512xf32>
    %c8_933 = arith.constant 8 : index
    %c0_934 = arith.constant 0 : index
    %c0_935 = arith.constant 0 : index
    %1720 = vector.load %arg4[%c8_933, %c0_934, %c0_935] : memref<9x8x8xf32, #tpu.memory_space<vmem>>, vector<1x8x8xf32>
    %1721 = vector.shape_cast %1720 : vector<1x8x8xf32> to vector<8x8xf32>
    %cst_936 = arith.constant dense<0.000000e+00> : vector<8x512xf32>
    %1722 = tpu.matmul %1721, %1719, %cst_936 {dimension_numbers = #tpu.dot_dimension_numbers<[1], [0], [0], [1], [0, 0, 1, 1], [], []>} : vector<8x8xf32>, vector<8x512xf32>, vector<8x512xf32> -> vector<8x512xf32>
    %1723 = arith.addf %1722, %1558 : vector<8x512xf32>
    %c0_937 = arith.constant 0 : index
    %c0_938 = arith.constant 0 : index
    %1724 = vector.load %arg15[%c0_937, %c0_938] : memref<8x512xf32, #tpu.memory_space<vmem>>, vector<8x512xf32>
    tpu.vector_store %arg15[%c0_937, %c0_938], %1723 {strides = array<i32>} : memref<8x512xf32, #tpu.memory_space<vmem>>, vector<8x512xf32>,
    return
  }
}

</mosaic_0001>

<bundles_post_ra>
// kernel: attention_module_stage1.1
= control target key start
LH: loop header
LB: loop body
LE: loop exit
PB: predicated region body
PF: predicated region fallthrough
CT: control target
= control target key end

     0   :  { %20 = vsyncpa [#allocation3], 0  ;;  %s17168_s18 = smov [#allocation2]   ;;  %s20730_s0 = inlined_call_operand.vmem [shape: f32[8,512], index: 0, kind: input, shape index: {}]   ;;  %s20731_s1 = inlined_call_operand.vmem [shape: f32[9,8,6], index: 1, kind: input, shape index: {}]   ;;  %s20732_s2 = inlined_call_operand.vmem [shape: f32[9,8,8], index: 2, kind: input, shape index: {}]   ;;  %s20733_s3 = inlined_call_operand.vmem [shape: f32[81,8,8], index: 3, kind: input, shape index: {}]   ;;  %s20734_s4 = inlined_call_operand.vmem [shape: f32[9,8,8], index: 4, kind: input, shape index: {}]   ;;  %s20735_s5 = inlined_call_operand.vmem [shape: f32[8,4], index: 5, kind: input, shape index: {}]   ;;  %s20736_s6 = inlined_call_operand.vmem [shape: f32[8,8], index: 6, kind: input, shape index: {}]   ;;  %s20737_s7 = inlined_call_operand.vmem [shape: f32[8,8], index: 7, kind: input, shape index: {}]   ;;  %s20738_s8 = inlined_call_operand.vmem [shape: f32[9,1,512], index: 8, kind: input, shape index: {}]   ;;  %s20739_s9 = inlined_call_operand.vmem [shape: f32[9,1,128], index: 9, kind: input, shape index: {}]   ;;  %s20740_s10 = inlined_call_operand.vmem [shape: f32[512,128], index: 10, kind: input, shape index: {}]   ;;  %s20741_s11 = inlined_call_operand.vmem [shape: f32[128,32], index: 11, kind: input, shape index: {}]   ;;  %s20742_s12 = inlined_call_operand.vmem [shape: f32[9,32,32], index: 12, kind: input, shape index: {}]   ;;  %s20743_s13 = inlined_call_operand.hbm [shape: f32[32,128], index: 13, kind: input, shape index: {}]   ;;  %s20744_s14 = inlined_call_operand.vmem [shape: f32[128,512], index: 14, kind: input, shape index: {}]   ;;  %s20745_s15 = inlined_call_operand.vmem [shape: f32[8,512], index: 15, kind: output, shape index: {}]  }
   0x1   :  { %s52_s19 = sshll.u32 %s17168_s18, 4  ;;  %s17144_s22 = scalar_lea.hbm %s20743_s13, 512  ;;  %s53_s19 = int_to_ptr.vmem [resolvable:$true] %s52_s19 }
   0x2   :  { %p17145_p0 = scmp.ne.s32.totalorder %s20743_s13, %s17144_s22  ;;  %p17148_p1 = scmp.lt.u32.totalorder %s17144_s22, %s20743_s13 }
   0x4   :  { %p17150_p2 = pnand %p17148_p1, %p17145_p0 }
   0x6   :  { %17153 = shalt.err (!%p17150_p2)
}
   0x7   :  { %s17154_s27 = scalar_lea.vmem %s53_s19, 512  ;;  %p17159_p4 = scmp.lt.s32.totalorder %s53_s19, %s53_s19 }
   0x8   :  { %p17155_p3 = scmp.ne.s32.totalorder %s53_s19, %s17154_s27  ;;  %p17160_p5 = scmp.lt.s32.totalorder %s17154_s27, %s17154_s27 }
   0xa   :  { %p17161_p6 = por %p17160_p5, %p17159_p4 }
   0xc   :  { %p17162_p7 = pnand %p17161_p6, %p17155_p3 }
   0xe   :  { %17165 = shalt.err (!%p17162_p7)
}
   0xf   :  { %s17169_s28 = smov 128   ;;  %s17170_s29 = smov 8  }
  0x10   :  { %58 = dma.hbm_to_vmem [thread:$0]  %s20743_s13, 512, %s53_s19, [#allocation3], %s17169_s28, %s17169_s28, %s17170_s29  }
  0x11   :  { %17166 = dma.done.wait [#allocation3], 512  }
  0x12   :  { %17167 = vsyncadd [#allocation3], 4294966784  ;;  %v17289_v0 = vld [vmem:[%s20730_s0] sm:$0xff]  ;;  %v17294_v1 = vld [vmem:[%s20730_s0 + $0x8] sm:$0xff]  ;;  %v20754_v14 = vmov 0   ;;  %v20746_v23 = vmov 1  }
  0x13   :  { %v17299_v2 = vld [vmem:[%s20730_s0 + $0x10] sm:$0xff]  ;;  %v69_v3 = vadd.f32 %v17294_v1, %v17289_v0  ;;  %v75_v4 = vmul.f32 %v17289_v0, %v17289_v0  ;;  %v76_v5 = vmul.f32 %v17294_v1, %v17294_v1  ;;  %v17312_v7 = vld [vmem:[%s20730_s0 + $0x18] sm:$0xff]  ;;  %17009 = vset.pattern.permute.xlu1 %v20754_v14  ;;  %17010 = vset.pattern.permute.xlu0 %v20746_v23  ;;  %v17323_v24 = vld [vmem:[%s20731_s1] sm:$0xff]  ;;  %s17173_s25 = smov 1   ;;  %v20752_v30 = vmov 0.0   ;;  %s17177_s28 = smov 17  }
  0x14   :  { %v77_v6 = vmul.f32 %v17299_v2, %v17299_v2  ;;  %v78_v9 = vmul.f32 %v17312_v7, %v17312_v7  ;;  %188 = vmatprep.mubr.f32.mxu0 %v20752_v30  ;;  %259 = vmatprep.mubr.f32.mxu1 %v20752_v30  ;;  %v119_v45 = vld [vmem:[%s20732_s2] sm:$0xff]  ;;  %vm120_vm0 = vcmask 64512   ;;  %v20748_v60 = vmov 2   ;;  %s17178_s30 = smov 16   ;;  %s17179_s16 = smov 15  }
  0x15   :  { %v70_v8 = vadd.f32 %v69_v3, %v17299_v2  ;;  %v79_v10 = vadd.f32 %v76_v5, %v75_v4  ;;  %s17180_s17 = smov 127   ;;  %s20848_s18 = smov 113   ;;  %vm17186_vm9 = vmmov 0   ;;  %vm8776_vm10 = vcmask 261120  }
  0x16   :  { %s20846_s20 = smov 112   ;;  %s20844_s21 = smov 111  }
  0x17   :  { %v71_v11 = vadd.f32 %v70_v8, %v17312_v7  ;;  %v80_v12 = vadd.f32 %v79_v10, %v77_v6  ;;  %s17187_s13 = smov 9   ;;  %s17188_s19 = smov 7  }
  0x18   :  { %s17189_s0 = smov 121   ;;  %s17190_s24 = smov 119  }
  0x19   :  { %72 = vadd.xlane.f32.xlu0 %v71_v11  ;;  %v81_v13 = vadd.f32 %v80_v12, %v78_v9  ;;  %v20750_v12 = vmov 3  }
  0x1d   :  { %82 = vadd.xlane.f32.xlu0 %v81_v13 }
  0xa6   :  { %v73_v15 = vpop.xlane.xlu0 %72 }
  0xa7   :  { %v74_v16 = vmul.f32 0.001953125, %v73_v15 }
  0xa9   :  { %v85_v18 = vmul.f32 %v74_v16, %v74_v16 }
  0xaa   :  { %v83_v17 = vpop.xlane.xlu0 %82 }
  0xab   :  { %v84_v19 = vmul.f32 0.001953125, %v83_v17 }
  0xad   :  { %v86_v20 = vsub.f32 %v84_v19, %v85_v18 }
  0xaf   :  { %v87_v21 = vmax.f32 %v86_v20, 0.0 }
  0xb1   :  { %v88_v22 = vadd.f32 1e-05, %v87_v21 }
  0xb3   :  { %17062 = vrsqrt.f32 %v88_v22 }
  0xbd   :  { %v17063_v25 = vpop.eup %17062 }
  0xbe   :  { %v90_v26 = vmul.f32 %v17063_v25, %v17323_v24 }
  0xc0   :  { %v91_v27 = vmul.f32 %v90_v26, %v74_v16 }
  0xc2   :  { %93 = vrot.lane.b32.xlu1 %v91_v27, %s17173_s25 }
  0xc6   :  { %99 = vperm.xlu1 %17009, %v90_v26  }
 0x134   :  { %v94_v28 = vpop.permute.xlu1 %93 }
 0x135   :  { %v96_v29 = vsub.f32 %v17323_v24, %v94_v28 }
 0x137   :  { %108 = vperm.xlu0 %17010, %v96_v29  }
 0x13b   :  { %17011 = vset.pattern.permute.xlu0 %v20748_v60 }
 0x145   :  { %v100_v31 = vpop.permute.xlu1 %99 }
 0x146   :  { %v103_v32 = vmul.f32 %v100_v31, %v17294_v1  ;;  %v105_v33 = vmul.f32 %v100_v31, %v17312_v7  ;;  %v102_v34 = vmul.f32 %v100_v31, %v17289_v0  ;;  %v104_v35 = vmul.f32 %v100_v31, %v17299_v2 }
 0x1b6   :  { %v109_v36 = vpop.permute.xlu0 %108 }
 0x1b7   :  { %v112_v37 = vadd.f32 %v109_v36, %v103_v32  ;;  %v114_v38 = vadd.f32 %v109_v36, %v105_v33  ;;  %v111_v39 = vadd.f32 %v109_v36, %v102_v34  ;;  %v113_v40 = vadd.f32 %v109_v36, %v104_v35 }
 0x1b8   :  { %v327_v33 = vlaneseq }
 0x1b9   :  { %v116_v41 = vmax.f32 %v112_v37, 0.0  ;;  %v118_v42 = vmax.f32 %v114_v38, 0.0  ;;  %v115_v43 = vmax.f32 %v111_v39, 0.0  ;;  %v117_v44 = vmax.f32 %v113_v40, 0.0  ;;  %v334_v37 = vld [vmem:[%s20738_s8] sm:$0xf] }
 0x1ba   :  { %v337_v34 = vshrl.u32 %v327_v33, 7  ;;  %v17419_v35 = vand.u32 127, %v327_v33 }
 0x1bb   :  { %124 = vmatprep.subr.mxu0 %v116_v41  ;;  %195 = vmatprep.subr.mxu1 %v118_v42 }
 0x1bc   :  { %125 = vmatpush1.msra.mxu0 %v115_v43  ;;  %196 = vmatpush1.msra.mxu1 %v117_v44  ;;  %v17421_v36 = vsub.s32 1, %v337_v34  ;;  %vm329_vm1 = vcmp.lt.s32.totalorder %v17419_v35, 17  ;;  %v17427_v38 = vsub.s32 0, %v337_v34  ;;  %v17429_v39 = vsub.s32 2, %v337_v34 }
 0x1bd   :  { %15409 = vmatmul.mubr.msk.f32.vlgmr.msra.gmra.mrb[0].mxu0 %vm120_vm0, %v119_v45  ;;  %15410 = vmatmul.mubr.msk.f32.vlgmr.msra.gmra.mrb[0].mxu1 %vm120_vm0, %v119_v45  ;;  %v17434_v41 = vsub.s32 3, %v337_v34  ;;  %vm660_vm2 = vcmp.lt.s32.totalorder %v17419_v35, 16  ;;  %vm851_vm3 = vcmp.lt.s32.totalorder %v17419_v35, 15  ;;  %vm1042_vm4 = vcmp.lt.s32.totalorder %v17419_v35, 1 }
 0x1be   :  { %427 = vmatprep.mubr.f32.mxu0 %v20752_v30  ;;  %498 = vmatprep.mubr.f32.mxu1 %v20752_v30  ;;  %20852 = vst [vmem:[#allocation5_spill] sm:$0xff] %v17421_v36  ;;  %20853 = vst [vmem:[#allocation6_spill] sm:$0xff] %v17427_v38  ;;  %v17432_v40 = vrot.slane %v334_v37, %v17421_v36  ;;  %v17439_v45 = vrot.slane %v334_v37, %v17429_v39  ;;  %vm1233_vm5 = vcmp.lt.s32.totalorder %v17419_v35, 127 }
 0x1bf   :  { %20854 = vst [vmem:[#allocation7_spill] sm:$0xff] %v17429_v39  ;;  %20856 = vst [vmem:[#allocation9_spill] sm:$0xff] %v17434_v41  ;;  %vm1424_vm6 = vcmp.lt.s32.totalorder %v17419_v35, 113  ;;  %vm1615_vm7 = vcmp.lt.s32.totalorder %v17419_v35, 112  ;;  %vm1806_vm8 = vcmp.lt.s32.totalorder %v17419_v35, 111  ;;  %v15733_v35 = vld [vmem:[%s20733_s3 + $0x280] sm:$0xff] }
 0x1c0   :  { %20855 = vst [vmem:[#allocation8_spill] sm:$0xff] %v17432_v40  ;;  %20857 = vst [vmem:[#allocation10_spill] sm:$0xff] %v17439_v45 }
 0x290   :  { %v190_v46 = vpop.f32.mrb[0].mxu0  ;;  %v261_v47 = vpop.f32.mrb[0].mxu1 }
 0x291   :  { %v272_v48 = vmul.f32 %v190_v46, %v190_v46  ;;  %v192_v49 = vpop.f32.mrb[1].mxu0  ;;  %v263_v50 = vpop.f32.mrb[1].mxu1  ;;  %v274_v53 = vmul.f32 %v261_v47, %v261_v47 }
 0x292   :  { %v266_v51 = vadd.f32 %v192_v49, %v190_v46  ;;  %v273_v52 = vmul.f32 %v192_v49, %v192_v49  ;;  %v275_v57 = vmul.f32 %v263_v50, %v263_v50 }
 0x294   :  { %v267_v54 = vadd.f32 %v266_v51, %v261_v47  ;;  %v276_v55 = vadd.f32 %v273_v52, %v272_v48  ;;  %v17446_v48 = vrot.slane %v334_v37, %v17434_v41 }
 0x296   :  { %v268_v56 = vadd.f32 %v267_v54, %v263_v50  ;;  %v277_v58 = vadd.f32 %v276_v55, %v274_v53  ;;  %20859 = vst [vmem:[#allocation12_spill] sm:$0xff] %v17446_v48 }
 0x298   :  { %269 = vadd.xlane.f32.xlu1 %v268_v56  ;;  %v278_v59 = vadd.f32 %v277_v58, %v275_v57  ;;  %v318_v58 = vld [vmem:[%s20733_s3] sm:$0xff] }
 0x29c   :  { %279 = vadd.xlane.f32.xlu1 %v278_v59 }
 0x325   :  { %v270_v61 = vpop.xlane.xlu1 %269 }
 0x326   :  { %v271_v62 = vmul.f32 0.001953125, %v270_v61 }
 0x328   :  { %v282_v3 = vmul.f32 %v271_v62, %v271_v62 }
 0x329   :  { %v280_v63 = vpop.xlane.xlu1 %279 }
 0x32a   :  { %v281_v4 = vmul.f32 0.001953125, %v280_v63 }
 0x32c   :  { %v283_v5 = vsub.f32 %v281_v4, %v282_v3 }
 0x32e   :  { %v284_v6 = vmax.f32 %v283_v5, 0.0 }
 0x330   :  { %v285_v8 = vadd.f32 1e-05, %v284_v6  ;;  %v15421_v6 = vld [vmem:[%s20738_s8 + $0x8] sm:$0xf] }
 0x331   :  { %v17523_v33 = vrot.slane %v15421_v6, %v17429_v39 }
 0x332   :  { %17064 = vrsqrt.f32 %v285_v8 }
 0x333   :  { %20867 = vst [vmem:[#allocation20_spill] sm:$0xff] %v17523_v33 }
 0x33c   :  { %v17065_v9 = vpop.eup %17064 }
 0x33d   :  { %v287_v10 = vmul.f32 %v17065_v9, %v17323_v24 }
 0x33f   :  { %296 = vperm.xlu0 %17011, %v287_v10   ;;  %v288_v11 = vmul.f32 %v287_v10, %v271_v62 }
 0x341   :  { %290 = vrot.lane.b32.xlu1 %v288_v11, %s17173_s25 }
 0x343   :  { %17012 = vset.pattern.permute.xlu0 %v20750_v12 }
 0x3b3   :  { %v291_v13 = vpop.permute.xlu1 %290 }
 0x3b4   :  { %v293_v15 = vsub.f32 %v17323_v24, %v291_v13 }
 0x3b6   :  { %305 = vperm.xlu0 %17012, %v293_v15  }
 0x3ba   :  { %17016 = vset.pattern.permute.xlu0 %v20746_v23 }
 0x3be   :  { %v297_v16 = vpop.permute.xlu0 %296 }
 0x3bf   :  { %v299_v17 = vmul.f32 %v297_v16, %v190_v46  ;;  %v300_v18 = vmul.f32 %v297_v16, %v192_v49  ;;  %v301_v20 = vmul.f32 %v297_v16, %v261_v47  ;;  %v302_v21 = vmul.f32 %v297_v16, %v263_v50  ;;  %v15417_v49 = vld [vmem:[%s20738_s8 + $0x4] sm:$0xf] }
 0x3c0   :  { %v17443_v47 = vrot.slane %v334_v37, %v17427_v38  ;;  %v17465_v59 = vrot.slane %v15417_v49, %v17421_v36  ;;  %v17474_v4 = vrot.slane %v15417_v49, %v17427_v38  ;;  %v17477_v5 = vrot.slane %v15417_v49, %v17434_v41 }
 0x3c1   :  { %v17486_v10 = vrot.slane %v15417_v49, %v17429_v39 }
 0x3c2   :  { %20858 = vst [vmem:[#allocation11_spill] sm:$0xff] %v17443_v47  ;;  %20860 = vst [vmem:[#allocation13_spill] sm:$0xff] %v17465_v59 }
 0x3c3   :  { %20861 = vst [vmem:[#allocation14_spill] sm:$0xff] %v17474_v4  ;;  %20862 = vst [vmem:[#allocation15_spill] sm:$0xff] %v17477_v5 }
 0x3c4   :  { %20863 = vst [vmem:[#allocation16_spill] sm:$0xff] %v17486_v10 }
 0x435   :  { %v306_v19 = vpop.permute.xlu0 %305 }
 0x436   :  { %v308_v22 = vadd.f32 %v306_v19, %v299_v17  ;;  %v309_v25 = vadd.f32 %v306_v19, %v300_v18  ;;  %v310_v26 = vadd.f32 %v306_v19, %v301_v20  ;;  %v311_v27 = vadd.f32 %v306_v19, %v302_v21  ;;  %v15411_v18 = vld [vmem:[%s20733_s3 + $0x20] sm:$0xff] }
 0x437   :  { %v17503_v19 = vrot.slane %v15421_v6, %v17421_v36 }
 0x438   :  { %v17347_v28 = vmax.f32 %v308_v22, 0.0  ;;  %v17349_v29 = vmax.f32 %v309_v25, 0.0  ;;  %v17355_v31 = vmax.f32 %v310_v26, 0.0  ;;  %v17357_v32 = vmax.f32 %v311_v27, 0.0 }
 0x439   :  { %20864 = vst [vmem:[#allocation17_spill] sm:$0xff] %v17503_v19  ;;  %v17512_v27 = vrot.slane %v15421_v6, %v17427_v38 }
 0x43a   :  { %321 = vrot.lane.b32.xlu0 %v17349_v29, %s17177_s28  ;;  %319 = vrot.lane.b32.xlu1 %v17347_v28, %s17177_s28 }
 0x43b   :  { %20865 = vst [vmem:[#allocation18_spill] sm:$0xff] %v17512_v27 }
 0x43e   :  { %323 = vrot.lane.b32.xlu0 %v17355_v31, %s17177_s28  ;;  %325 = vrot.lane.b32.xlu1 %v17357_v32, %s17177_s28 }
 0x442   :  { %654 = vrot.lane.b32.xlu0 %v17349_v29, %s17178_s30  ;;  %652 = vrot.lane.b32.xlu1 %v17347_v28, %s17178_s30 }
 0x446   :  { %656 = vrot.lane.b32.xlu0 %v17355_v31, %s17178_s30  ;;  %658 = vrot.lane.b32.xlu1 %v17357_v32, %s17178_s30 }
 0x44a   :  { %845 = vrot.lane.b32.xlu0 %v17349_v29, %s17179_s16  ;;  %843 = vrot.lane.b32.xlu1 %v17347_v28, %s17179_s16 }
 0x44e   :  { %847 = vrot.lane.b32.xlu0 %v17355_v31, %s17179_s16  ;;  %849 = vrot.lane.b32.xlu1 %v17357_v32, %s17179_s16 }
 0x452   :  { %1036 = vrot.lane.b32.xlu0 %v17349_v29, %s17173_s25  ;;  %1034 = vrot.lane.b32.xlu1 %v17347_v28, %s17173_s25 }
 0x456   :  { %1038 = vrot.lane.b32.xlu0 %v17355_v31, %s17173_s25  ;;  %1040 = vrot.lane.b32.xlu1 %v17357_v32, %s17173_s25 }
 0x45a   :  { %1229 = vrot.lane.b32.xlu0 %v17355_v31, %s17180_s17  ;;  %1227 = vrot.lane.b32.xlu1 %v17349_v29, %s17180_s17 }
 0x45e   :  { %1231 = vrot.lane.b32.xlu0 %v17357_v32, %s17180_s17  ;;  %1225 = vrot.lane.b32.xlu1 %v17347_v28, %s17180_s17 }
 0x462   :  { %1420 = vrot.lane.b32.xlu0 %v17355_v31, %s20848_s18  ;;  %1418 = vrot.lane.b32.xlu1 %v17349_v29, %s20848_s18 }
 0x466   :  { %1422 = vrot.lane.b32.xlu0 %v17357_v32, %s20848_s18  ;;  %1416 = vrot.lane.b32.xlu1 %v17347_v28, %s20848_s18 }
 0x46a   :  { %1611 = vrot.lane.b32.xlu0 %v17355_v31, %s20846_s20  ;;  %1609 = vrot.lane.b32.xlu1 %v17349_v29, %s20846_s20 }
 0x46e   :  { %1613 = vrot.lane.b32.xlu0 %v17357_v32, %s20846_s20  ;;  %1607 = vrot.lane.b32.xlu1 %v17347_v28, %s20846_s20 }
 0x472   :  { %1802 = vrot.lane.b32.xlu0 %v17355_v31, %s20844_s21  ;;  %1800 = vrot.lane.b32.xlu1 %v17349_v29, %s20844_s21 }
 0x476   :  { %1804 = vrot.lane.b32.xlu0 %v17357_v32, %s20844_s21  ;;  %1798 = vrot.lane.b32.xlu1 %v17347_v28, %s20844_s21 }
 0x4ac   :  { %v322_v42 = vpop.permute.xlu0 %321  ;;  %v320_v43 = vpop.permute.xlu1 %319 }
 0x4ad   :  { %v332_v44 = vsel %vm329_vm1, %v320_v43, %v322_v42 }
 0x4ae   :  { %v357_v46 = vmul.f32 %v17432_v40, %v332_v44 }
 0x4b0   :  { %v324_v50 = vpop.permute.xlu0 %323  ;;  %363 = vmatprep.subr.mxu0 %v357_v46  ;;  %v326_v51 = vpop.permute.xlu1 %325  ;;  %v15416_v46 = vld [vmem:[%s20733_s3 + $0x8] sm:$0xff] }
 0x4b1   :  { %v331_v52 = vsel %vm329_vm1, %v322_v42, %v324_v50  ;;  %v330_v53 = vsel %vm329_vm1, %v324_v50, %v326_v51  ;;  %v333_v54 = vsel %vm329_vm1, %v326_v51, %v320_v43 }
 0x4b2   :  { %v358_v55 = vmul.f32 %v17439_v45, %v331_v52  ;;  %v356_v56 = vmul.f32 %v17443_v47, %v333_v54  ;;  %v359_v57 = vmul.f32 %v17446_v48, %v330_v53 }
 0x4b4   :  { %v655_v61 = vpop.permute.xlu0 %654  ;;  %364 = vmatpush1.msra.mxu0 %v356_v56  ;;  %434 = vmatprep.subr.mxu1 %v359_v57  ;;  %v653_v62 = vpop.permute.xlu1 %652  ;;  %v15429_v57 = vld [vmem:[%s20738_s8 + $0x14] sm:$0xf] }
 0x4b5   :  { %v663_v63 = vsel %vm660_vm2, %v653_v62, %v655_v61  ;;  %15412 = vmatmul.mubr.msk.f32.vlgmr.msra.gmra.mrb[2].mxu0 %vm120_vm0, %v318_v58  ;;  %435 = vmatpush1.msra.mxu1 %v358_v55 }
 0x4b6   :  { %508 = vmatprep.subr.mxu0 %v17349_v29  ;;  %15413 = vmatmul.mubr.msk.f32.vlgmr.msra.gmra.mrb[2].mxu1 %vm120_vm0, %v318_v58  ;;  %v689_v3 = vmul.f32 %v17465_v59, %v663_v63  ;;  %v15425_v29 = vld [vmem:[%s20738_s8 + $0xc] sm:$0xf] }
 0x4b7   :  { %509 = vmatpush1.msra.mxu0 %v17347_v28  ;;  %579 = vmatprep.subr.mxu1 %v17357_v32  ;;  %v17515_v28 = vrot.slane %v15421_v6, %v17434_v41  ;;  %v17538_v49 = vrot.slane %v15425_v29, %v17421_v36  ;;  %v17547_v55 = vrot.slane %v15425_v29, %v17427_v38 }
 0x4b8   :  { %580 = vmatpush1.msra.mxu1 %v17355_v31  ;;  %v657_v8 = vpop.permute.xlu0 %656  ;;  %695 = vmatprep.subr.mxu0 %v689_v3  ;;  %v659_v9 = vpop.permute.xlu1 %658  ;;  %v17550_v56 = vrot.slane %v15425_v29, %v17434_v41 }
 0x4b9   :  { %v661_v11 = vsel %vm660_vm2, %v657_v8, %v659_v9  ;;  %v664_v13 = vsel %vm660_vm2, %v659_v9, %v653_v62  ;;  %572 = vmatprep.mubr.f32.mxu0 %v20752_v30  ;;  %643 = vmatprep.mubr.f32.mxu1 %v20752_v30  ;;  %v662_v15 = vsel %vm660_vm2, %v655_v61, %v657_v8 }
 0x4ba   :  { %v688_v16 = vmul.f32 %v17474_v4, %v664_v13  ;;  %v691_v17 = vmul.f32 %v17477_v5, %v661_v11  ;;  %v690_v22 = vmul.f32 %v17486_v10, %v662_v15  ;;  %20866 = vst [vmem:[#allocation19_spill] sm:$0xff] %v17515_v28  ;;  %20868 = vst [vmem:[#allocation21_spill] sm:$0xff] %v17538_v49  ;;  %v15420_v11 = vld [vmem:[%s20733_s3 + $0x10] sm:$0xff] }
 0x4bb   :  { %20869 = vst [vmem:[#allocation22_spill] sm:$0xff] %v17547_v55  ;;  %20870 = vst [vmem:[#allocation23_spill] sm:$0xff] %v17550_v56  ;;  %v17558_v62 = vrot.slane %v15425_v29, %v17429_v39  ;;  %v17573_v13 = vrot.slane %v15429_v57, %v17421_v36 }
 0x4bc   :  { %v846_v20 = vpop.permute.xlu0 %845  ;;  %766 = vmatprep.subr.mxu1 %v691_v17  ;;  %v844_v21 = vpop.permute.xlu1 %843 }
 0x4bd   :  { %v854_v25 = vsel %vm851_vm3, %v844_v21, %v846_v20  ;;  %15414 = vmatmul.mubr.msk.f32.vlgmr.msra.gmra.mrb[2].mxu0 %vm120_vm0, %v15411_v18  ;;  %20871 = vst [vmem:[#allocation24_spill] sm:$0xff] %v17558_v62  ;;  %20872 = vst [vmem:[#allocation25_spill] sm:$0xff] %v17573_v13 }
 0x4be   :  { %696 = vmatpush1.msra.mxu0 %v688_v16  ;;  %15415 = vmatmul.mubr.msk.f32.vlgmr.msra.gmra.mrb[2].mxu1 %vm120_vm0, %v15411_v18  ;;  %v880_v26 = vmul.f32 %v17503_v19, %v854_v25  ;;  %v15433_v25 = vld [vmem:[%s20738_s8 + $0x18] sm:$0xf] }
 0x4bf   :  { %767 = vmatpush1.msra.mxu1 %v690_v22  ;;  %759 = vmatprep.mubr.f32.mxu0 %v20752_v30  ;;  %v17585_v22 = vrot.slane %v15429_v57, %v17434_v41 }
 0x4c0   :  { %v848_v31 = vpop.permute.xlu0 %847  ;;  %886 = vmatprep.subr.mxu0 %v880_v26  ;;  %v850_v32 = vpop.permute.xlu1 %849  ;;  %830 = vmatprep.mubr.f32.mxu1 %v20752_v30 }
 0x4c1   :  { %v852_v34 = vsel %vm851_vm3, %v848_v31, %v850_v32  ;;  %v855_v37 = vsel %vm851_vm3, %v850_v32, %v844_v21  ;;  %v853_v42 = vsel %vm851_vm3, %v846_v20, %v848_v31  ;;  %v17582_v21 = vrot.slane %v15429_v57, %v17427_v38  ;;  %20874 = vst [vmem:[#allocation27_spill] sm:$0xff] %v17585_v22 }
 0x4c2   :  { %v879_v43 = vmul.f32 %v17512_v27, %v855_v37  ;;  %v882_v44 = vmul.f32 %v17515_v28, %v852_v34  ;;  %v881_v52 = vmul.f32 %v17523_v33, %v853_v42  ;;  %v17593_v31 = vrot.slane %v15429_v57, %v17429_v39 }
 0x4c3   :  { %20873 = vst [vmem:[#allocation26_spill] sm:$0xff] %v17582_v21  ;;  %v17617_v57 = vrot.slane %v15433_v25, %v17427_v38 }
 0x4c4   :  { %v1037_v50 = vpop.permute.xlu0 %1036  ;;  %957 = vmatprep.subr.mxu1 %v882_v44  ;;  %v1035_v51 = vpop.permute.xlu1 %1034  ;;  %20875 = vst [vmem:[#allocation28_spill] sm:$0xff] %v17593_v31  ;;  %v15424_v44 = vld [vmem:[%s20733_s3 + $0x18] sm:$0xff] }
 0x4c5   :  { %v1045_v53 = vsel %vm1042_vm4, %v1035_v51, %v1037_v50  ;;  %15418 = vmatmul.mubr.msk.f32.vlgmr.msra.gmra.mrb[2].mxu0 %vm120_vm0, %v15416_v46  ;;  %20877 = vst [vmem:[#allocation30_spill] sm:$0xff] %v17617_v57 }
 0x4c6   :  { %887 = vmatpush1.msra.mxu0 %v879_v43  ;;  %15419 = vmatmul.mubr.msk.f32.vlgmr.msra.gmra.mrb[2].mxu1 %vm120_vm0, %v15416_v46  ;;  %v1071_v54 = vmul.f32 %v17538_v49, %v1045_v53  ;;  %v17608_v46 = vrot.slane %v15433_v25, %v17421_v36 }
 0x4c7   :  { %958 = vmatpush1.msra.mxu1 %v881_v52  ;;  %950 = vmatprep.mubr.f32.mxu0 %v20752_v30 }
 0x4c8   :  { %v1039_v58 = vpop.permute.xlu0 %1038  ;;  %1077 = vmatprep.subr.mxu0 %v1071_v54  ;;  %v1041_v61 = vpop.permute.xlu1 %1040  ;;  %1021 = vmatprep.mubr.f32.mxu1 %v20752_v30  ;;  %20876 = vst [vmem:[#allocation29_spill] sm:$0xff] %v17608_v46 }
 0x4c9   :  { %v1043_v63 = vsel %vm1042_vm4, %v1039_v58, %v1041_v61  ;;  %v1046_v3 = vsel %vm1042_vm4, %v1041_v61, %v1035_v51  ;;  %v1044_v6 = vsel %vm1042_vm4, %v1037_v50, %v1039_v58  ;;  %v17620_v58 = vrot.slane %v15433_v25, %v17434_v41  ;;  %v15437_v61 = vld [vmem:[%s20738_s8 + $0x1c] sm:$0xf] }
 0x4ca   :  { %v1070_v8 = vmul.f32 %v17547_v55, %v1046_v3  ;;  %v1073_v9 = vmul.f32 %v17550_v56, %v1043_v63  ;;  %v1072_v17 = vmul.f32 %v17558_v62, %v1044_v6  ;;  %v17628_v6 = vrot.slane %v15433_v25, %v17429_v39 }
 0x4cb   :  { %20878 = vst [vmem:[#allocation31_spill] sm:$0xff] %v17620_v58 }
 0x4cc   :  { %v1230_v15 = vpop.permute.xlu0 %1229  ;;  %1148 = vmatprep.subr.mxu1 %v1073_v9  ;;  %v1228_v16 = vpop.permute.xlu1 %1227  ;;  %20879 = vst [vmem:[#allocation32_spill] sm:$0xff] %v17628_v6 }
 0x4cd   :  { %v1235_v18 = vsel %vm1233_vm5, %v1228_v16, %v1230_v15  ;;  %15422 = vmatmul.mubr.msk.f32.vlgmr.msra.gmra.mrb[2].mxu0 %vm120_vm0, %v15420_v11 }
 0x4ce   :  { %1078 = vmatpush1.msra.mxu0 %v1070_v8  ;;  %15423 = vmatmul.mubr.msk.f32.vlgmr.msra.gmra.mrb[2].mxu1 %vm120_vm0, %v15420_v11  ;;  %v1262_v20 = vmul.f32 %v17573_v13, %v1235_v18  ;;  %v17643_v18 = vrot.slane %v15437_v61, %v17421_v36 }
 0x4cf   :  { %1149 = vmatpush1.msra.mxu1 %v1072_v17  ;;  %1141 = vmatprep.mubr.f32.mxu0 %v20752_v30  ;;  %v15428_v17 = vld [vmem:[%s20733_s3 + $0x28] sm:$0xff] }
 0x4d0   :  { %v1232_v26 = vpop.permute.xlu0 %1231  ;;  %1268 = vmatprep.subr.mxu0 %v1262_v20  ;;  %v1226_v29 = vpop.permute.xlu1 %1225  ;;  %1212 = vmatprep.mubr.f32.mxu1 %v20752_v30  ;;  %20880 = vst [vmem:[#allocation33_spill] sm:$0xff] %v17643_v18 }
 0x4d1   :  { %v1236_v32 = vsel %vm1233_vm5, %v1226_v29, %v1228_v16  ;;  %v1237_v34 = vsel %vm1233_vm5, %v1232_v26, %v1226_v29  ;;  %v1234_v37 = vsel %vm1233_vm5, %v1230_v15, %v1232_v26 }
 0x4d2   :  { %v1261_v42 = vmul.f32 %v17582_v21, %v1236_v32  ;;  %v1264_v43 = vmul.f32 %v17585_v22, %v1237_v34  ;;  %v1263_v52 = vmul.f32 %v17593_v31, %v1234_v37  ;;  %v17652_v34 = vrot.slane %v15437_v61, %v17427_v38 }
 0x4d3   :  { %v17655_v37 = vrot.slane %v15437_v61, %v17434_v41 }
 0x4d4   :  { %v1421_v50 = vpop.permute.xlu0 %1420  ;;  %1339 = vmatprep.subr.mxu1 %v1264_v43  ;;  %v1419_v51 = vpop.permute.xlu1 %1418  ;;  %20881 = vst [vmem:[#allocation34_spill] sm:$0xff] %v17652_v34 }
 0x4d5   :  { %v1426_v53 = vsel %vm1424_vm6, %v1419_v51, %v1421_v50  ;;  %15426 = vmatmul.mubr.msk.f32.vlgmr.msra.gmra.mrb[2].mxu0 %vm120_vm0, %v15424_v44  ;;  %20882 = vst [vmem:[#allocation35_spill] sm:$0xff] %v17655_v37 }
 0x4d6   :  { %1269 = vmatpush1.msra.mxu0 %v1261_v42  ;;  %15427 = vmatmul.mubr.msk.f32.vlgmr.msra.gmra.mrb[2].mxu1 %vm120_vm0, %v15424_v44  ;;  %v1453_v54 = vmul.f32 %v17608_v46, %v1426_v53  ;;  %v15441_v42 = vld [vmem:[%s20738_s8 + $0x20] sm:$0xf] }
 0x4d7   :  { %1340 = vmatpush1.msra.mxu1 %v1263_v52  ;;  %1332 = vmatprep.mubr.f32.mxu0 %v20752_v30 }
 0x4d8   :  { %v1423_v63 = vpop.permute.xlu0 %1422  ;;  %1459 = vmatprep.subr.mxu0 %v1453_v54  ;;  %v1417_v3 = vpop.permute.xlu1 %1416  ;;  %1403 = vmatprep.mubr.f32.mxu1 %v20752_v30 }
 0x4d9   :  { %v1427_v8 = vsel %vm1424_vm6, %v1417_v3, %v1419_v51  ;;  %v1428_v9 = vsel %vm1424_vm6, %v1423_v63, %v1417_v3  ;;  %v1425_v11 = vsel %vm1424_vm6, %v1421_v50, %v1423_v63  ;;  %v17663_v50 = vrot.slane %v15437_v61, %v17429_v39  ;;  %v15432_v61 = vld [vmem:[%s20733_s3 + $0x30] sm:$0xff] }
 0x4da   :  { %v1452_v15 = vmul.f32 %v17617_v57, %v1427_v8  ;;  %v1455_v16 = vmul.f32 %v17620_v58, %v1428_v9  ;;  %v1454_v26 = vmul.f32 %v17628_v6, %v1425_v11  ;;  %v17678_v3 = vrot.slane %v15441_v42, %v17421_v36 }
 0x4db   :  { %20883 = vst [vmem:[#allocation36_spill] sm:$0xff] %v17663_v50 }
 0x4dc   :  { %v1612_v20 = vpop.permute.xlu0 %1611  ;;  %1530 = vmatprep.subr.mxu1 %v1455_v16  ;;  %v1610_v25 = vpop.permute.xlu1 %1609  ;;  %20884 = vst [vmem:[#allocation37_spill] sm:$0xff] %v17678_v3 }
 0x4dd   :  { %v1617_v29 = vsel %vm1615_vm7, %v1610_v25, %v1612_v20  ;;  %15430 = vmatmul.mubr.msk.f32.vlgmr.msra.gmra.mrb[2].mxu0 %vm120_vm0, %v15428_v17 }
 0x4de   :  { %1460 = vmatpush1.msra.mxu0 %v1452_v15  ;;  %15431 = vmatmul.mubr.msk.f32.vlgmr.msra.gmra.mrb[2].mxu1 %vm120_vm0, %v15428_v17  ;;  %v1644_v32 = vmul.f32 %v17643_v18, %v1617_v29  ;;  %v17687_v17 = vrot.slane %v15441_v42, %v17427_v38  ;;  %v17695_v29 = vrot.slane %v15441_v42, %v17429_v39 }
 0x4df   :  { %1531 = vmatpush1.msra.mxu1 %v1454_v26  ;;  %1523 = vmatprep.mubr.f32.mxu0 %v20752_v30 }
 0x4e0   :  { %v1614_v43 = vpop.permute.xlu0 %1613  ;;  %1650 = vmatprep.subr.mxu0 %v1644_v32  ;;  %v1608_v44 = vpop.permute.xlu1 %1607  ;;  %1594 = vmatprep.mubr.f32.mxu1 %v20752_v30  ;;  %20885 = vst [vmem:[#allocation38_spill] sm:$0xff] %v17687_v17  ;;  %20887 = vst [vmem:[#allocation40_spill] sm:$0xff] %v17695_v29 }
 0x4e1   :  { %v1618_v51 = vsel %vm1615_vm7, %v1608_v44, %v1610_v25  ;;  %v1619_v52 = vsel %vm1615_vm7, %v1614_v43, %v1608_v44  ;;  %v1616_v53 = vsel %vm1615_vm7, %v1612_v20, %v1614_v43  ;;  %v17690_v20 = vrot.slane %v15441_v42, %v17434_v41 }
 0x4e2   :  { %v1643_v54 = vmul.f32 %v17652_v34, %v1618_v51  ;;  %v1646_v63 = vmul.f32 %v17655_v37, %v1619_v52  ;;  %v1645_v11 = vmul.f32 %v17663_v50, %v1616_v53  ;;  %v15436_v53 = vld [vmem:[%s20733_s3 + $0x38] sm:$0xff] }
 0x4e3   :  { %20886 = vst [vmem:[#allocation39_spill] sm:$0xff] %v17690_v20 }
 0x4e4   :  { %v1803_v8 = vpop.permute.xlu0 %1802  ;;  %1721 = vmatprep.subr.mxu1 %v1646_v63  ;;  %v1801_v9 = vpop.permute.xlu1 %1800 }
 0x4e5   :  { %v1808_v15 = vsel %vm1806_vm8, %v1801_v9, %v1803_v8  ;;  %15434 = vmatmul.mubr.msk.f32.vlgmr.msra.gmra.mrb[2].mxu0 %vm120_vm0, %v15432_v61 }
 0x4e6   :  { %1651 = vmatpush1.msra.mxu0 %v1643_v54  ;;  %15435 = vmatmul.mubr.msk.f32.vlgmr.msra.gmra.mrb[2].mxu1 %vm120_vm0, %v15432_v61  ;;  %v1835_v16 = vmul.f32 %v17678_v3, %v1808_v15  ;;  %v15440_v54 = vld [vmem:[%s20733_s3 + $0x40] sm:$0xff] }
 0x4e7   :  { %1722 = vmatpush1.msra.mxu1 %v1645_v11  ;;  %1714 = vmatprep.mubr.f32.mxu0 %v20752_v30 }
 0x4e8   :  { %v1805_v25 = vpop.permute.xlu0 %1804  ;;  %1841 = vmatprep.subr.mxu0 %v1835_v16  ;;  %v1799_v26 = vpop.permute.xlu1 %1798  ;;  %1785 = vmatprep.mubr.f32.mxu1 %v20752_v30 }
 0x4e9   :  { %v1809_v32 = vsel %vm1806_vm8, %v1799_v26, %v1801_v9  ;;  %v1810_v43 = vsel %vm1806_vm8, %v1805_v25, %v1799_v26  ;;  %v1807_v44 = vsel %vm1806_vm8, %v1803_v8, %v1805_v25 }
 0x4ea   :  { %v1834_v51 = vmul.f32 %v17687_v17, %v1809_v32  ;;  %v1837_v52 = vmul.f32 %v17690_v20, %v1810_v43  ;;  %v1836_v42 = vmul.f32 %v17695_v29, %v1807_v44 }
 0x4ec   :  { %1912 = vmatprep.subr.mxu1 %v1837_v52 }
 0x4ed   :  { %15438 = vmatmul.mubr.msk.f32.vlgmr.msra.gmra.mrb[2].mxu0 %vm120_vm0, %v15436_v53 }
 0x4ee   :  { %1842 = vmatpush1.msra.mxu0 %v1834_v51  ;;  %15439 = vmatmul.mubr.msk.f32.vlgmr.msra.gmra.mrb[2].mxu1 %vm120_vm0, %v15436_v53  ;;  %v20760_v53 = vmov 4  }
 0x4ef   :  { %1913 = vmatpush1.msra.mxu1 %v1836_v42  ;;  %1905 = vmatprep.mubr.f32.mxu0 %v20752_v30 }
 0x4f0   :  { %1976 = vmatprep.mubr.f32.mxu1 %v20752_v30  ;;  %17013 = vset.pattern.permute.xlu1 %v20760_v53 }
 0x4f5   :  { %15442 = vmatmul.mubr.msk.f32.vlgmr.msra.gmra.mrb[2].mxu0 %vm120_vm0, %v15440_v54 }
 0x4f6   :  { %15443 = vmatmul.mubr.msk.f32.vlgmr.msra.gmra.mrb[2].mxu1 %vm120_vm0, %v15440_v54  ;;  %2105 = vmatprep.mubr.f32.mxu0 %v20752_v30 }
 0x4f7   :  { %2176 = vmatprep.mubr.f32.mxu1 %v20752_v30 }
 0x5c8   :  { %v1907_v63 = vpop.f32.mrb[2].mxu0 }
 0x5c9   :  { %v1993_v61 = vmul.f32 %v1907_v63, %v1907_v63  ;;  %v1909_v8 = vpop.f32.mrb[3].mxu0  ;;  %v1978_v9 = vpop.f32.mrb[2].mxu1 }
 0x5ca   :  { %v1987_v11 = vadd.f32 %v1909_v8, %v1907_v63  ;;  %v1994_v15 = vmul.f32 %v1909_v8, %v1909_v8  ;;  %v1980_v16 = vpop.f32.mrb[3].mxu1  ;;  %v1995_v25 = vmul.f32 %v1978_v9, %v1978_v9 }
 0x5cb   :  { %v1996_v44 = vmul.f32 %v1980_v16, %v1980_v16 }
 0x5cc   :  { %v1988_v26 = vadd.f32 %v1987_v11, %v1978_v9  ;;  %v1997_v32 = vadd.f32 %v1994_v15, %v1993_v61 }
 0x5ce   :  { %v1989_v43 = vadd.f32 %v1988_v26, %v1980_v16  ;;  %v1998_v51 = vadd.f32 %v1997_v32, %v1995_v25  ;;  %v20758_v25 = vmov 5  }
 0x5d0   :  { %1990 = vadd.xlane.f32.xlu1 %v1989_v43  ;;  %v1999_v52 = vadd.f32 %v1998_v51, %v1996_v44  ;;  %v20888_v43 = vmov 0  }
 0x5d2   :  { %2000 = vadd.xlane.f32.xlu0 %v1999_v52 }
 0x65d   :  { %v1991_v42 = vpop.xlane.xlu1 %1990 }
 0x65e   :  { %v1992_v54 = vmul.f32 0.001953125, %v1991_v42 }
 0x65f   :  { %v2001_v23 = vpop.xlane.xlu0 %2000 }
 0x660   :  { %v2003_v60 = vmul.f32 %v1992_v54, %v1992_v54  ;;  %v2002_v12 = vmul.f32 0.001953125, %v2001_v23 }
 0x662   :  { %v2004_v30 = vsub.f32 %v2002_v12, %v2003_v60 }
 0x664   :  { %v2005_v14 = vmax.f32 %v2004_v30, 0.0 }
 0x666   :  { %v2006_v41 = vadd.f32 1e-05, %v2005_v14 }
 0x668   :  { %17066 = vrsqrt.f32 %v2006_v41 }
 0x672   :  { %v17067_v11 = vpop.eup %17066 }
 0x673   :  { %v2008_v61 = vmul.f32 %v17067_v11, %v17323_v24 }
 0x675   :  { %2017 = vperm.xlu1 %17013, %v2008_v61   ;;  %v2009_v15 = vmul.f32 %v2008_v61, %v1992_v54 }
 0x677   :  { %2011 = vrot.lane.b32.xlu0 %v2009_v15, %s17173_s25 }
 0x679   :  { %17014 = vset.pattern.permute.xlu1 %v20758_v25 }
 0x6e9   :  { %v2012_v26 = vpop.permute.xlu0 %2011 }
 0x6ea   :  { %v2014_v32 = vsub.f32 %v17323_v24, %v2012_v26  ;;  %v2037_v24 = vld [vmem:[%s20734_s4] sm:$0xff] }
 0x6ec   :  { %2026 = vperm.xlu1 %17014, %v2014_v32  }
 0x6f0   :  { %17015 = vset.pattern.permute.xlu1 %v20888_v43 }
 0x6f4   :  { %v2018_v23 = vpop.permute.xlu1 %2017 }
 0x6f5   :  { %v2020_v30 = vmul.f32 %v2018_v23, %v1907_v63  ;;  %v2022_v14 = vmul.f32 %v2018_v23, %v1978_v9  ;;  %v2021_v60 = vmul.f32 %v2018_v23, %v1909_v8  ;;  %v2023_v12 = vmul.f32 %v2018_v23, %v1980_v16 }
 0x6f6   :  { %v20889_v63 = vmov 0.0  }
 0x76b   :  { %v2027_v41 = vpop.permute.xlu1 %2026 }
 0x76c   :  { %v2030_v44 = vadd.f32 %v2027_v41, %v2021_v60  ;;  %v2032_v51 = vadd.f32 %v2027_v41, %v2023_v12  ;;  %v2029_v52 = vadd.f32 %v2027_v41, %v2020_v30  ;;  %v2031_v42 = vadd.f32 %v2027_v41, %v2022_v14 }
 0x76e   :  { %v2034_v54 = vmax.f32 %v2030_v44, 0.0  ;;  %v2036_v11 = vmax.f32 %v2032_v51, 0.0  ;;  %v2033_v61 = vmax.f32 %v2029_v52, 0.0  ;;  %v2035_v15 = vmax.f32 %v2031_v42, 0.0 }
 0x770   :  { %2041 = vmatprep.subr.mxu0 %v2034_v54  ;;  %2112 = vmatprep.subr.mxu1 %v2036_v11 }
 0x771   :  { %2042 = vmatpush1.msra.mxu0 %v2033_v61  ;;  %2113 = vmatpush1.msra.mxu1 %v2035_v15 }
 0x772   :  { %15444 = vmatmul.mubr.msk.f32.vlgmr.msra.gmra.mrb[4].mxu0 %vm120_vm0, %v2037_v24  ;;  %15445 = vmatmul.mubr.msk.f32.vlgmr.msra.gmra.mrb[4].mxu1 %vm120_vm0, %v2037_v24 }
 0x773   :  { %2304 = vmatprep.mubr.f32.mxu0 %v20889_v63  ;;  %2375 = vmatprep.mubr.f32.mxu1 %v20889_v63 }
 0x845   :  { %v2107_v8 = vpop.f32.mrb[4].mxu0  ;;  %v2178_v9 = vpop.f32.mrb[4].mxu1 }
 0x846   :  { %v17734_v16 = vadd.f32 %v2107_v8, %v17289_v0  ;;  %v2109_v26 = vpop.f32.mrb[5].mxu0  ;;  %v17737_v32 = vadd.f32 %v2178_v9, %v17299_v2  ;;  %v2180_v23 = vpop.f32.mrb[5].mxu1 }
 0x847   :  { %v17740_v30 = vadd.f32 %v2109_v26, %v17294_v1  ;;  %v17745_v60 = vadd.f32 %v2180_v23, %v17312_v7  ;;  %v17760_v26 = vld [vmem:[%s20731_s1 + $0x8] sm:$0xff] }
 0x848   :  { %20890 = vst [vmem:[#allocation41_spill] sm:$0xff] %v17737_v32  ;;  %v2191_v14 = vmul.f32 %v17734_v16, %v17734_v16  ;;  %v2193_v2 = vmul.f32 %v17737_v32, %v17737_v32 }
 0x849   :  { %v2185_v12 = vadd.f32 %v17740_v30, %v17734_v16  ;;  %v2192_v0 = vmul.f32 %v17740_v30, %v17740_v30  ;;  %v2194_v51 = vmul.f32 %v17745_v60, %v17745_v60 }
 0x84b   :  { %v2186_v41 = vadd.f32 %v2185_v12, %v17737_v32  ;;  %v2195_v44 = vadd.f32 %v2192_v0, %v2191_v14  ;;  %v20891_v0 = vmov 3  }
 0x84d   :  { %v2187_v1 = vadd.f32 %v2186_v41, %v17745_v60  ;;  %v2196_v52 = vadd.f32 %v2195_v44, %v2193_v2  ;;  %v20892_v44 = vmov 2  }
 0x84f   :  { %2188 = vadd.xlane.f32.xlu0 %v2187_v1  ;;  %v2197_v7 = vadd.f32 %v2196_v52, %v2194_v51 }
 0x851   :  { %2198 = vadd.xlane.f32.xlu1 %v2197_v7 }
 0x8dc   :  { %v2189_v42 = vpop.xlane.xlu0 %2188 }
 0x8dd   :  { %v2190_v54 = vmul.f32 0.001953125, %v2189_v42 }
 0x8de   :  { %v2199_v11 = vpop.xlane.xlu1 %2198 }
 0x8df   :  { %v2201_v61 = vmul.f32 %v2190_v54, %v2190_v54  ;;  %v2200_v15 = vmul.f32 0.001953125, %v2199_v11 }
 0x8e1   :  { %v2202_v24 = vsub.f32 %v2200_v15, %v2201_v61 }
 0x8e3   :  { %v2203_v8 = vmax.f32 %v2202_v24, 0.0 }
 0x8e5   :  { %v2204_v9 = vadd.f32 1e-05, %v2203_v8 }
 0x8e7   :  { %17068 = vrsqrt.f32 %v2204_v9 }
 0x8f1   :  { %v17069_v23 = vpop.eup %17068 }
 0x8f2   :  { %v2206_v14 = vmul.f32 %v17069_v23, %v17760_v26 }
 0x8f4   :  { %2215 = vperm.xlu1 %17015, %v2206_v14   ;;  %v2207_v12 = vmul.f32 %v2206_v14, %v2190_v54 }
 0x8f6   :  { %2209 = vrot.lane.b32.xlu0 %v2207_v12, %s17173_s25  ;;  %v15447_v12 = vld [vmem:[%s20732_s2 + $0x8] sm:$0xff] }
 0x8f8   :  { %17018 = vset.pattern.permute.xlu1 %v20891_v0 }
 0x968   :  { %v2210_v2 = vpop.permute.xlu0 %2209 }
 0x969   :  { %v2212_v41 = vsub.f32 %v17760_v26, %v2210_v2 }
 0x96b   :  { %2224 = vperm.xlu0 %17016, %v2212_v41  }
 0x96f   :  { %17017 = vset.pattern.permute.xlu0 %v20892_v44 }
 0x973   :  { %v2216_v1 = vpop.permute.xlu1 %2215 }
 0x974   :  { %v2218_v51 = vmul.f32 %v2216_v1, %v17734_v16  ;;  %v2220_v52 = vmul.f32 %v2216_v1, %v17737_v32  ;;  %v2219_v7 = vmul.f32 %v2216_v1, %v17740_v30  ;;  %v2221_v42 = vmul.f32 %v2216_v1, %v17745_v60 }
 0x9ea   :  { %v2225_v54 = vpop.permute.xlu0 %2224 }
 0x9eb   :  { %v2228_v11 = vadd.f32 %v2225_v54, %v2219_v7  ;;  %v2230_v61 = vadd.f32 %v2225_v54, %v2221_v42  ;;  %v2227_v15 = vadd.f32 %v2225_v54, %v2218_v51  ;;  %v2229_v24 = vadd.f32 %v2225_v54, %v2220_v52 }
 0x9ed   :  { %v2232_v8 = vmax.f32 %v2228_v11, 0.0  ;;  %v2234_v9 = vmax.f32 %v2230_v61, 0.0  ;;  %v2231_v23 = vmax.f32 %v2227_v15, 0.0  ;;  %v2233_v14 = vmax.f32 %v2229_v24, 0.0 }
 0x9ef   :  { %2240 = vmatprep.subr.mxu0 %v2232_v8  ;;  %2311 = vmatprep.subr.mxu1 %v2234_v9 }
 0x9f0   :  { %2241 = vmatpush1.msra.mxu0 %v2231_v23  ;;  %2312 = vmatpush1.msra.mxu1 %v2233_v14 }
 0x9f1   :  { %15448 = vmatmul.mubr.msk.f32.vlgmr.msra.gmra.mrb[6].mxu0 %vm120_vm0, %v15447_v12  ;;  %15449 = vmatmul.mubr.msk.f32.vlgmr.msra.gmra.mrb[6].mxu1 %vm120_vm0, %v15447_v12 }
 0x9f2   :  { %2519 = vmatprep.mubr.f32.mxu0 %v20889_v63  ;;  %2590 = vmatprep.mubr.f32.mxu1 %v20889_v63 }
 0xac4   :  { %v2306_v2 = vpop.f32.mrb[6].mxu0  ;;  %v2377_v41 = vpop.f32.mrb[6].mxu1 }
 0xac5   :  { %v2388_v1 = vmul.f32 %v2306_v2, %v2306_v2  ;;  %v2308_v51 = vpop.f32.mrb[7].mxu0  ;;  %v2379_v52 = vpop.f32.mrb[7].mxu1  ;;  %v2390_v54 = vmul.f32 %v2377_v41, %v2377_v41 }
 0xac6   :  { %v2382_v7 = vadd.f32 %v2308_v51, %v2306_v2  ;;  %v2389_v42 = vmul.f32 %v2308_v51, %v2308_v51  ;;  %v2391_v24 = vmul.f32 %v2379_v52, %v2379_v52 }
 0xac8   :  { %v2383_v11 = vadd.f32 %v2382_v7, %v2377_v41  ;;  %v2392_v61 = vadd.f32 %v2389_v42, %v2388_v1  ;;  %v20893_v7 = vmov 1  }
 0xaca   :  { %v2384_v15 = vadd.f32 %v2383_v11, %v2379_v52  ;;  %v2393_v8 = vadd.f32 %v2392_v61, %v2390_v54  ;;  %v20894_v11 = vmov 4  }
 0xacc   :  { %2385 = vadd.xlane.f32.xlu1 %v2384_v15  ;;  %v2394_v9 = vadd.f32 %v2393_v8, %v2391_v24 }
 0xace   :  { %2395 = vadd.xlane.f32.xlu0 %v2394_v9 }
 0xb59   :  { %v2386_v23 = vpop.xlane.xlu1 %2385 }
 0xb5a   :  { %v2387_v14 = vmul.f32 0.001953125, %v2386_v23 }
 0xb5b   :  { %v2396_v12 = vpop.xlane.xlu0 %2395 }
 0xb5c   :  { %v2398_v25 = vmul.f32 %v2387_v14, %v2387_v14  ;;  %v2397_v53 = vmul.f32 0.001953125, %v2396_v12 }
 0xb5e   :  { %v2399_v38 = vsub.f32 %v2397_v53, %v2398_v25 }
 0xb60   :  { %v2400_v39 = vmax.f32 %v2399_v38, 0.0 }
 0xb62   :  { %v2401_v36 = vadd.f32 1e-05, %v2400_v39 }
 0xb64   :  { %17070 = vrsqrt.f32 %v2401_v36 }
 0xb6e   :  { %v17071_v0 = vpop.eup %17070 }
 0xb6f   :  { %v2403_v44 = vmul.f32 %v17071_v0, %v17760_v26 }
 0xb71   :  { %2412 = vperm.xlu0 %17017, %v2403_v44   ;;  %v2404_v1 = vmul.f32 %v2403_v44, %v2387_v14 }
 0xb73   :  { %2406 = vrot.lane.b32.xlu1 %v2404_v1, %s17173_s25 }
 0xb75   :  { %17022 = vset.pattern.permute.xlu0 %v20893_v7 }
 0xbe5   :  { %v2407_v42 = vpop.permute.xlu1 %2406 }
 0xbe6   :  { %v2409_v54 = vsub.f32 %v17760_v26, %v2407_v42 }
 0xbe8   :  { %2421 = vperm.xlu1 %17018, %v2409_v54  }
 0xbec   :  { %17019 = vset.pattern.permute.xlu1 %v20894_v11 }
 0xbf0   :  { %v2413_v61 = vpop.permute.xlu0 %2412 }
 0xbf1   :  { %v2415_v53 = vmul.f32 %v2413_v61, %v2306_v2  ;;  %v2417_v38 = vmul.f32 %v2413_v61, %v2377_v41  ;;  %v2416_v36 = vmul.f32 %v2413_v61, %v2308_v51  ;;  %v2418_v8 = vmul.f32 %v2413_v61, %v2379_v52 }
 0xc67   :  { %v2422_v39 = vpop.permute.xlu1 %2421 }
 0xc68   :  { %v2424_v25 = vadd.f32 %v2422_v39, %v2415_v53  ;;  %v2426_v15 = vadd.f32 %v2422_v39, %v2417_v38  ;;  %v2425_v0 = vadd.f32 %v2422_v39, %v2416_v36  ;;  %v2427_v9 = vadd.f32 %v2422_v39, %v2418_v8  ;;  %v15451_v38 = vld [vmem:[%s20733_s3 + $0x48] sm:$0xff] }
 0xc6a   :  { %v2428_v24 = vmax.f32 %v2424_v25, 0.0  ;;  %v17783_v44 = vmax.f32 %v2426_v15, 0.0  ;;  %v2429_v23 = vmax.f32 %v2425_v0, 0.0  ;;  %v2431_v2 = vmax.f32 %v2427_v9, 0.0 }
 0xc6c   :  { %2748 = vrot.lane.b32.xlu0 %v17783_v44, %s17178_s30  ;;  %2436 = vrot.lane.b32.xlu1 %v2428_v24, %s17177_s28 }
 0xc70   :  { %2913 = vrot.lane.b32.xlu0 %v2429_v23, %s17179_s16  ;;  %2438 = vrot.lane.b32.xlu1 %v2429_v23, %s17177_s28 }
 0xc74   :  { %2915 = vrot.lane.b32.xlu0 %v17783_v44, %s17179_s16  ;;  %2442 = vrot.lane.b32.xlu1 %v2431_v2, %s17177_s28 }
 0xc78   :  { %3080 = vrot.lane.b32.xlu0 %v2429_v23, %s17173_s25  ;;  %2440 = vrot.lane.b32.xlu1 %v17783_v44, %s17177_s28 }
 0xc7c   :  { %3082 = vrot.lane.b32.xlu0 %v17783_v44, %s17173_s25  ;;  %2744 = vrot.lane.b32.xlu1 %v2428_v24, %s17178_s30 }
 0xc80   :  { %3249 = vrot.lane.b32.xlu0 %v17783_v44, %s17180_s17  ;;  %2746 = vrot.lane.b32.xlu1 %v2429_v23, %s17178_s30 }
 0xc84   :  { %3251 = vrot.lane.b32.xlu0 %v2431_v2, %s17180_s17  ;;  %2750 = vrot.lane.b32.xlu1 %v2431_v2, %s17178_s30 }
 0xc88   :  { %3416 = vrot.lane.b32.xlu0 %v17783_v44, %s20848_s18  ;;  %2911 = vrot.lane.b32.xlu1 %v2428_v24, %s17179_s16 }
 0xc8c   :  { %3418 = vrot.lane.b32.xlu0 %v2431_v2, %s20848_s18  ;;  %2917 = vrot.lane.b32.xlu1 %v2431_v2, %s17179_s16 }
 0xc90   :  { %3583 = vrot.lane.b32.xlu0 %v17783_v44, %s20846_s20  ;;  %3078 = vrot.lane.b32.xlu1 %v2428_v24, %s17173_s25 }
 0xc94   :  { %3585 = vrot.lane.b32.xlu0 %v2431_v2, %s20846_s20  ;;  %3084 = vrot.lane.b32.xlu1 %v2431_v2, %s17173_s25 }
 0xc98   :  { %3750 = vrot.lane.b32.xlu0 %v17783_v44, %s20844_s21  ;;  %3247 = vrot.lane.b32.xlu1 %v2429_v23, %s17180_s17 }
 0xc9c   :  { %3752 = vrot.lane.b32.xlu0 %v2431_v2, %s20844_s21  ;;  %3245 = vrot.lane.b32.xlu1 %v2428_v24, %s17180_s17 }
 0xca0   :  { %3414 = vrot.lane.b32.xlu1 %v2429_v23, %s20848_s18 }
 0xca4   :  { %3412 = vrot.lane.b32.xlu1 %v2428_v24, %s20848_s18 }
 0xca8   :  { %3581 = vrot.lane.b32.xlu1 %v2429_v23, %s20846_s20 }
 0xcac   :  { %3579 = vrot.lane.b32.xlu1 %v2428_v24, %s20846_s20 }
 0xcb0   :  { %3748 = vrot.lane.b32.xlu1 %v2429_v23, %s20844_s21 }
 0xcb4   :  { %3746 = vrot.lane.b32.xlu1 %v2428_v24, %s20844_s21 }
 0xcde   :  { %v2749_v41 = vpop.permute.xlu0 %2748  ;;  %v2437_v51 = vpop.permute.xlu1 %2436 }
 0xce2   :  { %v2914_v52 = vpop.permute.xlu0 %2913  ;;  %v2439_v14 = vpop.permute.xlu1 %2438 }
 0xce3   :  { %v2446_v12 = vsel %vm329_vm1, %v2437_v51, %v2439_v14 }
 0xce4   :  { %v2449_v1 = vmul.f32 %v2446_v12, %v17432_v40 }
 0xce6   :  { %2455 = vmatprep.subr.mxu0 %v2449_v1  ;;  %v2443_v42 = vpop.permute.xlu1 %2442  ;;  %v2916_v54 = vpop.permute.xlu0 %2915 }
 0xce7   :  { %v2447_v61 = vsel %vm329_vm1, %v2443_v42, %v2437_v51  ;;  %v15450_v51 = vld [vmem:[%s20733_s3 + $0x68] sm:$0xff] }
 0xce8   :  { %v2448_v53 = vmul.f32 %v2447_v61, %v17443_v47 }
 0xcea   :  { %2456 = vmatpush1.msra.mxu0 %v2448_v53  ;;  %v2441_v39 = vpop.permute.xlu1 %2440  ;;  %v3081_v8 = vpop.permute.xlu0 %3080 }
 0xceb   :  { %v2444_v36 = vsel %vm329_vm1, %v2441_v39, %v2443_v42  ;;  %v2445_v25 = vsel %vm329_vm1, %v2439_v14, %v2441_v39  ;;  %15452 = vmatmul.mubr.msk.f32.vlgmr.msra.gmra.mrb[8].mxu0 %vm120_vm0, %v15451_v38  ;;  %2600 = vmatprep.subr.mxu0 %v2429_v23 }
 0xcec   :  { %v2450_v15 = vmul.f32 %v2445_v25, %v17439_v45  ;;  %2601 = vmatpush1.msra.mxu0 %v2428_v24  ;;  %v2451_v0 = vmul.f32 %v2444_v36, %v17446_v48  ;;  %2664 = vmatprep.mubr.f32.mxu0 %v20889_v63 }
 0xcee   :  { %2526 = vmatprep.subr.mxu1 %v2451_v0  ;;  %v2745_v9 = vpop.permute.xlu1 %2744  ;;  %v3083_v23 = vpop.permute.xlu0 %3082  ;;  %v2920_v0 = vsel %vm851_vm3, %v2914_v52, %v2916_v54 }
 0xcef   :  { %2527 = vmatpush1.msra.mxu1 %v2450_v15 }
 0xcf0   :  { %15453 = vmatmul.mubr.msk.f32.vlgmr.msra.gmra.mrb[8].mxu1 %vm120_vm0, %v15451_v38  ;;  %2671 = vmatprep.subr.mxu1 %v2431_v2  ;;  %v15456_v38 = vld [vmem:[%s20733_s3 + $0x50] sm:$0xff] }
 0xcf1   :  { %2672 = vmatpush1.msra.mxu1 %v17783_v44  ;;  %2735 = vmatprep.mubr.f32.mxu1 %v20889_v63 }
 0xcf2   :  { %v2747_v24 = vpop.permute.xlu1 %2746  ;;  %v3250_v39 = vpop.permute.xlu0 %3249 }
 0xcf3   :  { %v2754_v14 = vsel %vm660_vm2, %v2745_v9, %v2747_v24  ;;  %15454 = vmatmul.mubr.msk.f32.vlgmr.msra.gmra.mrb[8].mxu0 %vm120_vm0, %v15450_v51  ;;  %v2753_v2 = vsel %vm660_vm2, %v2747_v24, %v2749_v41 }
 0xcf4   :  { %v2757_v12 = vmul.f32 %v2754_v14, %v17465_v59  ;;  %2827 = vmatprep.mubr.f32.mxu0 %v20889_v63  ;;  %v2758_v36 = vmul.f32 %v2753_v2, %v17486_v10 }
 0xcf6   :  { %2763 = vmatprep.subr.mxu0 %v2757_v12  ;;  %v2751_v1 = vpop.permute.xlu1 %2750 }
 0xcf7   :  { %v2752_v44 = vsel %vm660_vm2, %v2749_v41, %v2751_v1  ;;  %v2755_v42 = vsel %vm660_vm2, %v2751_v1, %v2745_v9  ;;  %v15459_v1 = vld [vmem:[%s20733_s3 + $0x58] sm:$0xff] }
 0xcf8   :  { %v2756_v61 = vmul.f32 %v2755_v42, %v17474_v4  ;;  %15455 = vmatmul.mubr.msk.f32.vlgmr.msra.gmra.mrb[8].mxu1 %vm120_vm0, %v15450_v51  ;;  %v2759_v53 = vmul.f32 %v2752_v44, %v17477_v5  ;;  %v3252_v51 = vpop.permute.xlu0 %3251 }
 0xcf9   :  { %2898 = vmatprep.mubr.f32.mxu1 %v20889_v63 }
 0xcfa   :  { %2764 = vmatpush1.msra.mxu0 %v2756_v61  ;;  %2834 = vmatprep.subr.mxu1 %v2759_v53  ;;  %v2912_v41 = vpop.permute.xlu1 %2911  ;;  %v3087_v53 = vsel %vm1042_vm4, %v3081_v8, %v3083_v23 }
 0xcfb   :  { %v2921_v25 = vsel %vm851_vm3, %v2912_v41, %v2914_v52  ;;  %15457 = vmatmul.mubr.msk.f32.vlgmr.msra.gmra.mrb[8].mxu0 %vm120_vm0, %v15456_v38  ;;  %2835 = vmatpush1.msra.mxu1 %v2758_v36  ;;  %v2925_v52 = vmul.f32 %v2920_v0, %v17523_v33  ;;  %v15462_v0 = vld [vmem:[%s20733_s3 + $0x60] sm:$0xff] }
 0xcfc   :  { %v2924_v15 = vmul.f32 %v2921_v25, %v17503_v19  ;;  %2994 = vmatprep.mubr.f32.mxu0 %v20889_v63  ;;  %v3417_v61 = vpop.permute.xlu0 %3416 }
 0xcfe   :  { %2930 = vmatprep.subr.mxu0 %v2924_v15  ;;  %v2918_v9 = vpop.permute.xlu1 %2917 }
 0xcff   :  { %v2919_v24 = vsel %vm851_vm3, %v2916_v54, %v2918_v9  ;;  %v2922_v14 = vsel %vm851_vm3, %v2918_v9, %v2912_v41 }
 0xd00   :  { %v2923_v12 = vmul.f32 %v2922_v14, %v17512_v27  ;;  %15458 = vmatmul.mubr.msk.f32.vlgmr.msra.gmra.mrb[8].mxu1 %vm120_vm0, %v15456_v38  ;;  %v2926_v2 = vmul.f32 %v2919_v24, %v17515_v28  ;;  %v3419_v9 = vpop.permute.xlu0 %3418 }
 0xd01   :  { %3065 = vmatprep.mubr.f32.mxu1 %v20889_v63 }
 0xd02   :  { %2931 = vmatpush1.msra.mxu0 %v2923_v12  ;;  %3001 = vmatprep.subr.mxu1 %v2926_v2  ;;  %v3079_v54 = vpop.permute.xlu1 %3078  ;;  %v3253_v12 = vsel %vm1233_vm5, %v3250_v39, %v3252_v51 }
 0xd03   :  { %v3088_v44 = vsel %vm1042_vm4, %v3079_v54, %v3081_v8  ;;  %15460 = vmatmul.mubr.msk.f32.vlgmr.msra.gmra.mrb[8].mxu0 %vm120_vm0, %v15459_v1  ;;  %3002 = vmatpush1.msra.mxu1 %v2925_v52  ;;  %v3092_v8 = vmul.f32 %v3087_v53, %v17558_v62 }
 0xd04   :  { %v3091_v42 = vmul.f32 %v3088_v44, %v17538_v49  ;;  %3161 = vmatprep.mubr.f32.mxu0 %v20889_v63  ;;  %v3584_v53 = vpop.permute.xlu0 %3583 }
 0xd06   :  { %3097 = vmatprep.subr.mxu0 %v3091_v42  ;;  %v3085_v38 = vpop.permute.xlu1 %3084  ;;  %v15465_v42 = vld [vmem:[%s20733_s3 + $0x70] sm:$0xff] }
 0xd07   :  { %v3086_v36 = vsel %vm1042_vm4, %v3083_v23, %v3085_v38  ;;  %v3089_v41 = vsel %vm1042_vm4, %v3085_v38, %v3079_v54 }
 0xd08   :  { %v3090_v25 = vmul.f32 %v3089_v41, %v17547_v55  ;;  %15461 = vmatmul.mubr.msk.f32.vlgmr.msra.gmra.mrb[8].mxu1 %vm120_vm0, %v15459_v1  ;;  %v3093_v15 = vmul.f32 %v3086_v36, %v17550_v56  ;;  %v3420_v41 = vsel %vm1424_vm6, %v3417_v61, %v3419_v9 }
 0xd09   :  { %3232 = vmatprep.mubr.f32.mxu1 %v20889_v63 }
 0xd0a   :  { %3098 = vmatpush1.msra.mxu0 %v3090_v25  ;;  %3168 = vmatprep.subr.mxu1 %v3093_v15  ;;  %v3248_v23 = vpop.permute.xlu1 %3247  ;;  %v3586_v15 = vpop.permute.xlu0 %3585 }
 0xd0b   :  { %v3254_v24 = vsel %vm1233_vm5, %v3248_v23, %v3250_v39  ;;  %15463 = vmatmul.mubr.msk.f32.vlgmr.msra.gmra.mrb[8].mxu0 %vm120_vm0, %v15462_v0  ;;  %3169 = vmatpush1.msra.mxu1 %v3092_v8  ;;  %v3259_v39 = vmul.f32 %v3253_v12, %v17593_v31 }
 0xd0c   :  { %v3258_v14 = vmul.f32 %v3254_v24, %v17573_v13  ;;  %3328 = vmatprep.mubr.f32.mxu0 %v20889_v63 }
 0xd0e   :  { %3264 = vmatprep.subr.mxu0 %v3258_v14  ;;  %v3246_v2 = vpop.permute.xlu1 %3245  ;;  %v15468_v14 = vld [vmem:[%s20733_s3 + $0x78] sm:$0xff] }
 0xd0f   :  { %v3255_v1 = vsel %vm1233_vm5, %v3246_v2, %v3248_v23  ;;  %v3256_v52 = vsel %vm1233_vm5, %v3252_v51, %v3246_v2 }
 0xd10   :  { %v3257_v54 = vmul.f32 %v3255_v1, %v17582_v21  ;;  %15464 = vmatmul.mubr.msk.f32.vlgmr.msra.gmra.mrb[8].mxu1 %vm120_vm0, %v15462_v0  ;;  %v3260_v44 = vmul.f32 %v3256_v52, %v17585_v22  ;;  %v3751_v1 = vpop.permute.xlu0 %3750  ;;  %v3587_v52 = vsel %vm1615_vm7, %v3584_v53, %v3586_v15 }
 0xd11   :  { %3399 = vmatprep.mubr.f32.mxu1 %v20889_v63 }
 0xd12   :  { %3265 = vmatpush1.msra.mxu0 %v3257_v54  ;;  %3335 = vmatprep.subr.mxu1 %v3260_v44  ;;  %v3415_v38 = vpop.permute.xlu1 %3414 }
 0xd13   :  { %v3421_v51 = vsel %vm1424_vm6, %v3415_v38, %v3417_v61  ;;  %15466 = vmatmul.mubr.msk.f32.vlgmr.msra.gmra.mrb[8].mxu0 %vm120_vm0, %v15465_v42  ;;  %3336 = vmatpush1.msra.mxu1 %v3259_v39  ;;  %v3426_v61 = vmul.f32 %v3420_v41, %v17628_v6 }
 0xd14   :  { %v3425_v36 = vmul.f32 %v3421_v51, %v17608_v46  ;;  %3495 = vmatprep.mubr.f32.mxu0 %v20889_v63  ;;  %v15471_v51 = vld [vmem:[%s20733_s3 + $0x80] sm:$0xff]  ;;  %v3753_v41 = vpop.permute.xlu0 %3752 }
 0xd16   :  { %3431 = vmatprep.subr.mxu0 %v3425_v36  ;;  %v3413_v25 = vpop.permute.xlu1 %3412 }
 0xd17   :  { %v3422_v0 = vsel %vm1424_vm6, %v3413_v25, %v3415_v38  ;;  %v3423_v8 = vsel %vm1424_vm6, %v3419_v9, %v3413_v25 }
 0xd18   :  { %v3424_v23 = vmul.f32 %v3422_v0, %v17617_v57  ;;  %15467 = vmatmul.mubr.msk.f32.vlgmr.msra.gmra.mrb[8].mxu1 %vm120_vm0, %v15465_v42  ;;  %v3427_v24 = vmul.f32 %v3423_v8, %v17620_v58  ;;  %v3754_v0 = vsel %vm1806_vm8, %v3751_v1, %v3753_v41 }
 0xd19   :  { %3566 = vmatprep.mubr.f32.mxu1 %v20889_v63 }
 0xd1a   :  { %3432 = vmatpush1.msra.mxu0 %v3424_v23  ;;  %3502 = vmatprep.subr.mxu1 %v3427_v24  ;;  %v3582_v12 = vpop.permute.xlu1 %3581 }
 0xd1b   :  { %v3588_v9 = vsel %vm1615_vm7, %v3582_v12, %v3584_v53  ;;  %15469 = vmatmul.mubr.msk.f32.vlgmr.msra.gmra.mrb[8].mxu0 %vm120_vm0, %v15468_v14  ;;  %3503 = vmatpush1.msra.mxu1 %v3426_v61  ;;  %v3593_v53 = vmul.f32 %v3587_v52, %v17663_v50 }
 0xd1c   :  { %v3592_v2 = vmul.f32 %v3588_v9, %v17643_v18  ;;  %3662 = vmatprep.mubr.f32.mxu0 %v20889_v63  ;;  %v3760_v9 = vmul.f32 %v3754_v0, %v17695_v29 }
 0xd1e   :  { %3598 = vmatprep.subr.mxu0 %v3592_v2  ;;  %v3580_v54 = vpop.permute.xlu1 %3579 }
 0xd1f   :  { %v3589_v44 = vsel %vm1615_vm7, %v3580_v54, %v3582_v12  ;;  %v3590_v42 = vsel %vm1615_vm7, %v3586_v15, %v3580_v54  ;;  %v15474_v12 = vld [vmem:[%s20733_s3 + $0x88] sm:$0xff] }
 0xd20   :  { %v3591_v39 = vmul.f32 %v3589_v44, %v17652_v34  ;;  %15470 = vmatmul.mubr.msk.f32.vlgmr.msra.gmra.mrb[8].mxu1 %vm120_vm0, %v15468_v14  ;;  %v3594_v38 = vmul.f32 %v3590_v42, %v17655_v37 }
 0xd21   :  { %3733 = vmatprep.mubr.f32.mxu1 %v20889_v63 }
 0xd22   :  { %3599 = vmatpush1.msra.mxu0 %v3591_v39  ;;  %3669 = vmatprep.subr.mxu1 %v3594_v38  ;;  %v3749_v36 = vpop.permute.xlu1 %3748 }
 0xd23   :  { %v3755_v25 = vsel %vm1806_vm8, %v3749_v36, %v3751_v1  ;;  %15472 = vmatmul.mubr.msk.f32.vlgmr.msra.gmra.mrb[8].mxu0 %vm120_vm0, %v15471_v51  ;;  %3670 = vmatpush1.msra.mxu1 %v3593_v53 }
 0xd24   :  { %v3759_v15 = vmul.f32 %v3755_v25, %v17678_v3  ;;  %3829 = vmatprep.mubr.f32.mxu0 %v20889_v63 }
 0xd26   :  { %3765 = vmatprep.subr.mxu0 %v3759_v15  ;;  %v3747_v8 = vpop.permute.xlu1 %3746 }
 0xd27   :  { %v3756_v23 = vsel %vm1806_vm8, %v3747_v8, %v3749_v36  ;;  %v3757_v24 = vsel %vm1806_vm8, %v3753_v41, %v3747_v8 }
 0xd28   :  { %v3758_v14 = vmul.f32 %v3756_v23, %v17687_v17  ;;  %15473 = vmatmul.mubr.msk.f32.vlgmr.msra.gmra.mrb[8].mxu1 %vm120_vm0, %v15471_v51  ;;  %v3761_v61 = vmul.f32 %v3757_v24, %v17690_v20 }
 0xd29   :  { %3900 = vmatprep.mubr.f32.mxu1 %v20889_v63 }
 0xd2a   :  { %3766 = vmatpush1.msra.mxu0 %v3758_v14  ;;  %3836 = vmatprep.subr.mxu1 %v3761_v61 }
 0xd2b   :  { %15475 = vmatmul.mubr.msk.f32.vlgmr.msra.gmra.mrb[8].mxu0 %vm120_vm0, %v15474_v12  ;;  %3837 = vmatpush1.msra.mxu1 %v3760_v9 }
 0xd2c   :  { %4030 = vmatprep.mubr.f32.mxu0 %v20889_v63 }
 0xd30   :  { %15476 = vmatmul.mubr.msk.f32.vlgmr.msra.gmra.mrb[8].mxu1 %vm120_vm0, %v15474_v12 }
 0xd31   :  { %4101 = vmatprep.mubr.f32.mxu1 %v20889_v63 }
 0xdfe   :  { %v3831_v2 = vpop.f32.mrb[8].mxu0 }
 0xdff   :  { %v3917_v1 = vmul.f32 %v3831_v2, %v3831_v2  ;;  %v3833_v52 = vpop.f32.mrb[9].mxu0 }
 0xe00   :  { %v3911_v54 = vadd.f32 %v3833_v52, %v3831_v2  ;;  %v3918_v44 = vmul.f32 %v3833_v52, %v3833_v52 }
 0xe02   :  { %v3921_v42 = vadd.f32 %v3918_v44, %v3917_v1 }
 0xe03   :  { %v3902_v39 = vpop.f32.mrb[8].mxu1 }
 0xe04   :  { %v3919_v38 = vmul.f32 %v3902_v39, %v3902_v39  ;;  %v3904_v51 = vpop.f32.mrb[9].mxu1  ;;  %v3912_v53 = vadd.f32 %v3911_v54, %v3902_v39 }
 0xe05   :  { %v3920_v36 = vmul.f32 %v3904_v51, %v3904_v51 }
 0xe06   :  { %v3913_v41 = vadd.f32 %v3912_v53, %v3904_v51  ;;  %v3922_v25 = vadd.f32 %v3921_v42, %v3919_v38  ;;  %v20895_v42 = vmov 5  }
 0xe08   :  { %3914 = vadd.xlane.f32.xlu1 %v3913_v41  ;;  %v3923_v15 = vadd.f32 %v3922_v25, %v3920_v36 }
 0xe0a   :  { %3924 = vadd.xlane.f32.xlu0 %v3923_v15 }
 0xe95   :  { %v3915_v0 = vpop.xlane.xlu1 %3914 }
 0xe96   :  { %v3916_v8 = vmul.f32 0.001953125, %v3915_v0 }
 0xe97   :  { %v3925_v23 = vpop.xlane.xlu0 %3924 }
 0xe98   :  { %v3927_v24 = vmul.f32 %v3916_v8, %v3916_v8  ;;  %v3926_v14 = vmul.f32 0.001953125, %v3925_v23 }
 0xe9a   :  { %v3928_v61 = vsub.f32 %v3926_v14, %v3927_v24 }
 0xe9c   :  { %v3929_v12 = vmax.f32 %v3928_v61, 0.0 }
 0xe9e   :  { %v3930_v9 = vadd.f32 1e-05, %v3929_v12 }
 0xea0   :  { %17072 = vrsqrt.f32 %v3930_v9 }
 0xeaa   :  { %v17073_v1 = vpop.eup %17072 }
 0xeab   :  { %v3932_v44 = vmul.f32 %v17073_v1, %v17760_v26 }
 0xead   :  { %3941 = vperm.xlu1 %17019, %v3932_v44   ;;  %v3933_v54 = vmul.f32 %v3932_v44, %v3916_v8 }
 0xeaf   :  { %3935 = vrot.lane.b32.xlu0 %v3933_v54, %s17173_s25 }
 0xeb1   :  { %17020 = vset.pattern.permute.xlu1 %v20895_v42 }
 0xf21   :  { %v3936_v38 = vpop.permute.xlu0 %3935 }
 0xf22   :  { %v3938_v53 = vsub.f32 %v17760_v26, %v3936_v38  ;;  %v15477_v26 = vld [vmem:[%s20734_s4 + $0x8] sm:$0xff] }
 0xf24   :  { %3950 = vperm.xlu1 %17020, %v3938_v53  }
 0xf28   :  { %17021 = vset.pattern.permute.xlu1 %v20888_v43 }
 0xf2c   :  { %v3942_v36 = vpop.permute.xlu1 %3941 }
 0xf2d   :  { %v3944_v41 = vmul.f32 %v3942_v36, %v3831_v2  ;;  %v3946_v25 = vmul.f32 %v3942_v36, %v3902_v39  ;;  %v3945_v15 = vmul.f32 %v3942_v36, %v3833_v52  ;;  %v3947_v0 = vmul.f32 %v3942_v36, %v3904_v51 }
 0xfa3   :  { %v3951_v23 = vpop.permute.xlu1 %3950 }
 0xfa4   :  { %v3954_v24 = vadd.f32 %v3951_v23, %v3945_v15  ;;  %v3956_v14 = vadd.f32 %v3951_v23, %v3947_v0  ;;  %v3953_v61 = vadd.f32 %v3951_v23, %v3944_v41  ;;  %v3955_v8 = vadd.f32 %v3951_v23, %v3946_v25 }
 0xfa6   :  { %v3958_v12 = vmax.f32 %v3954_v24, 0.0  ;;  %v3960_v9 = vmax.f32 %v3956_v14, 0.0  ;;  %v3957_v1 = vmax.f32 %v3953_v61, 0.0  ;;  %v3959_v44 = vmax.f32 %v3955_v8, 0.0 }
 0xfa8   :  { %3966 = vmatprep.subr.mxu0 %v3958_v12  ;;  %4037 = vmatprep.subr.mxu1 %v3960_v9 }
 0xfa9   :  { %3967 = vmatpush1.msra.mxu0 %v3957_v1  ;;  %4038 = vmatpush1.msra.mxu1 %v3959_v44 }
 0xfaa   :  { %15478 = vmatmul.mubr.msk.f32.vlgmr.msra.gmra.mrb[10].mxu0 %vm120_vm0, %v15477_v26  ;;  %15479 = vmatmul.mubr.msk.f32.vlgmr.msra.gmra.mrb[10].mxu1 %vm120_vm0, %v15477_v26 }
 0xfab   :  { %4229 = vmatprep.mubr.f32.mxu0 %v20889_v63  ;;  %4300 = vmatprep.mubr.f32.mxu1 %v20889_v63 }
0x107d   :  { %v4032_v2 = vpop.f32.mrb[10].mxu0  ;;  %v4103_v52 = vpop.f32.mrb[10].mxu1 }
0x107e   :  { %v17998_v39 = vadd.f32 %v4032_v2, %v17734_v16  ;;  %v4034_v51 = vpop.f32.mrb[11].mxu0  ;;  %v4105_v54 = vpop.f32.mrb[11].mxu1  ;;  %v18001_v38 = vadd.f32 %v4103_v52, %v17737_v32 }
0x107f   :  { %v18004_v53 = vadd.f32 %v4034_v51, %v17740_v30  ;;  %v18011_v25 = vadd.f32 %v4105_v54, %v17745_v60 }
0x1080   :  { %20896 = vst [vmem:[#allocation42_spill] sm:$0xff] %v17998_v39  ;;  %20897 = vst [vmem:[#allocation43_spill] sm:$0xff] %v18001_v38  ;;  %v4116_v36 = vmul.f32 %v17998_v39, %v17998_v39  ;;  %v4118_v23 = vmul.f32 %v18001_v38, %v18001_v38 }
0x1081   :  { %20898 = vst [vmem:[#allocation44_spill] sm:$0xff] %v18004_v53  ;;  %v4117_v41 = vmul.f32 %v18004_v53, %v18004_v53  ;;  %20899 = vst [vmem:[#allocation45_spill] sm:$0xff] %v18011_v25  ;;  %v4110_v15 = vadd.f32 %v18004_v53, %v17998_v39  ;;  %v4119_v61 = vmul.f32 %v18011_v25, %v18011_v25 }
0x1083   :  { %v4111_v0 = vadd.f32 %v4110_v15, %v18001_v38  ;;  %v4120_v24 = vadd.f32 %v4117_v41, %v4116_v36  ;;  %v18024_v36 = vld [vmem:[%s20731_s1 + $0x10] sm:$0xff] }
0x1085   :  { %v4112_v14 = vadd.f32 %v4111_v0, %v18011_v25  ;;  %v4121_v8 = vadd.f32 %v4120_v24, %v4118_v23  ;;  %v20900_v23 = vmov 2  }
0x1087   :  { %4113 = vadd.xlane.f32.xlu0 %v4112_v14  ;;  %v4122_v12 = vadd.f32 %v4121_v8, %v4119_v61 }
0x1089   :  { %4123 = vadd.xlane.f32.xlu1 %v4122_v12 }
0x1114   :  { %v4114_v9 = vpop.xlane.xlu0 %4113 }
0x1115   :  { %v4115_v1 = vmul.f32 0.001953125, %v4114_v9 }
0x1116   :  { %v4124_v44 = vpop.xlane.xlu1 %4123 }
0x1117   :  { %v4126_v26 = vmul.f32 %v4115_v1, %v4115_v1  ;;  %v4125_v2 = vmul.f32 0.001953125, %v4124_v44 }
0x1119   :  { %v4127_v52 = vsub.f32 %v4125_v2, %v4126_v26 }
0x111b   :  { %v4128_v51 = vmax.f32 %v4127_v52, 0.0 }
0x111d   :  { %v4129_v54 = vadd.f32 1e-05, %v4128_v51 }
0x111f   :  { %17074 = vrsqrt.f32 %v4129_v54 }
0x1129   :  { %v17075_v41 = vpop.eup %17074 }
0x112a   :  { %v4131_v15 = vmul.f32 %v17075_v41, %v18024_v36 }
0x112c   :  { %4140 = vperm.xlu1 %17021, %v4131_v15   ;;  %v4132_v0 = vmul.f32 %v4131_v15, %v4115_v1 }
0x112e   :  { %4134 = vrot.lane.b32.xlu0 %v4132_v0, %s17173_s25 }
0x1130   :  { %17023 = vset.pattern.permute.xlu1 %v20900_v23 }
0x11a0   :  { %v4135_v24 = vpop.permute.xlu0 %4134 }
0x11a1   :  { %v4137_v14 = vsub.f32 %v18024_v36, %v4135_v24  ;;  %v15481_v24 = vld [vmem:[%s20732_s2 + $0x10] sm:$0xff] }
0x11a3   :  { %4149 = vperm.xlu0 %17022, %v4137_v14  }
0x11ab   :  { %v4141_v61 = vpop.permute.xlu1 %4140 }
0x11ac   :  { %v4143_v8 = vmul.f32 %v4141_v61, %v17998_v39  ;;  %v4145_v12 = vmul.f32 %v4141_v61, %v18001_v38  ;;  %v4144_v9 = vmul.f32 %v4141_v61, %v18004_v53  ;;  %v4146_v44 = vmul.f32 %v4141_v61, %v18011_v25 }
0x1222   :  { %v4150_v26 = vpop.permute.xlu0 %4149 }
0x1223   :  { %v4153_v2 = vadd.f32 %v4150_v26, %v4144_v9  ;;  %v4155_v1 = vadd.f32 %v4150_v26, %v4146_v44  ;;  %v4152_v52 = vadd.f32 %v4150_v26, %v4143_v8  ;;  %v4154_v51 = vadd.f32 %v4150_v26, %v4145_v12 }
0x1225   :  { %v4157_v54 = vmax.f32 %v4153_v2, 0.0  ;;  %v4159_v41 = vmax.f32 %v4155_v1, 0.0  ;;  %v4156_v15 = vmax.f32 %v4152_v52, 0.0  ;;  %v4158_v0 = vmax.f32 %v4154_v51, 0.0 }
0x1227   :  { %4165 = vmatprep.subr.mxu0 %v4157_v54  ;;  %4236 = vmatprep.subr.mxu1 %v4159_v41 }
0x1228   :  { %4166 = vmatpush1.msra.mxu0 %v4156_v15  ;;  %4237 = vmatpush1.msra.mxu1 %v4158_v0 }
0x1229   :  { %15482 = vmatmul.mubr.msk.f32.vlgmr.msra.gmra.mrb[12].mxu0 %vm120_vm0, %v15481_v24  ;;  %15483 = vmatmul.mubr.msk.f32.vlgmr.msra.gmra.mrb[12].mxu1 %vm120_vm0, %v15481_v24 }
0x122a   :  { %4444 = vmatprep.mubr.f32.mxu0 %v20889_v63  ;;  %4515 = vmatprep.mubr.f32.mxu1 %v20889_v63 }
0x12fc   :  { %v4231_v14 = vpop.f32.mrb[12].mxu0  ;;  %v4302_v61 = vpop.f32.mrb[12].mxu1 }
0x12fd   :  { %v4313_v8 = vmul.f32 %v4231_v14, %v4231_v14  ;;  %v4233_v12 = vpop.f32.mrb[13].mxu0  ;;  %v4304_v9 = vpop.f32.mrb[13].mxu1  ;;  %v4315_v2 = vmul.f32 %v4302_v61, %v4302_v61 }
0x12fe   :  { %v4307_v44 = vadd.f32 %v4233_v12, %v4231_v14  ;;  %v4314_v26 = vmul.f32 %v4233_v12, %v4233_v12  ;;  %v4316_v54 = vmul.f32 %v4304_v9, %v4304_v9 }
0x1300   :  { %v4308_v1 = vadd.f32 %v4307_v44, %v4302_v61  ;;  %v4317_v52 = vadd.f32 %v4314_v26, %v4313_v8  ;;  %v20901_v44 = vmov 3  }
0x1302   :  { %v4309_v51 = vadd.f32 %v4308_v1, %v4304_v9  ;;  %v4318_v41 = vadd.f32 %v4317_v52, %v4315_v2 }
0x1304   :  { %4310 = vadd.xlane.f32.xlu1 %v4309_v51  ;;  %v4319_v15 = vadd.f32 %v4318_v41, %v4316_v54 }
0x1306   :  { %4320 = vadd.xlane.f32.xlu0 %v4319_v15 }
0x1391   :  { %v4311_v0 = vpop.xlane.xlu1 %4310 }
0x1392   :  { %v4312_v24 = vmul.f32 0.001953125, %v4311_v0 }
0x1393   :  { %v4321_v25 = vpop.xlane.xlu0 %4320 }
0x1394   :  { %v4323_v53 = vmul.f32 %v4312_v24, %v4312_v24  ;;  %v4322_v38 = vmul.f32 0.001953125, %v4321_v25 }
0x1396   :  { %v4324_v39 = vsub.f32 %v4322_v38, %v4323_v53 }
0x1398   :  { %v4325_v7 = vmax.f32 %v4324_v39, 0.0 }
0x139a   :  { %v4326_v23 = vadd.f32 1e-05, %v4325_v7 }
0x139c   :  { %17076 = vrsqrt.f32 %v4326_v23 }
0x13a6   :  { %v17077_v43 = vpop.eup %17076 }
0x13a7   :  { %v4328_v32 = vmul.f32 %v17077_v43, %v18024_v36 }
0x13a9   :  { %4337 = vperm.xlu1 %17023, %v4328_v32   ;;  %v4329_v8 = vmul.f32 %v4328_v32, %v4312_v24 }
0x13ab   :  { %4331 = vrot.lane.b32.xlu0 %v4329_v8, %s17173_s25 }
0x13ad   :  { %17024 = vset.pattern.permute.xlu1 %v20901_v44 }
0x141d   :  { %v4332_v26 = vpop.permute.xlu0 %4331 }
0x141e   :  { %v4334_v2 = vsub.f32 %v18024_v36, %v4332_v26 }
0x1420   :  { %4346 = vperm.xlu1 %17024, %v4334_v2  }
0x1424   :  { %17025 = vset.pattern.permute.xlu1 %v20894_v11 }
0x1428   :  { %v4338_v25 = vpop.permute.xlu1 %4337 }
0x1429   :  { %v4340_v38 = vmul.f32 %v4338_v25, %v4231_v14  ;;  %v4341_v39 = vmul.f32 %v4338_v25, %v4233_v12  ;;  %v4342_v53 = vmul.f32 %v4338_v25, %v4302_v61  ;;  %v4343_v23 = vmul.f32 %v4338_v25, %v4304_v9 }
0x149f   :  { %v4347_v7 = vpop.permute.xlu1 %4346 }
0x14a0   :  { %v4349_v1 = vadd.f32 %v4347_v7, %v4340_v38  ;;  %v4350_v43 = vadd.f32 %v4347_v7, %v4341_v39  ;;  %v4351_v52 = vadd.f32 %v4347_v7, %v4342_v53  ;;  %v4352_v32 = vadd.f32 %v4347_v7, %v4343_v23  ;;  %v15485_v7 = vld [vmem:[%s20733_s3 + $0x90] sm:$0xff] }
0x14a2   :  { %v4353_v51 = vmax.f32 %v4349_v1, 0.0  ;;  %v4354_v54 = vmax.f32 %v4350_v43, 0.0  ;;  %v4355_v41 = vmax.f32 %v4351_v52, 0.0  ;;  %v4356_v15 = vmax.f32 %v4352_v32, 0.0 }
0x14a4   :  { %4363 = vrot.lane.b32.xlu0 %v4354_v54, %s17177_s28  ;;  %4361 = vrot.lane.b32.xlu1 %v4353_v51, %s17177_s28 }
0x14a8   :  { %4365 = vrot.lane.b32.xlu0 %v4355_v41, %s17177_s28  ;;  %4367 = vrot.lane.b32.xlu1 %v4356_v15, %s17177_s28 }
0x14ac   :  { %4671 = vrot.lane.b32.xlu0 %v4354_v54, %s17178_s30  ;;  %4669 = vrot.lane.b32.xlu1 %v4353_v51, %s17178_s30 }
0x14b0   :  { %4673 = vrot.lane.b32.xlu0 %v4355_v41, %s17178_s30  ;;  %4675 = vrot.lane.b32.xlu1 %v4356_v15, %s17178_s30 }
0x14b4   :  { %4838 = vrot.lane.b32.xlu0 %v4354_v54, %s17179_s16  ;;  %4836 = vrot.lane.b32.xlu1 %v4353_v51, %s17179_s16 }
0x14b8   :  { %4840 = vrot.lane.b32.xlu0 %v4355_v41, %s17179_s16  ;;  %4842 = vrot.lane.b32.xlu1 %v4356_v15, %s17179_s16 }
0x14bc   :  { %5005 = vrot.lane.b32.xlu0 %v4354_v54, %s17173_s25  ;;  %5003 = vrot.lane.b32.xlu1 %v4353_v51, %s17173_s25 }
0x14c0   :  { %5007 = vrot.lane.b32.xlu0 %v4355_v41, %s17173_s25  ;;  %5009 = vrot.lane.b32.xlu1 %v4356_v15, %s17173_s25 }
0x14c4   :  { %5174 = vrot.lane.b32.xlu0 %v4355_v41, %s17180_s17  ;;  %5172 = vrot.lane.b32.xlu1 %v4354_v54, %s17180_s17 }
0x14c8   :  { %5176 = vrot.lane.b32.xlu0 %v4356_v15, %s17180_s17  ;;  %5170 = vrot.lane.b32.xlu1 %v4353_v51, %s17180_s17 }
0x14cc   :  { %5341 = vrot.lane.b32.xlu0 %v4355_v41, %s20848_s18  ;;  %5339 = vrot.lane.b32.xlu1 %v4354_v54, %s20848_s18 }
0x14d0   :  { %5343 = vrot.lane.b32.xlu0 %v4356_v15, %s20848_s18  ;;  %5337 = vrot.lane.b32.xlu1 %v4353_v51, %s20848_s18 }
0x14d4   :  { %5508 = vrot.lane.b32.xlu0 %v4355_v41, %s20846_s20  ;;  %5506 = vrot.lane.b32.xlu1 %v4354_v54, %s20846_s20 }
0x14d8   :  { %5510 = vrot.lane.b32.xlu0 %v4356_v15, %s20846_s20  ;;  %5504 = vrot.lane.b32.xlu1 %v4353_v51, %s20846_s20 }
0x14dc   :  { %5675 = vrot.lane.b32.xlu0 %v4355_v41, %s20844_s21  ;;  %5673 = vrot.lane.b32.xlu1 %v4354_v54, %s20844_s21 }
0x14e0   :  { %5677 = vrot.lane.b32.xlu0 %v4356_v15, %s20844_s21  ;;  %5671 = vrot.lane.b32.xlu1 %v4353_v51, %s20844_s21 }
0x1516   :  { %v4364_v14 = vpop.permute.xlu0 %4363  ;;  %v4362_v61 = vpop.permute.xlu1 %4361 }
0x1517   :  { %v4371_v12 = vsel %vm329_vm1, %v4362_v61, %v4364_v14 }
0x1518   :  { %v4374_v9 = vmul.f32 %v4371_v12, %v17432_v40 }
0x151a   :  { %v4366_v0 = vpop.permute.xlu0 %4365  ;;  %4380 = vmatprep.subr.mxu0 %v4374_v9  ;;  %v4368_v24 = vpop.permute.xlu1 %4367 }
0x151b   :  { %v4370_v8 = vsel %vm329_vm1, %v4364_v14, %v4366_v0  ;;  %v4369_v26 = vsel %vm329_vm1, %v4366_v0, %v4368_v24  ;;  %v4372_v2 = vsel %vm329_vm1, %v4368_v24, %v4362_v61 }
0x151c   :  { %v4375_v25 = vmul.f32 %v4370_v8, %v17439_v45  ;;  %v4373_v38 = vmul.f32 %v4372_v2, %v17443_v47  ;;  %v4376_v39 = vmul.f32 %v4369_v26, %v17446_v48 }
0x151e   :  { %v4672_v53 = vpop.permute.xlu0 %4671  ;;  %4381 = vmatpush1.msra.mxu0 %v4373_v38  ;;  %4451 = vmatprep.subr.mxu1 %v4376_v39  ;;  %v4670_v23 = vpop.permute.xlu1 %4669 }
0x151f   :  { %v4679_v1 = vsel %vm660_vm2, %v4670_v23, %v4672_v53  ;;  %15486 = vmatmul.mubr.msk.f32.vlgmr.msra.gmra.mrb[14].mxu0 %vm120_vm0, %v15485_v7  ;;  %4452 = vmatpush1.msra.mxu1 %v4375_v25 }
0x1520   :  { %4525 = vmatprep.subr.mxu0 %v4354_v54  ;;  %15487 = vmatmul.mubr.msk.f32.vlgmr.msra.gmra.mrb[14].mxu1 %vm120_vm0, %v15485_v7  ;;  %v4682_v43 = vmul.f32 %v4679_v1, %v17465_v59 }
0x1521   :  { %4526 = vmatpush1.msra.mxu0 %v4353_v51  ;;  %4596 = vmatprep.subr.mxu1 %v4356_v15  ;;  %v15484_v15 = vld [vmem:[%s20733_s3 + $0xb0] sm:$0xff] }
0x1522   :  { %4597 = vmatpush1.msra.mxu1 %v4355_v41  ;;  %v4674_v52 = vpop.permute.xlu0 %4673  ;;  %4688 = vmatprep.subr.mxu0 %v4682_v43  ;;  %v4676_v32 = vpop.permute.xlu1 %4675 }
0x1523   :  { %v4677_v14 = vsel %vm660_vm2, %v4674_v52, %v4676_v32  ;;  %v4680_v61 = vsel %vm660_vm2, %v4676_v32, %v4670_v23  ;;  %4589 = vmatprep.mubr.f32.mxu0 %v20889_v63  ;;  %4660 = vmatprep.mubr.f32.mxu1 %v20889_v63  ;;  %v4678_v54 = vsel %vm660_vm2, %v4672_v53, %v4674_v52  ;;  %v15490_v23 = vld [vmem:[%s20733_s3 + $0x98] sm:$0xff] }
0x1524   :  { %v4681_v51 = vmul.f32 %v4680_v61, %v17474_v4  ;;  %v4684_v41 = vmul.f32 %v4677_v14, %v17477_v5  ;;  %v4683_v0 = vmul.f32 %v4678_v54, %v17486_v10 }
0x1526   :  { %v4839_v12 = vpop.permute.xlu0 %4838  ;;  %4759 = vmatprep.subr.mxu1 %v4684_v41  ;;  %v4837_v9 = vpop.permute.xlu1 %4836 }
0x1527   :  { %v4846_v24 = vsel %vm851_vm3, %v4837_v9, %v4839_v12  ;;  %15488 = vmatmul.mubr.msk.f32.vlgmr.msra.gmra.mrb[14].mxu0 %vm120_vm0, %v15484_v15 }
0x1528   :  { %4689 = vmatpush1.msra.mxu0 %v4681_v51  ;;  %15489 = vmatmul.mubr.msk.f32.vlgmr.msra.gmra.mrb[14].mxu1 %vm120_vm0, %v15484_v15  ;;  %v4849_v8 = vmul.f32 %v4846_v24, %v17503_v19 }
0x1529   :  { %4760 = vmatpush1.msra.mxu1 %v4683_v0  ;;  %4752 = vmatprep.mubr.f32.mxu0 %v20889_v63  ;;  %v15493_v0 = vld [vmem:[%s20733_s3 + $0xa0] sm:$0xff] }
0x152a   :  { %v4841_v26 = vpop.permute.xlu0 %4840  ;;  %4855 = vmatprep.subr.mxu0 %v4849_v8  ;;  %v4843_v2 = vpop.permute.xlu1 %4842  ;;  %4823 = vmatprep.mubr.f32.mxu1 %v20889_v63 }
0x152b   :  { %v4844_v25 = vsel %vm851_vm3, %v4841_v26, %v4843_v2  ;;  %v4847_v38 = vsel %vm851_vm3, %v4843_v2, %v4837_v9  ;;  %v4845_v39 = vsel %vm851_vm3, %v4839_v12, %v4841_v26 }
0x152c   :  { %v4848_v7 = vmul.f32 %v4847_v38, %v17512_v27  ;;  %v4851_v53 = vmul.f32 %v4844_v25, %v17515_v28  ;;  %v4850_v52 = vmul.f32 %v4845_v39, %v17523_v33 }
0x152e   :  { %v5006_v1 = vpop.permute.xlu0 %5005  ;;  %4926 = vmatprep.subr.mxu1 %v4851_v53  ;;  %v5004_v43 = vpop.permute.xlu1 %5003 }
0x152f   :  { %v5013_v32 = vsel %vm1042_vm4, %v5004_v43, %v5006_v1  ;;  %15491 = vmatmul.mubr.msk.f32.vlgmr.msra.gmra.mrb[14].mxu0 %vm120_vm0, %v15490_v23 }
0x1530   :  { %4856 = vmatpush1.msra.mxu0 %v4848_v7  ;;  %15492 = vmatmul.mubr.msk.f32.vlgmr.msra.gmra.mrb[14].mxu1 %vm120_vm0, %v15490_v23  ;;  %v5016_v14 = vmul.f32 %v5013_v32, %v17538_v49 }
0x1531   :  { %4927 = vmatpush1.msra.mxu1 %v4850_v52  ;;  %4919 = vmatprep.mubr.f32.mxu0 %v20889_v63  ;;  %v15496_v52 = vld [vmem:[%s20733_s3 + $0xa8] sm:$0xff] }
0x1532   :  { %v5008_v61 = vpop.permute.xlu0 %5007  ;;  %5022 = vmatprep.subr.mxu0 %v5016_v14  ;;  %v5010_v54 = vpop.permute.xlu1 %5009  ;;  %4990 = vmatprep.mubr.f32.mxu1 %v20889_v63 }
0x1533   :  { %v5011_v51 = vsel %vm1042_vm4, %v5008_v61, %v5010_v54  ;;  %v5014_v41 = vsel %vm1042_vm4, %v5010_v54, %v5004_v43  ;;  %v5012_v15 = vsel %vm1042_vm4, %v5006_v1, %v5008_v61 }
0x1534   :  { %v5015_v12 = vmul.f32 %v5014_v41, %v17547_v55  ;;  %v5018_v9 = vmul.f32 %v5011_v51, %v17550_v56  ;;  %v5017_v26 = vmul.f32 %v5012_v15, %v17558_v62 }
0x1536   :  { %v5175_v24 = vpop.permute.xlu0 %5174  ;;  %5093 = vmatprep.subr.mxu1 %v5018_v9  ;;  %v5173_v8 = vpop.permute.xlu1 %5172 }
0x1537   :  { %v5179_v2 = vsel %vm1233_vm5, %v5173_v8, %v5175_v24  ;;  %15494 = vmatmul.mubr.msk.f32.vlgmr.msra.gmra.mrb[14].mxu0 %vm120_vm0, %v15493_v0 }
0x1538   :  { %5023 = vmatpush1.msra.mxu0 %v5015_v12  ;;  %15495 = vmatmul.mubr.msk.f32.vlgmr.msra.gmra.mrb[14].mxu1 %vm120_vm0, %v15493_v0  ;;  %v5183_v25 = vmul.f32 %v5179_v2, %v17573_v13  ;;  %v18538_v13 = vld [vmem:[%s20740_s10 + $0x198] sm:$0xff] }
0x1539   :  { %5094 = vmatpush1.msra.mxu1 %v5017_v26  ;;  %5086 = vmatprep.mubr.f32.mxu0 %v20889_v63  ;;  %v15499_v26 = vld [vmem:[%s20733_s3 + $0xb8] sm:$0xff] }
0x153a   :  { %v5177_v38 = vpop.permute.xlu0 %5176  ;;  %5189 = vmatprep.subr.mxu0 %v5183_v25  ;;  %v5171_v39 = vpop.permute.xlu1 %5170  ;;  %5157 = vmatprep.mubr.f32.mxu1 %v20889_v63 }
0x153b   :  { %v5180_v7 = vsel %vm1233_vm5, %v5171_v39, %v5173_v8  ;;  %v5181_v53 = vsel %vm1233_vm5, %v5177_v38, %v5171_v39  ;;  %v5178_v23 = vsel %vm1233_vm5, %v5175_v24, %v5177_v38 }
0x153c   :  { %v5182_v1 = vmul.f32 %v5180_v7, %v17582_v21  ;;  %v5185_v43 = vmul.f32 %v5181_v53, %v17585_v22  ;;  %v5184_v61 = vmul.f32 %v5178_v23, %v17593_v31  ;;  %v18443_v22 = vld [vmem:[%s20740_s10 + $0x98] sm:$0xff]  ;;  %v18448_v31 = vld [vmem:[%s20740_s10 + $0x180] sm:$0xff] }
0x153d   :  { %v18503_v21 = vld [vmem:[%s20740_s10 + $0xa0] sm:$0xff] }
0x153e   :  { %v5342_v32 = vpop.permute.xlu0 %5341  ;;  %5260 = vmatprep.subr.mxu1 %v5185_v43  ;;  %v5340_v14 = vpop.permute.xlu1 %5339 }
0x153f   :  { %v5346_v54 = vsel %vm1424_vm6, %v5340_v14, %v5342_v32  ;;  %15497 = vmatmul.mubr.msk.f32.vlgmr.msra.gmra.mrb[14].mxu0 %vm120_vm0, %v15496_v52 }
0x1540   :  { %5190 = vmatpush1.msra.mxu0 %v5182_v1  ;;  %15498 = vmatmul.mubr.msk.f32.vlgmr.msra.gmra.mrb[14].mxu1 %vm120_vm0, %v15496_v52  ;;  %v5350_v51 = vmul.f32 %v5346_v54, %v17608_v46  ;;  %v18471_v46 = vld [vmem:[%s20740_s10 + $0x18] sm:$0xff] }
0x1541   :  { %5261 = vmatpush1.msra.mxu1 %v5184_v61  ;;  %5253 = vmatprep.mubr.f32.mxu0 %v20889_v63  ;;  %v15502_v61 = vld [vmem:[%s20733_s3 + $0xc0] sm:$0xff] }
0x1542   :  { %v5344_v41 = vpop.permute.xlu0 %5343  ;;  %5356 = vmatprep.subr.mxu0 %v5350_v51  ;;  %v5338_v15 = vpop.permute.xlu1 %5337  ;;  %5324 = vmatprep.mubr.f32.mxu1 %v20889_v63 }
0x1543   :  { %v5347_v12 = vsel %vm1424_vm6, %v5338_v15, %v5340_v14  ;;  %v5348_v9 = vsel %vm1424_vm6, %v5344_v41, %v5338_v15  ;;  %v5345_v0 = vsel %vm1424_vm6, %v5342_v32, %v5344_v41 }
0x1544   :  { %v5349_v24 = vmul.f32 %v5347_v12, %v17617_v57  ;;  %v5352_v8 = vmul.f32 %v5348_v9, %v17620_v58  ;;  %v5351_v38 = vmul.f32 %v5345_v0, %v17628_v6  ;;  %v18487_v57 = vld [vmem:[%s20740_s10 + $0x108] sm:$0xff] }
0x1546   :  { %v5509_v2 = vpop.permute.xlu0 %5508  ;;  %5427 = vmatprep.subr.mxu1 %v5352_v8  ;;  %v5507_v25 = vpop.permute.xlu1 %5506 }
0x1547   :  { %v5513_v39 = vsel %vm1615_vm7, %v5507_v25, %v5509_v2  ;;  %15500 = vmatmul.mubr.msk.f32.vlgmr.msra.gmra.mrb[14].mxu0 %vm120_vm0, %v15499_v26 }
0x1548   :  { %5357 = vmatpush1.msra.mxu0 %v5349_v24  ;;  %15501 = vmatmul.mubr.msk.f32.vlgmr.msra.gmra.mrb[14].mxu1 %vm120_vm0, %v15499_v26  ;;  %v5517_v7 = vmul.f32 %v5513_v39, %v17643_v18 }
0x1549   :  { %5428 = vmatpush1.msra.mxu1 %v5351_v38  ;;  %5420 = vmatprep.mubr.f32.mxu0 %v20889_v63  ;;  %v15505_v38 = vld [vmem:[%s20733_s3 + $0xc8] sm:$0xff] }
0x154a   :  { %v5511_v53 = vpop.permute.xlu0 %5510  ;;  %5523 = vmatprep.subr.mxu0 %v5517_v7  ;;  %v5505_v23 = vpop.permute.xlu1 %5504  ;;  %5491 = vmatprep.mubr.f32.mxu1 %v20889_v63  ;;  %v15508_v7 = vld [vmem:[%s20733_s3 + $0xd0] sm:$0xff] }
0x154b   :  { %v5514_v1 = vsel %vm1615_vm7, %v5505_v23, %v5507_v25  ;;  %v5515_v43 = vsel %vm1615_vm7, %v5511_v53, %v5505_v23  ;;  %v5512_v52 = vsel %vm1615_vm7, %v5509_v2, %v5511_v53 }
0x154c   :  { %v5516_v32 = vmul.f32 %v5514_v1, %v17652_v34  ;;  %v5519_v14 = vmul.f32 %v5515_v43, %v17655_v37  ;;  %v5518_v41 = vmul.f32 %v5512_v52, %v17663_v50  ;;  %v20911_v37 = vld [vmem:[#allocation9_spill] sm:$0xff]  ;;  %v17140_v50 = vld [vmem:[%s20738_s8 + $0x14] sm:$0xf] }
0x154d   :  { %v15518_v58 = vadd.f32 -1.0, %v17140_v50  ;;  %v18404_v34 = vld [vmem:[%s20740_s10 + $0x80] sm:$0xff]  ;;  %20914 = vst [vmem:[#allocation9_spill] sm:$0xff] %v18503_v21  ;;  %v15511_v21 = vld [vmem:[%s20734_s4 + $0x10] sm:$0xff] }
0x154e   :  { %v5676_v54 = vpop.permute.xlu0 %5675  ;;  %5594 = vmatprep.subr.mxu1 %v5519_v14  ;;  %v5674_v51 = vpop.permute.xlu1 %5673 }
0x154f   :  { %v5680_v15 = vsel %vm1806_vm8, %v5674_v51, %v5676_v54  ;;  %15503 = vmatmul.mubr.msk.f32.vlgmr.msra.gmra.mrb[14].mxu0 %vm120_vm0, %v15502_v61  ;;  %v18416_v50 = vmul.f32 1e+30, %v15518_v58 }
0x1550   :  { %5524 = vmatpush1.msra.mxu0 %v5516_v32  ;;  %15504 = vmatmul.mubr.msk.f32.vlgmr.msra.gmra.mrb[14].mxu1 %vm120_vm0, %v15502_v61  ;;  %v5684_v12 = vmul.f32 %v5680_v15, %v17678_v3  ;;  %v20909_v3 = vld [vmem:[#allocation7_spill] sm:$0xff] }
0x1551   :  { %5595 = vmatpush1.msra.mxu1 %v5518_v41  ;;  %5587 = vmatprep.mubr.f32.mxu0 %v20889_v63  ;;  %20912 = vst [vmem:[#allocation7_spill] sm:$0xff] %v18416_v50 }
0x1552   :  { %v5678_v9 = vpop.permute.xlu0 %5677  ;;  %5690 = vmatprep.subr.mxu0 %v5684_v12  ;;  %v5672_v0 = vpop.permute.xlu1 %5671  ;;  %5658 = vmatprep.mubr.f32.mxu1 %v20889_v63 }
0x1553   :  { %v5681_v24 = vsel %vm1806_vm8, %v5672_v0, %v5674_v51  ;;  %v5682_v8 = vsel %vm1806_vm8, %v5678_v9, %v5672_v0  ;;  %v5679_v26 = vsel %vm1806_vm8, %v5676_v54, %v5678_v9 }
0x1554   :  { %v5683_v2 = vmul.f32 %v5681_v24, %v17687_v17  ;;  %v5686_v25 = vmul.f32 %v5682_v8, %v17690_v20  ;;  %v5685_v39 = vmul.f32 %v5679_v26, %v17695_v29  ;;  %v20906_v20 = vld [vmem:[#allocation5_spill] sm:$0xff] }
0x1556   :  { %5761 = vmatprep.subr.mxu1 %v5686_v25 }
0x1557   :  { %15506 = vmatmul.mubr.msk.f32.vlgmr.msra.gmra.mrb[14].mxu0 %vm120_vm0, %v15505_v38 }
0x1558   :  { %5691 = vmatpush1.msra.mxu0 %v5683_v2  ;;  %15507 = vmatmul.mubr.msk.f32.vlgmr.msra.gmra.mrb[14].mxu1 %vm120_vm0, %v15505_v38 }
0x1559   :  { %5762 = vmatpush1.msra.mxu1 %v5685_v39  ;;  %5754 = vmatprep.mubr.f32.mxu0 %v20889_v63 }
0x155a   :  { %5825 = vmatprep.mubr.f32.mxu1 %v20889_v63 }
0x155f   :  { %15509 = vmatmul.mubr.msk.f32.vlgmr.msra.gmra.mrb[14].mxu0 %vm120_vm0, %v15508_v7 }
0x1560   :  { %15510 = vmatmul.mubr.msk.f32.vlgmr.msra.gmra.mrb[14].mxu1 %vm120_vm0, %v15508_v7  ;;  %5955 = vmatprep.mubr.f32.mxu0 %v20889_v63 }
0x1561   :  { %6026 = vmatprep.mubr.f32.mxu1 %v20889_v63 }
0x1632   :  { %v18237_v53 = vpop.f32.mrb[14].mxu0 }
0x1633   :  { %v5842_v23 = vmul.f32 %v18237_v53, %v18237_v53  ;;  %v18241_v1 = vpop.f32.mrb[15].mxu0  ;;  %v18243_v43 = vpop.f32.mrb[14].mxu1 }
0x1634   :  { %v5836_v52 = vadd.f32 %v18241_v1, %v18237_v53  ;;  %v5843_v32 = vmul.f32 %v18241_v1, %v18241_v1  ;;  %v18249_v14 = vpop.f32.mrb[15].mxu1  ;;  %v5844_v51 = vmul.f32 %v18243_v43, %v18243_v43 }
0x1635   :  { %v5845_v12 = vmul.f32 %v18249_v14, %v18249_v14 }
0x1636   :  { %v5846_v61 = vadd.f32 %v5843_v32, %v5842_v23  ;;  %v5837_v54 = vadd.f32 %v5836_v52, %v18243_v43  ;;  %v20902_v32 = vld [vmem:[#allocation41_spill] sm:$0xff] }
0x1638   :  { %v5847_v41 = vadd.f32 %v5846_v61, %v5844_v51  ;;  %v5838_v15 = vadd.f32 %v5837_v54, %v18249_v14  ;;  %v20903_v51 = vmov 0  }
0x163a   :  { %5839 = vadd.xlane.f32.xlu1 %v5838_v15  ;;  %v5848_v9 = vadd.f32 %v5847_v41, %v5845_v12 }
0x163c   :  { %5849 = vadd.xlane.f32.xlu0 %v5848_v9 }
0x16c7   :  { %v5840_v0 = vpop.xlane.xlu1 %5839 }
0x16c8   :  { %v5841_v24 = vmul.f32 0.001953125, %v5840_v0 }
0x16c9   :  { %v5850_v8 = vpop.xlane.xlu0 %5849 }
0x16ca   :  { %v5852_v26 = vmul.f32 %v5841_v24, %v5841_v24  ;;  %v5851_v2 = vmul.f32 0.001953125, %v5850_v8 }
0x16cc   :  { %v5853_v25 = vsub.f32 %v5851_v2, %v5852_v26 }
0x16ce   :  { %v5854_v38 = vmax.f32 %v5853_v25, 0.0  ;;  %v17136_v25 = vld [vmem:[%s20738_s8] sm:$0xf] }
0x16d0   :  { %v5855_v39 = vadd.f32 1e-05, %v5854_v38  ;;  %v15514_v38 = vadd.f32 -1.0, %v17136_v25  ;;  %v17139_v25 = vld [vmem:[%s20738_s8 + $0xc] sm:$0xf] }
0x16d1   :  { %v15517_v11 = vadd.f32 -1.0, %v17139_v25 }
0x16d2   :  { %17078 = vrsqrt.f32 %v5855_v39  ;;  %v17137_v39 = vld [vmem:[%s20738_s8 + $0x4] sm:$0xf] }
0x16d3   :  { %v18366_v63 = vmul.f32 1e+30, %v15517_v11 }
0x16d5   :  { %20908 = vst [vmem:[#allocation47_spill] sm:$0xff] %v18366_v63 }
0x16dc   :  { %v17079_v7 = vpop.eup %17078 }
0x16dd   :  { %v5857_v23 = vmul.f32 %v17079_v7, %v18024_v36  ;;  %v15515_v7 = vadd.f32 -1.0, %v17137_v39 }
0x16df   :  { %5866 = vperm.xlu1 %17025, %v5857_v23   ;;  %v5858_v52 = vmul.f32 %v5857_v23, %v5841_v24  ;;  %v18354_v44 = vmul.f32 1e+30, %v15515_v7  ;;  %v20910_v7 = vld [vmem:[#allocation6_spill] sm:$0xff] }
0x16e1   :  { %5860 = vrot.lane.b32.xlu0 %v5858_v52, %s17173_s25  ;;  %v17138_v52 = vld [vmem:[%s20738_s8 + $0x8] sm:$0xf] }
0x16e3   :  { %6035 = vrot.lane.b32.xlu1 %v17740_v30, %s17177_s28 }
0x16e4   :  { %17026 = vset.pattern.permute.xlu1 %v20895_v42 }
0x16e5   :  { %6033 = vrot.lane.b32.xlu0 %v17734_v16, %s17177_s28 }
0x16e7   :  { %6039 = vrot.lane.b32.xlu1 %v17745_v60, %s17177_s28 }
0x16e9   :  { %6037 = vrot.lane.b32.xlu0 %v20902_v32, %s17177_s28 }
0x16eb   :  { %6082 = vrot.lane.b32.xlu1 %v17740_v30, %s17178_s30 }
0x16ed   :  { %6080 = vrot.lane.b32.xlu0 %v17734_v16, %s17178_s30 }
0x16ef   :  { %6086 = vrot.lane.b32.xlu1 %v17745_v60, %s17178_s30 }
0x16f1   :  { %6084 = vrot.lane.b32.xlu0 %v20902_v32, %s17178_s30 }
0x16f3   :  { %6129 = vrot.lane.b32.xlu1 %v17740_v30, %s17179_s16 }
0x16f5   :  { %6127 = vrot.lane.b32.xlu0 %v17734_v16, %s17179_s16 }
0x16f7   :  { %6133 = vrot.lane.b32.xlu1 %v17745_v60, %s17179_s16 }
0x16f9   :  { %6131 = vrot.lane.b32.xlu0 %v20902_v32, %s17179_s16 }
0x16fd   :  { %6174 = vrot.lane.b32.xlu0 %v17734_v16, %s17173_s25 }
0x1701   :  { %6178 = vrot.lane.b32.xlu0 %v20902_v32, %s17173_s25 }
0x1705   :  { %6221 = vrot.lane.b32.xlu0 %v17734_v16, %s17180_s17 }
0x1709   :  { %6225 = vrot.lane.b32.xlu0 %v20902_v32, %s17180_s17 }
0x170d   :  { %6268 = vrot.lane.b32.xlu0 %v17734_v16, %s20848_s18 }
0x1711   :  { %6272 = vrot.lane.b32.xlu0 %v20902_v32, %s20848_s18 }
0x1715   :  { %6315 = vrot.lane.b32.xlu0 %v17734_v16, %s20846_s20 }
0x1719   :  { %6319 = vrot.lane.b32.xlu0 %v20902_v32, %s20846_s20 }
0x171d   :  { %6362 = vrot.lane.b32.xlu0 %v17734_v16, %s20844_s21 }
0x1721   :  { %6366 = vrot.lane.b32.xlu0 %v20902_v32, %s20844_s21 }
0x1753   :  { %v5861_v61 = vpop.permute.xlu0 %5860 }
0x1754   :  { %v5863_v54 = vsub.f32 %v18024_v36, %v5861_v61  ;;  %v15516_v61 = vadd.f32 -1.0, %v17138_v52 }
0x1756   :  { %5875 = vperm.xlu1 %17026, %v5863_v54   ;;  %v18347_v54 = vmul.f32 1e+30, %v15514_v38  ;;  %v18358_v42 = vmul.f32 1e+30, %v15516_v61 }
0x1757   :  { %v6034_v36 = vpop.permute.xlu0 %6033 }
0x1758   :  { %20905 = vst [vmem:[#allocation46_spill] sm:$0xff] %v18358_v42  ;;  %v6059_v29 = vrot.slane %v18347_v54, %v20906_v20  ;;  %v6063_v25 = vrot.slane %v18347_v54, %v20909_v3  ;;  %v20915_v63 = vrot.slane %v18347_v54, %v20910_v7 }
0x175a   :  { %6176 = vrot.lane.b32.xlu1 %v17740_v30, %s17173_s25 }
0x175b   :  { %17027 = vset.pattern.permute.xlu1 %v20903_v51  ;;  %v6038_v41 = vpop.permute.xlu0 %6037 }
0x175e   :  { %6180 = vrot.lane.b32.xlu1 %v17745_v60, %s17173_s25  ;;  %v5867_v12 = vpop.permute.xlu1 %5866 }
0x175f   :  { %v18326_v15 = vpop.permute.xlu0 %6080  ;;  %v5869_v11 = vmul.f32 %v5867_v12, %v18237_v53  ;;  %v18431_v53 = vld [vmem:[%s20740_s10 + $0x90] sm:$0xff] }
0x1762   :  { %6223 = vrot.lane.b32.xlu1 %v17740_v30, %s17180_s17  ;;  %v6036_v0 = vpop.permute.xlu1 %6035 }
0x1763   :  { %v18328_v9 = vpop.permute.xlu0 %6084  ;;  %v6043_v39 = vsel %vm329_vm1, %v6034_v36, %v6036_v0  ;;  %v6042_v38 = vsel %vm329_vm1, %v6036_v0, %v6038_v41 }
0x1764   :  { %v6046_v0 = vmul.f32 %v6043_v39, %v17432_v40  ;;  %v6047_v61 = vmul.f32 %v6042_v38, %v17439_v45  ;;  %v18409_v39 = vld [vmem:[%s20740_s10 + $0x88] sm:$0xff]  ;;  %v18421_v38 = vld [vmem:[%s20740_s10] sm:$0xff]  ;;  %v5872_v40 = vmul.f32 %v5867_v12, %v18249_v14 }
0x1765   :  { %v18426_v45 = vld [vmem:[%s20740_s10 + $0x8] sm:$0xff] }
0x1766   :  { %6227 = vrot.lane.b32.xlu1 %v17745_v60, %s17180_s17  ;;  %v6040_v8 = vpop.permute.xlu1 %6039 }
0x1767   :  { %v18330_v24 = vpop.permute.xlu0 %6127  ;;  %v6041_v6 = vsel %vm329_vm1, %v6038_v41, %v6040_v8  ;;  %v6044_v18 = vsel %vm329_vm1, %v6040_v8, %v6034_v36  ;;  %v5871_v41 = vmul.f32 %v5867_v12, %v18243_v43  ;;  %v18434_v36 = vadd.f32 %v6059_v29, %v6046_v0  ;;  %v18453_v29 = vld [vmem:[%s20740_s10 + $0x188] sm:$0xff]  ;;  %v18466_v0 = vld [vmem:[%s20740_s10 + $0x10] sm:$0xff] }
0x1768   :  { %v5870_v8 = vmul.f32 %v5867_v12, %v18241_v1  ;;  %v18455_v43 = vadd.f32 %v6063_v25, %v6047_v61  ;;  %v6045_v25 = vmul.f32 %v6044_v18, %v17443_v47  ;;  %v6048_v61 = vmul.f32 %v6041_v6, %v17446_v48  ;;  %v18482_v12 = vld [vmem:[%s20740_s10 + $0x100] sm:$0xff]  ;;  %v17141_v18 = vld [vmem:[%s20738_s8 + $0x18] sm:$0xf]  ;;  %v18533_v47 = vld [vmem:[%s20740_s10 + $0x190] sm:$0xff] }
0x1769   :  { %v15519_v6 = vadd.f32 -1.0, %v17141_v18  ;;  %v18508_v18 = vld [vmem:[%s20740_s10 + $0xa8] sm:$0xff] }
0x176a   :  { %6270 = vrot.lane.b32.xlu1 %v17740_v30, %s20848_s18  ;;  %v18334_v2 = vpop.permute.xlu1 %6082  ;;  %v18543_v50 = vadd.f32 %v20915_v63, %v6045_v25 }
0x176b   :  { %v18332_v26 = vpop.permute.xlu0 %6131  ;;  %v6089_v56 = vsel %vm660_vm2, %v18334_v2, %v18328_v9  ;;  %v6090_v48 = vsel %vm660_vm2, %v18326_v15, %v18334_v2  ;;  %v20916_v2 = vrot.slane %v18347_v54, %v20911_v37  ;;  %v18564_v54 = vld [vmem:[%s20740_s10 + $0x28] sm:$0xff] }
0x176d   :  { %v18548_v62 = vadd.f32 %v20916_v2, %v6048_v61  ;;  %v18569_v61 = vld [vmem:[%s20740_s10 + $0x110] sm:$0xff] }
0x176e   :  { %6274 = vrot.lane.b32.xlu1 %v17745_v60, %s20848_s18  ;;  %v18349_v51 = vpop.permute.xlu1 %6086 }
0x176f   :  { %v18342_v23 = vpop.permute.xlu0 %6174 }
0x1770   :  { %20904 = vst [vmem:[#allocation41_spill] sm:$0xff] %v18342_v23 }
0x1772   :  { %6317 = vrot.lane.b32.xlu1 %v17740_v30, %s20846_s20  ;;  %v18384_v17 = vpop.permute.xlu1 %6129 }
0x1773   :  { %v18364_v52 = vpop.permute.xlu0 %6178 }
0x1774   :  { %20907 = vst [vmem:[#allocation5_spill] sm:$0xff] %v18364_v52  ;;  %v18559_v52 = vld [vmem:[%s20740_s10 + $0x20] sm:$0xff] }
0x1776   :  { %6321 = vrot.lane.b32.xlu1 %v17745_v60, %s20846_s20  ;;  %v18475_v1 = vpop.permute.xlu1 %6133 }
0x1777   :  { %v18436_v58 = vpop.permute.xlu0 %6221 }
0x1778   :  { %20913 = vst [vmem:[#allocation6_spill] sm:$0xff] %v18436_v58  ;;  %v18552_v58 = vmul.f32 1e+30, %v15519_v6  ;;  %v18574_v6 = vld [vmem:[%s20740_s10 + $0x118] sm:$0xff] }
0x177a   :  { %6364 = vrot.lane.b32.xlu1 %v17740_v30, %s20844_s21 }
0x177b   :  { %v18550_v14 = vpop.permute.xlu0 %6225 }
0x177c   :  { %20917 = vst [vmem:[#allocation48_spill] sm:$0xff] %v18550_v14 }
0x177e   :  { %6368 = vrot.lane.b32.xlu1 %v17745_v60, %s20844_s21 }
0x17d5   :  { %v5876_v49 = vpop.permute.xlu1 %5875 }
0x17d6   :  { %v5879_v63 = vadd.f32 %v5876_v49, %v5870_v8  ;;  %v5881_v25 = vadd.f32 %v5876_v49, %v5872_v40  ;;  %v5878_v23 = vadd.f32 %v5876_v49, %v5869_v11  ;;  %v5880_v42 = vadd.f32 %v5876_v49, %v5871_v41  ;;  %v18627_v11 = vld [vmem:[%s20740_s10 + $0x30] sm:$0xff] }
0x17d7   :  { %v6093_v8 = vmul.f32 %v6090_v48, %v17465_v59  ;;  %v6094_v40 = vmul.f32 %v6089_v56, %v17486_v10  ;;  %v6091_v49 = vsel %vm660_vm2, %v18349_v51, %v18326_v15  ;;  %v6088_v56 = vsel %vm660_vm2, %v18328_v9, %v18349_v51  ;;  %v18612_v51 = vld [vmem:[%s20740_s10 + $0x1a0] sm:$0xff]  ;;  %v18632_v9 = vld [vmem:[%s20740_s10 + $0x38] sm:$0xff]  ;;  %v18640_v10 = vpop.permute.xlu0 %6268 }
0x17d8   :  { %v5883_v41 = vmax.f32 %v5879_v63, 0.0  ;;  %v5885_v2 = vmax.f32 %v5881_v25, 0.0  ;;  %v5882_v55 = vmax.f32 %v5878_v23, 0.0  ;;  %v5884_v14 = vmax.f32 %v5880_v42, 0.0  ;;  %v18602_v23 = vld [vmem:[%s20740_s10 + $0xb0] sm:$0xff]  ;;  %v18607_v25 = vld [vmem:[%s20740_s10 + $0xb8] sm:$0xff] }
0x17d9   :  { %v18593_v15 = vpop.permute.xlu1 %6176  ;;  %v6092_v63 = vmul.f32 %v6091_v49, %v17474_v4  ;;  %v18622_v42 = vld [vmem:[%s20740_s10 + $0x1a8] sm:$0xff]  ;;  %v20919_v49 = vrot.slane %v18354_v44, %v20906_v20  ;;  %v6095_v59 = vmul.f32 %v6088_v56, %v17477_v5  ;;  %v18713_v5 = vld [vmem:[%s20740_s10 + $0x1b8] sm:$0xff] }
0x17da   :  { %20918 = vst [vmem:[#allocation49_spill] sm:$0xff] %v18593_v15  ;;  %5891 = vmatprep.subr.mxu0 %v5883_v41  ;;  %5962 = vmatprep.subr.mxu1 %v5885_v2  ;;  %v20920_v2 = vrot.slane %v18354_v44, %v20909_v3  ;;  %v6136_v15 = vsel %vm851_vm3, %v18384_v17, %v18332_v26 }
0x17db   :  { %v6120_v41 = vadd.f32 %v20919_v49, %v6093_v8  ;;  %5892 = vmatpush1.msra.mxu0 %v5882_v55  ;;  %5963 = vmatpush1.msra.mxu1 %v5884_v14  ;;  %v6137_v8 = vsel %vm851_vm3, %v18330_v24, %v18384_v17  ;;  %v18658_v55 = vld [vmem:[%s20740_s10 + $0x120] sm:$0xff]  ;;  %v18663_v14 = vld [vmem:[%s20740_s10 + $0x128] sm:$0xff]  ;;  %v20922_v49 = vpack.c.bf16 %v18453_v29, %v18448_v31  ;;  %v18695_v31 = vld [vmem:[%s20740_s10 + $0x1b0] sm:$0xff] }
0x17dc   :  { %v6121_v48 = vadd.f32 %v20920_v2, %v6094_v40  ;;  %15512 = vmatmul.mubr.msk.f32.vlgmr.msra.gmra.mrb[16].mxu0 %vm120_vm0, %v15511_v21  ;;  %15513 = vmatmul.mubr.msk.f32.vlgmr.msra.gmra.mrb[16].mxu1 %vm120_vm0, %v15511_v21  ;;  %v17142_v40 = vld [vmem:[%s20738_s8 + $0x1c] sm:$0xf]  ;;  %v20921_v21 = vpack.c.bf16 %v18409_v39, %v18404_v34  ;;  %v16530_v2 = vpack.c.bf16 %v18607_v25, %v18602_v23  ;;  %v18690_v34 = vld [vmem:[%s20740_s10 + $0xc8] sm:$0xff]  ;;  %v18953_v25 = vld [vmem:[%s20740_s10 + $0xf0] sm:$0xff] }
0x17dd   :  { %v15520_v56 = vadd.f32 -1.0, %v17142_v40  ;;  %v18668_v17 = vpop.permute.xlu1 %6180  ;;  %16551 = vmatprep.subr.bf16.mxu1 %v20922_v49  ;;  %v16558_v4 = vpack.c.bf16 %v18622_v42, %v18612_v51  ;;  %v18685_v40 = vld [vmem:[%s20740_s10 + $0xc0] sm:$0xff]  ;;  %v20923_v39 = vrot.slane %v18354_v44, %v20910_v7  ;;  %v20924_v42 = vpack.c.bf16 %v18426_v45, %v18421_v38 }
0x17de   :  { %16519 = vmatprep.subr.bf16.mxu0 %v20921_v21  ;;  %v20925_v51 = vpack.c.bf16 %v18487_v57, %v18482_v12  ;;  %v18718_v45 = vld [vmem:[%s20740_s10 + $0x40] sm:$0xff]  ;;  %v18723_v57 = vld [vmem:[%s20740_s10 + $0x48] sm:$0xff]  ;;  %v6140_v38 = vmul.f32 %v6137_v8, %v17503_v19  ;;  %v6141_v12 = vmul.f32 %v6136_v15, %v17523_v33  ;;  %v18741_v8 = vld [vmem:[%s20740_s10 + $0x130] sm:$0xff]  ;;  %v18766_v21 = vpop.permute.xlu0 %6272 }
0x17df   :  { %v6119_v29 = vadd.f32 %v20923_v39, %v6092_v63  ;;  %16521 = vmatpush3.bf16.msra.mxu0 %v20924_v42  ;;  %v6135_v63 = vsel %vm851_vm3, %v18332_v26, %v18475_v1  ;;  %v6138_v39 = vsel %vm851_vm3, %v18475_v1, %v18330_v24  ;;  %v20926_v42 = vpack.c.bf16 %v18443_v22, %v18431_v53  ;;  %v18746_v15 = vld [vmem:[%s20740_s10 + $0x138] sm:$0xff]  ;;  %v6469_v23 = vld [vmem:[%s20740_s10 + $0x1e0] sm:$0xff]  ;;  %v20956_v33 = vld [vmem:[#allocation26_spill] sm:$0xff] }
0x17e0   :  { %16553 = vmatpush3.bf16.msra.mxu1 %v20925_v51  ;;  %v20927_v26 = vmax.f32 %v17740_v30, %v18434_v36  ;;  %v20928_v24 = vmax.f32 %v20902_v32, %v18455_v43  ;;  %v20929_v53 = vrot.slane %v18354_v44, %v20911_v37  ;;  %v18764_v49 = vmul.f32 1e+30, %v15520_v56  ;;  %v18791_v43 = vld [vmem:[%s20740_s10 + $0x1c0] sm:$0xff]  ;;  %v18806_v56 = vld [vmem:[%s20740_s10 + $0x1c8] sm:$0xff] }
0x17e1   :  { %16523 = vmatprep.subr.bf16.mxu0 %v20926_v42  ;;  %v20930_v42 = vpack.c.bf16 %v18538_v13, %v18533_v47  ;;  %v18768_v30 = vpop.permute.xlu1 %6223  ;;  %v16560_v36 = vpack.c.bf16 %v18663_v14, %v18658_v55  ;;  %v16534_v32 = vpack.c.bf16 %v18690_v34, %v18685_v40  ;;  %v16562_v44 = vpack.c.bf16 %v18713_v5, %v18695_v31  ;;  %v18781_v47 = vld [vmem:[%s20740_s10 + $0xd0] sm:$0xff]  ;;  %v18786_v13 = vld [vmem:[%s20740_s10 + $0xd8] sm:$0xff]  ;;  %v20959_v19 = vld [vmem:[#allocation25_spill] sm:$0xff] }
0x17e2   :  { %v18751_v51 = vmax.f32 %v20927_v26, %v6120_v41  ;;  %v18756_v22 = vmax.f32 %v20928_v24, %v6121_v48  ;;  %v6122_v1 = vadd.f32 %v20929_v53, %v6095_v59  ;;  %v6139_v5 = vmul.f32 %v6138_v39, %v17512_v27  ;;  %v18811_v31 = vld [vmem:[%s20740_s10 + $0x50] sm:$0xff]  ;;  %v20937_v26 = vld [vmem:[#allocation9_spill] sm:$0xff]  ;;  %v19024_v40 = vld [vmem:[%s20740_s10 + $0x1f8] sm:$0xff] }
0x17e3   :  { %16555 = vmatprep.subr.bf16.mxu1 %v20930_v42  ;;  %v6142_v48 = vmul.f32 %v6135_v63, %v17515_v28  ;;  %v20931_v41 = vpack.c.bf16 %v18471_v46, %v18466_v0  ;;  %v20932_v55 = vpack.c.bf16 %v18574_v6, %v18569_v61  ;;  %v16564_v14 = vpack.c.bf16 %v18746_v15, %v18741_v8  ;;  %v18816_v46 = vld [vmem:[%s20740_s10 + $0x58] sm:$0xff]  ;;  %v20934_v6 = vld [vmem:[#allocation46_spill] sm:$0xff] }
0x17e4   :  { %v20933_v0 = vmax.f32 %v17734_v16, %v18543_v50  ;;  %v20935_v63 = vrot.slane %v20934_v6, %v20906_v20  ;;  %v20936_v8 = vrot.slane %v20934_v6, %v20909_v3  ;;  %v20938_v24 = vpack.c.bf16 %v18508_v18, %v20937_v26  ;;  %v18839_v16 = vld [vmem:[%s20740_s10 + $0x140] sm:$0xff]  ;;  %v18844_v50 = vld [vmem:[%s20740_s10 + $0x148] sm:$0xff]  ;;  %v18888_v26 = vld [vmem:[%s20740_s10 + $0x1d8] sm:$0xff] }
0x17e5   :  { %16525 = vmatpush3.bf16.msra.mxu0 %v20931_v41  ;;  %16557 = vmatpush3.bf16.msra.mxu1 %v20932_v55  ;;  %v18863_v55 = vld [vmem:[%s20740_s10 + $0xe0] sm:$0xff]  ;;  %v20943_v53 = vpack.c.bf16 %v18564_v54, %v18559_v52  ;;  %v16568_v52 = vpack.c.bf16 %v18844_v50, %v18839_v16  ;;  %v20951_v34 = vld [vmem:[#allocation24_spill] sm:$0xff]  ;;  %v20957_v27 = vpack.c.bf16 %v18723_v57, %v18718_v45 }
0x17e6   :  { %v18821_v61 = vmax.f32 %v20933_v0, %v6119_v29  ;;  %v18826_v39 = vadd.f32 %v20935_v63, %v6140_v38  ;;  %v18831_v15 = vadd.f32 %v20936_v8, %v6141_v12  ;;  %16527 = vmatprep.subr.bf16.mxu0 %v20938_v24  ;;  %v17143_v29 = vld [vmem:[%s20738_s8 + $0x20] sm:$0xf]  ;;  %v20939_v12 = vmax.f32 %v17745_v60, %v18548_v62  ;;  %v18868_v62 = vld [vmem:[%s20740_s10 + $0xe8] sm:$0xff]  ;;  %v18875_v60 = vpop.permute.xlu1 %6227  ;;  %v20953_v41 = vld [vmem:[#allocation48_spill] sm:$0xff]  ;;  %s17191_s8 = smov 120  }
0x17e7   :  { %v15521_v38 = vadd.f32 -1.0, %v17143_v29  ;;  %16559 = vmatprep.subr.bf16.mxu1 %v16558_v4  ;;  %v18873_v4 = vld [vmem:[%s20740_s10 + $0x1d0] sm:$0xff]  ;;  %v16566_v63 = vpack.c.bf16 %v18806_v56, %v18791_v43  ;;  %v18893_v24 = vld [vmem:[%s20740_s10 + $0x60] sm:$0xff]  ;;  %v18898_v29 = vld [vmem:[%s20740_s10 + $0x68] sm:$0xff]  ;;  %v20940_v43 = vrot.slane %v20934_v6, %v20910_v7  ;;  %v6230_v59 = vsel %vm1233_vm5, %v18768_v30, %v20953_v41 }
0x17e8   :  { %v18852_v18 = vmax.f32 %v20939_v12, %v6122_v1  ;;  %v20941_v12 = vrot.slane %v20934_v6, %v20911_v37  ;;  %v20942_v1 = vld [vmem:[#allocation41_spill] sm:$0xff]  ;;  %v16570_v6 = vpack.c.bf16 %v18888_v26, %v18873_v4 }
0x17e9   :  { %v18903_v56 = vadd.f32 %v20940_v43, %v6139_v5  ;;  %v6185_v42 = vsel %vm1042_vm4, %v18668_v17, %v20942_v1  ;;  %16529 = vmatpush3.bf16.msra.mxu0 %v20943_v53  ;;  %16561 = vmatpush3.bf16.msra.mxu1 %v16560_v36  ;;  %v18920_v5 = vld [vmem:[%s20740_s10 + $0x150] sm:$0xff]  ;;  %v18938_v54 = vmul.f32 1e+30, %v15521_v38  ;;  %v20945_v36 = vld [vmem:[#allocation49_spill] sm:$0xff]  ;;  %v20947_v38 = vld [vmem:[#allocation22_spill] sm:$0xff] }
0x17ea   :  { %v18908_v0 = vadd.f32 %v20941_v12, %v6142_v48  ;;  %v18925_v48 = vld [vmem:[%s20740_s10 + $0x158] sm:$0xff]  ;;  %v18931_v12 = vpop.permute.xlu0 %6315  ;;  %16531 = vmatprep.subr.bf16.mxu0 %v16530_v2  ;;  %v6184_v53 = vsel %vm1042_vm4, %v20942_v1, %v20945_v36  ;;  %16563 = vmatprep.subr.bf16.mxu1 %v16562_v44  ;;  %v20946_v44 = vld [vmem:[#allocation5_spill] sm:$0xff]  ;;  %v6186_v4 = vmul.f32 %v6185_v42, %v20947_v38  ;;  %v6271_v1 = vpop.permute.xlu1 %6270  ;;  %v6470_v43 = vld [vmem:[%s20740_s10 + $0x1e8] sm:$0xff] }
0x17eb   :  { %20944 = vst [vmem:[#allocation46_spill] sm:$0xff] %v18938_v54  ;;  %v18958_v2 = vld [vmem:[%s20740_s10 + $0xf8] sm:$0xff]  ;;  %v6183_v16 = vsel %vm1042_vm4, %v20945_v36, %v20946_v44  ;;  %v6182_v50 = vsel %vm1042_vm4, %v20946_v44, %v18668_v17  ;;  %v16572_v26 = vpack.c.bf16 %v18925_v48, %v18920_v5  ;;  %v6170_v36 = vmax.f32 %v18821_v61, %v18903_v56  ;;  %v20948_v42 = vld [vmem:[#allocation6_spill] sm:$0xff]  ;;  %v18991_v48 = vld [vmem:[%s20740_s10 + $0x70] sm:$0xff] }
0x17ec   :  { %v6231_v44 = vsel %vm1233_vm5, %v20948_v42, %v18768_v30  ;;  %v20949_v5 = vpack.c.bf16 %v18632_v9, %v18627_v11  ;;  %v18996_v61 = vld [vmem:[%s20740_s10 + $0x78] sm:$0xff]  ;;  %v19001_v56 = vld [vmem:[%s20740_s10 + $0x160] sm:$0xff]  ;;  %v20952_v11 = vld [vmem:[#allocation23_spill] sm:$0xff]  ;;  %v6278_v30 = vsel %vm1424_vm6, %v18640_v10, %v6271_v1  ;;  %v20960_v54 = vpack.c.bf16 %v18786_v13, %v18781_v47 }
0x17ed   :  { %16565 = vmatpush3.bf16.msra.mxu1 %v16564_v14  ;;  %v20950_v17 = vld [vmem:[#allocation21_spill] sm:$0xff]  ;;  %v6454_v14 = vld [vmem:[%s20740_s10 + $0x168] sm:$0xff]  ;;  %v6189_v9 = vmul.f32 %v6182_v50, %v20952_v11  ;;  %v19035_v38 = vld [vmem:[%s20740_s10 + $0x170] sm:$0xff]  ;;  %v6233_v28 = vmul.f32 %v6231_v44, %v20956_v33 }
0x17ee   :  { %16533 = vmatpush3.bf16.msra.mxu0 %v20949_v5  ;;  %v6187_v8 = vmul.f32 %v6184_v53, %v20950_v17  ;;  %v19019_v53 = vld [vmem:[%s20740_s10 + $0x1f0] sm:$0xff]  ;;  %16567 = vmatprep.subr.bf16.mxu1 %v16566_v63  ;;  %v16574_v5 = vpack.c.bf16 %v6470_v43, %v6469_v23  ;;  %v19040_v17 = vld [vmem:[%s20740_s10 + $0x178] sm:$0xff]  ;;  %v6275_v63 = vpop.permute.xlu1 %6274  ;;  %v6277_v23 = vsel %vm1424_vm6, %v6271_v1, %v18766_v21 }
0x17ef   :  { %16535 = vmatprep.subr.bf16.mxu0 %v16534_v32  ;;  %v6188_v32 = vmul.f32 %v6183_v16, %v20951_v34  ;;  %v6320_v16 = vpop.permute.xlu0 %6319  ;;  %v20954_v34 = vld [vmem:[#allocation47_spill] sm:$0xff]  ;;  %v16578_v44 = vpack.c.bf16 %v19024_v40, %v19019_v53  ;;  %v6234_v43 = vmul.f32 %v6230_v59, %v20959_v19  ;;  %v6229_v59 = vsel %vm1233_vm5, %v20953_v41, %v18875_v60  ;;  %v20969_v40 = vld [vmem:[#allocation28_spill] sm:$0xff] }
0x17f0   :  { %v20955_v50 = vrot.slane %v20954_v34, %v20910_v7  ;;  %v20961_v45 = vrot.slane %v20954_v34, %v20909_v3  ;;  %v6276_v53 = vsel %vm1424_vm6, %v18766_v21, %v6275_v63  ;;  %v6279_v21 = vsel %vm1424_vm6, %v6275_v63, %v18640_v10 }
0x17f1   :  { %16569 = vmatpush3.bf16.msra.mxu1 %v16568_v52  ;;  %v20962_v52 = vrot.slane %v20954_v34, %v20911_v37 }
0x17f2   :  { %v6213_v11 = vadd.f32 %v20955_v50, %v6186_v4  ;;  %16537 = vmatpush3.bf16.msra.mxu0 %v20957_v27  ;;  %v16576_v4 = vpack.c.bf16 %v6454_v14, %v19001_v56  ;;  %v20958_v50 = vrot.slane %v20954_v34, %v20906_v20  ;;  %16571 = vmatprep.subr.bf16.mxu1 %v16570_v6  ;;  %v20964_v6 = vld [vmem:[#allocation7_spill] sm:$0xff]  ;;  %v20966_v56 = vld [vmem:[#allocation29_spill] sm:$0xff] }
0x17f3   :  { %16539 = vmatprep.subr.bf16.mxu0 %v20960_v54  ;;  %v16580_v27 = vpack.c.bf16 %v19040_v17, %v19035_v38  ;;  %v6215_v57 = vadd.f32 %v20961_v45, %v6188_v32  ;;  %v6216_v1 = vadd.f32 %v20962_v52, %v6189_v9  ;;  %v20965_v54 = vrot.slane %v20964_v6, %v20910_v7  ;;  %v6318_v9 = vpop.permute.xlu1 %6317 }
0x17f4   :  { %v6214_v33 = vadd.f32 %v20958_v50, %v6187_v8  ;;  %v20963_v8 = vld [vmem:[#allocation30_spill] sm:$0xff]  ;;  %v6217_v13 = vmax.f32 %v6170_v36, %v6213_v11  ;;  %v6232_v17 = vsel %vm1233_vm5, %v18875_v60, %v20948_v42  ;;  %v6281_v14 = vmul.f32 %v6277_v23, %v20966_v56  ;;  %v6363_v60 = vpop.permute.xlu0 %6362 }
0x17f5   :  { %v6280_v47 = vmul.f32 %v6278_v30, %v20963_v8  ;;  %v6260_v38 = vadd.f32 %v20965_v54, %v6233_v28  ;;  %v6324_v41 = vsel %vm1615_vm7, %v6318_v9, %v6320_v16  ;;  %v6325_v36 = vsel %vm1615_vm7, %v18931_v12, %v6318_v9  ;;  %16573 = vmatpush3.bf16.msra.mxu1 %v16572_v26  ;;  %v20971_v30 = vld [vmem:[#allocation27_spill] sm:$0xff]  ;;  %v20973_v23 = vld [vmem:[#allocation34_spill] sm:$0xff] }
0x17f6   :  { %v20967_v28 = vpack.c.bf16 %v18816_v46, %v18811_v31  ;;  %v20968_v42 = vrot.slane %v20964_v6, %v20906_v20  ;;  %v6235_v34 = vmul.f32 %v6229_v59, %v20969_v40  ;;  %v20970_v32 = vpack.c.bf16 %v18868_v62, %v18863_v55  ;;  %16575 = vmatprep.subr.bf16.mxu1 %v16574_v5  ;;  %v20977_v5 = vld [vmem:[#allocation32_spill] sm:$0xff] }
0x17f7   :  { %v6236_v31 = vmul.f32 %v6232_v17, %v20971_v30  ;;  %v20972_v46 = vrot.slane %v18552_v58, %v20910_v7  ;;  %v6327_v50 = vmul.f32 %v6325_v36, %v20973_v23  ;;  %v20975_v52 = vmax.f32 %v18751_v51, %v18826_v39  ;;  %v6322_v54 = vpop.permute.xlu1 %6321  ;;  %v20978_v17 = vld [vmem:[#allocation31_spill] sm:$0xff] }
0x17f8   :  { %16541 = vmatpush3.bf16.msra.mxu0 %v20967_v28  ;;  %v6261_v11 = vadd.f32 %v20968_v42, %v6234_v43  ;;  %v20974_v43 = vld [vmem:[#allocation33_spill] sm:$0xff]  ;;  %v6264_v10 = vmax.f32 %v6217_v13, %v6260_v38  ;;  %v20976_v55 = vrot.slane %v18552_v58, %v20906_v20  ;;  %v6282_v63 = vmul.f32 %v6276_v53, %v20977_v5  ;;  %v20989_v28 = vld [vmem:[#allocation35_spill] sm:$0xff] }
0x17f9   :  { %16543 = vmatprep.subr.bf16.mxu0 %v20970_v32  ;;  %v6307_v26 = vadd.f32 %v20972_v46, %v6280_v47  ;;  %v6328_v45 = vmul.f32 %v6324_v41, %v20974_v43  ;;  %v6218_v59 = vmax.f32 %v20975_v52, %v6214_v33  ;;  %v6283_v9 = vmul.f32 %v6279_v21, %v20978_v17  ;;  %v20992_v46 = vld [vmem:[#allocation38_spill] sm:$0xff] }
0x17fa   :  { %v6308_v62 = vadd.f32 %v20976_v55, %v6281_v14  ;;  %v6323_v47 = vsel %vm1615_vm7, %v6320_v16, %v6322_v54  ;;  %v6326_v41 = vsel %vm1615_vm7, %v6322_v54, %v18931_v12  ;;  %v20979_v33 = vpack.c.bf16 %v18898_v29, %v18893_v24  ;;  %16577 = vmatpush3.bf16.msra.mxu1 %v16576_v4  ;;  %v20994_v52 = vld [vmem:[#allocation46_spill] sm:$0xff] }
0x17fb   :  { %v20980_v51 = vmax.f32 %v18756_v22, %v18831_v15  ;;  %v20981_v13 = vmax.f32 %v18852_v18, %v18908_v0  ;;  %v6265_v14 = vmax.f32 %v6218_v59, %v6261_v11  ;;  %v20982_v16 = vrot.slane %v20964_v6, %v20909_v3  ;;  %16579 = vmatprep.subr.bf16.mxu1 %v16578_v44  ;;  %v6365_v42 = vpop.permute.xlu1 %6364 }
0x17fc   :  { %16545 = vmatpush3.bf16.msra.mxu0 %v20979_v33  ;;  %v20983_v12 = vpack.c.bf16 %v18958_v2, %v18953_v25  ;;  %v20984_v24 = vrot.slane %v20964_v6, %v20911_v37  ;;  %v6311_v4 = vmax.f32 %v6264_v10, %v6307_v26  ;;  %v20985_v22 = vrot.slane %v18764_v49, %v20910_v7  ;;  %v20988_v2 = vld [vmem:[#allocation36_spill] sm:$0xff] }
0x17fd   :  { %v6219_v39 = vmax.f32 %v20980_v51, %v6215_v57  ;;  %v6220_v38 = vmax.f32 %v20981_v13, %v6216_v1  ;;  %v6262_v53 = vadd.f32 %v20982_v16, %v6235_v34  ;;  %v20986_v18 = vrot.slane %v18764_v49, %v20906_v20  ;;  %v6367_v57 = vpop.permute.xlu0 %6366  ;;  %v21000_v16 = vld [vmem:[#allocation40_spill] sm:$0xff] }
0x17fe   :  { %16547 = vmatprep.subr.bf16.mxu0 %v20983_v12  ;;  %v6263_v29 = vadd.f32 %v20984_v24, %v6236_v31  ;;  %v6354_v15 = vadd.f32 %v20985_v22, %v6327_v50  ;;  %v20987_v1 = vrot.slane %v18552_v58, %v20909_v3  ;;  %v6329_v36 = vmul.f32 %v6323_v47, %v20988_v2  ;;  %v20993_v50 = vld [vmem:[#allocation37_spill] sm:$0xff] }
0x17ff   :  { %v6355_v0 = vadd.f32 %v20986_v18, %v6328_v45  ;;  %v6330_v6 = vmul.f32 %v6326_v41, %v20989_v28  ;;  %v6312_v11 = vmax.f32 %v6265_v14, %v6308_v62  ;;  %v20990_v34 = vrot.slane %v18552_v58, %v20911_v37  ;;  %16581 = vmatpush3.bf16.msra.mxu1 %v16580_v27  ;;  %v6369_v33 = vpop.permute.xlu1 %6368 }
0x1800   :  { %v6309_v25 = vadd.f32 %v20987_v1, %v6282_v63  ;;  %v6371_v32 = vsel %vm1806_vm8, %v6365_v42, %v6367_v57  ;;  %v6372_v44 = vsel %vm1806_vm8, %v6363_v60, %v6365_v42  ;;  %v20991_v31 = vpack.c.bf16 %v18996_v61, %v18991_v48 }
0x1801   :  { %v6310_v21 = vadd.f32 %v20990_v34, %v6283_v9  ;;  %v6374_v26 = vmul.f32 %v6372_v44, %v20992_v46  ;;  %v6375_v45 = vmul.f32 %v6371_v32, %v20993_v50  ;;  %v6392_v59 = vrot.slane %v20994_v52, %v20909_v3 }
0x1802   :  { %16549 = vmatpush3.bf16.msra.mxu0 %v20991_v31  ;;  %v6396_v58 = vrot.slane %v20994_v52, %v20911_v37  ;;  %v20995_v10 = vmov 0.0   ;;  %v6266_v55 = vmax.f32 %v6219_v39, %v6262_v53  ;;  %v6267_v62 = vmax.f32 %v6220_v38, %v6263_v29 }
0x1803   :  { %16021 = vmatprep.subr.mxu0 %v20995_v10  ;;  %v6358_v63 = vmax.f32 %v6311_v4, %v6354_v15  ;;  %v6359_v54 = vmax.f32 %v6312_v11, %v6355_v0  ;;  %16026 = vmatprep.subr.mxu1 %v20995_v10  ;;  %v20996_v48 = vrot.slane %v18764_v49, %v20909_v3 }
0x1804   :  { %v20997_v27 = vrot.slane %v18764_v49, %v20911_v37  ;;  %v20998_v47 = vrot.slane %v20994_v52, %v20910_v7  ;;  %v20999_v51 = vrot.slane %v20994_v52, %v20906_v20  ;;  %v6313_v13 = vmax.f32 %v6266_v55, %v6309_v25  ;;  %v21001_v49 = vld [vmem:[#allocation39_spill] sm:$0xff] }
0x1805   :  { %v6356_v61 = vadd.f32 %v20996_v48, %v6329_v36  ;;  %v6370_v38 = vsel %vm1806_vm8, %v6367_v57, %v6369_v33  ;;  %v6373_v3 = vsel %vm1806_vm8, %v6369_v33, %v6363_v60  ;;  %v6314_v14 = vmax.f32 %v6267_v62, %v6310_v21  ;;  %v19209_v62 = vld [vmem:[%s20731_s1 + $0x18] sm:$0xff] }
0x1806   :  { %v6357_v9 = vadd.f32 %v20997_v27, %v6330_v6  ;;  %v6401_v41 = vadd.f32 %v20998_v47, %v6374_v26  ;;  %v6402_v39 = vadd.f32 %v20999_v51, %v6375_v45  ;;  %v6376_v37 = vmul.f32 %v6370_v38, %v21000_v16  ;;  %v15523_v38 = vld [vmem:[%s20732_s2 + $0x18] sm:$0xff] }
0x1807   :  { %v6377_v53 = vmul.f32 %v6373_v3, %v21001_v49  ;;  %v6360_v29 = vmax.f32 %v6313_v13, %v6356_v61  ;;  %v21002_v61 = vmov 2   ;;  %v21003_v47 = vmov 5  }
0x1808   :  { %v6406_v12 = vmax.f32 %v6359_v54, %v6402_v39  ;;  %v6405_v24 = vmax.f32 %v6358_v63, %v6401_v41  ;;  %v6403_v4 = vadd.f32 %v6392_v59, %v6376_v37  ;;  %v6361_v22 = vmax.f32 %v6314_v14, %v6357_v9 }
0x1809   :  { %v6404_v20 = vadd.f32 %v6396_v58, %v6377_v53 }
0x180a   :  { %6537 = vmatprep.mubr.f32.mxu0 %v6406_v12  ;;  %v6407_v18 = vmax.f32 %v6360_v29, %v6403_v4 }
0x180b   :  { %6538 = vmatmul.mubr.f32.vlgmr.msra.gmra.mrb[18].mxu0 %v6405_v24  ;;  %v6408_v15 = vmax.f32 %v6361_v22, %v6404_v20 }
0x180c   :  { %16023 = vmatprep.mubr.msk.f32.mxu0 %vm17186_vm9, %v20995_v10 }
0x180d   :  { %6607 = vmatprep.mubr.f32.mxu1 %v6408_v15 }
0x180e   :  { %6608 = vmatmul.mubr.f32.vlgmr.msra.gmra.mrb[18].mxu1 %v6407_v18 }
0x180f   :  { %16028 = vmatprep.mubr.msk.f32.mxu1 %vm17186_vm9, %v20995_v10 }
0x18af   :  { %v19193_v0 = vpop.f32.mrb[16].mxu0  ;;  %v19195_v60 = vpop.f32.mrb[16].mxu1 }
0x18b0   :  { %v19197_v57 = vpop.f32.mrb[17].mxu0  ;;  %v19199_v1 = vpop.f32.mrb[17].mxu1 }
0x18de   :  { %v15771_v25 = vpop.f32.mrb[18].mxu0 }
0x18df   :  { %v15772_v36 = vpop.f32.mrb[19].mxu0 }
0x18e0   :  { %v15773_v6 = vadd.f32 %v15772_v36, %v15771_v25 }
0x18e1   :  { %v15806_v42 = vpop.f32.mrb[18].mxu1 }
0x18e2   :  { %v15807_v11 = vpop.f32.mrb[19].mxu1 }
0x18e3   :  { %v15808_v34 = vadd.f32 %v15807_v11, %v15806_v42 }
0x18e5   :  { %v19201_v21 = vadd.f32 %v15808_v34, %v15773_v6  ;;  %v21004_v6 = vmov 3   ;;  %v21005_v34 = vmov 4  }
0x18e7   :  { %6615 = vadd.xlane.f32.xlu0 %v19201_v21  ;;  %v6618_v32 = vmul.f32 %v19201_v21, %v19201_v21 }
0x18e9   :  { %6619 = vadd.xlane.f32.xlu1 %v6618_v32 }
0x1974   :  { %v6616_v44 = vpop.xlane.xlu0 %6615 }
0x1975   :  { %v6617_v31 = vmul.f32 0.0078125, %v6616_v44 }
0x1976   :  { %v6620_v26 = vpop.xlane.xlu1 %6619 }
0x1977   :  { %v6622_v45 = vmul.f32 %v6617_v31, %v6617_v31  ;;  %v6621_v52 = vmul.f32 0.0078125, %v6620_v26 }
0x1979   :  { %v6623_v59 = vsub.f32 %v6621_v52, %v6622_v45  ;;  %v19244_v52 = vld [vmem:[%s20739_s9] sm:$0x1] }
0x197b   :  { %v6624_v58 = vmax.f32 %v6623_v59, 0.0  ;;  %v19248_v59 = vrot.slane %v19244_v52, %v20910_v7 }
0x197d   :  { %v6625_v55 = vadd.f32 1e-05, %v6624_v58 }
0x197f   :  { %17080 = vrsqrt.f32 %v6625_v55 }
0x1989   :  { %v17081_v63 = vpop.eup %17080 }
0x198a   :  { %v6627_v54 = vmul.f32 %v17081_v63, %v19209_v62  ;;  %v15526_v63 = vld [vmem:[%s20733_s3 + $0xd8] sm:$0xff] }
0x198c   :  { %6636 = vperm.xlu1 %17027, %v6627_v54   ;;  %v6628_v48 = vmul.f32 %v6627_v54, %v6617_v31  ;;  %v19257_v54 = vld [vmem:[%s20739_s9 + $0x1] sm:$0x1] }
0x198e   :  { %6630 = vrot.lane.b32.xlu0 %v6628_v48, %s17173_s25  ;;  %v19266_v48 = vrot.slane %v19257_v54, %v20910_v7 }
0x1990   :  { %17028 = vset.pattern.permute.xlu1 %v21002_v61 }
0x1a00   :  { %v6631_v27 = vpop.permute.xlu0 %6630 }
0x1a01   :  { %v6633_v9 = vsub.f32 %v19209_v62, %v6631_v27 }
0x1a03   :  { %6642 = vperm.xlu0 %17022, %v6633_v9   ;;  %v15525_v9 = vld [vmem:[%s20733_s3 + $0xf8] sm:$0xff] }
0x1a07   :  { %17031 = vset.pattern.permute.xlu0 %v21003_v47 }
0x1a0b   :  { %v6637_v41 = vpop.permute.xlu1 %6636 }
0x1a0c   :  { %v6639_v33 = vmul.f32 %v6637_v41, %v19201_v21 }
0x1a82   :  { %v6643_v51 = vpop.permute.xlu0 %6642 }
0x1a83   :  { %v6645_v39 = vadd.f32 %v6643_v51, %v6639_v33  ;;  %v19275_v33 = vld [vmem:[%s20739_s9 + $0x2] sm:$0x1] }
0x1a84   :  { %v19283_v51 = vrot.slane %v19275_v33, %v20910_v7 }
0x1a85   :  { %v6646_v13 = vmax.f32 %v6645_v39, 0.0 }
0x1a87   :  { %16022 = vmatpush3.msra.mxu0 %v6646_v13  ;;  %v15529_v13 = vld [vmem:[%s20733_s3 + $0xe0] sm:$0xff] }
0x1a88   :  { %16024 = vmatmul.mubr.msk.f32.vlgmr.msra.gmra.mrb[20].mxu0 %vm120_vm0, %v15523_v38  ;;  %16071 = vmatprep.subr.mxu0 %v20995_v10 }
0x1a89   :  { %16073 = vmatprep.mubr.msk.f32.mxu0 %vm17186_vm9, %v20995_v10 }
0x1b5b   :  { %v6718_v3 = vpop.f32.mrb[20].mxu0 }
0x1b5c   :  { %v6725_v14 = vmul.f32 %v6718_v3, %v6718_v3  ;;  %6722 = vadd.xlane.f32.xlu1 %v6718_v3  ;;  %v16025_v37 = vpop.f32.mrb[21].mxu0 }
0x1b5e   :  { %6726 = vadd.xlane.f32.xlu0 %v6725_v14 }
0x1be9   :  { %v6723_v53 = vpop.xlane.xlu1 %6722 }
0x1bea   :  { %v6724_v12 = vmul.f32 0.0078125, %v6723_v53  ;;  %v15532_v53 = vld [vmem:[%s20733_s3 + $0xe8] sm:$0xff] }
0x1beb   :  { %v6727_v24 = vpop.xlane.xlu0 %6726 }
0x1bec   :  { %v6729_v29 = vmul.f32 %v6724_v12, %v6724_v12  ;;  %v6728_v4 = vmul.f32 0.0078125, %v6727_v24  ;;  %v19309_v24 = vld [vmem:[%s20739_s9 + $0x5] sm:$0x1] }
0x1bee   :  { %v6730_v22 = vsub.f32 %v6728_v4, %v6729_v29  ;;  %v19317_v29 = vrot.slane %v19309_v24, %v20910_v7 }
0x1bf0   :  { %v6731_v20 = vmax.f32 %v6730_v22, 0.0  ;;  %v15535_v22 = vld [vmem:[%s20733_s3 + $0xf0] sm:$0xff] }
0x1bf2   :  { %v6732_v15 = vadd.f32 1e-05, %v6731_v20 }
0x1bf4   :  { %17082 = vrsqrt.f32 %v6732_v15  ;;  %v19326_v15 = vld [vmem:[%s20739_s9 + $0x6] sm:$0x1] }
0x1bfe   :  { %v17083_v18 = vpop.eup %17082 }
0x1bff   :  { %v6734_v25 = vmul.f32 %v17083_v18, %v19209_v62  ;;  %v19334_v18 = vrot.slane %v19326_v15, %v20910_v7 }
0x1c01   :  { %6743 = vperm.xlu1 %17028, %v6734_v25   ;;  %v6735_v36 = vmul.f32 %v6734_v25, %v6724_v12 }
0x1c03   :  { %6737 = vrot.lane.b32.xlu0 %v6735_v36, %s17173_s25  ;;  %v15538_v36 = vld [vmem:[%s20733_s3 + $0x100] sm:$0xff] }
0x1c05   :  { %17029 = vset.pattern.permute.xlu1 %v21004_v6 }
0x1c75   :  { %v6738_v42 = vpop.permute.xlu0 %6737 }
0x1c76   :  { %v6740_v11 = vsub.f32 %v19209_v62, %v6738_v42 }
0x1c78   :  { %6749 = vperm.xlu1 %17029, %v6740_v11   ;;  %v19343_v11 = vld [vmem:[%s20739_s9 + $0x7] sm:$0x1] }
0x1c7c   :  { %17030 = vset.pattern.permute.xlu1 %v21005_v34 }
0x1c80   :  { %v6744_v32 = vpop.permute.xlu1 %6743 }
0x1c81   :  { %v6746_v44 = vmul.f32 %v6744_v32, %v6718_v3  ;;  %v19292_v3 = vld [vmem:[%s20739_s9 + $0x3] sm:$0x1]  ;;  %v19351_v32 = vrot.slane %v19343_v11, %v20910_v7 }
0x1c82   :  { %v19300_v14 = vrot.slane %v19292_v3, %v20910_v7 }
0x1cf7   :  { %v6750_v31 = vpop.permute.xlu1 %6749 }
0x1cf8   :  { %v6752_v26 = vadd.f32 %v6750_v31, %v6746_v44  ;;  %v15541_v31 = vld [vmem:[%s20733_s3 + $0x108] sm:$0xff] }
0x1cfa   :  { %v6753_v45 = vmax.f32 %v6752_v26, 0.0 }
0x1cfc   :  { %6916 = vrot.lane.b32.xlu1 %v6753_v45, %s17170_s29  ;;  %6758 = vrot.lane.b32.xlu0 %v6753_v45, %s17187_s13 }
0x1d00   :  { %7090 = vrot.lane.b32.xlu1 %v6753_v45, %s17173_s25  ;;  %7003 = vrot.lane.b32.xlu0 %v6753_v45, %s17188_s19 }
0x1d04   :  { %7264 = vrot.lane.b32.xlu1 %v6753_v45, %s17189_s0  ;;  %7177 = vrot.lane.b32.xlu0 %v6753_v45, %s17180_s17 }
0x1d08   :  { %7438 = vrot.lane.b32.xlu1 %v6753_v45, %s17190_s24  ;;  %7351 = vrot.lane.b32.xlu0 %v6753_v45, %s17191_s8 }
0x1d6e   :  { %v6759_v58 = vpop.permute.xlu0 %6758  ;;  %v6917_v27 = vpop.permute.xlu1 %6916 }
0x1d6f   :  { %v6767_v55 = vmul.f32 %v19248_v59, %v6759_v58  ;;  %v6926_v41 = vmul.f32 %v19266_v48, %v6917_v27 }
0x1d71   :  { %16027 = vmatpush3.msra.mxu1 %v6767_v55 }
0x1d72   :  { %16029 = vmatmul.mubr.msk.f32.vlgmr.msra.gmra.mrb[20].mxu1 %vm120_vm0, %v15526_v63  ;;  %16031 = vmatprep.subr.mxu1 %v20995_v10  ;;  %v7004_v39 = vpop.permute.xlu0 %7003  ;;  %v7091_v37 = vpop.permute.xlu1 %7090  ;;  %v15544_v63 = vld [vmem:[%s20733_s3 + $0x110] sm:$0xff] }
0x1d73   :  { %16032 = vmatpush3.msra.mxu1 %v6753_v45  ;;  %16033 = vmatprep.mubr.msk.f32.mxu1 %vm17186_vm9, %v20995_v10  ;;  %v7013_v38 = vmul.f32 %v19283_v51, %v7004_v39  ;;  %v7100_v12 = vmul.f32 %v19300_v14, %v7091_v37  ;;  %v19360_v45 = vld [vmem:[%s20739_s9 + $0x8] sm:$0x1] }
0x1d74   :  { %16036 = vmatprep.subr.mxu1 %v20995_v10  ;;  %v19368_v58 = vrot.slane %v19360_v45, %v20910_v7 }
0x1d76   :  { %v7178_v4 = vpop.permute.xlu0 %7177  ;;  %v7265_v25 = vpop.permute.xlu1 %7264 }
0x1d77   :  { %v7187_v20 = vmul.f32 %v19317_v29, %v7178_v4  ;;  %v7274_v42 = vmul.f32 %v19334_v18, %v7265_v25 }
0x1d7a   :  { %16034 = vmatmul.mubr.msk.f32.vlgmr.msra.gmra.mrb[20].mxu1 %vm120_vm0, %v15525_v9  ;;  %v7352_v44 = vpop.permute.xlu0 %7351  ;;  %v7439_v55 = vpop.permute.xlu1 %7438  ;;  %v15547_v9 = vld [vmem:[%s20733_s3 + $0x118] sm:$0xff] }
0x1d7b   :  { %16037 = vmatpush3.msra.mxu1 %v6926_v41  ;;  %16038 = vmatprep.mubr.msk.f32.mxu1 %vm17186_vm9, %v20995_v10  ;;  %v7361_v26 = vmul.f32 %v19351_v32, %v7352_v44  ;;  %v7448_v27 = vmul.f32 %v19368_v58, %v7439_v55 }
0x1d7c   :  { %16041 = vmatprep.subr.mxu1 %v20995_v10 }
0x1d82   :  { %16039 = vmatmul.mubr.msk.f32.vlgmr.msra.gmra.mrb[20].mxu1 %vm120_vm0, %v15529_v13 }
0x1d83   :  { %16042 = vmatpush3.msra.mxu1 %v7013_v38  ;;  %16043 = vmatprep.mubr.msk.f32.mxu1 %vm17186_vm9, %v20995_v10 }
0x1d84   :  { %16046 = vmatprep.subr.mxu1 %v20995_v10 }
0x1d8a   :  { %16044 = vmatmul.mubr.msk.f32.vlgmr.msra.gmra.mrb[20].mxu1 %vm120_vm0, %v15532_v53 }
0x1d8b   :  { %16047 = vmatpush3.msra.mxu1 %v7100_v12  ;;  %16048 = vmatprep.mubr.msk.f32.mxu1 %vm17186_vm9, %v20995_v10 }
0x1d8c   :  { %16051 = vmatprep.subr.mxu1 %v20995_v10 }
0x1d92   :  { %16049 = vmatmul.mubr.msk.f32.vlgmr.msra.gmra.mrb[20].mxu1 %vm120_vm0, %v15535_v22 }
0x1d93   :  { %16052 = vmatpush3.msra.mxu1 %v7187_v20  ;;  %16053 = vmatprep.mubr.msk.f32.mxu1 %vm17186_vm9, %v20995_v10 }
0x1d94   :  { %16056 = vmatprep.subr.mxu1 %v20995_v10 }
0x1d9a   :  { %16054 = vmatmul.mubr.msk.f32.vlgmr.msra.gmra.mrb[20].mxu1 %vm120_vm0, %v15538_v36 }
0x1d9b   :  { %16057 = vmatpush3.msra.mxu1 %v7274_v42  ;;  %16058 = vmatprep.mubr.msk.f32.mxu1 %vm17186_vm9, %v20995_v10 }
0x1d9c   :  { %16061 = vmatprep.subr.mxu1 %v20995_v10 }
0x1da2   :  { %16059 = vmatmul.mubr.msk.f32.vlgmr.msra.gmra.mrb[20].mxu1 %vm120_vm0, %v15541_v31  ;;  %v21006_v31 = vmov 0  }
0x1da3   :  { %16062 = vmatpush3.msra.mxu1 %v7361_v26  ;;  %16063 = vmatprep.mubr.msk.f32.mxu1 %vm17186_vm9, %v20995_v10 }
0x1da4   :  { %16066 = vmatprep.subr.mxu1 %v20995_v10 }
0x1daa   :  { %16064 = vmatmul.mubr.msk.f32.vlgmr.msra.gmra.mrb[20].mxu1 %vm120_vm0, %v15544_v63 }
0x1dab   :  { %16067 = vmatpush3.msra.mxu1 %v7448_v27  ;;  %16068 = vmatprep.mubr.msk.f32.mxu1 %vm17186_vm9, %v20995_v10 }
0x1dac   :  { %16126 = vmatprep.subr.mxu1 %v20995_v10 }
0x1db2   :  { %16069 = vmatmul.mubr.msk.f32.vlgmr.msra.gmra.mrb[20].mxu1 %vm120_vm0, %v15547_v9 }
0x1db3   :  { %16128 = vmatprep.mubr.msk.f32.mxu1 %vm17186_vm9, %v20995_v10 }
0x1e85   :  { %v7518_v41 = vpop.f32.mrb[20].mxu1 }
0x1e86   :  { %v7526_v39 = vmul.f32 %v7518_v41, %v7518_v41  ;;  %7523 = vadd.xlane.f32.xlu0 %v7518_v41  ;;  %v16070_v13 = vpop.f32.mrb[21].mxu1 }
0x1e88   :  { %7527 = vadd.xlane.f32.xlu1 %v7526_v39 }
0x1f13   :  { %v7524_v38 = vpop.xlane.xlu0 %7523 }
0x1f14   :  { %v7525_v37 = vmul.f32 0.0078125, %v7524_v38  ;;  %v15550_v38 = vld [vmem:[%s20734_s4 + $0x18] sm:$0xff] }
0x1f15   :  { %v7528_v53 = vpop.xlane.xlu1 %7527 }
0x1f16   :  { %v7530_v12 = vmul.f32 %v7525_v37, %v7525_v37  ;;  %v7529_v4 = vmul.f32 0.0078125, %v7528_v53 }
0x1f18   :  { %v7531_v22 = vsub.f32 %v7529_v4, %v7530_v12 }
0x1f1a   :  { %v7532_v20 = vmax.f32 %v7531_v22, 0.0 }
0x1f1c   :  { %v7533_v25 = vadd.f32 1e-05, %v7532_v20 }
0x1f1e   :  { %17084 = vrsqrt.f32 %v7533_v25 }
0x1f28   :  { %v17085_v36 = vpop.eup %17084 }
0x1f29   :  { %v7535_v42 = vmul.f32 %v17085_v36, %v19209_v62 }
0x1f2b   :  { %7544 = vperm.xlu1 %17030, %v7535_v42   ;;  %v7536_v44 = vmul.f32 %v7535_v42, %v7525_v37 }
0x1f2d   :  { %7538 = vrot.lane.b32.xlu0 %v7536_v44, %s17173_s25 }
0x1f2f   :  { %17032 = vset.pattern.permute.xlu1 %v21006_v31 }
0x1f9f   :  { %v7539_v26 = vpop.permute.xlu0 %7538 }
0x1fa0   :  { %v7541_v55 = vsub.f32 %v19209_v62, %v7539_v26 }
0x1fa2   :  { %7550 = vperm.xlu0 %17031, %v7541_v55  }
0x1faa   :  { %v7545_v63 = vpop.permute.xlu1 %7544 }
0x1fab   :  { %v7547_v27 = vmul.f32 %v7545_v63, %v7518_v41 }
0x2021   :  { %v7551_v9 = vpop.permute.xlu0 %7550 }
0x2022   :  { %v7553_v39 = vadd.f32 %v7551_v9, %v7547_v27  ;;  %v21007_v27 = vmov 1  }
0x2024   :  { %v7554_v13 = vmax.f32 %v7553_v39, 0.0 }
0x2026   :  { %16072 = vmatpush3.msra.mxu0 %v7554_v13 }
0x2027   :  { %16074 = vmatmul.mubr.msk.f32.vlgmr.msra.gmra.mrb[22].mxu0 %vm120_vm0, %v15550_v38  ;;  %16076 = vmatprep.subr.mxu0 %v20995_v10 }
0x2028   :  { %16078 = vmatprep.mubr.msk.f32.mxu0 %vm17186_vm9, %v20995_v10 }
0x20fa   :  { %v7626_v37 = vpop.f32.mrb[22].mxu0 }
0x20fb   :  { %v19396_v62 = vadd.f32 %v7626_v37, %v19201_v21  ;;  %v16075_v41 = vpop.f32.mrb[23].mxu0  ;;  %v19404_v21 = vld [vmem:[%s20731_s1 + $0x20] sm:$0xff] }
0x20fd   :  { %7632 = vadd.xlane.f32.xlu1 %v19396_v62  ;;  %v7635_v53 = vmul.f32 %v19396_v62, %v19396_v62 }
0x20ff   :  { %7636 = vadd.xlane.f32.xlu0 %v7635_v53 }
0x218a   :  { %v7633_v12 = vpop.xlane.xlu1 %7632 }
0x218b   :  { %v7634_v4 = vmul.f32 0.0078125, %v7633_v12  ;;  %v15553_v12 = vld [vmem:[%s20732_s2 + $0x20] sm:$0xff] }
0x218c   :  { %v7637_v22 = vpop.xlane.xlu0 %7636 }
0x218d   :  { %v7639_v20 = vmul.f32 %v7634_v4, %v7634_v4  ;;  %v7638_v25 = vmul.f32 0.0078125, %v7637_v22 }
0x218f   :  { %v7640_v36 = vsub.f32 %v7638_v25, %v7639_v20 }
0x2191   :  { %v7641_v42 = vmax.f32 %v7640_v36, 0.0 }
0x2193   :  { %v7642_v44 = vadd.f32 1e-05, %v7641_v42 }
0x2195   :  { %17086 = vrsqrt.f32 %v7642_v44 }
0x219f   :  { %v17087_v26 = vpop.eup %17086 }
0x21a0   :  { %v7644_v55 = vmul.f32 %v17087_v26, %v19404_v21 }
0x21a2   :  { %7653 = vperm.xlu1 %17032, %v7644_v55   ;;  %v7645_v63 = vmul.f32 %v7644_v55, %v7634_v4 }
0x21a4   :  { %7647 = vrot.lane.b32.xlu0 %v7645_v63, %s17173_s25 }
0x21a6   :  { %17033 = vset.pattern.permute.xlu1 %v21007_v27 }
0x2216   :  { %v7648_v9 = vpop.permute.xlu0 %7647 }
0x2217   :  { %v7650_v39 = vsub.f32 %v19404_v21, %v7648_v9 }
0x2219   :  { %7659 = vperm.xlu1 %17033, %v7650_v39  }
0x221d   :  { %17034 = vset.pattern.permute.xlu1 %v21002_v61 }
0x2221   :  { %v7654_v13 = vpop.permute.xlu1 %7653 }
0x2222   :  { %v7656_v38 = vmul.f32 %v7654_v13, %v19396_v62 }
0x2298   :  { %v7660_v37 = vpop.permute.xlu1 %7659 }
0x2299   :  { %v7662_v41 = vadd.f32 %v7660_v37, %v7656_v38 }
0x229b   :  { %v7663_v53 = vmax.f32 %v7662_v41, 0.0 }
0x229d   :  { %16077 = vmatpush3.msra.mxu0 %v7663_v53 }
0x229e   :  { %16079 = vmatmul.mubr.msk.f32.vlgmr.msra.gmra.mrb[24].mxu0 %vm120_vm0, %v15553_v12  ;;  %16081 = vmatprep.subr.mxu0 %v20995_v10 }
0x229f   :  { %16083 = vmatprep.mubr.msk.f32.mxu0 %vm17186_vm9, %v20995_v10 }
0x2371   :  { %v7735_v4 = vpop.f32.mrb[24].mxu0 }
0x2372   :  { %v7742_v22 = vmul.f32 %v7735_v4, %v7735_v4  ;;  %7739 = vadd.xlane.f32.xlu1 %v7735_v4  ;;  %v16080_v20 = vpop.f32.mrb[25].mxu0 }
0x2374   :  { %7743 = vadd.xlane.f32.xlu0 %v7742_v22 }
0x23ff   :  { %v7740_v25 = vpop.xlane.xlu1 %7739 }
0x2400   :  { %v7741_v36 = vmul.f32 0.0078125, %v7740_v25 }
0x2401   :  { %v7744_v42 = vpop.xlane.xlu0 %7743 }
0x2402   :  { %v7746_v44 = vmul.f32 %v7741_v36, %v7741_v36  ;;  %v7745_v26 = vmul.f32 0.0078125, %v7744_v42  ;;  %v15556_v42 = vld [vmem:[%s20733_s3 + $0x120] sm:$0xff] }
0x2404   :  { %v7747_v55 = vsub.f32 %v7745_v26, %v7746_v44  ;;  %v15555_v26 = vld [vmem:[%s20733_s3 + $0x140] sm:$0xff] }
0x2406   :  { %v7748_v63 = vmax.f32 %v7747_v55, 0.0 }
0x2408   :  { %v7749_v9 = vadd.f32 1e-05, %v7748_v63 }
0x240a   :  { %17088 = vrsqrt.f32 %v7749_v9  ;;  %v15559_v9 = vld [vmem:[%s20733_s3 + $0x128] sm:$0xff] }
0x2414   :  { %v17089_v39 = vpop.eup %17088 }
0x2415   :  { %v7751_v13 = vmul.f32 %v17089_v39, %v19404_v21 }
0x2417   :  { %7760 = vperm.xlu1 %17034, %v7751_v13   ;;  %v7752_v38 = vmul.f32 %v7751_v13, %v7741_v36 }
0x2419   :  { %7754 = vrot.lane.b32.xlu0 %v7752_v38, %s17173_s25  ;;  %v15561_v38 = vld [vmem:[%s20733_s3 + $0x130] sm:$0xff] }
0x241b   :  { %17035 = vset.pattern.permute.xlu1 %v21004_v6 }
0x248b   :  { %v7755_v37 = vpop.permute.xlu0 %7754 }
0x248c   :  { %v7757_v41 = vsub.f32 %v19404_v21, %v7755_v37 }
0x248e   :  { %7766 = vperm.xlu1 %17035, %v7757_v41  }
0x2492   :  { %17036 = vset.pattern.permute.xlu1 %v21005_v34 }
0x2496   :  { %v7761_v53 = vpop.permute.xlu1 %7760 }
0x2497   :  { %v7763_v12 = vmul.f32 %v7761_v53, %v7735_v4  ;;  %v15563_v53 = vld [vmem:[%s20733_s3 + $0x138] sm:$0xff] }
0x250d   :  { %v7767_v22 = vpop.permute.xlu1 %7766 }
0x250e   :  { %v7769_v20 = vadd.f32 %v7767_v22, %v7763_v12 }
0x2510   :  { %v7770_v25 = vmax.f32 %v7769_v20, 0.0  ;;  %v15565_v20 = vld [vmem:[%s20733_s3 + $0x148] sm:$0xff] }
0x2512   :  { %7926 = vrot.lane.b32.xlu1 %v7770_v25, %s17170_s29  ;;  %7775 = vrot.lane.b32.xlu0 %v7770_v25, %s17187_s13 }
0x2516   :  { %8084 = vrot.lane.b32.xlu1 %v7770_v25, %s17173_s25  ;;  %8005 = vrot.lane.b32.xlu0 %v7770_v25, %s17188_s19 }
0x251a   :  { %8242 = vrot.lane.b32.xlu1 %v7770_v25, %s17189_s0  ;;  %8163 = vrot.lane.b32.xlu0 %v7770_v25, %s17180_s17 }
0x251e   :  { %8400 = vrot.lane.b32.xlu1 %v7770_v25, %s17190_s24  ;;  %8321 = vrot.lane.b32.xlu0 %v7770_v25, %s17191_s8 }
0x2584   :  { %v7776_v4 = vpop.permute.xlu0 %7775  ;;  %v7927_v44 = vpop.permute.xlu1 %7926 }
0x2585   :  { %v7777_v36 = vmul.f32 %v7776_v4, %v19248_v59  ;;  %v7928_v55 = vmul.f32 %v7927_v44, %v19266_v48 }
0x2587   :  { %16082 = vmatpush3.msra.mxu0 %v7777_v36  ;;  %v15567_v36 = vld [vmem:[%s20733_s3 + $0x150] sm:$0xff] }
0x2588   :  { %16084 = vmatmul.mubr.msk.f32.vlgmr.msra.gmra.mrb[26].mxu0 %vm120_vm0, %v15556_v42  ;;  %16086 = vmatprep.subr.mxu0 %v20995_v10  ;;  %v8006_v63 = vpop.permute.xlu0 %8005  ;;  %v8085_v13 = vpop.permute.xlu1 %8084 }
0x2589   :  { %16087 = vmatpush3.msra.mxu0 %v7770_v25  ;;  %16088 = vmatprep.mubr.msk.f32.mxu0 %vm17186_vm9, %v20995_v10  ;;  %v8007_v39 = vmul.f32 %v8006_v63, %v19283_v51  ;;  %v8086_v37 = vmul.f32 %v8085_v13, %v19300_v14  ;;  %v15571_v63 = vld [vmem:[%s20733_s3 + $0x160] sm:$0xff] }
0x258a   :  { %16091 = vmatprep.subr.mxu0 %v20995_v10 }
0x258c   :  { %v8164_v41 = vpop.permute.xlu0 %8163  ;;  %v8243_v22 = vpop.permute.xlu1 %8242 }
0x258d   :  { %v8165_v12 = vmul.f32 %v8164_v41, %v19317_v29  ;;  %v8244_v25 = vmul.f32 %v8243_v22, %v19334_v18 }
0x2590   :  { %16089 = vmatmul.mubr.msk.f32.vlgmr.msra.gmra.mrb[26].mxu0 %vm120_vm0, %v15555_v26  ;;  %v8322_v4 = vpop.permute.xlu0 %8321  ;;  %v8401_v44 = vpop.permute.xlu1 %8400  ;;  %v15569_v26 = vld [vmem:[%s20733_s3 + $0x158] sm:$0xff] }
0x2591   :  { %16092 = vmatpush3.msra.mxu0 %v7928_v55  ;;  %16093 = vmatprep.mubr.msk.f32.mxu0 %vm17186_vm9, %v20995_v10  ;;  %v8323_v42 = vmul.f32 %v8322_v4, %v19351_v32  ;;  %v8402_v55 = vmul.f32 %v8401_v44, %v19368_v58 }
0x2592   :  { %16096 = vmatprep.subr.mxu0 %v20995_v10 }
0x2598   :  { %16094 = vmatmul.mubr.msk.f32.vlgmr.msra.gmra.mrb[26].mxu0 %vm120_vm0, %v15559_v9 }
0x2599   :  { %16097 = vmatpush3.msra.mxu0 %v8007_v39  ;;  %16098 = vmatprep.mubr.msk.f32.mxu0 %vm17186_vm9, %v20995_v10 }
0x259a   :  { %16101 = vmatprep.subr.mxu0 %v20995_v10 }
0x25a0   :  { %16099 = vmatmul.mubr.msk.f32.vlgmr.msra.gmra.mrb[26].mxu0 %vm120_vm0, %v15561_v38 }
0x25a1   :  { %16102 = vmatpush3.msra.mxu0 %v8086_v37  ;;  %16103 = vmatprep.mubr.msk.f32.mxu0 %vm17186_vm9, %v20995_v10 }
0x25a2   :  { %16106 = vmatprep.subr.mxu0 %v20995_v10 }
0x25a8   :  { %16104 = vmatmul.mubr.msk.f32.vlgmr.msra.gmra.mrb[26].mxu0 %vm120_vm0, %v15563_v53 }
0x25a9   :  { %16107 = vmatpush3.msra.mxu0 %v8165_v12  ;;  %16108 = vmatprep.mubr.msk.f32.mxu0 %vm17186_vm9, %v20995_v10 }
0x25aa   :  { %16111 = vmatprep.subr.mxu0 %v20995_v10 }
0x25b0   :  { %16109 = vmatmul.mubr.msk.f32.vlgmr.msra.gmra.mrb[26].mxu0 %vm120_vm0, %v15565_v20 }
0x25b1   :  { %16112 = vmatpush3.msra.mxu0 %v8244_v25  ;;  %16113 = vmatprep.mubr.msk.f32.mxu0 %vm17186_vm9, %v20995_v10 }
0x25b2   :  { %16116 = vmatprep.subr.mxu0 %v20995_v10 }
0x25b8   :  { %16114 = vmatmul.mubr.msk.f32.vlgmr.msra.gmra.mrb[26].mxu0 %vm120_vm0, %v15567_v36 }
0x25b9   :  { %16117 = vmatpush3.msra.mxu0 %v8323_v42  ;;  %16118 = vmatprep.mubr.msk.f32.mxu0 %vm17186_vm9, %v20995_v10 }
0x25ba   :  { %16121 = vmatprep.subr.mxu0 %v20995_v10 }
0x25c0   :  { %16119 = vmatmul.mubr.msk.f32.vlgmr.msra.gmra.mrb[26].mxu0 %vm120_vm0, %v15569_v26 }
0x25c1   :  { %16122 = vmatpush3.msra.mxu0 %v8402_v55  ;;  %16123 = vmatprep.mubr.msk.f32.mxu0 %vm17186_vm9, %v20995_v10 }
0x25c2   :  { %16166 = vmatprep.subr.mxu0 %v20995_v10 }
0x25c8   :  { %16124 = vmatmul.mubr.msk.f32.vlgmr.msra.gmra.mrb[26].mxu0 %vm120_vm0, %v15571_v63  ;;  %v15575_v63 = vadd.f32 -1.0, %v19244_v52 }
0x25c9   :  { %16168 = vmatprep.mubr.msk.f32.mxu0 %vm17186_vm9, %v20995_v10 }
0x269b   :  { %v8472_v9 = vpop.f32.mrb[26].mxu0 }
0x269c   :  { %v8480_v39 = vmul.f32 %v8472_v9, %v8472_v9  ;;  %8477 = vadd.xlane.f32.xlu0 %v8472_v9  ;;  %v16125_v13 = vpop.f32.mrb[27].mxu0 }
0x269e   :  { %8481 = vadd.xlane.f32.xlu1 %v8480_v39  ;;  %v8588_v39 = vmul.f32 1e+30, %v15575_v63 }
0x2729   :  { %v8478_v38 = vpop.xlane.xlu0 %8477 }
0x272a   :  { %v8479_v37 = vmul.f32 0.0078125, %v8478_v38 }
0x272b   :  { %v8482_v41 = vpop.xlane.xlu1 %8481 }
0x272c   :  { %v8484_v53 = vmul.f32 %v8479_v37, %v8479_v37  ;;  %v8483_v12 = vmul.f32 0.0078125, %v8482_v41 }
0x272e   :  { %v8485_v22 = vsub.f32 %v8483_v12, %v8484_v53  ;;  %v8688_v53 = vld [vmem:[%s20741_s11] sm:$0xff]  ;;  %v8689_v12 = vld [vmem:[%s20741_s11 + $0x8] sm:$0xff] }
0x2730   :  { %v8486_v20 = vmax.f32 %v8485_v22, 0.0 }
0x2732   :  { %v8487_v25 = vadd.f32 1e-05, %v8486_v20  ;;  %v8593_v20 = vrot.slane %v8588_v39, %v20910_v7  ;;  %v20850_v39 = vmov 0.0|0.0  }
0x2734   :  { %17090 = vrsqrt.f32 %v8487_v25 }
0x273e   :  { %v17091_v4 = vpop.eup %17090 }
0x273f   :  { %v8489_v36 = vmul.f32 %v17091_v4, %v19404_v21  ;;  %v16583_v4 = vpack.c.bf16 %v8689_v12, %v8688_v53  ;;  %v8693_v53 = vld [vmem:[%s20741_s11 + $0x28] sm:$0xff] }
0x2741   :  { %8498 = vperm.xlu1 %17036, %v8489_v36   ;;  %v8490_v42 = vmul.f32 %v8489_v36, %v8479_v37 }
0x2743   :  { %8492 = vrot.lane.b32.xlu0 %v8490_v42, %s17173_s25 }
0x2745   :  { %8584 = vrot.lane.b32.xlu1 %v19396_v62, %s17187_s13 }
0x2746   :  { %17037 = vset.pattern.permute.xlu1 %v21006_v31 }
0x2749   :  { %8610 = vrot.lane.b32.xlu1 %v19396_v62, %s17188_s19 }
0x274d   :  { %8636 = vrot.lane.b32.xlu1 %v19396_v62, %s17180_s17 }
0x2751   :  { %8662 = vrot.lane.b32.xlu1 %v19396_v62, %s17191_s8 }
0x27b5   :  { %v8493_v44 = vpop.permute.xlu0 %8492 }
0x27b6   :  { %v8495_v26 = vsub.f32 %v19404_v21, %v8493_v44  ;;  %v15576_v21 = vadd.f32 -1.0, %v19257_v54  ;;  %v15577_v54 = vadd.f32 -1.0, %v19275_v33  ;;  %v15578_v44 = vadd.f32 -1.0, %v19292_v3 }
0x27b8   :  { %8504 = vperm.xlu0 %17031, %v8495_v26   ;;  %v8601_v41 = vmul.f32 1e+30, %v15576_v21  ;;  %v8690_v26 = vld [vmem:[%s20741_s11 + $0x10] sm:$0xff]  ;;  %v8614_v21 = vmul.f32 1e+30, %v15577_v54  ;;  %v15579_v54 = vadd.f32 -1.0, %v19309_v24 }
0x27ba   :  { %v8606_v36 = vrot.slane %v8601_v41, %v20910_v7  ;;  %v8692_v41 = vld [vmem:[%s20741_s11 + $0x20] sm:$0xff] }
0x27bc   :  { %8597 = vrot.lane.b32.xlu0 %v19396_v62, %s17170_s29 }
0x27bd   :  { %17040 = vset.pattern.permute.xlu0 %v21004_v6 }
0x27c0   :  { %8623 = vrot.lane.b32.xlu0 %v19396_v62, %s17173_s25  ;;  %v8499_v55 = vpop.permute.xlu1 %8498 }
0x27c1   :  { %v8501_v13 = vmul.f32 %v8499_v55, %v8472_v9  ;;  %v15573_v9 = vld [vmem:[%s20734_s4 + $0x20] sm:$0xff]  ;;  %v8691_v55 = vld [vmem:[%s20741_s11 + $0x18] sm:$0xff] }
0x27c2   :  { %v16586_v3 = vpack.c.bf16 %v8691_v55, %v8690_v26  ;;  %v8695_v26 = vld [vmem:[%s20741_s11 + $0x38] sm:$0xff]  ;;  %v8640_v55 = vmul.f32 1e+30, %v15579_v54 }
0x27c4   :  { %8649 = vrot.lane.b32.xlu0 %v19396_v62, %s17189_s0  ;;  %v8585_v38 = vpop.permute.xlu1 %8584 }
0x27c5   :  { %v8586_v52 = vmul.f32 %v8585_v38, %v19248_v59 }
0x27c7   :  { %v8595_v63 = vadd.f32 %v8593_v20, %v8586_v52  ;;  %v8619_v20 = vrot.slane %v8614_v21, %v20910_v7 }
0x27c8   :  { %8675 = vrot.lane.b32.xlu0 %v19396_v62, %s17190_s24 }
0x2837   :  { %v8505_v37 = vpop.permute.xlu0 %8504 }
0x2838   :  { %v8507_v22 = vadd.f32 %v8505_v37, %v8501_v13  ;;  %v8611_v13 = vpop.permute.xlu1 %8610  ;;  %v8627_v37 = vmul.f32 1e+30, %v15578_v44  ;;  %v8694_v44 = vld [vmem:[%s20741_s11 + $0x30] sm:$0xff] }
0x2839   :  { %v8612_v52 = vmul.f32 %v8611_v13, %v19283_v51 }
0x283a   :  { %v8508_v25 = vmax.f32 %v8507_v22, 0.0  ;;  %v8596_v22 = vmax.f32 %v19396_v62, %v8595_v63  ;;  %v16592_v63 = vpack.c.bf16 %v8695_v26, %v8694_v44 }
0x283b   :  { %v8598_v42 = vpop.permute.xlu0 %8597  ;;  %v8621_v24 = vadd.f32 %v8619_v20, %v8612_v52 }
0x283c   :  { %v8599_v33 = vmul.f32 %v8598_v42, %v19266_v48  ;;  %16127 = vmatpush3.msra.mxu1 %v8508_v25  ;;  %v16589_v25 = vpack.c.bf16 %v8693_v53, %v8692_v41  ;;  %v15580_v42 = vadd.f32 -1.0, %v19326_v15  ;;  %v8696_v15 = vld [vmem:[%s20741_s11 + $0x40] sm:$0xff]  ;;  %v8645_v41 = vrot.slane %v8640_v55, %v20910_v7 }
0x283d   :  { %16582 = vmatprep.subr.bf16.mxu1 %v20850_v39  ;;  %16129 = vmatmul.mubr.msk.f32.vlgmr.msra.gmra.mrb[22].mxu1 %vm120_vm0, %v15573_v9 }
0x283e   :  { %16584 = vmatpush3.bf16.msra.mxu1 %v16583_v4  ;;  %16163 = vmatprep.mubr.msk.f32.mxu1 %vm17186_vm9, %v20995_v10  ;;  %v8608_v38 = vadd.f32 %v8606_v36, %v8599_v33  ;;  %v8632_v4 = vrot.slane %v8627_v37, %v20910_v7  ;;  %v8637_v33 = vpop.permute.xlu1 %8636 }
0x283f   :  { %16585 = vmatprep.subr.bf16.mxu1 %v20850_v39  ;;  %v8624_v12 = vpop.permute.xlu0 %8623  ;;  %v8638_v53 = vmul.f32 %v8637_v33, %v19317_v29  ;;  %v8701_v33 = vld [vmem:[%s20741_s11 + $0x68] sm:$0xff] }
0x2840   :  { %v8609_v9 = vmax.f32 %v8596_v22, %v8608_v38  ;;  %v8625_v36 = vmul.f32 %v8624_v12, %v19300_v14  ;;  %v8697_v38 = vld [vmem:[%s20741_s11 + $0x48] sm:$0xff]  ;;  %v15581_v12 = vadd.f32 -1.0, %v19343_v11 }
0x2841   :  { %v16595_v22 = vpack.c.bf16 %v8697_v38, %v8696_v15  ;;  %v8647_v11 = vadd.f32 %v8645_v41, %v8638_v53  ;;  %v8702_v41 = vld [vmem:[%s20741_s11 + $0x70] sm:$0xff]  ;;  %v8703_v53 = vld [vmem:[%s20741_s11 + $0x78] sm:$0xff] }
0x2842   :  { %16587 = vmatpush3.bf16.msra.mxu1 %v16586_v3  ;;  %v8622_v21 = vmax.f32 %v8609_v9, %v8621_v24  ;;  %v8634_v13 = vadd.f32 %v8632_v4, %v8625_v36  ;;  %v8653_v3 = vmul.f32 1e+30, %v15580_v42  ;;  %v8698_v9 = vld [vmem:[%s20741_s11 + $0x50] sm:$0xff]  ;;  %v8699_v4 = vld [vmem:[%s20741_s11 + $0x58] sm:$0xff]  ;;  %v8666_v36 = vmul.f32 1e+30, %v15581_v12  ;;  %v8663_v42 = vpop.permute.xlu1 %8662 }
0x2843   :  { %16588 = vmatprep.subr.bf16.mxu1 %v20850_v39  ;;  %v8650_v37 = vpop.permute.xlu0 %8649  ;;  %v16598_v44 = vpack.c.bf16 %v8699_v4, %v8698_v9 }
0x2844   :  { %v8635_v20 = vmax.f32 %v8622_v21, %v8634_v13  ;;  %v8658_v52 = vrot.slane %v8653_v3, %v20910_v7  ;;  %v8651_v54 = vmul.f32 %v8650_v37, %v19334_v18  ;;  %v8671_v21 = vrot.slane %v8666_v36, %v20910_v7 }
0x2845   :  { %v8664_v13 = vmul.f32 %v8663_v42, %v19351_v32 }
0x2846   :  { %16590 = vmatpush3.bf16.msra.mxu1 %v16589_v25  ;;  %v15582_v25 = vadd.f32 -1.0, %v19360_v45  ;;  %v8648_v26 = vmax.f32 %v8635_v20, %v8647_v11  ;;  %v8660_v24 = vadd.f32 %v8658_v52, %v8651_v54  ;;  %v8700_v45 = vld [vmem:[%s20741_s11 + $0x60] sm:$0xff] }
0x2847   :  { %16591 = vmatprep.subr.bf16.mxu1 %v20850_v39  ;;  %v16601_v3 = vpack.c.bf16 %v8701_v33, %v8700_v45  ;;  %v8673_v12 = vadd.f32 %v8671_v21, %v8664_v13 }
0x2848   :  { %v8679_v55 = vmul.f32 1e+30, %v15582_v25  ;;  %v8661_v15 = vmax.f32 %v8648_v26, %v8660_v24 }
0x284a   :  { %16593 = vmatpush3.bf16.msra.mxu1 %v16592_v63  ;;  %v8676_v63 = vpop.permute.xlu0 %8675  ;;  %v8684_v38 = vrot.slane %v8679_v55, %v20910_v7  ;;  %v8674_v20 = vmax.f32 %v8661_v15, %v8673_v12 }
0x284b   :  { %16594 = vmatprep.subr.bf16.mxu1 %v20850_v39  ;;  %v8677_v37 = vmul.f32 %v8676_v63, %v19368_v58  ;;  %v19624_v63 = vld [vmem:[%s20731_s1 + $0x28] sm:$0xff] }
0x284d   :  { %v8686_v52 = vadd.f32 %v8684_v38, %v8677_v37 }
0x284e   :  { %16596 = vmatpush3.bf16.msra.mxu1 %v16595_v22  ;;  %v16604_v22 = vpack.c.bf16 %v8703_v53, %v8702_v41 }
0x284f   :  { %16597 = vmatprep.subr.bf16.mxu1 %v20850_v39  ;;  %v8687_v7 = vmax.f32 %v8674_v20, %v8686_v52  ;;  %v15584_v20 = vld [vmem:[%s20732_s2 + $0x28] sm:$0xff] }
0x2852   :  { %16599 = vmatpush3.bf16.msra.mxu1 %v16598_v44 }
0x2853   :  { %16600 = vmatprep.subr.bf16.mxu1 %v20850_v39 }
0x2856   :  { %16602 = vmatpush3.bf16.msra.mxu1 %v16601_v3 }
0x2857   :  { %16603 = vmatprep.subr.bf16.mxu1 %v20850_v39 }
0x285a   :  { %16605 = vmatpush3.bf16.msra.mxu1 %v16604_v22 }
0x285b   :  { %16618 = vmatprep.subr.bf16.mxu1 %v20850_v39 }
0x285d   :  { %16164 = vmatmul.mubr.f32.vlgmr.msra.gmra.mrb[24].mxu1 %v8687_v7 }
0x285e   :  { %16216 = vmatprep.mubr.msk.f32.mxu1 %vm17186_vm9, %v20995_v10 }
0x2930   :  { %v19614_v54 = vpop.f32.mrb[24].mxu1 }
0x2931   :  { %v16165_v25 = vpop.f32.mrb[25].mxu1  ;;  %v8777_v9 = vsel %vm8776_vm10, %v19614_v54, 0.0  ;;  %v8781_v4 = vmul.f32 %v19614_v54, %v19614_v54 }
0x2932   :  { %8778 = vadd.xlane.f32.xlu1 %v8777_v9 }
0x2933   :  { %v8782_v11 = vsel %vm8776_vm10, %v8781_v4, 0.0 }
0x2934   :  { %8783 = vadd.xlane.f32.xlu0 %v8782_v11 }
0x29bf   :  { %v8779_v36 = vpop.xlane.xlu1 %8778 }
0x29c0   :  { %v8780_v42 = vmul.f32 0.03125, %v8779_v36 }
0x29c1   :  { %v8784_v44 = vpop.xlane.xlu0 %8783 }
0x29c2   :  { %v8786_v26 = vmul.f32 %v8780_v42, %v8780_v42  ;;  %v8785_v24 = vmul.f32 0.03125, %v8784_v44 }
0x29c4   :  { %v8787_v55 = vsub.f32 %v8785_v24, %v8786_v26 }
0x29c6   :  { %v8788_v45 = vmax.f32 %v8787_v55, 0.0 }
0x29c8   :  { %v8789_v33 = vadd.f32 1e-05, %v8788_v45 }
0x29ca   :  { %17092 = vrsqrt.f32 %v8789_v33 }
0x29d4   :  { %v17093_v21 = vpop.eup %17092 }
0x29d5   :  { %v8791_v13 = vmul.f32 %v17093_v21, %v19624_v63 }
0x29d7   :  { %8800 = vperm.xlu1 %17037, %v8791_v13   ;;  %v8792_v3 = vmul.f32 %v8791_v13, %v8780_v42 }
0x29d9   :  { %8794 = vrot.lane.b32.xlu0 %v8792_v3, %s17173_s25  ;;  %v15599_v3 = vld [vmem:[%s20742_s12 + $0x40] sm:$0xff] }
0x29db   :  { %17038 = vset.pattern.permute.xlu1 %v21007_v27 }
0x2a4b   :  { %v8795_v15 = vpop.permute.xlu0 %8794 }
0x2a4c   :  { %v8797_v38 = vsub.f32 %v19624_v63, %v8795_v15  ;;  %v15600_v15 = vld [vmem:[%s20742_s12 + $0x48] sm:$0xff] }
0x2a4e   :  { %8806 = vperm.xlu1 %17038, %v8797_v38   ;;  %v8924_v38 = vld [vmem:[%s20742_s12] sm:$0xff] }
0x2a52   :  { %17039 = vset.pattern.permute.xlu1 %v21002_v61 }
0x2a56   :  { %v8801_v37 = vpop.permute.xlu1 %8800 }
0x2a57   :  { %v8803_v41 = vmul.f32 %v8801_v37, %v19614_v54  ;;  %v19651_v37 = vpack.c.bf16 %v15600_v15, %v15599_v3  ;;  %v15620_v3 = vld [vmem:[%s20742_s12 + $0xc0] sm:$0xff]  ;;  %v15621_v15 = vld [vmem:[%s20742_s12 + $0xc8] sm:$0xff] }
0x2a59   :  { %16620 = vmatpush3.bf16.msra.mxu1 %v19651_v37 }
0x2a5a   :  { %16621 = vmatprep.subr.bf16.mxu1 %v20850_v39 }
0x2acd   :  { %v8807_v53 = vpop.permute.xlu1 %8806 }
0x2ace   :  { %v8809_v12 = vadd.f32 %v8807_v53, %v8803_v41  ;;  %v8925_v41 = vld [vmem:[%s20742_s12 + $0x8] sm:$0xff] }
0x2acf   :  { %v19657_v53 = vpack.c.bf16 %v8925_v41, %v8924_v38  ;;  %v19720_v38 = vpack.c.bf16 %v15621_v15, %v15620_v3  ;;  %v15622_v41 = vld [vmem:[%s20742_s12 + $0xd0] sm:$0xff]  ;;  %v15587_v3 = vld [vmem:[%s20733_s3 + $0x168] sm:$0xff] }
0x2ad0   :  { %v8810_v22 = vmax.f32 %v8809_v12, 0.0 }
0x2ad2   :  { %16167 = vmatpush3.msra.mxu0 %v8810_v22 }
0x2ad3   :  { %16169 = vmatmul.mubr.msk.f32.vlgmr.msra.gmra.mrb[28].mxu0 %vm120_vm0, %v15584_v20  ;;  %16606 = vmatprep.subr.bf16.mxu0 %v20850_v39  ;;  %v15601_v20 = vld [vmem:[%s20742_s12 + $0x50] sm:$0xff] }
0x2ad4   :  { %16179 = vmatprep.mubr.msk.f32.mxu0 %vm17186_vm9, %v20995_v10  ;;  %16608 = vmatpush3.bf16.msra.mxu0 %v19657_v53 }
0x2ad5   :  { %16609 = vmatprep.subr.bf16.mxu0 %v20850_v39 }
0x2ba6   :  { %v8882_v52 = vpop.f32.mrb[28].mxu0 }
0x2ba7   :  { %v8890_v7 = vmul.f32 %v8882_v52, %v8882_v52  ;;  %v8886_v25 = vsel %vm8776_vm10, %v8882_v52, 0.0  ;;  %v16170_v9 = vpop.f32.mrb[29].mxu0 }
0x2ba8   :  { %8887 = vadd.xlane.f32.xlu0 %v8886_v25  ;;  %v8926_v9 = vld [vmem:[%s20742_s12 + $0x10] sm:$0xff] }
0x2ba9   :  { %v8891_v4 = vsel %vm8776_vm10, %v8890_v7, 0.0  ;;  %v15602_v7 = vld [vmem:[%s20742_s12 + $0x58] sm:$0xff] }
0x2baa   :  { %8892 = vadd.xlane.f32.xlu1 %v8891_v4  ;;  %v19671_v25 = vpack.c.bf16 %v15602_v7, %v15601_v20  ;;  %v8927_v4 = vld [vmem:[%s20742_s12 + $0x18] sm:$0xff]  ;;  %v15627_v20 = vld [vmem:[%s20742_s12 + $0xe0] sm:$0xff]  ;;  %v15628_v7 = vld [vmem:[%s20742_s12 + $0xe8] sm:$0xff] }
0x2bac   :  { %16623 = vmatpush3.bf16.msra.mxu1 %v19671_v25 }
0x2bad   :  { %16624 = vmatprep.subr.bf16.mxu1 %v20850_v39 }
0x2c35   :  { %v8888_v11 = vpop.xlane.xlu0 %8887 }
0x2c36   :  { %v8889_v36 = vmul.f32 0.03125, %v8888_v11  ;;  %v19679_v11 = vpack.c.bf16 %v8927_v4, %v8926_v9  ;;  %v19744_v9 = vpack.c.bf16 %v15628_v7, %v15627_v20  ;;  %v15629_v4 = vld [vmem:[%s20742_s12 + $0xf0] sm:$0xff]  ;;  %v15592_v7 = vld [vmem:[%s20742_s12 + $0x20] sm:$0xff] }
0x2c37   :  { %v8893_v42 = vpop.xlane.xlu1 %8892 }
0x2c38   :  { %v8895_v44 = vmul.f32 %v8889_v36, %v8889_v36  ;;  %v8894_v26 = vmul.f32 0.03125, %v8893_v42  ;;  %16611 = vmatpush3.bf16.msra.mxu0 %v19679_v11 }
0x2c39   :  { %16182 = vmatprep.subr.mxu0 %v20995_v10 }
0x2c3a   :  { %v8896_v24 = vsub.f32 %v8894_v26, %v8895_v44  ;;  %v15606_v44 = vld [vmem:[%s20742_s12 + $0x60] sm:$0xff]  ;;  %v15607_v26 = vld [vmem:[%s20742_s12 + $0x68] sm:$0xff] }
0x2c3c   :  { %v8897_v55 = vmax.f32 %v8896_v24, 0.0 }
0x2c3e   :  { %v8898_v45 = vadd.f32 1e-05, %v8897_v55 }
0x2c40   :  { %17094 = vrsqrt.f32 %v8898_v45  ;;  %v19691_v45 = vpack.c.bf16 %v15607_v26, %v15606_v44  ;;  %v15634_v44 = vld [vmem:[%s20742_s12 + $0x100] sm:$0xff]  ;;  %v15635_v26 = vld [vmem:[%s20742_s12 + $0x108] sm:$0xff] }
0x2c4a   :  { %v17095_v33 = vpop.eup %17094 }
0x2c4b   :  { %v8900_v21 = vmul.f32 %v17095_v33, %v19624_v63 }
0x2c4d   :  { %8909 = vperm.xlu1 %17039, %v8900_v21   ;;  %v8901_v13 = vmul.f32 %v8900_v21, %v8889_v36  ;;  %v15608_v21 = vld [vmem:[%s20742_s12 + $0x70] sm:$0xff] }
0x2c4f   :  { %8903 = vrot.lane.b32.xlu0 %v8901_v13, %s17173_s25 }
0x2c51   :  { %17041 = vset.pattern.permute.xlu1 %v21005_v34 }
0x2cc1   :  { %v8904_v12 = vpop.permute.xlu0 %8903 }
0x2cc2   :  { %v8906_v22 = vsub.f32 %v19624_v63, %v8904_v12  ;;  %v15623_v12 = vld [vmem:[%s20742_s12 + $0xd8] sm:$0xff] }
0x2cc4   :  { %8915 = vperm.xlu0 %17040, %v8906_v22   ;;  %v19732_v22 = vpack.c.bf16 %v15623_v12, %v15622_v41 }
0x2ccc   :  { %v8910_v36 = vpop.permute.xlu1 %8909 }
0x2ccd   :  { %v8912_v42 = vmul.f32 %v8910_v36, %v8882_v52  ;;  %v15609_v52 = vld [vmem:[%s20742_s12 + $0x78] sm:$0xff] }
0x2cce   :  { %v19706_v13 = vpack.c.bf16 %v15609_v52, %v15608_v21  ;;  %v15630_v36 = vld [vmem:[%s20742_s12 + $0xf8] sm:$0xff] }
0x2ccf   :  { %v15637_v21 = vld [vmem:[%s20742_s12 + $0x118] sm:$0xff] }
0x2d43   :  { %v8916_v24 = vpop.permute.xlu0 %8915 }
0x2d44   :  { %v8918_v55 = vadd.f32 %v8916_v24, %v8912_v42  ;;  %v19756_v42 = vpack.c.bf16 %v15630_v36, %v15629_v4  ;;  %v19768_v24 = vpack.c.bf16 %v15635_v26, %v15634_v44  ;;  %v15593_v4 = vld [vmem:[%s20742_s12 + $0x28] sm:$0xff] }
0x2d45   :  { %v15586_v36 = vld [vmem:[%s20733_s3 + $0x188] sm:$0xff]  ;;  %v19809_v44 = vpack.c.bf16 %v15593_v4, %v15592_v7 }
0x2d46   :  { %v19693_v33 = vmax.f32 %v8918_v55, 0.0  ;;  %v15636_v55 = vld [vmem:[%s20742_s12 + $0x110] sm:$0xff] }
0x2d47   :  { %v19780_v52 = vpack.c.bf16 %v15637_v21, %v15636_v55  ;;  %v15594_v55 = vld [vmem:[%s20742_s12 + $0x30] sm:$0xff]  ;;  %v15595_v21 = vld [vmem:[%s20742_s12 + $0x38] sm:$0xff] }
0x2d48   :  { %16180 = vmatmul.mubr.msk.f32.vlgmr.msra.gmra.mrb[30].mxu0 %vm8776_vm10, %v19693_v33  ;;  %16217 = vmatmul.mubr.msk.f32.vlgmr.msra.gmra.mrb[26].mxu1 %vm8776_vm10, %v19693_v33 }
0x2d49   :  { %16626 = vmatpush3.bf16.msra.mxu1 %v19691_v45  ;;  %16232 = vmatprep.mubr.msk.f32.mxu1 %vm17186_vm9, %v20995_v10 }
0x2d4a   :  { %16627 = vmatprep.subr.bf16.mxu1 %v20850_v39  ;;  %16184 = vmatprep.mubr.msk.f32.mxu0 %vm17186_vm9, %v20995_v10 }
0x2d4d   :  { %16629 = vmatpush3.bf16.msra.mxu1 %v19706_v13 }
0x2d4e   :  { %16636 = vmatprep.subr.bf16.mxu1 %v20850_v39 }
0x2d50   :  { %16233 = vmatmul.mubr.msk.f32.vlgmr.msra.gmra.mrb[28].mxu1 %vm8776_vm10, %v19693_v33 }
0x2d51   :  { %16638 = vmatpush3.bf16.msra.mxu1 %v19720_v38  ;;  %16264 = vmatprep.mubr.msk.f32.mxu1 %vm17186_vm9, %v20995_v10 }
0x2d52   :  { %16639 = vmatprep.subr.bf16.mxu1 %v20850_v39 }
0x2d55   :  { %16641 = vmatpush3.bf16.msra.mxu1 %v19732_v22 }
0x2d56   :  { %16642 = vmatprep.subr.bf16.mxu1 %v20850_v39 }
0x2d58   :  { %16265 = vmatmul.mubr.msk.f32.vlgmr.msra.gmra.mrb[30].mxu1 %vm8776_vm10, %v19693_v33 }
0x2d59   :  { %16644 = vmatpush3.bf16.msra.mxu1 %v19744_v9  ;;  %16280 = vmatprep.mubr.msk.f32.mxu1 %vm17186_vm9, %v20995_v10 }
0x2d5a   :  { %16645 = vmatprep.subr.bf16.mxu1 %v20850_v39 }
0x2d5d   :  { %16647 = vmatpush3.bf16.msra.mxu1 %v19756_v42 }
0x2d5e   :  { %16648 = vmatprep.subr.bf16.mxu1 %v20850_v39 }
0x2d60   :  { %16281 = vmatmul.mubr.msk.f32.vlgmr.msra.gmra.mrb[32].mxu1 %vm8776_vm10, %v19693_v33 }
0x2d61   :  { %16650 = vmatpush3.bf16.msra.mxu1 %v19768_v24  ;;  %16296 = vmatprep.mubr.msk.f32.mxu1 %vm17186_vm9, %v20995_v10 }
0x2d62   :  { %16651 = vmatprep.subr.bf16.mxu1 %v20850_v39 }
0x2d65   :  { %16653 = vmatpush3.bf16.msra.mxu1 %v19780_v52 }
0x2d66   :  { %16309 = vmatprep.subr.mxu1 %v20995_v10 }
0x2d68   :  { %16297 = vmatmul.mubr.msk.f32.vlgmr.msra.gmra.mrb[34].mxu1 %vm8776_vm10, %v19693_v33 }
0x2d69   :  { %16311 = vmatprep.mubr.msk.f32.mxu1 %vm17186_vm9, %v20995_v10 }
0x2e1b   :  { %v8997_v15 = vpop.f32.mrb[30].mxu0  ;;  %v9371_v41 = vpop.f32.mrb[26].mxu1 }
0x2e1c   :  { %v16181_v12 = vpop.f32.mrb[31].mxu0  ;;  %16183 = vmatpush3.msra.mxu0 %v8997_v15  ;;  %v16218_v20 = vpop.f32.mrb[27].mxu1  ;;  %v19819_v15 = vpack.c.bf16 %v15595_v21, %v15594_v55  ;;  %v15591_v21 = vld [vmem:[%s20733_s3 + $0x170] sm:$0xff] }
0x2e1d   :  { %16185 = vmatmul.mubr.msk.f32.vlgmr.msra.gmra.mrb[32].mxu0 %vm120_vm0, %v15587_v3  ;;  %16187 = vmatprep.subr.mxu0 %v20995_v10 }
0x2e1e   :  { %16188 = vmatpush3.msra.mxu0 %v19693_v33  ;;  %16189 = vmatprep.mubr.msk.f32.mxu0 %vm17186_vm9, %v20995_v10 }
0x2e1f   :  { %16612 = vmatprep.subr.bf16.mxu0 %v20850_v39 }
0x2e23   :  { %v9522_v26 = vpop.f32.mrb[28].mxu1 }
0x2e24   :  { %v16234_v3 = vpop.f32.mrb[29].mxu1 }
0x2e25   :  { %16190 = vmatmul.mubr.msk.f32.vlgmr.msra.gmra.mrb[32].mxu0 %vm120_vm0, %v15586_v36 }
0x2e26   :  { %16614 = vmatpush3.bf16.msra.mxu0 %v19809_v44  ;;  %16200 = vmatprep.mubr.msk.f32.mxu0 %vm17186_vm9, %v20995_v10 }
0x2e27   :  { %16615 = vmatprep.subr.bf16.mxu0 %v20850_v39 }
0x2e2a   :  { %16617 = vmatpush3.bf16.msra.mxu0 %v19819_v15 }
0x2e2b   :  { %v9824_v12 = vpop.f32.mrb[30].mxu1  ;;  %16203 = vmatprep.subr.mxu0 %v20995_v10 }
0x2e2c   :  { %v16266_v20 = vpop.f32.mrb[31].mxu1 }
0x2e2d   :  { %16201 = vmatmul.mubr.msk.f32.vlgmr.msra.gmra.mrb[34].mxu0 %vm8776_vm10, %v19693_v33  ;;  %v15598_v20 = vld [vmem:[%s20733_s3 + $0x178] sm:$0xff] }
0x2e2e   :  { %16205 = vmatprep.mubr.msk.f32.mxu0 %vm17186_vm9, %v20995_v10 }
0x2e33   :  { %v9975_v7 = vpop.f32.mrb[32].mxu1 }
0x2e34   :  { %v16282_v4 = vpop.f32.mrb[33].mxu1 }
0x2e35   :  { %v15614_v4 = vld [vmem:[%s20742_s12 + $0xa8] sm:$0xff] }
0x2e3b   :  { %v10126_v36 = vpop.f32.mrb[34].mxu1 }
0x2e3c   :  { %v16298_v55 = vpop.f32.mrb[35].mxu1 }
0x2e3d   :  { %v15605_v55 = vld [vmem:[%s20733_s3 + $0x180] sm:$0xff] }
0x2f00   :  { %v9220_v3 = vpop.f32.mrb[34].mxu0 }
0x2f01   :  { %v16202_v39 = vpop.f32.mrb[35].mxu0  ;;  %16204 = vmatpush3.msra.mxu0 %v9220_v3  ;;  %v15616_v3 = vld [vmem:[%s20742_s12 + $0xb8] sm:$0xff] }
0x2f02   :  { %16206 = vmatmul.mubr.msk.f32.vlgmr.msra.gmra.mrb[32].mxu0 %vm120_vm0, %v15591_v21  ;;  %16219 = vmatprep.subr.mxu0 %v20995_v10  ;;  %v21008_v39 = vmov 0.0|0.0  }
0x2f03   :  { %16220 = vmatpush3.msra.mxu0 %v9371_v41  ;;  %16221 = vmatprep.mubr.msk.f32.mxu0 %vm17186_vm9, %v20995_v10  ;;  %v15613_v41 = vld [vmem:[%s20742_s12 + $0xa0] sm:$0xff] }
0x2f04   :  { %16235 = vmatprep.subr.mxu0 %v20995_v10  ;;  %v19854_v21 = vpack.c.bf16 %v15614_v4, %v15613_v41  ;;  %v15612_v41 = vld [vmem:[%s20733_s3 + $0x190] sm:$0xff] }
0x2f0a   :  { %16222 = vmatmul.mubr.msk.f32.vlgmr.msra.gmra.mrb[32].mxu0 %vm120_vm0, %v15598_v20 }
0x2f0b   :  { %16236 = vmatpush3.msra.mxu0 %v9522_v26  ;;  %16237 = vmatprep.mubr.msk.f32.mxu0 %vm17186_vm9, %v20995_v10  ;;  %v15615_v26 = vld [vmem:[%s20742_s12 + $0xb0] sm:$0xff] }
0x2f0c   :  { %16630 = vmatprep.subr.bf16.mxu0 %v21008_v39  ;;  %v19864_v20 = vpack.c.bf16 %v15616_v3, %v15615_v26 }
0x2f12   :  { %16238 = vmatmul.mubr.msk.f32.vlgmr.msra.gmra.mrb[32].mxu0 %vm120_vm0, %v15605_v55 }
0x2f13   :  { %16632 = vmatpush3.bf16.msra.mxu0 %v19854_v21  ;;  %16248 = vmatprep.mubr.msk.f32.mxu0 %vm17186_vm9, %v20995_v10 }
0x2f14   :  { %16633 = vmatprep.subr.bf16.mxu0 %v21008_v39 }
0x2f17   :  { %16635 = vmatpush3.bf16.msra.mxu0 %v19864_v20 }
0x2f18   :  { %16251 = vmatprep.subr.mxu0 %v20995_v10 }
0x2f1a   :  { %16249 = vmatmul.mubr.msk.f32.vlgmr.msra.gmra.mrb[36].mxu0 %vm8776_vm10, %v19693_v33  ;;  %v15619_v33 = vld [vmem:[%s20733_s3 + $0x198] sm:$0xff] }
0x2f1b   :  { %16253 = vmatprep.mubr.msk.f32.mxu0 %vm17186_vm9, %v20995_v10 }
0x2fed   :  { %v9673_v4 = vpop.f32.mrb[36].mxu0 }
0x2fee   :  { %v16250_v55 = vpop.f32.mrb[37].mxu0  ;;  %16252 = vmatpush3.msra.mxu0 %v9673_v4 }
0x2fef   :  { %16254 = vmatmul.mubr.msk.f32.vlgmr.msra.gmra.mrb[32].mxu0 %vm120_vm0, %v15612_v41  ;;  %16267 = vmatprep.subr.mxu0 %v20995_v10 }
0x2ff0   :  { %16268 = vmatpush3.msra.mxu0 %v9824_v12  ;;  %16269 = vmatprep.mubr.msk.f32.mxu0 %vm17186_vm9, %v20995_v10  ;;  %v15626_v12 = vld [vmem:[%s20733_s3 + $0x1a0] sm:$0xff] }
0x2ff1   :  { %16283 = vmatprep.subr.mxu0 %v20995_v10 }
0x2ff7   :  { %16270 = vmatmul.mubr.msk.f32.vlgmr.msra.gmra.mrb[32].mxu0 %vm120_vm0, %v15619_v33 }
0x2ff8   :  { %16284 = vmatpush3.msra.mxu0 %v9975_v7  ;;  %16285 = vmatprep.mubr.msk.f32.mxu0 %vm17186_vm9, %v20995_v10  ;;  %v15633_v7 = vld [vmem:[%s20733_s3 + $0x1a8] sm:$0xff] }
0x2ff9   :  { %16299 = vmatprep.subr.mxu0 %v20995_v10 }
0x2fff   :  { %16286 = vmatmul.mubr.msk.f32.vlgmr.msra.gmra.mrb[32].mxu0 %vm120_vm0, %v15626_v12 }
0x3000   :  { %16300 = vmatpush3.msra.mxu0 %v10126_v36  ;;  %16301 = vmatprep.mubr.msk.f32.mxu0 %vm17186_vm9, %v20995_v10 }
0x3001   :  { %16304 = vmatprep.subr.mxu0 %v20995_v10 }
0x3007   :  { %16302 = vmatmul.mubr.msk.f32.vlgmr.msra.gmra.mrb[32].mxu0 %vm120_vm0, %v15633_v7 }
0x3008   :  { %16306 = vmatprep.mubr.msk.f32.mxu0 %vm17186_vm9, %v20995_v10 }
0x30da   :  { %v10199_v26 = vpop.f32.mrb[32].mxu0 }
0x30db   :  { %v10208_v3 = vmul.f32 %v10199_v26, %v10199_v26  ;;  %v16303_v41 = vpop.f32.mrb[33].mxu0  ;;  %v10204_v4 = vsel %vm8776_vm10, %v10199_v26, 0.0 }
0x30dc   :  { %10205 = vadd.xlane.f32.xlu1 %v10204_v4 }
0x30dd   :  { %v10209_v36 = vsel %vm8776_vm10, %v10208_v3, 0.0 }
0x30de   :  { %10210 = vadd.xlane.f32.xlu0 %v10209_v36 }
0x3169   :  { %v10206_v55 = vpop.xlane.xlu1 %10205 }
0x316a   :  { %v10207_v33 = vmul.f32 0.03125, %v10206_v55 }
0x316b   :  { %v10211_v12 = vpop.xlane.xlu0 %10210 }
0x316c   :  { %v10213_v16 = vmul.f32 %v10207_v33, %v10207_v33  ;;  %v10212_v49 = vmul.f32 0.03125, %v10211_v12 }
0x316e   :  { %v10214_v46 = vsub.f32 %v10212_v49, %v10213_v16 }
0x3170   :  { %v10215_v50 = vmax.f32 %v10214_v46, 0.0 }
0x3172   :  { %v10216_v7 = vadd.f32 1e-05, %v10215_v50 }
0x3174   :  { %17096 = vrsqrt.f32 %v10216_v7 }
0x317e   :  { %v17097_v2 = vpop.eup %17096 }
0x317f   :  { %v10218_v28 = vmul.f32 %v17097_v2, %v19624_v63  ;;  %v15640_v2 = vld [vmem:[%s20734_s4 + $0x28] sm:$0xff] }
0x3181   :  { %10227 = vperm.xlu1 %17041, %v10218_v28   ;;  %v10219_v41 = vmul.f32 %v10218_v28, %v10207_v33 }
0x3183   :  { %10221 = vrot.lane.b32.xlu0 %v10219_v41, %s17173_s25 }
0x3185   :  { %17042 = vset.pattern.permute.xlu1 %v21003_v47 }
0x31f5   :  { %v10222_v3 = vpop.permute.xlu0 %10221 }
0x31f6   :  { %v10224_v4 = vsub.f32 %v19624_v63, %v10222_v3 }
0x31f8   :  { %10233 = vperm.xlu1 %17042, %v10224_v4  }
0x31fc   :  { %17043 = vset.pattern.permute.xlu1 %v21006_v31 }
0x3200   :  { %v10228_v36 = vpop.permute.xlu1 %10227 }
0x3201   :  { %v10230_v16 = vmul.f32 %v10228_v36, %v10199_v26 }
0x3277   :  { %v10234_v46 = vpop.permute.xlu1 %10233 }
0x3278   :  { %v10236_v50 = vadd.f32 %v10234_v46, %v10230_v16  ;;  %v19932_v16 = vld [vmem:[%s20731_s1 + $0x30] sm:$0xff] }
0x327a   :  { %v10237_v49 = vmax.f32 %v10236_v50, 0.0 }
0x327c   :  { %16305 = vmatpush3.msra.mxu0 %v10237_v49 }
0x327d   :  { %16307 = vmatmul.mubr.msk.f32.vlgmr.msra.gmra.mrb[38].mxu0 %vm120_vm0, %v15640_v2  ;;  %16654 = vmatprep.subr.bf16.mxu0 %v21008_v39 }
0x327e   :  { %16656 = vmatpush3.bf16.msra.mxu0 %v19657_v53  ;;  %16322 = vmatprep.mubr.msk.f32.mxu0 %vm17186_vm9, %v20995_v10 }
0x327f   :  { %16657 = vmatprep.subr.bf16.mxu0 %v21008_v39 }
0x3282   :  { %16659 = vmatpush3.bf16.msra.mxu0 %v19679_v11 }
0x3283   :  { %16660 = vmatprep.subr.bf16.mxu0 %v21008_v39 }
0x3350   :  { %v10309_v28 = vpop.f32.mrb[38].mxu0 }
0x3351   :  { %v19922_v63 = vadd.f32 %v10309_v28, %v19614_v54  ;;  %v16308_v26 = vpop.f32.mrb[39].mxu0 }
0x3353   :  { %v10315_v55 = vsel %vm8776_vm10, %v19922_v63, 0.0  ;;  %v10319_v53 = vmul.f32 %v19922_v63, %v19922_v63 }
0x3354   :  { %10316 = vadd.xlane.f32.xlu1 %v10315_v55 }
0x3355   :  { %v10320_v33 = vsel %vm8776_vm10, %v10319_v53, 0.0 }
0x3356   :  { %10321 = vadd.xlane.f32.xlu0 %v10320_v33 }
0x33e1   :  { %v10317_v12 = vpop.xlane.xlu1 %10316 }
0x33e2   :  { %v10318_v7 = vmul.f32 0.03125, %v10317_v12 }
0x33e3   :  { %v10322_v11 = vpop.xlane.xlu0 %10321 }
0x33e4   :  { %v10324_v41 = vmul.f32 %v10318_v7, %v10318_v7  ;;  %v10323_v3 = vmul.f32 0.03125, %v10322_v11 }
0x33e6   :  { %v10325_v4 = vsub.f32 %v10323_v3, %v10324_v41 }
0x33e8   :  { %v10326_v36 = vmax.f32 %v10325_v4, 0.0 }
0x33ea   :  { %v10327_v54 = vadd.f32 1e-05, %v10326_v36 }
0x33ec   :  { %17098 = vrsqrt.f32 %v10327_v54 }
0x33f6   :  { %v17099_v46 = vpop.eup %17098 }
0x33f7   :  { %v10329_v50 = vmul.f32 %v17099_v46, %v19932_v16 }
0x33f9   :  { %10338 = vperm.xlu1 %17043, %v10329_v50   ;;  %v10330_v49 = vmul.f32 %v10329_v50, %v10318_v7  ;;  %v15643_v7 = vld [vmem:[%s20732_s2 + $0x30] sm:$0xff] }
0x33fb   :  { %10332 = vrot.lane.b32.xlu0 %v10330_v49, %s17173_s25 }
0x33fd   :  { %17044 = vset.pattern.permute.xlu1 %v21007_v27 }
0x346d   :  { %v10333_v2 = vpop.permute.xlu0 %10332 }
0x346e   :  { %v10335_v28 = vsub.f32 %v19932_v16, %v10333_v2 }
0x3470   :  { %10344 = vperm.xlu1 %17044, %v10335_v28  }
0x3474   :  { %17045 = vset.pattern.permute.xlu1 %v21002_v61 }
0x3478   :  { %v10339_v26 = vpop.permute.xlu1 %10338 }
0x3479   :  { %v10341_v55 = vmul.f32 %v10339_v26, %v19922_v63 }
0x34ef   :  { %v10345_v53 = vpop.permute.xlu1 %10344 }
0x34f0   :  { %v10347_v33 = vadd.f32 %v10345_v53, %v10341_v55 }
0x34f2   :  { %v10348_v12 = vmax.f32 %v10347_v33, 0.0 }
0x34f4   :  { %16310 = vmatpush3.msra.mxu1 %v10348_v12 }
0x34f5   :  { %16312 = vmatmul.mubr.msk.f32.vlgmr.msra.gmra.mrb[36].mxu1 %vm120_vm0, %v15643_v7  ;;  %16325 = vmatprep.subr.mxu1 %v20995_v10 }
0x34f6   :  { %16327 = vmatprep.mubr.msk.f32.mxu1 %vm17186_vm9, %v20995_v10 }
0x35c8   :  { %v10420_v11 = vpop.f32.mrb[36].mxu1 }
0x35c9   :  { %v10428_v41 = vmul.f32 %v10420_v11, %v10420_v11  ;;  %v10424_v3 = vsel %vm8776_vm10, %v10420_v11, 0.0  ;;  %v16313_v4 = vpop.f32.mrb[37].mxu1 }
0x35ca   :  { %10425 = vadd.xlane.f32.xlu0 %v10424_v3 }
0x35cb   :  { %v10429_v36 = vsel %vm8776_vm10, %v10428_v41, 0.0 }
0x35cc   :  { %10430 = vadd.xlane.f32.xlu1 %v10429_v36 }
0x3657   :  { %v10426_v54 = vpop.xlane.xlu0 %10425 }
0x3658   :  { %v10427_v46 = vmul.f32 0.03125, %v10426_v54 }
0x3659   :  { %v10431_v50 = vpop.xlane.xlu1 %10430 }
0x365a   :  { %v10433_v49 = vmul.f32 %v10427_v46, %v10427_v46  ;;  %v10432_v2 = vmul.f32 0.03125, %v10431_v50 }
0x365c   :  { %v10434_v28 = vsub.f32 %v10432_v2, %v10433_v49  ;;  %v15653_v2 = vld [vmem:[%s20733_s3 + $0x1c0] sm:$0xff] }
0x365e   :  { %v10435_v26 = vmax.f32 %v10434_v28, 0.0 }
0x3660   :  { %v10436_v55 = vadd.f32 1e-05, %v10435_v26  ;;  %v15656_v26 = vld [vmem:[%s20733_s3 + $0x1c8] sm:$0xff] }
0x3662   :  { %17100 = vrsqrt.f32 %v10436_v55  ;;  %v15659_v55 = vld [vmem:[%s20733_s3 + $0x1d8] sm:$0xff] }
0x366c   :  { %v17101_v53 = vpop.eup %17100 }
0x366d   :  { %v10438_v33 = vmul.f32 %v17101_v53, %v19932_v16  ;;  %v15662_v53 = vld [vmem:[%s20733_s3 + $0x1e0] sm:$0xff] }
0x366f   :  { %10447 = vperm.xlu1 %17045, %v10438_v33   ;;  %v10439_v12 = vmul.f32 %v10438_v33, %v10427_v46  ;;  %v15665_v33 = vld [vmem:[%s20733_s3 + $0x1e8] sm:$0xff] }
0x3671   :  { %10441 = vrot.lane.b32.xlu0 %v10439_v12, %s17173_s25 }
0x3673   :  { %17046 = vset.pattern.permute.xlu1 %v21005_v34 }
0x36e3   :  { %v10442_v7 = vpop.permute.xlu0 %10441 }
0x36e4   :  { %v10444_v41 = vsub.f32 %v19932_v16, %v10442_v7 }
0x36e6   :  { %10453 = vperm.xlu0 %17040, %v10444_v41  }
0x36ea   :  { %17049 = vset.pattern.permute.xlu0 %v21007_v27  ;;  %v15646_v27 = vld [vmem:[%s20733_s3 + $0x1b0] sm:$0xff] }
0x36ee   :  { %v10448_v3 = vpop.permute.xlu1 %10447 }
0x36ef   :  { %v10450_v4 = vmul.f32 %v10448_v3, %v10420_v11 }
0x3765   :  { %v10454_v36 = vpop.permute.xlu0 %10453 }
0x3766   :  { %v10456_v54 = vadd.f32 %v10454_v36, %v10450_v4 }
0x3768   :  { %v19954_v50 = vmax.f32 %v10456_v54, 0.0 }
0x376a   :  { %16323 = vmatmul.mubr.msk.f32.vlgmr.msra.gmra.mrb[40].mxu0 %vm8776_vm10, %v19954_v50 }
0x376b   :  { %16662 = vmatpush3.bf16.msra.mxu0 %v19809_v44  ;;  %16343 = vmatprep.mubr.msk.f32.mxu0 %vm17186_vm9, %v20995_v10 }
0x376c   :  { %16663 = vmatprep.subr.bf16.mxu0 %v21008_v39 }
0x376f   :  { %16665 = vmatpush3.bf16.msra.mxu0 %v19819_v15 }
0x3770   :  { %16672 = vmatprep.subr.bf16.mxu0 %v21008_v39 }
0x3772   :  { %16344 = vmatmul.mubr.msk.f32.vlgmr.msra.gmra.mrb[42].mxu0 %vm8776_vm10, %v19954_v50 }
0x3773   :  { %16674 = vmatpush3.bf16.msra.mxu0 %v19691_v45  ;;  %16375 = vmatprep.mubr.msk.f32.mxu0 %vm17186_vm9, %v20995_v10 }
0x3774   :  { %16675 = vmatprep.subr.bf16.mxu0 %v21008_v39 }
0x3777   :  { %16677 = vmatpush3.bf16.msra.mxu0 %v19706_v13 }
0x3778   :  { %16678 = vmatprep.subr.bf16.mxu0 %v21008_v39 }
0x377a   :  { %16376 = vmatmul.mubr.msk.f32.vlgmr.msra.gmra.mrb[44].mxu0 %vm8776_vm10, %v19954_v50 }
0x377b   :  { %16680 = vmatpush3.bf16.msra.mxu0 %v19854_v21  ;;  %16391 = vmatprep.mubr.msk.f32.mxu0 %vm17186_vm9, %v20995_v10 }
0x377c   :  { %16681 = vmatprep.subr.bf16.mxu0 %v21008_v39 }
0x377f   :  { %16683 = vmatpush3.bf16.msra.mxu0 %v19864_v20 }
0x3780   :  { %16684 = vmatprep.subr.bf16.mxu0 %v21008_v39 }
0x3782   :  { %16392 = vmatmul.mubr.msk.f32.vlgmr.msra.gmra.mrb[46].mxu0 %vm8776_vm10, %v19954_v50 }
0x3783   :  { %16686 = vmatpush3.bf16.msra.mxu0 %v19720_v38  ;;  %16407 = vmatprep.mubr.msk.f32.mxu0 %vm17186_vm9, %v20995_v10  ;;  %v15645_v38 = vld [vmem:[%s20733_s3 + $0x1d0] sm:$0xff] }
0x3784   :  { %16687 = vmatprep.subr.bf16.mxu0 %v21008_v39 }
0x3787   :  { %16689 = vmatpush3.bf16.msra.mxu0 %v19732_v22 }
0x3788   :  { %16696 = vmatprep.subr.bf16.mxu0 %v21008_v39 }
0x378a   :  { %16408 = vmatmul.mubr.msk.f32.vlgmr.msra.gmra.mrb[48].mxu0 %vm8776_vm10, %v19954_v50 }
0x378b   :  { %16698 = vmatpush3.bf16.msra.mxu0 %v19768_v24  ;;  %16439 = vmatprep.mubr.msk.f32.mxu0 %vm17186_vm9, %v20995_v10 }
0x378c   :  { %16699 = vmatprep.subr.bf16.mxu0 %v21008_v39 }
0x378f   :  { %16701 = vmatpush3.bf16.msra.mxu0 %v19780_v52  ;;  %v15650_v52 = vld [vmem:[%s20733_s3 + $0x1b8] sm:$0xff] }
0x3790   :  { %16447 = vmatprep.subr.mxu0 %v20995_v10 }
0x3792   :  { %16440 = vmatmul.mubr.msk.f32.vlgmr.msra.gmra.mrb[50].mxu0 %vm8776_vm10, %v19954_v50 }
0x3793   :  { %16449 = vmatprep.mubr.msk.f32.mxu0 %vm17186_vm9, %v20995_v10 }
0x383d   :  { %v10531_v45 = vpop.f32.mrb[40].mxu0 }
0x383e   :  { %v16324_v13 = vpop.f32.mrb[41].mxu0  ;;  %16326 = vmatpush3.msra.mxu1 %v10531_v45 }
0x383f   :  { %16328 = vmatmul.mubr.msk.f32.vlgmr.msra.gmra.mrb[38].mxu1 %vm120_vm0, %v15646_v27  ;;  %16330 = vmatprep.subr.mxu1 %v20995_v10 }
0x3840   :  { %16331 = vmatpush3.msra.mxu1 %v19954_v50  ;;  %16332 = vmatprep.mubr.msk.f32.mxu1 %vm17186_vm9, %v20995_v10 }
0x3841   :  { %16346 = vmatprep.subr.mxu1 %v20995_v10 }
0x3845   :  { %v10749_v22 = vpop.f32.mrb[42].mxu0 }
0x3846   :  { %v16345_v24 = vpop.f32.mrb[43].mxu0 }
0x3847   :  { %16333 = vmatmul.mubr.msk.f32.vlgmr.msra.gmra.mrb[38].mxu1 %vm120_vm0, %v15645_v38 }
0x3848   :  { %16347 = vmatpush3.msra.mxu1 %v10749_v22  ;;  %16348 = vmatprep.mubr.msk.f32.mxu1 %vm17186_vm9, %v20995_v10 }
0x3849   :  { %16666 = vmatprep.subr.bf16.mxu1 %v21008_v39 }
0x384d   :  { %v11041_v44 = vpop.f32.mrb[44].mxu0 }
0x384e   :  { %v16377_v15 = vpop.f32.mrb[45].mxu0 }
0x384f   :  { %16349 = vmatmul.mubr.msk.f32.vlgmr.msra.gmra.mrb[38].mxu1 %vm120_vm0, %v15650_v52 }
0x3850   :  { %16668 = vmatpush3.bf16.msra.mxu1 %v19651_v37  ;;  %16359 = vmatprep.mubr.msk.f32.mxu1 %vm17186_vm9, %v20995_v10 }
0x3851   :  { %16669 = vmatprep.subr.bf16.mxu1 %v21008_v39 }
0x3854   :  { %16671 = vmatpush3.bf16.msra.mxu1 %v19671_v25 }
0x3855   :  { %v11187_v21 = vpop.f32.mrb[46].mxu0  ;;  %16362 = vmatprep.subr.mxu1 %v20995_v10 }
0x3856   :  { %v16393_v20 = vpop.f32.mrb[47].mxu0 }
0x3857   :  { %16360 = vmatmul.mubr.msk.f32.vlgmr.msra.gmra.mrb[40].mxu1 %vm8776_vm10, %v19954_v50 }
0x3858   :  { %16364 = vmatprep.mubr.msk.f32.mxu1 %vm17186_vm9, %v20995_v10 }
0x385d   :  { %v11333_v11 = vpop.f32.mrb[48].mxu0 }
0x385e   :  { %v16409_v46 = vpop.f32.mrb[49].mxu0 }
0x385f   :  { %v11813_v46 = vld [vmem:[#allocation2 + $0x8] sm:$0xff] }
0x3865   :  { %v11625_v37 = vpop.f32.mrb[50].mxu0 }
0x3866   :  { %v16441_v49 = vpop.f32.mrb[51].mxu0 }
0x392a   :  { %v10895_v28 = vpop.f32.mrb[40].mxu1 }
0x392b   :  { %v16361_v25 = vpop.f32.mrb[41].mxu1  ;;  %16363 = vmatpush3.msra.mxu1 %v10895_v28 }
0x392c   :  { %16365 = vmatmul.mubr.msk.f32.vlgmr.msra.gmra.mrb[38].mxu1 %vm120_vm0, %v15653_v2  ;;  %16378 = vmatprep.subr.mxu1 %v20995_v10 }
0x392d   :  { %16379 = vmatpush3.msra.mxu1 %v11041_v44  ;;  %16380 = vmatprep.mubr.msk.f32.mxu1 %vm17186_vm9, %v20995_v10 }
0x392e   :  { %16394 = vmatprep.subr.mxu1 %v20995_v10 }
0x3934   :  { %16381 = vmatmul.mubr.msk.f32.vlgmr.msra.gmra.mrb[38].mxu1 %vm120_vm0, %v15656_v26 }
0x3935   :  { %16395 = vmatpush3.msra.mxu1 %v11187_v21  ;;  %16396 = vmatprep.mubr.msk.f32.mxu1 %vm17186_vm9, %v20995_v10 }
0x3936   :  { %16410 = vmatprep.subr.mxu1 %v20995_v10 }
0x393c   :  { %16397 = vmatmul.mubr.msk.f32.vlgmr.msra.gmra.mrb[38].mxu1 %vm120_vm0, %v15659_v55  ;;  %v15671_v55 = vld [vmem:[%s20734_s4 + $0x30] sm:$0xff] }
0x393d   :  { %16411 = vmatpush3.msra.mxu1 %v11333_v11  ;;  %16412 = vmatprep.mubr.msk.f32.mxu1 %vm17186_vm9, %v20995_v10  ;;  %v11812_v11 = vld [vmem:[#allocation2] sm:$0xff] }
0x393e   :  { %16690 = vmatprep.subr.bf16.mxu1 %v21008_v39 }
0x3944   :  { %16413 = vmatmul.mubr.msk.f32.vlgmr.msra.gmra.mrb[38].mxu1 %vm120_vm0, %v15662_v53  ;;  %v11815_v53 = vld [vmem:[#allocation2 + $0x18] sm:$0xff] }
0x3945   :  { %16692 = vmatpush3.bf16.msra.mxu1 %v19744_v9  ;;  %16423 = vmatprep.mubr.msk.f32.mxu1 %vm17186_vm9, %v20995_v10 }
0x3946   :  { %16693 = vmatprep.subr.bf16.mxu1 %v21008_v39 }
0x3949   :  { %16695 = vmatpush3.bf16.msra.mxu1 %v19756_v42  ;;  %v15668_v42 = vld [vmem:[%s20733_s3 + $0x1f0] sm:$0xff] }
0x394a   :  { %16426 = vmatprep.subr.mxu1 %v20995_v10 }
0x394c   :  { %16424 = vmatmul.mubr.msk.f32.vlgmr.msra.gmra.mrb[42].mxu1 %vm8776_vm10, %v19954_v50 }
0x394d   :  { %16428 = vmatprep.mubr.msk.f32.mxu1 %vm17186_vm9, %v20995_v10 }
0x3a1f   :  { %v11479_v9 = vpop.f32.mrb[42].mxu1 }
0x3a20   :  { %v16425_v12 = vpop.f32.mrb[43].mxu1  ;;  %16427 = vmatpush3.msra.mxu1 %v11479_v9 }
0x3a21   :  { %16429 = vmatmul.mubr.msk.f32.vlgmr.msra.gmra.mrb[38].mxu1 %vm120_vm0, %v15665_v33  ;;  %16442 = vmatprep.subr.mxu1 %v20995_v10 }
0x3a22   :  { %16443 = vmatpush3.msra.mxu1 %v11625_v37  ;;  %16444 = vmatprep.mubr.msk.f32.mxu1 %vm17186_vm9, %v20995_v10  ;;  %v16703_v37 = vpack.c.bf16 %v11813_v46, %v11812_v11 }
0x3a23   :  { %16702 = vmatprep.subr.bf16.mxu1 %v21008_v39 }
0x3a29   :  { %16445 = vmatmul.mubr.msk.f32.vlgmr.msra.gmra.mrb[38].mxu1 %vm120_vm0, %v15668_v42  ;;  %v16772_v42 = vadd.f32 %v19396_v62, %v19396_v62  ;;  %v20110_v62 = vld [vmem:[%s20731_s1 + $0x38] sm:$0xff] }
0x3a2a   :  { %16460 = vmatprep.mubr.msk.f32.mxu1 %vm17186_vm9, %v20995_v10  ;;  %16704 = vmatpush3.bf16.msra.mxu1 %v16703_v37 }
0x3a2b   :  { %16705 = vmatprep.subr.bf16.mxu1 %v21008_v39 }
0x3afc   :  { %v11698_v7 = vpop.f32.mrb[38].mxu1 }
0x3afd   :  { %v11707_v41 = vmul.f32 %v11698_v7, %v11698_v7  ;;  %v16446_v3 = vpop.f32.mrb[39].mxu1  ;;  %v11703_v4 = vsel %vm8776_vm10, %v11698_v7, 0.0 }
0x3afe   :  { %11704 = vadd.xlane.f32.xlu1 %v11703_v4 }
0x3aff   :  { %v11708_v36 = vsel %vm8776_vm10, %v11707_v41, 0.0 }
0x3b00   :  { %11709 = vadd.xlane.f32.xlu0 %v11708_v36 }
0x3b8b   :  { %v11705_v54 = vpop.xlane.xlu1 %11704 }
0x3b8c   :  { %v11706_v50 = vmul.f32 0.03125, %v11705_v54 }
0x3b8d   :  { %v11710_v27 = vpop.xlane.xlu0 %11709 }
0x3b8e   :  { %v11712_v45 = vmul.f32 %v11706_v50, %v11706_v50  ;;  %v11711_v13 = vmul.f32 0.03125, %v11710_v27 }
0x3b90   :  { %v11713_v38 = vsub.f32 %v11711_v13, %v11712_v45 }
0x3b92   :  { %v11714_v22 = vmax.f32 %v11713_v38, 0.0 }
0x3b94   :  { %v11715_v24 = vadd.f32 1e-05, %v11714_v22 }
0x3b96   :  { %17102 = vrsqrt.f32 %v11715_v24 }
0x3ba0   :  { %v17103_v52 = vpop.eup %17102 }
0x3ba1   :  { %v11717_v44 = vmul.f32 %v17103_v52, %v19932_v16 }
0x3ba3   :  { %11726 = vperm.xlu1 %17046, %v11717_v44   ;;  %v11718_v15 = vmul.f32 %v11717_v44, %v11706_v50 }
0x3ba5   :  { %11720 = vrot.lane.b32.xlu0 %v11718_v15, %s17173_s25 }
0x3ba7   :  { %17047 = vset.pattern.permute.xlu1 %v21003_v47 }
0x3c17   :  { %v11721_v21 = vpop.permute.xlu0 %11720 }
0x3c18   :  { %v11723_v20 = vsub.f32 %v19932_v16, %v11721_v21  ;;  %v11814_v16 = vld [vmem:[#allocation2 + $0x10] sm:$0xff] }
0x3c19   :  { %v16706_v39 = vpack.c.bf16 %v11815_v53, %v11814_v16 }
0x3c1a   :  { %11732 = vperm.xlu1 %17047, %v11723_v20  }
0x3c1b   :  { %16707 = vmatpush3.bf16.msra.mxu1 %v16706_v39 }
0x3c1c   :  { %16513 = vmatprep.subr.mxu1 %v20995_v10 }
0x3c1e   :  { %17048 = vset.pattern.permute.xlu1 %v21006_v31 }
0x3c22   :  { %v11727_v49 = vpop.permute.xlu1 %11726 }
0x3c23   :  { %v11729_v2 = vmul.f32 %v11727_v49, %v11698_v7  ;;  %v15675_v49 = vld [vmem:[%s20732_s2 + $0x38] sm:$0xff] }
0x3c99   :  { %v11733_v28 = vpop.permute.xlu1 %11732 }
0x3c9a   :  { %v11735_v25 = vadd.f32 %v11733_v28, %v11729_v2 }
0x3c9c   :  { %v11736_v26 = vmax.f32 %v11735_v25, 0.0 }
0x3c9e   :  { %16448 = vmatpush3.msra.mxu0 %v11736_v26 }
0x3c9f   :  { %16450 = vmatmul.mubr.msk.f32.vlgmr.msra.gmra.mrb[52].mxu0 %vm120_vm0, %v15671_v55  ;;  %16463 = vmatprep.subr.mxu0 %v20995_v10 }
0x3ca0   :  { %16465 = vmatprep.mubr.msk.f32.mxu0 %vm17186_vm9, %v20995_v10 }
0x3d72   :  { %v11808_v33 = vpop.f32.mrb[52].mxu0 }
0x3d73   :  { %v11809_v9 = vadd.f32 %v11808_v33, %v19922_v63  ;;  %v16451_v12 = vpop.f32.mrb[53].mxu0 }
0x3d75   :  { %16461 = vmatmul.mubr.msk.f32.vlgmr.msra.gmra.mrb[22].mxu1 %vm8776_vm10, %v11809_v9 }
0x3d76   :  { %16515 = vmatprep.mubr.msk.f32.mxu1 %vm17186_vm9, %v20995_v10 }
0x3e48   :  { %v11885_v7 = vpop.f32.mrb[22].mxu1 }
0x3e49   :  { %v20102_v41 = vadd.f32 %v16772_v42, %v11885_v7  ;;  %v16462_v3 = vpop.f32.mrb[23].mxu1 }
0x3e4b   :  { %11892 = vadd.xlane.f32.xlu0 %v20102_v41  ;;  %v11895_v4 = vmul.f32 %v20102_v41, %v20102_v41 }
0x3e4d   :  { %11896 = vadd.xlane.f32.xlu1 %v11895_v4 }
0x3ed8   :  { %v11893_v63 = vpop.xlane.xlu0 %11892 }
0x3ed9   :  { %v11894_v36 = vmul.f32 0.0078125, %v11893_v63 }
0x3eda   :  { %v11897_v54 = vpop.xlane.xlu1 %11896 }
0x3edb   :  { %v11899_v50 = vmul.f32 %v11894_v36, %v11894_v36  ;;  %v11898_v27 = vmul.f32 0.0078125, %v11897_v54 }
0x3edd   :  { %v11900_v45 = vsub.f32 %v11898_v27, %v11899_v50 }
0x3edf   :  { %v11901_v13 = vmax.f32 %v11900_v45, 0.0 }
0x3ee1   :  { %v11902_v38 = vadd.f32 1e-05, %v11901_v13 }
0x3ee3   :  { %17104 = vrsqrt.f32 %v11902_v38 }
0x3eed   :  { %v17105_v22 = vpop.eup %17104 }
0x3eee   :  { %v11904_v24 = vmul.f32 %v17105_v22, %v20110_v62  ;;  %v15678_v22 = vld [vmem:[%s20733_s3 + $0x1f8] sm:$0xff] }
0x3ef0   :  { %11913 = vperm.xlu1 %17048, %v11904_v24   ;;  %v11905_v52 = vmul.f32 %v11904_v24, %v11894_v36 }
0x3ef2   :  { %11907 = vrot.lane.b32.xlu0 %v11905_v52, %s17173_s25 }
0x3ef4   :  { %17050 = vset.pattern.permute.xlu1 %v21002_v61 }
0x3f64   :  { %v11908_v44 = vpop.permute.xlu0 %11907 }
0x3f65   :  { %v11910_v15 = vsub.f32 %v20110_v62, %v11908_v44 }
0x3f67   :  { %11919 = vperm.xlu0 %17049, %v11910_v15   ;;  %v15681_v15 = vld [vmem:[%s20733_s3 + $0x200] sm:$0xff] }
0x3f6f   :  { %v11914_v21 = vpop.permute.xlu1 %11913 }
0x3f70   :  { %v11916_v20 = vmul.f32 %v20102_v41, %v11914_v21 }
0x3fe6   :  { %v11920_v11 = vpop.permute.xlu0 %11919 }
0x3fe7   :  { %v11922_v46 = vadd.f32 %v11920_v11, %v11916_v20  ;;  %v15683_v20 = vld [vmem:[%s20733_s3 + $0x208] sm:$0xff] }
0x3fe9   :  { %v11923_v37 = vmax.f32 %v11922_v46, 0.0  ;;  %v15685_v46 = vld [vmem:[%s20733_s3 + $0x210] sm:$0xff] }
0x3feb   :  { %16464 = vmatpush3.msra.mxu0 %v11923_v37 }
0x3fec   :  { %16466 = vmatmul.mubr.msk.f32.vlgmr.msra.gmra.mrb[54].mxu0 %vm120_vm0, %v15675_v49  ;;  %16468 = vmatprep.subr.mxu0 %v20995_v10  ;;  %v15687_v49 = vld [vmem:[%s20733_s3 + $0x220] sm:$0xff] }
0x3fed   :  { %16470 = vmatprep.mubr.msk.f32.mxu0 %vm17186_vm9, %v20995_v10 }
0x40bf   :  { %v11995_v2 = vpop.f32.mrb[54].mxu0 }
0x40c0   :  { %v12002_v28 = vmul.f32 %v11995_v2, %v11995_v2  ;;  %11999 = vadd.xlane.f32.xlu1 %v11995_v2  ;;  %v16467_v25 = vpop.f32.mrb[55].mxu0 }
0x40c2   :  { %12003 = vadd.xlane.f32.xlu0 %v12002_v28  ;;  %v15689_v28 = vld [vmem:[%s20733_s3 + $0x228] sm:$0xff] }
0x414d   :  { %v12000_v26 = vpop.xlane.xlu1 %11999 }
0x414e   :  { %v12001_v55 = vmul.f32 0.0078125, %v12000_v26  ;;  %v15691_v26 = vld [vmem:[%s20733_s3 + $0x230] sm:$0xff] }
0x414f   :  { %v12004_v16 = vpop.xlane.xlu0 %12003 }
0x4150   :  { %v12006_v53 = vmul.f32 %v12001_v55, %v12001_v55  ;;  %v12005_v39 = vmul.f32 0.0078125, %v12004_v16 }
0x4152   :  { %v12007_v33 = vsub.f32 %v12005_v39, %v12006_v53 }
0x4154   :  { %v12008_v9 = vmax.f32 %v12007_v33, 0.0 }
0x4156   :  { %v12009_v12 = vadd.f32 1e-05, %v12008_v9 }
0x4158   :  { %17106 = vrsqrt.f32 %v12009_v12 }
0x4162   :  { %v17107_v42 = vpop.eup %17106 }
0x4163   :  { %v12011_v7 = vmul.f32 %v17107_v42, %v20110_v62 }
0x4165   :  { %12020 = vperm.xlu1 %17050, %v12011_v7   ;;  %v12012_v3 = vmul.f32 %v12011_v7, %v12001_v55 }
0x4167   :  { %12014 = vrot.lane.b32.xlu0 %v12012_v3, %s17173_s25 }
0x4169   :  { %17051 = vset.pattern.permute.xlu1 %v21004_v6 }
0x41d9   :  { %v12015_v4 = vpop.permute.xlu0 %12014 }
0x41da   :  { %v12017_v63 = vsub.f32 %v20110_v62, %v12015_v4 }
0x41dc   :  { %12026 = vperm.xlu1 %17051, %v12017_v63  }
0x41e0   :  { %17052 = vset.pattern.permute.xlu1 %v21005_v34 }
0x41e4   :  { %v12021_v36 = vpop.permute.xlu1 %12020 }
0x41e5   :  { %v12023_v54 = vmul.f32 %v12021_v36, %v11995_v2 }
0x425b   :  { %v12027_v50 = vpop.permute.xlu1 %12026 }
0x425c   :  { %v12029_v27 = vadd.f32 %v12027_v50, %v12023_v54 }
0x425e   :  { %v12030_v45 = vmax.f32 %v12029_v27, 0.0 }
0x4260   :  { %12186 = vrot.lane.b32.xlu0 %v12030_v45, %s17170_s29  ;;  %12035 = vrot.lane.b32.xlu1 %v12030_v45, %s17187_s13 }
0x4264   :  { %12344 = vrot.lane.b32.xlu0 %v12030_v45, %s17173_s25  ;;  %12265 = vrot.lane.b32.xlu1 %v12030_v45, %s17188_s19 }
0x4268   :  { %12502 = vrot.lane.b32.xlu0 %v12030_v45, %s17189_s0  ;;  %12423 = vrot.lane.b32.xlu1 %v12030_v45, %s17180_s17 }
0x426c   :  { %12660 = vrot.lane.b32.xlu0 %v12030_v45, %s17190_s24  ;;  %12581 = vrot.lane.b32.xlu1 %v12030_v45, %s17191_s8 }
0x42d2   :  { %v12036_v13 = vpop.permute.xlu1 %12035  ;;  %v12187_v24 = vpop.permute.xlu0 %12186 }
0x42d3   :  { %v12037_v38 = vmul.f32 %v12036_v13, %v19248_v59  ;;  %v15677_v59 = vld [vmem:[%s20733_s3 + $0x218] sm:$0xff]  ;;  %v12188_v52 = vmul.f32 %v12187_v24, %v19266_v48 }
0x42d4   :  { %v12851_v13 = vld [vmem:[%s20744_s14 + $0x38] sm:$0xff] }
0x42d5   :  { %16469 = vmatpush3.msra.mxu0 %v12037_v38 }
0x42d6   :  { %16471 = vmatmul.mubr.msk.f32.vlgmr.msra.gmra.mrb[56].mxu0 %vm120_vm0, %v15678_v22  ;;  %16473 = vmatprep.subr.mxu0 %v20995_v10  ;;  %v12266_v44 = vpop.permute.xlu1 %12265  ;;  %v12345_v48 = vpop.permute.xlu0 %12344  ;;  %v12846_v22 = vld [vmem:[%s20744_s14 + $0x10] sm:$0xff] }
0x42d7   :  { %16474 = vmatpush3.msra.mxu0 %v12030_v45  ;;  %16475 = vmatprep.mubr.msk.f32.mxu0 %vm17186_vm9, %v20995_v10  ;;  %v12267_v21 = vmul.f32 %v12266_v44, %v19283_v51  ;;  %v12346_v11 = vmul.f32 %v12345_v48, %v19300_v14  ;;  %v12847_v45 = vld [vmem:[%s20744_s14 + $0x18] sm:$0xff] }
0x42d8   :  { %16478 = vmatprep.subr.mxu0 %v20995_v10  ;;  %v16740_v38 = vpack.c.bf16 %v12851_v13, %v12847_v45  ;;  %v12903_v45 = vld [vmem:[%s20744_s14 + $0x1d8] sm:$0xff] }
0x42d9   :  { %v12907_v13 = vld [vmem:[%s20744_s14 + $0x1f8] sm:$0xff] }
0x42da   :  { %v12424_v51 = vpop.permute.xlu1 %12423  ;;  %v12503_v14 = vpop.permute.xlu0 %12502 }
0x42db   :  { %v12425_v37 = vmul.f32 %v12424_v51, %v19317_v29  ;;  %v12504_v2 = vmul.f32 %v12503_v14, %v19334_v18 }
0x42de   :  { %16476 = vmatmul.mubr.msk.f32.vlgmr.msra.gmra.mrb[56].mxu0 %vm120_vm0, %v15677_v59  ;;  %v12582_v29 = vpop.permute.xlu1 %12581  ;;  %v12661_v18 = vpop.permute.xlu0 %12660  ;;  %v12855_v59 = vld [vmem:[%s20744_s14 + $0x58] sm:$0xff] }
0x42df   :  { %16479 = vmatpush3.msra.mxu0 %v12188_v52  ;;  %16480 = vmatprep.mubr.msk.f32.mxu0 %vm17186_vm9, %v20995_v10  ;;  %v12583_v25 = vmul.f32 %v12582_v29, %v19351_v32  ;;  %v12662_v55 = vmul.f32 %v12661_v18, %v19368_v58  ;;  %v15693_v32 = vld [vmem:[%s20733_s3 + $0x238] sm:$0xff] }
0x42e0   :  { %16483 = vmatprep.subr.mxu0 %v20995_v10  ;;  %v12859_v52 = vld [vmem:[%s20744_s14 + $0x78] sm:$0xff] }
0x42e1   :  { %v16744_v44 = vpack.c.bf16 %v12859_v52, %v12855_v59  ;;  %v12849_v59 = vld [vmem:[%s20744_s14 + $0x28] sm:$0xff] }
0x42e6   :  { %16481 = vmatmul.mubr.msk.f32.vlgmr.msra.gmra.mrb[56].mxu0 %vm120_vm0, %v15681_v15  ;;  %v12854_v15 = vld [vmem:[%s20744_s14 + $0x50] sm:$0xff] }
0x42e7   :  { %16484 = vmatpush3.msra.mxu0 %v12267_v21  ;;  %16485 = vmatprep.mubr.msk.f32.mxu0 %vm17186_vm9, %v20995_v10  ;;  %v12858_v21 = vld [vmem:[%s20744_s14 + $0x70] sm:$0xff] }
0x42e8   :  { %16488 = vmatprep.subr.mxu0 %v20995_v10  ;;  %v16746_v48 = vpack.c.bf16 %v12858_v21, %v12854_v15  ;;  %v12848_v15 = vld [vmem:[%s20744_s14 + $0x20] sm:$0xff] }
0x42ee   :  { %16486 = vmatmul.mubr.msk.f32.vlgmr.msra.gmra.mrb[56].mxu0 %vm120_vm0, %v15683_v20  ;;  %v12863_v20 = vld [vmem:[%s20744_s14 + $0x98] sm:$0xff] }
0x42ef   :  { %16489 = vmatpush3.msra.mxu0 %v12346_v11  ;;  %16490 = vmatprep.mubr.msk.f32.mxu0 %vm17186_vm9, %v20995_v10  ;;  %v12867_v11 = vld [vmem:[%s20744_s14 + $0xb8] sm:$0xff] }
0x42f0   :  { %16493 = vmatprep.subr.mxu0 %v20995_v10  ;;  %v16748_v51 = vpack.c.bf16 %v12867_v11, %v12863_v20 }
0x42f6   :  { %16491 = vmatmul.mubr.msk.f32.vlgmr.msra.gmra.mrb[56].mxu0 %vm120_vm0, %v15685_v46  ;;  %v12862_v46 = vld [vmem:[%s20744_s14 + $0x90] sm:$0xff] }
0x42f7   :  { %16494 = vmatpush3.msra.mxu0 %v12425_v37  ;;  %16495 = vmatprep.mubr.msk.f32.mxu0 %vm17186_vm9, %v20995_v10  ;;  %v12866_v37 = vld [vmem:[%s20744_s14 + $0xb0] sm:$0xff] }
0x42f8   :  { %16498 = vmatprep.subr.mxu0 %v20995_v10  ;;  %v16750_v14 = vpack.c.bf16 %v12866_v37, %v12862_v46 }
0x42fe   :  { %16496 = vmatmul.mubr.msk.f32.vlgmr.msra.gmra.mrb[56].mxu0 %vm120_vm0, %v15687_v49  ;;  %v12871_v49 = vld [vmem:[%s20744_s14 + $0xd8] sm:$0xff] }
0x42ff   :  { %16499 = vmatpush3.msra.mxu0 %v12504_v2  ;;  %16500 = vmatprep.mubr.msk.f32.mxu0 %vm17186_vm9, %v20995_v10  ;;  %v12875_v2 = vld [vmem:[%s20744_s14 + $0xf8] sm:$0xff] }
0x4300   :  { %16503 = vmatprep.subr.mxu0 %v20995_v10  ;;  %v16752_v29 = vpack.c.bf16 %v12875_v2, %v12871_v49  ;;  %v12856_v49 = vld [vmem:[%s20744_s14 + $0x60] sm:$0xff]  ;;  %v12861_v2 = vld [vmem:[%s20744_s14 + $0x88] sm:$0xff] }
0x4306   :  { %16501 = vmatmul.mubr.msk.f32.vlgmr.msra.gmra.mrb[56].mxu0 %vm120_vm0, %v15689_v28  ;;  %v12870_v28 = vld [vmem:[%s20744_s14 + $0xd0] sm:$0xff] }
0x4307   :  { %16504 = vmatpush3.msra.mxu0 %v12583_v25  ;;  %16505 = vmatprep.mubr.msk.f32.mxu0 %vm17186_vm9, %v20995_v10  ;;  %v12874_v25 = vld [vmem:[%s20744_s14 + $0xf0] sm:$0xff] }
0x4308   :  { %16508 = vmatprep.subr.mxu0 %v20995_v10  ;;  %v16754_v18 = vpack.c.bf16 %v12874_v25, %v12870_v28 }
0x430e   :  { %16506 = vmatmul.mubr.msk.f32.vlgmr.msra.gmra.mrb[56].mxu0 %vm120_vm0, %v15691_v26  ;;  %v12879_v26 = vld [vmem:[%s20744_s14 + $0x118] sm:$0xff] }
0x430f   :  { %16509 = vmatpush3.msra.mxu0 %v12662_v55  ;;  %16510 = vmatprep.mubr.msk.f32.mxu0 %vm17186_vm9, %v20995_v10  ;;  %v12883_v55 = vld [vmem:[%s20744_s14 + $0x138] sm:$0xff] }
0x4310   :  { %16741 = vmatprep.subr.bf16.mxu0 %v16740_v38  ;;  %v16768_v38 = vpack.c.bf16 %v12907_v13, %v12903_v45  ;;  %v12888_v45 = vld [vmem:[%s20744_s14 + $0x160] sm:$0xff]  ;;  %v12893_v13 = vld [vmem:[%s20744_s14 + $0x188] sm:$0xff] }
0x4316   :  { %16511 = vmatmul.mubr.msk.f32.vlgmr.msra.gmra.mrb[56].mxu0 %vm120_vm0, %v15693_v32  ;;  %v16756_v32 = vpack.c.bf16 %v12883_v55, %v12879_v26  ;;  %v12864_v26 = vld [vmem:[%s20744_s14 + $0xa0] sm:$0xff]  ;;  %v12869_v55 = vld [vmem:[%s20744_s14 + $0xc8] sm:$0xff] }
0x4317   :  { %13043 = vmatprep.mubr.f32.mxu0 %v20995_v10 }
0x43e9   :  { %v20206_v16 = vpop.f32.mrb[56].mxu0 }
0x43ea   :  { %v12740_v53 = vmul.f32 %v20206_v16, %v20206_v16  ;;  %12737 = vadd.xlane.f32.xlu1 %v20206_v16  ;;  %v16512_v58 = vpop.f32.mrb[57].mxu0 }
0x43eb   :  { %v12882_v58 = vld [vmem:[%s20744_s14 + $0x130] sm:$0xff] }
0x43ec   :  { %12741 = vadd.xlane.f32.xlu0 %v12740_v53  ;;  %v12878_v53 = vld [vmem:[%s20744_s14 + $0x110] sm:$0xff] }
0x4477   :  { %v12738_v39 = vpop.xlane.xlu1 %12737 }
0x4478   :  { %v12739_v33 = vmul.f32 0.0078125, %v12738_v39  ;;  %v16758_v39 = vpack.c.bf16 %v12882_v58, %v12878_v53 }
0x4479   :  { %v12742_v9 = vpop.xlane.xlu0 %12741 }
0x447a   :  { %v12744_v12 = vmul.f32 %v12739_v33, %v12739_v33  ;;  %v12743_v42 = vmul.f32 0.0078125, %v12742_v9  ;;  %v12891_v9 = vld [vmem:[%s20744_s14 + $0x178] sm:$0xff] }
0x447c   :  { %v12745_v7 = vsub.f32 %v12743_v42, %v12744_v12  ;;  %v12886_v42 = vld [vmem:[%s20744_s14 + $0x150] sm:$0xff] }
0x447e   :  { %v12746_v3 = vmax.f32 %v12745_v7, 0.0  ;;  %v12890_v7 = vld [vmem:[%s20744_s14 + $0x170] sm:$0xff] }
0x4480   :  { %v12747_v4 = vadd.f32 1e-05, %v12746_v3  ;;  %v16762_v3 = vpack.c.bf16 %v12890_v7, %v12886_v42 }
0x4482   :  { %17108 = vrsqrt.f32 %v12747_v4  ;;  %v12895_v4 = vld [vmem:[%s20744_s14 + $0x198] sm:$0xff] }
0x448c   :  { %v17109_v63 = vpop.eup %17108 }
0x448d   :  { %v12749_v36 = vmul.f32 %v17109_v63, %v20110_v62  ;;  %v12899_v63 = vld [vmem:[%s20744_s14 + $0x1b8] sm:$0xff] }
0x448f   :  { %12758 = vperm.xlu1 %17052, %v12749_v36   ;;  %v12750_v54 = vmul.f32 %v12749_v36, %v12739_v33  ;;  %v12887_v33 = vld [vmem:[%s20744_s14 + $0x158] sm:$0xff]  ;;  %v16764_v36 = vpack.c.bf16 %v12899_v63, %v12895_v4  ;;  %v12880_v4 = vld [vmem:[%s20744_s14 + $0x120] sm:$0xff]  ;;  %v12885_v63 = vld [vmem:[%s20744_s14 + $0x148] sm:$0xff] }
0x4490   :  { %v16760_v12 = vpack.c.bf16 %v12891_v9, %v12887_v33  ;;  %v12872_v33 = vld [vmem:[%s20744_s14 + $0xe0] sm:$0xff]  ;;  %v12877_v9 = vld [vmem:[%s20744_s14 + $0x108] sm:$0xff] }
0x4491   :  { %12752 = vrot.lane.b32.xlu0 %v12750_v54, %s17173_s25  ;;  %v12894_v54 = vld [vmem:[%s20744_s14 + $0x190] sm:$0xff] }
0x4493   :  { %17053 = vset.pattern.permute.xlu1 %v21003_v47 }
0x4503   :  { %v12753_v50 = vpop.permute.xlu0 %12752 }
0x4504   :  { %v12755_v27 = vsub.f32 %v20110_v62, %v12753_v50  ;;  %v12850_v62 = vld [vmem:[%s20744_s14 + $0x30] sm:$0xff] }
0x4505   :  { %v16742_v24 = vpack.c.bf16 %v12850_v62, %v12846_v22  ;;  %v12898_v50 = vld [vmem:[%s20744_s14 + $0x1b0] sm:$0xff] }
0x4506   :  { %12764 = vperm.xlu1 %17053, %v12755_v27   ;;  %v16766_v27 = vpack.c.bf16 %v12898_v50, %v12894_v54 }
0x4507   :  { %16743 = vmatpush1.bf16.msra.mxu0 %v16742_v24  ;;  %v12845_v24 = vld [vmem:[%s20744_s14 + $0x8] sm:$0xff] }
0x4508   :  { %16745 = vmatprep.subr.bf16.mxu0 %v16744_v44  ;;  %v12844_v44 = vld [vmem:[%s20744_s14] sm:$0xff]  ;;  %v16708_v20 = vpack.c.bf16 %v12849_v59, %v12845_v24 }
0x4509   :  { %v16710_v46 = vpack.c.bf16 %v12848_v15, %v12844_v44  ;;  %v12892_v24 = vld [vmem:[%s20744_s14 + $0x180] sm:$0xff]  ;;  %v12905_v44 = vld [vmem:[%s20744_s14 + $0x1e8] sm:$0xff] }
0x450a   :  { %17054 = vset.pattern.permute.xlu1 %v21006_v31  ;;  %v12896_v59 = vld [vmem:[%s20744_s14 + $0x1a0] sm:$0xff] }
0x450b   :  { %16747 = vmatpush1.bf16.msra.mxu0 %v16746_v48  ;;  %v12857_v48 = vld [vmem:[%s20744_s14 + $0x68] sm:$0xff]  ;;  %v16734_v15 = vpack.c.bf16 %v12896_v59, %v12892_v24  ;;  %v20440_v59 = vld [vmem:[%s20735_s5] sm:$0xff] }
0x450c   :  { %16749 = vmatprep.subr.bf16.mxu0 %v16748_v51  ;;  %v15695_v51 = vld [vmem:[%s20734_s4 + $0x38] sm:$0xff] }
0x450e   :  { %v12759_v22 = vpop.permute.xlu1 %12758 }
0x450f   :  { %16751 = vmatpush1.bf16.msra.mxu0 %v16750_v14  ;;  %v12761_v62 = vmul.f32 %v12759_v22, %v20206_v16  ;;  %v12853_v16 = vld [vmem:[%s20744_s14 + $0x48] sm:$0xff]  ;;  %v12852_v14 = vld [vmem:[%s20744_s14 + $0x40] sm:$0xff] }
0x4510   :  { %16753 = vmatprep.subr.bf16.mxu0 %v16752_v29  ;;  %v16712_v37 = vpack.c.bf16 %v12857_v48, %v12853_v16  ;;  %v12865_v29 = vld [vmem:[%s20744_s14 + $0xa8] sm:$0xff]  ;;  %v16714_v28 = vpack.c.bf16 %v12856_v49, %v12852_v14  ;;  %v12900_v16 = vld [vmem:[%s20744_s14 + $0x1c0] sm:$0xff] }
0x4511   :  { %v16716_v25 = vpack.c.bf16 %v12865_v29, %v12861_v2  ;;  %v12904_v48 = vld [vmem:[%s20744_s14 + $0x1e0] sm:$0xff]  ;;  %v21009_v2 = vld [vmem:[#allocation42_spill] sm:$0xff] }
0x4512   :  { %v20419_v29 = vadd.f32 %v19193_v0, %v21009_v2 }
0x4513   :  { %16755 = vmatpush1.bf16.msra.mxu0 %v16754_v18  ;;  %v12860_v18 = vld [vmem:[%s20744_s14 + $0x80] sm:$0xff] }
0x4514   :  { %16757 = vmatprep.subr.bf16.mxu0 %v16756_v32  ;;  %v12873_v32 = vld [vmem:[%s20744_s14 + $0xe8] sm:$0xff]  ;;  %v16718_v53 = vpack.c.bf16 %v12864_v26, %v12860_v18  ;;  %v21011_v18 = vld [vmem:[#allocation44_spill] sm:$0xff] }
0x4515   :  { %v16720_v58 = vpack.c.bf16 %v12873_v32, %v12869_v55  ;;  %v20427_v26 = vadd.f32 %v19197_v57, %v21011_v18 }
0x4517   :  { %16759 = vmatpush1.bf16.msra.mxu0 %v16758_v39  ;;  %v12868_v39 = vld [vmem:[%s20744_s14 + $0xc0] sm:$0xff] }
0x4518   :  { %16761 = vmatprep.subr.bf16.mxu0 %v16760_v12  ;;  %v12881_v12 = vld [vmem:[%s20744_s14 + $0x128] sm:$0xff]  ;;  %v16722_v42 = vpack.c.bf16 %v12872_v33, %v12868_v39  ;;  %v21012_v39 = vld [vmem:[#allocation45_spill] sm:$0xff] }
0x4519   :  { %v16724_v7 = vpack.c.bf16 %v12881_v12, %v12877_v9  ;;  %v20432_v33 = vadd.f32 %v19199_v1, %v21012_v39 }
0x451b   :  { %16763 = vmatpush1.bf16.msra.mxu0 %v16762_v3  ;;  %v12876_v3 = vld [vmem:[%s20744_s14 + $0x100] sm:$0xff] }
0x451c   :  { %16765 = vmatprep.subr.bf16.mxu0 %v16764_v36  ;;  %v12889_v36 = vld [vmem:[%s20744_s14 + $0x168] sm:$0xff]  ;;  %v16726_v54 = vpack.c.bf16 %v12880_v4, %v12876_v3 }
0x451d   :  { %v16728_v50 = vpack.c.bf16 %v12889_v36, %v12885_v63 }
0x451f   :  { %16767 = vmatpush1.bf16.msra.mxu0 %v16766_v27  ;;  %v12884_v27 = vld [vmem:[%s20744_s14 + $0x140] sm:$0xff] }
0x4520   :  { %16769 = vmatprep.subr.bf16.mxu0 %v16768_v38  ;;  %v12897_v38 = vld [vmem:[%s20744_s14 + $0x1a8] sm:$0xff]  ;;  %v16730_v22 = vpack.c.bf16 %v12888_v45, %v12884_v27 }
0x4585   :  { %v12765_v52 = vpop.permute.xlu1 %12764 }
0x4586   :  { %v12767_v21 = vadd.f32 %v12765_v52, %v12761_v62  ;;  %v16732_v62 = vpack.c.bf16 %v12897_v38, %v12893_v13  ;;  %v12901_v52 = vld [vmem:[%s20744_s14 + $0x1c8] sm:$0xff] }
0x4588   :  { %v12768_v11 = vmax.f32 %v12767_v21, 0.0  ;;  %v16736_v21 = vpack.c.bf16 %v12905_v44, %v12901_v52 }
0x458a   :  { %16514 = vmatpush3.msra.mxu1 %v12768_v11  ;;  %v16738_v11 = vpack.c.bf16 %v12904_v48, %v12900_v16 }
0x458b   :  { %16516 = vmatmul.mubr.msk.f32.vlgmr.msra.gmra.mrb[44].mxu1 %vm120_vm0, %v15695_v51  ;;  %16709 = vmatprep.subr.bf16.mxu1 %v16708_v20  ;;  %v12902_v20 = vld [vmem:[%s20744_s14 + $0x1d0] sm:$0xff] }
0x458c   :  { %16711 = vmatpush1.bf16.msra.mxu1 %v16710_v46  ;;  %12972 = vmatprep.mubr.f32.mxu1 %v20995_v10  ;;  %v12906_v51 = vld [vmem:[%s20744_s14 + $0x1f0] sm:$0xff] }
0x458d   :  { %16713 = vmatprep.subr.bf16.mxu1 %v16712_v37  ;;  %v16770_v46 = vpack.c.bf16 %v12906_v51, %v12902_v20 }
0x458f   :  { %16771 = vmatpush1.bf16.msra.mxu0 %v16770_v46 }
0x4590   :  { %16715 = vmatpush1.bf16.msra.mxu1 %v16714_v28  ;;  %v21010_v28 = vld [vmem:[#allocation43_spill] sm:$0xff] }
0x4591   :  { %16717 = vmatprep.subr.bf16.mxu1 %v16716_v25  ;;  %v20423_v25 = vadd.f32 %v19195_v60, %v21010_v28 }
0x4594   :  { %16719 = vmatpush1.bf16.msra.mxu1 %v16718_v53 }
0x4595   :  { %16721 = vmatprep.subr.bf16.mxu1 %v16720_v58 }
0x4598   :  { %16723 = vmatpush1.bf16.msra.mxu1 %v16722_v42 }
0x4599   :  { %16725 = vmatprep.subr.bf16.mxu1 %v16724_v7 }
0x459c   :  { %16727 = vmatpush1.bf16.msra.mxu1 %v16726_v54 }
0x459d   :  { %16729 = vmatprep.subr.bf16.mxu1 %v16728_v50 }
0x45a0   :  { %16731 = vmatpush1.bf16.msra.mxu1 %v16730_v22 }
0x45a1   :  { %16733 = vmatprep.subr.bf16.mxu1 %v16732_v62 }
0x45a4   :  { %16735 = vmatpush1.bf16.msra.mxu1 %v16734_v15 }
0x45a5   :  { %16737 = vmatprep.subr.bf16.mxu1 %v16736_v21 }
0x45a8   :  { %16739 = vmatpush1.bf16.msra.mxu1 %v16738_v11 }
0x465e   :  { %v12840_v37 = vpop.f32.mrb[44].mxu1 }
0x465f   :  { %v12841_v14 = vadd.f32 %v20102_v41, %v12840_v37  ;;  %v16517_v49 = vpop.f32.mrb[45].mxu1 }
0x4661   :  { %12973 = vmatmul.mubr.f32.vlgmr.msra.gmra.mrb[46].mxu1 %v12841_v14  ;;  %13044 = vmatmul.mubr.f32.vlgmr.msra.gmra.mrb[58].mxu0 %v12841_v14 }
0x4662   :  { %13169 = vmatprep.mubr.f32.mxu1 %v20995_v10  ;;  %13882 = vmatprep.mubr.f32.mxu0 %v20995_v10 }
0x4734   :  { %v12974_v41 = vpop.f32.mrb[46].mxu1  ;;  %v13045_v55 = vpop.f32.mrb[58].mxu0 }
0x4735   :  { %v12975_v32 = vadd.f32 %v12974_v41, %v20419_v29  ;;  %v12976_v53 = vpop.f32.mrb[47].mxu1  ;;  %v13047_v58 = vpop.f32.mrb[59].mxu0  ;;  %v13046_v0 = vadd.f32 %v13045_v55, %v20423_v25  ;;  %v13051_v55 = vld [vmem:[%s20736_s6] sm:$0xff] }
0x4736   :  { %v12977_v9 = vadd.f32 %v12976_v53, %v20427_v26  ;;  %v13048_v57 = vadd.f32 %v13047_v58, %v20432_v33 }
0x4737   :  { %v13058_v60 = vmul.f32 %v12975_v32, %v12975_v32  ;;  %v13060_v7 = vmul.f32 %v13046_v0, %v13046_v0 }
0x4738   :  { %v13052_v12 = vadd.f32 %v12977_v9, %v12975_v32  ;;  %v13059_v42 = vmul.f32 %v12977_v9, %v12977_v9  ;;  %v13061_v63 = vmul.f32 %v13048_v57, %v13048_v57 }
0x473a   :  { %v13062_v3 = vadd.f32 %v13059_v42, %v13058_v60  ;;  %v13053_v4 = vadd.f32 %v13052_v12, %v13046_v0 }
0x473c   :  { %v13054_v36 = vadd.f32 %v13053_v4, %v13048_v57  ;;  %v13063_v54 = vadd.f32 %v13062_v3, %v13060_v7 }
0x473e   :  { %13055 = vadd.xlane.f32.xlu0 %v13054_v36  ;;  %v13064_v50 = vadd.f32 %v13063_v54, %v13061_v63 }
0x4740   :  { %13065 = vadd.xlane.f32.xlu1 %v13064_v50 }
0x47cb   :  { %v13056_v1 = vpop.xlane.xlu0 %13055 }
0x47cc   :  { %v13057_v27 = vmul.f32 0.001953125, %v13056_v1 }
0x47cd   :  { %v13066_v45 = vpop.xlane.xlu1 %13065 }
0x47ce   :  { %v13068_v13 = vmul.f32 %v13057_v27, %v13057_v27  ;;  %v13067_v38 = vmul.f32 0.001953125, %v13066_v45 }
0x47d0   :  { %v13069_v22 = vsub.f32 %v13067_v38, %v13068_v13 }
0x47d2   :  { %v13070_v62 = vmax.f32 %v13069_v22, 0.0 }
0x47d4   :  { %v13071_v24 = vadd.f32 1e-05, %v13070_v62 }
0x47d6   :  { %17110 = vrsqrt.f32 %v13071_v24 }
0x47e0   :  { %v17111_v52 = vpop.eup %17110 }
0x47e1   :  { %v13073_v44 = vmul.f32 %v17111_v52, %v20440_v59 }
0x47e3   :  { %13082 = vperm.xlu1 %17054, %v13073_v44   ;;  %v13074_v15 = vmul.f32 %v13073_v44, %v13057_v27 }
0x47e5   :  { %13076 = vrot.lane.b32.xlu0 %v13074_v15, %s17173_s25 }
0x47e7   :  { %17055 = vset.pattern.permute.xlu1 %v21002_v61 }
0x4857   :  { %v13077_v21 = vpop.permute.xlu0 %13076 }
0x4858   :  { %v13079_v16 = vsub.f32 %v20440_v59, %v13077_v21 }
0x485a   :  { %13091 = vperm.xlu0 %17049, %v13079_v16  }
0x4862   :  { %v13083_v48 = vpop.permute.xlu1 %13082 }
0x4863   :  { %v13085_v20 = vmul.f32 %v13083_v48, %v12975_v32  ;;  %v13086_v11 = vmul.f32 %v13083_v48, %v12977_v9  ;;  %v13088_v51 = vmul.f32 %v13083_v48, %v13048_v57  ;;  %v13087_v46 = vmul.f32 %v13083_v48, %v13046_v0 }
0x48d9   :  { %v13092_v37 = vpop.permute.xlu0 %13091 }
0x48da   :  { %v13094_v14 = vadd.f32 %v13092_v37, %v13085_v20  ;;  %v13095_v49 = vadd.f32 %v13092_v37, %v13086_v11  ;;  %v13097_v2 = vadd.f32 %v13092_v37, %v13088_v51  ;;  %v13096_v28 = vadd.f32 %v13092_v37, %v13087_v46 }
0x48dc   :  { %v13098_v18 = vmax.f32 %v13094_v14, 0.0  ;;  %v13099_v41 = vmax.f32 %v13095_v49, 0.0  ;;  %v13101_v53 = vmax.f32 %v13097_v2, 0.0  ;;  %v13100_v58 = vmax.f32 %v13096_v28, 0.0 }
0x48de   :  { %13105 = vmatprep.subr.mxu1 %v13099_v41  ;;  %v13247_v41 = vld [vmem:[%s20737_s7] sm:$0xff] }
0x48df   :  { %13106 = vmatpush1.msra.mxu1 %v13098_v18 }
0x48e0   :  { %15697 = vmatmul.mubr.msk.f32.vlgmr.msra.gmra.mrb[48].mxu1 %vm120_vm0, %v13051_v55  ;;  %13176 = vmatprep.subr.mxu1 %v13101_v53 }
0x48e1   :  { %13177 = vmatpush1.msra.mxu1 %v13100_v58  ;;  %13240 = vmatprep.mubr.f32.mxu1 %v20995_v10 }
0x48e4   :  { %15698 = vmatmul.mubr.msk.f32.vlgmr.msra.gmra.mrb[50].mxu1 %vm120_vm0, %v13051_v55 }
0x48e5   :  { %13365 = vmatprep.mubr.f32.mxu1 %v20995_v10 }
0x49b3   :  { %v13171_v32 = vpop.f32.mrb[48].mxu1 }
0x49b4   :  { %v13254_v39 = vmul.f32 %v13171_v32, %v13171_v32  ;;  %v13173_v0 = vpop.f32.mrb[49].mxu1 }
0x49b5   :  { %v13248_v9 = vadd.f32 %v13173_v0, %v13171_v32  ;;  %v13255_v60 = vmul.f32 %v13173_v0, %v13173_v0 }
0x49b7   :  { %v13258_v12 = vadd.f32 %v13255_v60, %v13254_v39  ;;  %v13242_v42 = vpop.f32.mrb[50].mxu1 }
0x49b8   :  { %v13249_v57 = vadd.f32 %v13248_v9, %v13242_v42  ;;  %v13256_v7 = vmul.f32 %v13242_v42, %v13242_v42  ;;  %v13244_v3 = vpop.f32.mrb[51].mxu1 }
0x49b9   :  { %v13257_v4 = vmul.f32 %v13244_v3, %v13244_v3 }
0x49ba   :  { %v13259_v63 = vadd.f32 %v13258_v12, %v13256_v7  ;;  %v13250_v36 = vadd.f32 %v13249_v57, %v13244_v3 }
0x49bc   :  { %13251 = vadd.xlane.f32.xlu1 %v13250_v36  ;;  %v13260_v54 = vadd.f32 %v13259_v63, %v13257_v4 }
0x49be   :  { %13261 = vadd.xlane.f32.xlu0 %v13260_v54 }
0x4a49   :  { %v13252_v50 = vpop.xlane.xlu1 %13251 }
0x4a4a   :  { %v13253_v1 = vmul.f32 0.001953125, %v13252_v50 }
0x4a4b   :  { %v13262_v27 = vpop.xlane.xlu0 %13261 }
0x4a4c   :  { %v13264_v45 = vmul.f32 %v13253_v1, %v13253_v1  ;;  %v13263_v13 = vmul.f32 0.001953125, %v13262_v27 }
0x4a4e   :  { %v13265_v38 = vsub.f32 %v13263_v13, %v13264_v45 }
0x4a50   :  { %v13266_v22 = vmax.f32 %v13265_v38, 0.0 }
0x4a52   :  { %v13267_v62 = vadd.f32 1e-05, %v13266_v22 }
0x4a54   :  { %17112 = vrsqrt.f32 %v13267_v62 }
0x4a5e   :  { %v17113_v24 = vpop.eup %17112 }
0x4a5f   :  { %v13269_v52 = vmul.f32 %v17113_v24, %v20440_v59 }
0x4a61   :  { %13278 = vperm.xlu1 %17055, %v13269_v52   ;;  %v13270_v44 = vmul.f32 %v13269_v52, %v13253_v1 }
0x4a63   :  { %13272 = vrot.lane.b32.xlu0 %v13270_v44, %s17173_s25 }
0x4a65   :  { %17056 = vset.pattern.permute.xlu1 %v21004_v6 }
0x4ad5   :  { %v13273_v15 = vpop.permute.xlu0 %13272 }
0x4ad6   :  { %v13275_v21 = vsub.f32 %v20440_v59, %v13273_v15 }
0x4ad8   :  { %13287 = vperm.xlu1 %17056, %v13275_v21  }
0x4adc   :  { %17057 = vset.pattern.permute.xlu1 %v21006_v31 }
0x4ae0   :  { %v13279_v16 = vpop.permute.xlu1 %13278 }
0x4ae1   :  { %v13281_v48 = vmul.f32 %v13279_v16, %v13171_v32  ;;  %v13282_v20 = vmul.f32 %v13279_v16, %v13173_v0  ;;  %v13284_v11 = vmul.f32 %v13279_v16, %v13244_v3  ;;  %v13283_v51 = vmul.f32 %v13279_v16, %v13242_v42 }
0x4b57   :  { %v13288_v46 = vpop.permute.xlu1 %13287 }
0x4b58   :  { %v13290_v37 = vadd.f32 %v13288_v46, %v13281_v48  ;;  %v13291_v14 = vadd.f32 %v13288_v46, %v13282_v20  ;;  %v13293_v49 = vadd.f32 %v13288_v46, %v13284_v11  ;;  %v13292_v2 = vadd.f32 %v13288_v46, %v13283_v51 }
0x4b5a   :  { %v13294_v28 = vmax.f32 %v13290_v37, 0.0  ;;  %v13295_v18 = vmax.f32 %v13291_v14, 0.0  ;;  %v13297_v59 = vmax.f32 %v13293_v49, 0.0  ;;  %v13296_v55 = vmax.f32 %v13292_v2, 0.0 }
0x4b5c   :  { %13301 = vmatprep.subr.mxu1 %v13295_v18 }
0x4b5d   :  { %13302 = vmatpush1.msra.mxu1 %v13294_v28 }
0x4b5e   :  { %15699 = vmatmul.mubr.msk.f32.vlgmr.msra.gmra.mrb[52].mxu1 %vm120_vm0, %v13247_v41  ;;  %13372 = vmatprep.subr.mxu1 %v13297_v59 }
0x4b5f   :  { %13373 = vmatpush1.msra.mxu1 %v13296_v55  ;;  %13436 = vmatprep.mubr.f32.mxu1 %v20995_v10 }
0x4b62   :  { %15700 = vmatmul.mubr.msk.f32.vlgmr.msra.gmra.mrb[54].mxu1 %vm120_vm0, %v13247_v41  ;;  %v20492_v41 = vld [vmem:[%s20731_s1 + $0x40] sm:$0xff] }
0x4b63   :  { %13596 = vmatprep.mubr.f32.mxu1 %v20995_v10 }
0x4c31   :  { %v13367_v31 = vpop.f32.mrb[52].mxu1 }
0x4c32   :  { %v15701_v53 = vmul.f32 -1.442695, %v13367_v31  ;;  %v13369_v58 = vpop.f32.mrb[53].mxu1 }
0x4c33   :  { %v15702_v32 = vmul.f32 -1.442695, %v13369_v58 }
0x4c34   :  { %17114 = vpow2.f32 %v15701_v53 }
0x4c35   :  { %17116 = vpow2.f32 %v15702_v32  ;;  %v13438_v39 = vpop.f32.mrb[54].mxu1 }
0x4c36   :  { %v15703_v0 = vmul.f32 -1.442695, %v13438_v39  ;;  %v13440_v9 = vpop.f32.mrb[55].mxu1 }
0x4c37   :  { %v15704_v60 = vmul.f32 -1.442695, %v13440_v9 }
0x4c38   :  { %17118 = vpow2.f32 %v15703_v0 }
0x4c39   :  { %17120 = vpow2.f32 %v15704_v60 }
0x4c3e   :  { %v17115_v12 = vpop.eup %17114 }
0x4c3f   :  { %v17117_v42 = vpop.eup %17116  ;;  %v13455_v57 = vadd.f32 1.0, %v17115_v12 }
0x4c40   :  { %v13456_v7 = vadd.f32 1.0, %v17117_v42 }
0x4c41   :  { %17122 = vrcp.f32 %v13455_v57 }
0x4c42   :  { %v17119_v3 = vpop.eup %17118  ;;  %17124 = vrcp.f32 %v13456_v7 }
0x4c43   :  { %v17121_v4 = vpop.eup %17120  ;;  %v13457_v63 = vadd.f32 1.0, %v17119_v3 }
0x4c44   :  { %v13458_v36 = vadd.f32 1.0, %v17121_v4 }
0x4c45   :  { %17126 = vrcp.f32 %v13457_v63 }
0x4c46   :  { %17128 = vrcp.f32 %v13458_v36 }
0x4c4b   :  { %v17123_v54 = vpop.eup %17122 }
0x4c4c   :  { %v17125_v50 = vpop.eup %17124  ;;  %v13467_v1 = vadd.f32 1.0, %v17123_v54 }
0x4c4d   :  { %v13468_v27 = vadd.f32 1.0, %v17125_v50 }
0x4c4e   :  { %v20466_v45 = vmul.f32 %v13467_v1, %v20419_v29 }
0x4c4f   :  { %v17127_v13 = vpop.eup %17126  ;;  %v20469_v38 = vmul.f32 %v13468_v27, %v20427_v26 }
0x4c50   :  { %v17129_v22 = vpop.eup %17128  ;;  %v13469_v62 = vadd.f32 1.0, %v17127_v13  ;;  %v13483_v24 = vmul.f32 %v20466_v45, %v20466_v45 }
0x4c51   :  { %v13470_v52 = vadd.f32 1.0, %v17129_v22  ;;  %v13477_v44 = vadd.f32 %v20469_v38, %v20466_v45  ;;  %v13484_v15 = vmul.f32 %v20469_v38, %v20469_v38 }
0x4c52   :  { %v20478_v21 = vmul.f32 %v13469_v62, %v20423_v25 }
0x4c53   :  { %v20481_v29 = vmul.f32 %v13470_v52, %v20432_v33  ;;  %v13487_v26 = vadd.f32 %v13484_v15, %v13483_v24 }
0x4c54   :  { %v13478_v16 = vadd.f32 %v13477_v44, %v20478_v21  ;;  %v13485_v48 = vmul.f32 %v20478_v21, %v20478_v21 }
0x4c55   :  { %v13486_v20 = vmul.f32 %v20481_v29, %v20481_v29 }
0x4c56   :  { %v13479_v11 = vadd.f32 %v13478_v16, %v20481_v29  ;;  %v13488_v51 = vadd.f32 %v13487_v26, %v13485_v48 }
0x4c58   :  { %13480 = vadd.xlane.f32.xlu0 %v13479_v11  ;;  %v13489_v46 = vadd.f32 %v13488_v51, %v13486_v20 }
0x4c5a   :  { %13490 = vadd.xlane.f32.xlu1 %v13489_v46 }
0x4ce5   :  { %v13481_v25 = vpop.xlane.xlu0 %13480 }
0x4ce6   :  { %v13482_v37 = vmul.f32 0.001953125, %v13481_v25 }
0x4ce7   :  { %v13491_v14 = vpop.xlane.xlu1 %13490 }
0x4ce8   :  { %v13493_v33 = vmul.f32 %v13482_v37, %v13482_v37  ;;  %v13492_v49 = vmul.f32 0.001953125, %v13491_v14 }
0x4cea   :  { %v13494_v2 = vsub.f32 %v13492_v49, %v13493_v33 }
0x4cec   :  { %v13495_v28 = vmax.f32 %v13494_v2, 0.0 }
0x4cee   :  { %v13496_v18 = vadd.f32 1e-05, %v13495_v28 }
0x4cf0   :  { %17130 = vrsqrt.f32 %v13496_v18 }
0x4cfa   :  { %v17131_v59 = vpop.eup %17130 }
0x4cfb   :  { %v13498_v55 = vmul.f32 %v17131_v59, %v20492_v41 }
0x4cfd   :  { %13507 = vperm.xlu1 %17057, %v13498_v55   ;;  %v13499_v31 = vmul.f32 %v13498_v55, %v13482_v37 }
0x4cff   :  { %13501 = vrot.lane.b32.xlu0 %v13499_v31, %s17173_s25 }
0x4d01   :  { %17058 = vset.pattern.permute.xlu1 %v21002_v61 }
0x4d71   :  { %v13502_v53 = vpop.permute.xlu0 %13501 }
0x4d72   :  { %v13504_v58 = vsub.f32 %v20492_v41, %v13502_v53 }
0x4d74   :  { %13516 = vperm.xlu0 %17049, %v13504_v58  }
0x4d78   :  { %17061 = vset.pattern.permute.xlu0 %v21003_v47  ;;  %v15706_v47 = vld [vmem:[%s20732_s2 + $0x40] sm:$0xff]  ;;  %s21013_s2 = smov 113  }
0x4d7c   :  { %v13508_v32 = vpop.permute.xlu1 %13507 }
0x4d7d   :  { %v13510_v39 = vmul.f32 %v13508_v32, %v20466_v45  ;;  %v13511_v0 = vmul.f32 %v13508_v32, %v20469_v38  ;;  %v13513_v9 = vmul.f32 %v13508_v32, %v20481_v29  ;;  %v13512_v60 = vmul.f32 %v13508_v32, %v20478_v21 }
0x4df3   :  { %v13517_v12 = vpop.permute.xlu0 %13516 }
0x4df4   :  { %v13519_v42 = vadd.f32 %v13517_v12, %v13510_v39  ;;  %v13520_v57 = vadd.f32 %v13517_v12, %v13511_v0  ;;  %v13522_v7 = vadd.f32 %v13517_v12, %v13513_v9  ;;  %v13521_v61 = vadd.f32 %v13517_v12, %v13512_v60 }
0x4df6   :  { %v13523_v3 = vmax.f32 %v13519_v42, 0.0  ;;  %v13524_v4 = vmax.f32 %v13520_v57, 0.0  ;;  %v13526_v63 = vmax.f32 %v13522_v7, 0.0  ;;  %v13525_v36 = vmax.f32 %v13521_v61, 0.0 }
0x4df8   :  { %13532 = vmatprep.subr.mxu1 %v13524_v4  ;;  %v21016_v4 = vld [vmem:[#allocation8_spill] sm:$0xff] }
0x4df9   :  { %13533 = vmatpush1.msra.mxu1 %v13523_v3 }
0x4dfa   :  { %15707 = vmatmul.mubr.msk.f32.vlgmr.msra.gmra.mrb[56].mxu1 %vm120_vm0, %v15706_v47  ;;  %13603 = vmatprep.subr.mxu1 %v13526_v63 }
0x4dfb   :  { %13604 = vmatpush1.msra.mxu1 %v13525_v36  ;;  %13667 = vmatprep.mubr.f32.mxu1 %v20995_v10 }
0x4dfe   :  { %15708 = vmatmul.mubr.msk.f32.vlgmr.msra.gmra.mrb[58].mxu1 %vm120_vm0, %v15706_v47 }
0x4dff   :  { %13811 = vmatprep.mubr.f32.mxu1 %v20995_v10 }
0x4ecd   :  { %v13598_v54 = vpop.f32.mrb[56].mxu1 }
0x4ece   :  { %v13680_v50 = vmul.f32 %v13598_v54, %v13598_v54  ;;  %v13600_v1 = vpop.f32.mrb[57].mxu1 }
0x4ecf   :  { %v13674_v27 = vadd.f32 %v13600_v1, %v13598_v54  ;;  %v13681_v13 = vmul.f32 %v13600_v1, %v13600_v1 }
0x4ed1   :  { %v13684_v22 = vadd.f32 %v13681_v13, %v13680_v50  ;;  %v13669_v62 = vpop.f32.mrb[58].mxu1 }
0x4ed2   :  { %v13675_v24 = vadd.f32 %v13674_v27, %v13669_v62  ;;  %v13682_v52 = vmul.f32 %v13669_v62, %v13669_v62  ;;  %v13671_v44 = vpop.f32.mrb[59].mxu1  ;;  %v21017_v27 = vld [vmem:[#allocation10_spill] sm:$0xff] }
0x4ed3   :  { %v13683_v15 = vmul.f32 %v13671_v44, %v13671_v44 }
0x4ed4   :  { %v13685_v26 = vadd.f32 %v13684_v22, %v13682_v52  ;;  %v13676_v16 = vadd.f32 %v13675_v24, %v13671_v44  ;;  %v21018_v22 = vld [vmem:[#allocation11_spill] sm:$0xff]  ;;  %v21019_v24 = vld [vmem:[#allocation12_spill] sm:$0xff] }
0x4ed6   :  { %13677 = vadd.xlane.f32.xlu1 %v13676_v16  ;;  %v13686_v48 = vadd.f32 %v13685_v26, %v13683_v15 }
0x4ed8   :  { %13687 = vadd.xlane.f32.xlu0 %v13686_v48  ;;  %v21020_v48 = vld [vmem:[#allocation13_spill] sm:$0xff] }
0x4f63   :  { %v13678_v20 = vpop.xlane.xlu1 %13677 }
0x4f64   :  { %v13679_v11 = vmul.f32 0.001953125, %v13678_v20 }
0x4f65   :  { %v13688_v51 = vpop.xlane.xlu0 %13687 }
0x4f66   :  { %v13690_v46 = vmul.f32 %v13679_v11, %v13679_v11  ;;  %v13689_v25 = vmul.f32 0.001953125, %v13688_v51 }
0x4f68   :  { %v13691_v37 = vsub.f32 %v13689_v25, %v13690_v46 }
0x4f6a   :  { %v13692_v14 = vmax.f32 %v13691_v37, 0.0 }
0x4f6c   :  { %v13693_v33 = vadd.f32 1e-05, %v13692_v14  ;;  %v21021_v14 = vld [vmem:[#allocation14_spill] sm:$0xff] }
0x4f6e   :  { %17132 = vrsqrt.f32 %v13693_v33 }
0x4f78   :  { %v17133_v49 = vpop.eup %17132 }
0x4f79   :  { %v13695_v2 = vmul.f32 %v17133_v49, %v20492_v41  ;;  %v21022_v49 = vld [vmem:[#allocation15_spill] sm:$0xff] }
0x4f7b   :  { %13704 = vperm.xlu1 %17058, %v13695_v2   ;;  %v13696_v28 = vmul.f32 %v13695_v2, %v13679_v11 }
0x4f7d   :  { %13698 = vrot.lane.b32.xlu0 %v13696_v28, %s17173_s25  ;;  %v15709_v28 = vld [vmem:[%s20733_s3 + $0x260] sm:$0xff] }
0x4f7f   :  { %17059 = vset.pattern.permute.xlu1 %v21004_v6 }
0x4fef   :  { %v13699_v18 = vpop.permute.xlu0 %13698 }
0x4ff0   :  { %v13701_v59 = vsub.f32 %v20492_v41, %v13699_v18 }
0x4ff2   :  { %13713 = vperm.xlu1 %17059, %v13701_v59  }
0x4ff6   :  { %17060 = vset.pattern.permute.xlu1 %v21005_v34 }
0x4ffa   :  { %v13705_v55 = vpop.permute.xlu1 %13704 }
0x4ffb   :  { %v13707_v31 = vmul.f32 %v13705_v55, %v13598_v54  ;;  %v13708_v53 = vmul.f32 %v13705_v55, %v13600_v1  ;;  %v13709_v32 = vmul.f32 %v13705_v55, %v13669_v62  ;;  %v13710_v39 = vmul.f32 %v13705_v55, %v13671_v44  ;;  %v15710_v44 = vld [vmem:[%s20733_s3 + $0x240] sm:$0xff]  ;;  %v21023_v55 = vld [vmem:[#allocation16_spill] sm:$0xff] }
0x5071   :  { %v13714_v58 = vpop.permute.xlu1 %13713 }
0x5072   :  { %v13716_v0 = vadd.f32 %v13714_v58, %v13707_v31  ;;  %v13717_v9 = vadd.f32 %v13714_v58, %v13708_v53  ;;  %v13718_v60 = vadd.f32 %v13714_v58, %v13709_v32  ;;  %v13719_v12 = vadd.f32 %v13714_v58, %v13710_v39  ;;  %v21024_v58 = vld [vmem:[#allocation17_spill] sm:$0xff] }
0x5074   :  { %v13720_v42 = vmax.f32 %v13716_v0, 0.0  ;;  %v13721_v57 = vmax.f32 %v13717_v9, 0.0  ;;  %v13722_v6 = vmax.f32 %v13718_v60, 0.0  ;;  %v13723_v7 = vmax.f32 %v13719_v12, 0.0 }
0x5076   :  { %13730 = vrot.lane.b32.xlu1 %v13721_v57, %s17177_s28  ;;  %13728 = vrot.lane.b32.xlu0 %v13720_v42, %s17177_s28 }
0x507a   :  { %13732 = vrot.lane.b32.xlu1 %v13722_v6, %s17177_s28  ;;  %13734 = vrot.lane.b32.xlu0 %v13723_v7, %s17177_s28  ;;  %s21014_s28 = smov 112  }
0x507e   :  { %14038 = vrot.lane.b32.xlu1 %v13721_v57, %s17178_s30  ;;  %14036 = vrot.lane.b32.xlu0 %v13720_v42, %s17178_s30 }
0x5082   :  { %14040 = vrot.lane.b32.xlu1 %v13722_v6, %s17178_s30  ;;  %14042 = vrot.lane.b32.xlu0 %v13723_v7, %s17178_s30  ;;  %s21015_s30 = smov 111  }
0x5086   :  { %14205 = vrot.lane.b32.xlu1 %v13721_v57, %s17179_s16  ;;  %14203 = vrot.lane.b32.xlu0 %v13720_v42, %s17179_s16 }
0x508a   :  { %14207 = vrot.lane.b32.xlu1 %v13722_v6, %s17179_s16  ;;  %14209 = vrot.lane.b32.xlu0 %v13723_v7, %s17179_s16 }
0x508e   :  { %14372 = vrot.lane.b32.xlu1 %v13721_v57, %s17173_s25  ;;  %14370 = vrot.lane.b32.xlu0 %v13720_v42, %s17173_s25 }
0x5092   :  { %14374 = vrot.lane.b32.xlu1 %v13722_v6, %s17173_s25  ;;  %14376 = vrot.lane.b32.xlu0 %v13723_v7, %s17173_s25 }
0x5096   :  { %14541 = vrot.lane.b32.xlu1 %v13722_v6, %s17180_s17  ;;  %14539 = vrot.lane.b32.xlu0 %v13721_v57, %s17180_s17 }
0x509a   :  { %14543 = vrot.lane.b32.xlu1 %v13723_v7, %s17180_s17  ;;  %14537 = vrot.lane.b32.xlu0 %v13720_v42, %s17180_s17 }
0x509e   :  { %14708 = vrot.lane.b32.xlu1 %v13722_v6, %s21013_s2  ;;  %14706 = vrot.lane.b32.xlu0 %v13721_v57, %s21013_s2 }
0x50a2   :  { %14710 = vrot.lane.b32.xlu1 %v13723_v7, %s21013_s2  ;;  %14704 = vrot.lane.b32.xlu0 %v13720_v42, %s21013_s2 }
0x50a6   :  { %14875 = vrot.lane.b32.xlu1 %v13722_v6, %s21014_s28  ;;  %14873 = vrot.lane.b32.xlu0 %v13721_v57, %s21014_s28 }
0x50aa   :  { %14877 = vrot.lane.b32.xlu1 %v13723_v7, %s21014_s28  ;;  %14871 = vrot.lane.b32.xlu0 %v13720_v42, %s21014_s28 }
0x50ae   :  { %15042 = vrot.lane.b32.xlu1 %v13722_v6, %s21015_s30  ;;  %15040 = vrot.lane.b32.xlu0 %v13721_v57, %s21015_s30 }
0x50b2   :  { %15044 = vrot.lane.b32.xlu1 %v13723_v7, %s21015_s30  ;;  %15038 = vrot.lane.b32.xlu0 %v13720_v42, %s21015_s30 }
0x50e8   :  { %v13731_v34 = vpop.permute.xlu1 %13730  ;;  %v13729_v61 = vpop.permute.xlu0 %13728 }
0x50e9   :  { %v13738_v3 = vsel %vm329_vm1, %v13729_v61, %v13731_v34 }
0x50ea   :  { %v13741_v47 = vmul.f32 %v13738_v3, %v21016_v4  ;;  %v21027_v4 = vld [vmem:[#allocation20_spill] sm:$0xff] }
0x50ec   :  { %v13733_v63 = vpop.permute.xlu1 %13732  ;;  %13747 = vmatprep.subr.mxu1 %v13741_v47  ;;  %v13735_v36 = vpop.permute.xlu0 %13734 }
0x50ed   :  { %v13737_v54 = vsel %vm329_vm1, %v13731_v34, %v13733_v63  ;;  %v13736_v50 = vsel %vm329_vm1, %v13733_v63, %v13735_v36  ;;  %v13739_v1 = vsel %vm329_vm1, %v13735_v36, %v13729_v61  ;;  %v15715_v34 = vld [vmem:[%s20733_s3 + $0x248] sm:$0xff]  ;;  %v21028_v36 = vld [vmem:[#allocation21_spill] sm:$0xff] }
0x50ee   :  { %v13742_v13 = vmul.f32 %v13737_v54, %v21017_v27  ;;  %v13740_v62 = vmul.f32 %v13739_v1, %v21018_v22  ;;  %v13743_v52 = vmul.f32 %v13736_v50, %v21019_v24 }
0x50f0   :  { %v14039_v15 = vpop.permute.xlu1 %14038  ;;  %13748 = vmatpush1.msra.mxu1 %v13740_v62  ;;  %13818 = vmatprep.subr.mxu0 %v13743_v52  ;;  %v14037_v26 = vpop.permute.xlu0 %14036  ;;  %v21029_v62 = vld [vmem:[#allocation22_spill] sm:$0xff]  ;;  %v21030_v52 = vld [vmem:[#allocation23_spill] sm:$0xff] }
0x50f1   :  { %v14046_v16 = vsel %vm660_vm2, %v14037_v26, %v14039_v15  ;;  %15711 = vmatmul.mubr.msk.f32.vlgmr.msra.gmra.mrb[60].mxu1 %vm120_vm0, %v15710_v44  ;;  %13819 = vmatpush1.msra.mxu0 %v13742_v13 }
0x50f2   :  { %v14049_v20 = vmul.f32 %v14046_v16, %v21020_v48  ;;  %13892 = vmatprep.subr.mxu1 %v13721_v57  ;;  %15712 = vmatmul.mubr.msk.f32.vlgmr.msra.gmra.mrb[60].mxu0 %vm120_vm0, %v15710_v44  ;;  %v21031_v48 = vld [vmem:[#allocation24_spill] sm:$0xff] }
0x50f3   :  { %13893 = vmatpush1.msra.mxu1 %v13720_v42  ;;  %13963 = vmatprep.subr.mxu0 %v13723_v7  ;;  %v21025_v42 = vld [vmem:[#allocation18_spill] sm:$0xff] }
0x50f4   :  { %13964 = vmatpush1.msra.mxu0 %v13722_v6  ;;  %v14041_v11 = vpop.permute.xlu1 %14040  ;;  %14055 = vmatprep.subr.mxu1 %v14049_v20  ;;  %v14043_v51 = vpop.permute.xlu0 %14042  ;;  %v21026_v6 = vld [vmem:[#allocation19_spill] sm:$0xff] }
0x50f5   :  { %v14044_v46 = vsel %vm660_vm2, %v14041_v11, %v14043_v51  ;;  %v14047_v25 = vsel %vm660_vm2, %v14043_v51, %v14037_v26  ;;  %13956 = vmatprep.mubr.f32.mxu1 %v20995_v10  ;;  %14027 = vmatprep.mubr.f32.mxu0 %v20995_v10  ;;  %v14045_v37 = vsel %vm660_vm2, %v14039_v15, %v14041_v11  ;;  %v15718_v15 = vld [vmem:[%s20733_s3 + $0x250] sm:$0xff] }
0x50f6   :  { %v14048_v33 = vmul.f32 %v14047_v25, %v21021_v14  ;;  %v14051_v2 = vmul.f32 %v14044_v46, %v21022_v49  ;;  %v14050_v31 = vmul.f32 %v14045_v37, %v21023_v55 }
0x50f8   :  { %v14206_v18 = vpop.permute.xlu1 %14205  ;;  %14126 = vmatprep.subr.mxu0 %v14051_v2  ;;  %v14204_v59 = vpop.permute.xlu0 %14203 }
0x50f9   :  { %v14213_v53 = vsel %vm851_vm3, %v14204_v59, %v14206_v18  ;;  %15713 = vmatmul.mubr.msk.f32.vlgmr.msra.gmra.mrb[60].mxu1 %vm120_vm0, %v15709_v28 }
0x50fa   :  { %v14216_v32 = vmul.f32 %v14213_v53, %v21024_v58  ;;  %14056 = vmatpush1.msra.mxu1 %v14048_v33  ;;  %15714 = vmatmul.mubr.msk.f32.vlgmr.msra.gmra.mrb[60].mxu0 %vm120_vm0, %v15709_v28  ;;  %v21032_v33 = vld [vmem:[#allocation26_spill] sm:$0xff]  ;;  %v15721_v28 = vld [vmem:[%s20733_s3 + $0x258] sm:$0xff] }
0x50fb   :  { %14127 = vmatpush1.msra.mxu0 %v14050_v31  ;;  %14119 = vmatprep.mubr.f32.mxu1 %v20995_v10 }
0x50fc   :  { %v14208_v39 = vpop.permute.xlu1 %14207  ;;  %14222 = vmatprep.subr.mxu1 %v14216_v32  ;;  %v14210_v0 = vpop.permute.xlu0 %14209  ;;  %14190 = vmatprep.mubr.f32.mxu0 %v20995_v10 }
0x50fd   :  { %v14211_v9 = vsel %vm851_vm3, %v14208_v39, %v14210_v0  ;;  %v14214_v60 = vsel %vm851_vm3, %v14210_v0, %v14204_v59  ;;  %v14212_v12 = vsel %vm851_vm3, %v14206_v18, %v14208_v39 }
0x50fe   :  { %v14215_v57 = vmul.f32 %v14214_v60, %v21025_v42  ;;  %v14218_v7 = vmul.f32 %v14211_v9, %v21026_v6  ;;  %v14217_v47 = vmul.f32 %v14212_v12, %v21027_v4  ;;  %v15724_v9 = vld [vmem:[%s20733_s3 + $0x268] sm:$0xff]  ;;  %v15727_v4 = vld [vmem:[%s20733_s3 + $0x270] sm:$0xff] }
0x5100   :  { %v14373_v61 = vpop.permute.xlu1 %14372  ;;  %14293 = vmatprep.subr.mxu0 %v14218_v7  ;;  %v14371_v3 = vpop.permute.xlu0 %14370 }
0x5101   :  { %v14380_v63 = vsel %vm1042_vm4, %v14371_v3, %v14373_v61  ;;  %15716 = vmatmul.mubr.msk.f32.vlgmr.msra.gmra.mrb[60].mxu1 %vm120_vm0, %v15715_v34 }
0x5102   :  { %v14383_v54 = vmul.f32 %v14380_v63, %v21028_v36  ;;  %14223 = vmatpush1.msra.mxu1 %v14215_v57  ;;  %15717 = vmatmul.mubr.msk.f32.vlgmr.msra.gmra.mrb[60].mxu0 %vm120_vm0, %v15715_v34  ;;  %v21034_v36 = vld [vmem:[#allocation36_spill] sm:$0xff] }
0x5103   :  { %14294 = vmatpush1.msra.mxu0 %v14217_v47  ;;  %14286 = vmatprep.mubr.f32.mxu1 %v20995_v10 }
0x5104   :  { %v14375_v50 = vpop.permute.xlu1 %14374  ;;  %14389 = vmatprep.subr.mxu1 %v14383_v54  ;;  %v14377_v1 = vpop.permute.xlu0 %14376  ;;  %14357 = vmatprep.mubr.f32.mxu0 %v20995_v10 }
0x5105   :  { %v14378_v27 = vsel %vm1042_vm4, %v14375_v50, %v14377_v1  ;;  %v14381_v13 = vsel %vm1042_vm4, %v14377_v1, %v14371_v3  ;;  %v14379_v22 = vsel %vm1042_vm4, %v14373_v61, %v14375_v50  ;;  %v21033_v61 = vld [vmem:[#allocation35_spill] sm:$0xff]  ;;  %v21035_v1 = vld [vmem:[#allocation37_spill] sm:$0xff] }
0x5106   :  { %v14382_v24 = vmul.f32 %v14381_v13, %v21029_v62  ;;  %v14385_v44 = vmul.f32 %v14378_v27, %v21030_v52  ;;  %v14384_v20 = vmul.f32 %v14379_v22, %v21031_v48  ;;  %v21036_v52 = vld [vmem:[#allocation38_spill] sm:$0xff]  ;;  %v21038_v48 = vld [vmem:[#allocation40_spill] sm:$0xff] }
0x5108   :  { %v14542_v26 = vpop.permute.xlu1 %14541  ;;  %14460 = vmatprep.subr.mxu0 %v14385_v44  ;;  %v14540_v16 = vpop.permute.xlu0 %14539 }
0x5109   :  { %v14546_v11 = vsel %vm1233_vm5, %v14540_v16, %v14542_v26  ;;  %15719 = vmatmul.mubr.msk.f32.vlgmr.msra.gmra.mrb[60].mxu1 %vm120_vm0, %v15718_v15 }
0x510a   :  { %v14550_v51 = vmul.f32 %v14546_v11, %v20959_v19  ;;  %14390 = vmatpush1.msra.mxu1 %v14382_v24  ;;  %15720 = vmatmul.mubr.msk.f32.vlgmr.msra.gmra.mrb[60].mxu0 %vm120_vm0, %v15718_v15  ;;  %v21037_v15 = vld [vmem:[#allocation39_spill] sm:$0xff] }
0x510b   :  { %14461 = vmatpush1.msra.mxu0 %v14384_v20  ;;  %14453 = vmatprep.mubr.f32.mxu1 %v20995_v10 }
0x510c   :  { %v14544_v46 = vpop.permute.xlu1 %14543  ;;  %14556 = vmatprep.subr.mxu1 %v14550_v51  ;;  %v14538_v25 = vpop.permute.xlu0 %14537  ;;  %14524 = vmatprep.mubr.f32.mxu0 %v20995_v10 }
0x510d   :  { %v14547_v37 = vsel %vm1233_vm5, %v14538_v25, %v14540_v16  ;;  %v14548_v14 = vsel %vm1233_vm5, %v14544_v46, %v14538_v25  ;;  %v14545_v19 = vsel %vm1233_vm5, %v14542_v26, %v14544_v46  ;;  %v15730_v16 = vld [vmem:[%s20733_s3 + $0x278] sm:$0xff] }
0x510e   :  { %v14549_v49 = vmul.f32 %v14547_v37, %v21032_v33  ;;  %v14552_v2 = vmul.f32 %v14548_v14, %v20971_v30  ;;  %v14551_v55 = vmul.f32 %v14545_v19, %v20969_v40 }
0x5110   :  { %v14709_v18 = vpop.permute.xlu1 %14708  ;;  %14627 = vmatprep.subr.mxu0 %v14552_v2  ;;  %v14707_v59 = vpop.permute.xlu0 %14706 }
0x5111   :  { %v14713_v31 = vsel %vm1424_vm6, %v14707_v59, %v14709_v18  ;;  %15722 = vmatmul.mubr.msk.f32.vlgmr.msra.gmra.mrb[60].mxu1 %vm120_vm0, %v15721_v28 }
0x5112   :  { %v14717_v53 = vmul.f32 %v14713_v31, %v20966_v56  ;;  %14557 = vmatpush1.msra.mxu1 %v14549_v49  ;;  %15723 = vmatmul.mubr.msk.f32.vlgmr.msra.gmra.mrb[60].mxu0 %vm120_vm0, %v15721_v28 }
0x5113   :  { %14628 = vmatpush1.msra.mxu0 %v14551_v55  ;;  %14620 = vmatprep.mubr.f32.mxu1 %v20995_v10 }
0x5114   :  { %v14711_v30 = vpop.permute.xlu1 %14710  ;;  %14723 = vmatprep.subr.mxu1 %v14717_v53  ;;  %v14705_v58 = vpop.permute.xlu0 %14704  ;;  %14691 = vmatprep.mubr.f32.mxu0 %v20995_v10 }
0x5115   :  { %v14714_v40 = vsel %vm1424_vm6, %v14705_v58, %v14707_v59  ;;  %v14715_v32 = vsel %vm1424_vm6, %v14711_v30, %v14705_v58  ;;  %v14712_v56 = vsel %vm1424_vm6, %v14709_v18, %v14711_v30 }
0x5116   :  { %v14716_v39 = vmul.f32 %v14714_v40, %v20963_v8  ;;  %v14719_v0 = vmul.f32 %v14715_v32, %v20978_v17  ;;  %v14718_v42 = vmul.f32 %v14712_v56, %v20977_v5 }
0x5118   :  { %v14876_v60 = vpop.permute.xlu1 %14875  ;;  %14794 = vmatprep.subr.mxu0 %v14719_v0  ;;  %v14874_v12 = vpop.permute.xlu0 %14873 }
0x5119   :  { %v14880_v57 = vsel %vm1615_vm7, %v14874_v12, %v14876_v60  ;;  %15725 = vmatmul.mubr.msk.f32.vlgmr.msra.gmra.mrb[60].mxu1 %vm120_vm0, %v15724_v9 }
0x511a   :  { %v14884_v6 = vmul.f32 %v14880_v57, %v20974_v43  ;;  %14724 = vmatpush1.msra.mxu1 %v14716_v39  ;;  %15726 = vmatmul.mubr.msk.f32.vlgmr.msra.gmra.mrb[60].mxu0 %vm120_vm0, %v15724_v9 }
0x511b   :  { %14795 = vmatpush1.msra.mxu0 %v14718_v42  ;;  %14787 = vmatprep.mubr.f32.mxu1 %v20995_v10 }
0x511c   :  { %v14878_v8 = vpop.permute.xlu1 %14877  ;;  %14890 = vmatprep.subr.mxu1 %v14884_v6  ;;  %v14872_v17 = vpop.permute.xlu0 %14871  ;;  %14858 = vmatprep.mubr.f32.mxu0 %v20995_v10 }
0x511d   :  { %v14881_v5 = vsel %vm1615_vm7, %v14872_v17, %v14874_v12  ;;  %v14882_v7 = vsel %vm1615_vm7, %v14878_v8, %v14872_v17  ;;  %v14879_v43 = vsel %vm1615_vm7, %v14876_v60, %v14878_v8 }
0x511e   :  { %v14883_v34 = vmul.f32 %v14881_v5, %v20973_v23  ;;  %v14886_v3 = vmul.f32 %v14882_v7, %v21033_v61  ;;  %v14885_v54 = vmul.f32 %v14879_v43, %v21034_v36  ;;  %v15736_v36 = vld [vmem:[%s20734_s4 + $0x40] sm:$0xff] }
0x5120   :  { %v15043_v47 = vpop.permute.xlu1 %15042  ;;  %14961 = vmatprep.subr.mxu0 %v14886_v3  ;;  %v15041_v63 = vpop.permute.xlu0 %15040 }
0x5121   :  { %v15047_v50 = vsel %vm1806_vm8, %v15041_v63, %v15043_v47  ;;  %15728 = vmatmul.mubr.msk.f32.vlgmr.msra.gmra.mrb[60].mxu1 %vm120_vm0, %v15727_v4 }
0x5122   :  { %v15051_v27 = vmul.f32 %v15047_v50, %v21035_v1  ;;  %14891 = vmatpush1.msra.mxu1 %v14883_v34  ;;  %15729 = vmatmul.mubr.msk.f32.vlgmr.msra.gmra.mrb[60].mxu0 %vm120_vm0, %v15727_v4 }
0x5123   :  { %14962 = vmatpush1.msra.mxu0 %v14885_v54  ;;  %14954 = vmatprep.mubr.f32.mxu1 %v20995_v10 }
0x5124   :  { %v15045_v23 = vpop.permute.xlu1 %15044  ;;  %15057 = vmatprep.subr.mxu1 %v15051_v27  ;;  %v15039_v13 = vpop.permute.xlu0 %15038  ;;  %15025 = vmatprep.mubr.f32.mxu0 %v20995_v10 }
0x5125   :  { %v15048_v22 = vsel %vm1806_vm8, %v15039_v13, %v15041_v63  ;;  %v15049_v62 = vsel %vm1806_vm8, %v15045_v23, %v15039_v13  ;;  %v15046_v24 = vsel %vm1806_vm8, %v15043_v47, %v15045_v23 }
0x5126   :  { %v15050_v44 = vmul.f32 %v15048_v22, %v21036_v52  ;;  %v15053_v26 = vmul.f32 %v15049_v62, %v21037_v15  ;;  %v15052_v20 = vmul.f32 %v15046_v24, %v21038_v48 }
0x5128   :  { %15128 = vmatprep.subr.mxu0 %v15053_v26 }
0x5129   :  { %15731 = vmatmul.mubr.msk.f32.vlgmr.msra.gmra.mrb[60].mxu1 %vm120_vm0, %v15730_v16 }
0x512a   :  { %15058 = vmatpush1.msra.mxu1 %v15050_v44  ;;  %15732 = vmatmul.mubr.msk.f32.vlgmr.msra.gmra.mrb[60].mxu0 %vm120_vm0, %v15730_v16 }
0x512b   :  { %15129 = vmatpush1.msra.mxu0 %v15052_v20  ;;  %15121 = vmatprep.mubr.f32.mxu1 %v20995_v10 }
0x512c   :  { %15192 = vmatprep.mubr.f32.mxu0 %v20995_v10 }
0x5131   :  { %15734 = vmatmul.mubr.msk.f32.vlgmr.msra.gmra.mrb[60].mxu1 %vm120_vm0, %v15733_v35 }
0x5132   :  { %15735 = vmatmul.mubr.msk.f32.vlgmr.msra.gmra.mrb[60].mxu0 %vm120_vm0, %v15733_v35  ;;  %15322 = vmatprep.mubr.f32.mxu1 %v20995_v10 }
0x5133   :  { %15393 = vmatprep.mubr.f32.mxu0 %v20995_v10 }
0x5204   :  { %v15123_v11 = vpop.f32.mrb[60].mxu1 }
0x5205   :  { %v15209_v51 = vmul.f32 %v15123_v11, %v15123_v11  ;;  %v15125_v46 = vpop.f32.mrb[61].mxu1  ;;  %v15194_v25 = vpop.f32.mrb[60].mxu0 }
0x5206   :  { %v15203_v37 = vadd.f32 %v15125_v46, %v15123_v11  ;;  %v15210_v14 = vmul.f32 %v15125_v46, %v15125_v46  ;;  %v15196_v19 = vpop.f32.mrb[61].mxu0  ;;  %v15211_v2 = vmul.f32 %v15194_v25, %v15194_v25 }
0x5207   :  { %v15212_v59 = vmul.f32 %v15196_v19, %v15196_v19 }
0x5208   :  { %v15213_v33 = vadd.f32 %v15210_v14, %v15209_v51  ;;  %v15204_v49 = vadd.f32 %v15203_v37, %v15194_v25 }
0x520a   :  { %v15214_v28 = vadd.f32 %v15213_v33, %v15211_v2  ;;  %v15205_v18 = vadd.f32 %v15204_v49, %v15196_v19 }
0x520c   :  { %15206 = vadd.xlane.f32.xlu0 %v15205_v18  ;;  %v15215_v55 = vadd.f32 %v15214_v28, %v15212_v59 }
0x520e   :  { %15216 = vadd.xlane.f32.xlu1 %v15215_v55 }
0x5299   :  { %v15207_v31 = vpop.xlane.xlu0 %15206 }
0x529a   :  { %v15208_v53 = vmul.f32 0.001953125, %v15207_v31 }
0x529b   :  { %v15217_v30 = vpop.xlane.xlu1 %15216 }
0x529c   :  { %v15219_v10 = vmul.f32 %v15208_v53, %v15208_v53  ;;  %v15218_v58 = vmul.f32 0.001953125, %v15217_v30 }
0x529e   :  { %v15220_v40 = vsub.f32 %v15218_v58, %v15219_v10 }
0x52a0   :  { %v15221_v32 = vmax.f32 %v15220_v40, 0.0 }
0x52a2   :  { %v15222_v56 = vadd.f32 1e-05, %v15221_v32 }
0x52a4   :  { %17134 = vrsqrt.f32 %v15222_v56 }
0x52ae   :  { %v17135_v39 = vpop.eup %17134 }
0x52af   :  { %v15224_v0 = vmul.f32 %v17135_v39, %v20492_v41 }
0x52b1   :  { %15233 = vperm.xlu1 %17060, %v15224_v0   ;;  %v15225_v9 = vmul.f32 %v15224_v0, %v15208_v53 }
0x52b3   :  { %15227 = vrot.lane.b32.xlu0 %v15225_v9, %s17173_s25 }
0x5325   :  { %v15228_v60 = vpop.permute.xlu0 %15227 }
0x5326   :  { %v15230_v12 = vsub.f32 %v20492_v41, %v15228_v60 }
0x5328   :  { %15242 = vperm.xlu0 %17061, %v15230_v12  }
0x5330   :  { %v15234_v42 = vpop.permute.xlu1 %15233 }
0x5331   :  { %v15236_v57 = vmul.f32 %v15234_v42, %v15123_v11  ;;  %v15237_v6 = vmul.f32 %v15234_v42, %v15125_v46  ;;  %v15238_v8 = vmul.f32 %v15234_v42, %v15194_v25  ;;  %v15239_v17 = vmul.f32 %v15234_v42, %v15196_v19 }
0x53a7   :  { %v15243_v5 = vpop.permute.xlu0 %15242 }
0x53a8   :  { %v15245_v7 = vadd.f32 %v15243_v5, %v15236_v57  ;;  %v15246_v43 = vadd.f32 %v15243_v5, %v15237_v6  ;;  %v15247_v34 = vadd.f32 %v15243_v5, %v15238_v8  ;;  %v15248_v61 = vadd.f32 %v15243_v5, %v15239_v17 }
0x53aa   :  { %v15249_v3 = vmax.f32 %v15245_v7, 0.0  ;;  %v15251_v4 = vmax.f32 %v15247_v34, 0.0  ;;  %v15250_v47 = vmax.f32 %v15246_v43, 0.0  ;;  %v15252_v63 = vmax.f32 %v15248_v61, 0.0 }
0x53ac   :  { %15258 = vmatprep.subr.mxu1 %v15250_v47  ;;  %15329 = vmatprep.subr.mxu0 %v15252_v63 }
0x53ad   :  { %15259 = vmatpush1.msra.mxu1 %v15249_v3  ;;  %15330 = vmatpush1.msra.mxu0 %v15251_v4 }
0x53ae   :  { %15737 = vmatmul.mubr.msk.f32.vlgmr.msra.gmra.mrb[62].mxu1 %vm120_vm0, %v15736_v36  ;;  %15738 = vmatmul.mubr.msk.f32.vlgmr.msra.gmra.mrb[62].mxu0 %vm120_vm0, %v15736_v36 }
0x5481   :  { %v15324_v41 = vpop.f32.mrb[62].mxu1  ;;  %v15395_v54 = vpop.f32.mrb[62].mxu0 }
0x5482   :  { %v15325_v50 = vadd.f32 %v15324_v41, %v20466_v45  ;;  %v15396_v1 = vadd.f32 %v15395_v54, %v20478_v21  ;;  %v15326_v27 = vpop.f32.mrb[63].mxu1  ;;  %v15397_v23 = vpop.f32.mrb[63].mxu0 }
0x5483   :  { %v15327_v13 = vadd.f32 %v15326_v27, %v20469_v38  ;;  %v15398_v22 = vadd.f32 %v15397_v23, %v20481_v29 }
0x5484   :  { %15400 = vst [vmem:[%s20745_s15] sm:$0xff] %v15325_v50  ;;  %15402 = vst [vmem:[%s20745_s15 + $0x10] sm:$0xff] %v15396_v1 }
0x5485   :  { %15401 = vst [vmem:[%s20745_s15 + $0x8] sm:$0xff] %v15327_v13  ;;  %15403 = vst [vmem:[%s20745_s15 + $0x18] sm:$0xff] %v15398_v22 }
0x5486   :  { %15408 = vsyncpa [#allocation3], 1 }

</bundles_post_ra>
